<compile_context>
chip_gen: v7x
topology: tpu7x:2x2x1
jax: 0.10.0
libtpu: 0.0.40
codegen_flags: <defaults>
</compile_context>

<pallas_src>
import numpy as np
import jax
import jax.numpy as jnp
from jax.experimental import pallas as pl
from jax.experimental.pallas import tpu as pltpu

# ----------------------------- model dims -----------------------------------
B = 2                 # batch
S = 31                # sequence length (required so that S - 12 == 19)
E = 32                # embedding_dim
V = 11                # vocab_size
NUM_CLASSES = 2
C1, C2 = 128, 256     # conv channels
K = 7                 # conv kernel size
H = 64                # GRU hidden size
HP = 128              # hidden padded to a full lane tile (gate slices aligned)
G3 = 3 * HP           # fused gate width [r | z | n], each 128 lanes
L1 = S - (K - 1)      # 25 : length after conv1
L2 = L1 - (K - 1)     # 19 : length after conv2 (== 19 expected by fc)
BN_EPS = 1e-5

BG = 8                          # sequences per grid step (sublane padding)
NG = (B + BG - 1) // BG         # number of batch groups (grid size)


# ----------------------------- Pallas kernel --------------------------------
def cnn_bigru_kernel(xc1_ref,
                     w1_ref, s1_ref, t1_ref,
                     w2_ref, s2_ref, t2_ref,
                     wih_ref, bih_ref, whh_ref, bhn_ref,
                     wf1_ref, sf_ref, tf_ref,
                     wf2_ref, bf2_ref,
                     o_ref,
                     h1_ref, acc2_ref, xg_ref):
    """conv1 -> conv2 -> GRU (+folded fc1) -> fc2, one batch group per step.

    Row layout everywhere: row = t * BG + b  (time-major, batch padded to 8).
    """

    # ---- Conv1d(E -> 128, k=7) + BN(eval) + ReLU (Dropout = id) -------------
    # Input already im2col'ed in the wrapper: (L1*BG, K*E) bf16, lane-dense.
    a1 = jnp.dot(xc1_ref[...], w1_ref[...],
                 preferred_element_type=jnp.float32)                   # (L1*BG, C1)
    h1_ref[...] = jnp.maximum(a1 * s1_ref[...] + t1_ref[...], 0.0)

    # ---- Conv1d(128 -> 256, k=7): shifted-K accumulation ---------------------
    # Each k-slice h1[k*BG:(k+L2)*BG] is a tile-aligned sublane slice (offset k*8).
    acc2_ref[...] = jnp.dot(
        h1_ref[0:L2 * BG, :].astype(jnp.bfloat16), w2_ref[0],
        preferred_element_type=jnp.float32)                            # (L2*BG, C2)
    for k in range(1, K):
        acc2_ref[...] += jnp.dot(
            h1_ref[k * BG:(k + L2) * BG, :].astype(jnp.bfloat16), w2_ref[k],
            preferred_element_type=jnp.float32)
    h2 = jnp.maximum(acc2_ref[...] * s2_ref[...] + t2_ref[...], 0.0)   # (L2*BG, C2)

    # ---- GRU input projection: all gates & timesteps in one matmul ----------
    # Staged in VMEM so the recurrence only does aligned (8, 384) reads.
    xg_ref[...] = jnp.dot(h2.astype(jnp.bfloat16), wih_ref[...],
                          preferred_element_type=jnp.float32) + bih_ref[...]

    bhn = bhn_ref[...]                                                 # (1, HP)

    # ---- GRU recurrence; fc1 folded in as per-step MXU filler ---------------
    # TODO(synk): whh could be kept resident in MXU weight registers via
    # pltpu.matmul_push_rhs/matmul_acc_lhs; left to Mosaic's hoisting for now.
    def step(t, carry):
        h, acc = carry
        off = pl.multiple_of(t * BG, BG)
        xg_t = xg_ref[pl.ds(off, BG), :]                               # (BG, G3)
        hg = jnp.dot(h.astype(jnp.bfloat16), whh_ref[...],
                     preferred_element_type=jnp.float32)               # (BG, G3)
        r = jax.nn.sigmoid(xg_t[:, 0:HP] + hg[:, 0:HP])
        z = jax.nn.sigmoid(xg_t[:, HP:2 * HP] + hg[:, HP:2 * HP])
        n = jnp.tanh(xg_t[:, 2 * HP:3 * HP] + r * (hg[:, 2 * HP:3 * HP] + bhn))
        h_new = (1.0 - z) * n + z * h                                  # (BG, HP)
        # Flatten+Linear(19*64,64) partial product (independent of the h chain).
        acc_new = acc + jnp.dot(h_new.astype(jnp.bfloat16), wf1_ref[t],
                                preferred_element_type=jnp.float32)    # (BG, H)
        return h_new, acc_new

    h0 = jnp.zeros((BG, HP), jnp.float32)
    a0 = jnp.zeros((BG, H), jnp.float32)
    _, acc = jax.lax.fori_loop(0, L2, step, (h0, a0), unroll=True)

    # ---- fc: BN(eval) + ReLU + Linear(64 -> 2) -------------------------------
    f1 = jnp.maximum(acc * sf_ref[...] + tf_ref[...], 0.0)             # (BG, H)
    o_ref[...] = jnp.dot(f1.astype(jnp.bfloat16), wf2_ref[...],
                         preferred_element_type=jnp.float32) + bf2_ref[...]


def _resident(shape):
    """Full-array block with a constant index map (stays VMEM-resident)."""
    nd = len(shape)
    return pl.BlockSpec(shape, lambda i, _nd=nd: (0,) * _nd)


@jax.jit
def cnn_bigru_forward(xc1, *params):
    """xc1: (NG*L1*BG, K*E) bf16, time-major im2col of the embedded input."""
    in_specs = [pl.BlockSpec((L1 * BG, K * E), lambda i: (i, 0))]
    in_specs += [_resident(p.shape) for p in params]
    return pl.pallas_call(
        cnn_bigru_kernel,
        out_shape=jax.ShapeDtypeStruct((NG * BG, NUM_CLASSES), jnp.float32),
        grid_spec=pltpu.PrefetchScalarGridSpec(
            num_scalar_prefetch=0,
            grid=(NG,),
            in_specs=in_specs,
            out_specs=pl.BlockSpec((BG, NUM_CLASSES), lambda i: (i, 0)),
            scratch_shapes=[
                pltpu.VMEM((L1 * BG, C1), jnp.float32),    # h1 (post conv1)
                pltpu.VMEM((L2 * BG, C2), jnp.float32),    # conv2 accumulator
                pltpu.VMEM((L2 * BG, G3), jnp.float32),    # GRU input gates
            ],
        ),
        compiler_params=pltpu.CompilerParams(
            dimension_semantics=("parallel",)),
    )(xc1, *params)


# ----------------------------- glue (plain JAX) ------------------------------
def positional_encoding(seq_len, emb):
    pos = jnp.arange(seq_len, dtype=jnp.float32)[:, None]
    i_mat = jnp.power(10000.0, jnp.arange(0, emb, 2, dtype=jnp.float32) / emb)
    pe = jnp.zeros((seq_len, emb), jnp.float32)
    pe = pe.at[:, 0::2].set(jnp.sin(pos / i_mat))
    pe = pe.at[:, 1::2].set(jnp.cos(pos / i_mat))
    return pe


def build_conv1_input(x_emb):
    """(B, S, E) -> (NG*L1*BG, K*E) bf16: im2col + time-major + sublane pad.

    Pure layout plumbing on ~8 KB of data; done in XLA so the kernel receives a
    lane-dense slab and never assembles 32-lane pieces in-kernel.
    """
    xw = jnp.concatenate([x_emb[:, k:k + L1, :] for k in range(K)], axis=2)  # (B, L1, K*E)
    xw = jnp.pad(xw, ((0, NG * BG - B), (0, 0), (0, 0)))                     # (NG*BG, L1, K*E)
    xw = xw.reshape(NG, BG, L1, K * E).transpose(0, 2, 1, 3)                 # (NG, L1, BG, K*E)
    return xw.reshape(NG * L1 * BG, K * E).astype(jnp.bfloat16)


def init_params(key):
    """Deterministic synthetic parameters in PyTorch shapes."""
    keys = jax.random.split(key, 32)
    it = iter(range(32))

    def nrm(shape, scale=0.1):
        return scale * jax.random.normal(keys[next(it)], shape, dtype=jnp.float32)

    emb_table = nrm((V, E), 1.0)

    c1w = nrm((C1, E, K));    c1b = nrm((C1,))
    g1 = 1.0 + nrm((C1,));    be1 = nrm((C1,))
    m1 = nrm((C1,));          v1 = 1.0 + 0.5 * jax.nn.sigmoid(nrm((C1,), 1.0))

    c2w = nrm((C2, C1, K));   c2b = nrm((C2,))
    g2 = 1.0 + nrm((C2,));    be2 = nrm((C2,))
    m2 = nrm((C2,));          v2 = 1.0 + 0.5 * jax.nn.sigmoid(nrm((C2,), 1.0))

    w_ih = nrm((3 * H, C2));  w_hh = nrm((3 * H, H))
    b_ih = nrm((3 * H,));     b_hh = nrm((3 * H,))

    f1w = nrm((H, L2 * H));   f1b = nrm((H,))
    gf = 1.0 + nrm((H,));     bef = nrm((H,))
    mf = nrm((H,));           vf = 1.0 + 0.5 * jax.nn.sigmoid(nrm((H,), 1.0))

    f2w = nrm((NUM_CLASSES, H)); f2b = nrm((NUM_CLASSES,))

    raw = (c1w, c1b, g1, be1, m1, v1,
           c2w, c2b, g2, be2, m2, v2,
           w_ih, w_hh, b_ih, b_hh,
           f1w, f1b, gf, bef, mf, vf,
           f2w, f2b)
    return emb_table, raw


def make_kernel_params(raw):
    """Convert PyTorch-shaped params into the fused/padded layouts the kernel consumes."""
    (c1w, c1b, g1, be1, m1, v1,
     c2w, c2b, g2, be2, m2, v2,
     w_ih, w_hh, b_ih, b_hh,
     f1w, f1b, gf, bef, mf, vf,
     f2w, f2b) = raw

    def bn_fold(lin_bias, g, b, m, v):
        s = g / jnp.sqrt(v + BN_EPS)          # scale
        return s, (lin_bias - m) * s + b      # (scale, bias-folded shift)

    s1, sh1 = bn_fold(c1b, g1, be1, m1, v1)
    s2, sh2 = bn_fold(c2b, g2, be2, m2, v2)
    sf, shf = bn_fold(f1b, gf, bef, mf, vf)

    # Conv1 weight (Cout, Cin, K) -> im2col matrix (K*Cin, Cout); row = k*Cin + ci.
    w1 = jnp.transpose(c1w, (2, 1, 0)).reshape(K * E, C1).astype(jnp.bfloat16)
    # Conv2 weight per-k slices (K, C1, C2) for shifted-K accumulation.
    w2 = jnp.transpose(c2w, (2, 1, 0)).astype(jnp.bfloat16)

    # Fused GRU gates [r | z | n], each padded from 64 to 128 lanes (zeros),
    # so in-kernel gate slices land on whole-tile lane offsets 0/128/256.
    def pad_gate_cols(w):                       # (in, 3H) -> (in, G3)
        parts = [jnp.pad(w[:, g_ * H:(g_ + 1) * H], ((0, 0), (0, HP - H)))
                 for g_ in range(3)]
        return jnp.concatenate(parts, axis=1)

    def pad_gate_vec(v3h):                      # (3H,) -> (1, G3)
        parts = [jnp.pad(v3h[g_ * H:(g_ + 1) * H], (0, HP - H)) for g_ in range(3)]
        return jnp.concatenate(parts).reshape(1, G3)

    wih = pad_gate_cols(w_ih.T).astype(jnp.bfloat16)                    # (C2, G3)
    whh = jnp.pad(pad_gate_cols(w_hh.T), ((0, HP - H), (0, 0))).astype(jnp.bfloat16)  # (HP, G3)
    bih = pad_gate_vec(jnp.concatenate([b_ih[0:2 * H] + b_hh[0:2 * H],
                                        b_ih[2 * H:3 * H]]))            # (1, G3)
    bhn = jnp.pad(b_hh[2 * H:3 * H], (0, HP - H)).reshape(1, HP)        # (1, HP)

    # fc1 folded into the recurrence: wf1[t, i, o] = f1w[o, t*H + i], rows padded to HP.
    wf1 = f1w.T.reshape(L2, H, H)
    wf1 = jnp.pad(wf1, ((0, 0), (0, HP - H), (0, 0))).astype(jnp.bfloat16)  # (L2, HP, H)

    wf2 = f2w.T.astype(jnp.bfloat16)
    bf2 = f2b.reshape(1, NUM_CLASSES)

    return (w1, s1.reshape(1, C1), sh1.reshape(1, C1),
            w2, s2.reshape(1, C2), sh2.reshape(1, C2),
            wih, bih, whh, bhn,
            wf1, sf.reshape(1, H), shf.reshape(1, H),
            wf2, bf2)


def reference_forward(x_emb, raw):
    """Plain-JAX f32 reference mirroring the PyTorch eval-mode forward."""
    (c1w, c1b, g1, be1, m1, v1,
     c2w, c2b, g2, be2, m2, v2,
     w_ih, w_hh, b_ih, b_hh,
     f1w, f1b, gf, bef, mf, vf,
     f2w, f2b) = raw

    w1t = jnp.transpose(c1w, (2, 1, 0))        # (K, E, C1)
    w2t = jnp.transpose(c2w, (2, 1, 0))        # (K, C1, C2)

    def bn(y, g, b, m, v):
        return (y - m) / jnp.sqrt(v + BN_EPS) * g + b

    def one(x):                                # x: (S, E)
        a1 = sum(x[k:k + L1] @ w1t[k] for k in range(K)) + c1b
        h1 = jax.nn.relu(bn(a1, g1, be1, m1, v1))
        a2 = sum(h1[k:k + L2] @ w2t[k] for k in range(K)) + c2b
        h2 = jax.nn.relu(bn(a2, g2, be2, m2, v2))

        h = jnp.zeros((H,), jnp.float32)
        outs = []
        for t in range(L2):
            gi = w_ih @ h2[t] + b_ih           # (3H,)
            gh = w_hh @ h + b_hh               # (3H,)
            r = jax.nn.sigmoid(gi[0:H] + gh[0:H])
            z = jax.nn.sigmoid(gi[H:2 * H] + gh[H:2 * H])
            n = jnp.tanh(gi[2 * H:] + r * gh[2 * H:])
            h = (1.0 - z) * n + z * h
            outs.append(h)
        flat = jnp.concatenate(outs)           # (L2*H,)
        y = jax.nn.relu(bn(f1w @ flat + f1b, gf, bef, mf, vf))
        return f2w @ y + f2b

    return jax.vmap(one)(x_emb)


def model_forward(tokens, emb_table, kparams):
    """Full CNN_BiGRU_Model.forward: returns (x, out) like the PyTorch module."""
    pe = positional_encoding(S, E)
    x_emb = (emb_table[tokens] + pe[None, :, :]).astype(jnp.float32)
    # TODO(synk): embedding lookup + PE could be fused into the kernel via scalar
    # prefetch of the token ids; kept in the wrapper for simplicity.
    xc1 = build_conv1_input(x_emb)
    out_padded = cnn_bigru_forward(xc1, *kparams)
    return tokens, out_padded[:B], x_emb


# NOTE: the Self_Attention submodule is constructed in __init__ but never used
# in forward(), so it is intentionally not implemented.
# TODO(synk): Dropout layers are identity here (eval/inference semantics); no
# stochastic dropout mask is generated inside the kernel.

if __name__ == "__main__":
    key = jax.random.PRNGKey(0)
    k_tok, k_par = jax.random.split(key)
    tokens = jax.random.randint(k_tok, (B, S), 0, V, dtype=jnp.int32)
    emb_table, raw = init_params(k_par)
    kparams = make_kernel_params(raw)

    _, out, x_emb = model_forward(tokens, emb_table, kparams)
    out = jax.block_until_ready(out)

    assert out.shape == (B, NUM_CLASSES), out.shape
    ref = np.asarray(reference_forward(x_emb, raw))
    got = np.asarray(out)
    if not np.allclose(got, ref, atol=2e-2, rtol=2e-2):
        raise AssertionError(
            f"Pallas output mismatch (max abs diff {np.abs(got - ref).max()}):\n"
            f"{got}\nvs ref\n{ref}")
    print("KERNEL_OK")
</pallas_src>

<mosaic_0001>
module attributes {stable_mosaic.version = 11 : i64} {
  func.func @cnn_bigru_kernel(%arg0: i32, %arg1: memref<200x224xbf16, #tpu.memory_space<vmem>>, %arg2: memref<224x128xbf16, #tpu.memory_space<vmem>>, %arg3: memref<1x128xf32, #tpu.memory_space<vmem>>, %arg4: memref<1x128xf32, #tpu.memory_space<vmem>>, %arg5: memref<7x128x256xbf16, #tpu.memory_space<vmem>>, %arg6: memref<1x256xf32, #tpu.memory_space<vmem>>, %arg7: memref<1x256xf32, #tpu.memory_space<vmem>>, %arg8: memref<256x384xbf16, #tpu.memory_space<vmem>>, %arg9: memref<1x384xf32, #tpu.memory_space<vmem>>, %arg10: memref<128x384xbf16, #tpu.memory_space<vmem>>, %arg11: memref<1x128xf32, #tpu.memory_space<vmem>>, %arg12: memref<19x128x64xbf16, #tpu.memory_space<vmem>>, %arg13: memref<1x64xf32, #tpu.memory_space<vmem>>, %arg14: memref<1x64xf32, #tpu.memory_space<vmem>>, %arg15: memref<64x2xbf16, #tpu.memory_space<vmem>>, %arg16: memref<1x2xf32, #tpu.memory_space<vmem>>, %arg17: memref<8x2xf32, #tpu.memory_space<vmem>>, %arg18: memref<200x128xf32, #tpu.memory_space<vmem>>, %arg19: memref<152x256xf32, #tpu.memory_space<vmem>>, %arg20: memref<152x384xf32, #tpu.memory_space<vmem>>) attributes {dimension_semantics = [#tpu.dimension_semantics<parallel>], iteration_bounds = array<i64: 1>, scalar_prefetch = 0 : i64, scratch_operands = 3 : i64, tpu.core_type = #tpu.core_type<tc>, window_params = [{transform_indices = @transform_0, window_bounds = array<i64: 200, 224>}, {pipeline_mode = #tpu.pipeline_mode<synchronous>, transform_indices = @transform_1, window_bounds = array<i64: 224, 128>}, {pipeline_mode = #tpu.pipeline_mode<synchronous>, transform_indices = @transform_2, window_bounds = array<i64: 1, 128>}, {pipeline_mode = #tpu.pipeline_mode<synchronous>, transform_indices = @transform_3, window_bounds = array<i64: 1, 128>}, {pipeline_mode = #tpu.pipeline_mode<synchronous>, transform_indices = @transform_4, window_bounds = array<i64: 7, 128, 256>}, {pipeline_mode = #tpu.pipeline_mode<synchronous>, transform_indices = @transform_5, window_bounds = array<i64: 1, 256>}, {pipeline_mode = #tpu.pipeline_mode<synchronous>, transform_indices = @transform_6, window_bounds = array<i64: 1, 256>}, {pipeline_mode = #tpu.pipeline_mode<synchronous>, transform_indices = @transform_7, window_bounds = array<i64: 256, 384>}, {pipeline_mode = #tpu.pipeline_mode<synchronous>, transform_indices = @transform_8, window_bounds = array<i64: 1, 384>}, {pipeline_mode = #tpu.pipeline_mode<synchronous>, transform_indices = @transform_9, window_bounds = array<i64: 128, 384>}, {pipeline_mode = #tpu.pipeline_mode<synchronous>, transform_indices = @transform_10, window_bounds = array<i64: 1, 128>}, {pipeline_mode = #tpu.pipeline_mode<synchronous>, transform_indices = @transform_11, window_bounds = array<i64: 19, 128, 64>}, {pipeline_mode = #tpu.pipeline_mode<synchronous>, transform_indices = @transform_12, window_bounds = array<i64: 1, 64>}, {pipeline_mode = #tpu.pipeline_mode<synchronous>, transform_indices = @transform_13, window_bounds = array<i64: 1, 64>}, {pipeline_mode = #tpu.pipeline_mode<synchronous>, transform_indices = @transform_14, window_bounds = array<i64: 64, 2>}, {pipeline_mode = #tpu.pipeline_mode<synchronous>, transform_indices = @transform_15, window_bounds = array<i64: 1, 2>}, {transform_indices = @transform_16, window_bounds = array<i64: 8, 2>}]} {
    %c0 = arith.constant 0 : index
    %c0_0 = arith.constant 0 : index
    %0 = vector.load %arg1[%c0, %c0_0] : memref<200x224xbf16, #tpu.memory_space<vmem>>, vector<200x224xbf16>
    %c0_1 = arith.constant 0 : index
    %c0_2 = arith.constant 0 : index
    %1 = vector.load %arg2[%c0_1, %c0_2] : memref<224x128xbf16, #tpu.memory_space<vmem>>, vector<224x128xbf16>
    %cst = arith.constant dense<0.000000e+00> : vector<200x128xf32>
    %2 = tpu.matmul %0, %1, %cst {dimension_numbers = #tpu.dot_dimension_numbers<[1], [0], [0], [1], [0, 0, 1, 1], [], []>} : vector<200x224xbf16>, vector<224x128xbf16>, vector<200x128xf32> -> vector<200x128xf32>
    %c0_3 = arith.constant 0 : index
    %c0_4 = arith.constant 0 : index
    %3 = vector.load %arg3[%c0_3, %c0_4] : memref<1x128xf32, #tpu.memory_space<vmem>>, vector<1x128xf32>
    %4 = vector.broadcast %3 : vector<1x128xf32> to vector<200x128xf32>
    %5 = arith.mulf %2, %4 : vector<200x128xf32>
    %c0_5 = arith.constant 0 : index
    %c0_6 = arith.constant 0 : index
    %6 = vector.load %arg4[%c0_5, %c0_6] : memref<1x128xf32, #tpu.memory_space<vmem>>, vector<1x128xf32>
    %7 = vector.broadcast %6 : vector<1x128xf32> to vector<200x128xf32>
    %8 = arith.addf %5, %7 : vector<200x128xf32>
    %cst_7 = arith.constant 0.000000e+00 : f32
    %9 = vector.broadcast %cst_7 : f32 to vector<200x128xf32>
    %10 = arith.maximumf %8, %9 : vector<200x128xf32>
    %c0_8 = arith.constant 0 : index
    %c0_9 = arith.constant 0 : index
    %11 = vector.load %arg18[%c0_8, %c0_9] : memref<200x128xf32, #tpu.memory_space<vmem>>, vector<200x128xf32>
    tpu.vector_store %arg18[%c0_8, %c0_9], %10 {strides = array<i32>} : memref<200x128xf32, #tpu.memory_space<vmem>>, vector<200x128xf32>,
    %c0_10 = arith.constant 0 : index
    %c0_11 = arith.constant 0 : index
    %12 = vector.load %arg18[%c0_10, %c0_11] : memref<200x128xf32, #tpu.memory_space<vmem>>, vector<152x128xf32>
    %13 = arith.truncf %12 : vector<152x128xf32> to vector<152x128xbf16>
    %c0_12 = arith.constant 0 : index
    %c0_13 = arith.constant 0 : index
    %c0_14 = arith.constant 0 : index
    %14 = vector.load %arg5[%c0_12, %c0_13, %c0_14] : memref<7x128x256xbf16, #tpu.memory_space<vmem>>, vector<1x128x256xbf16>
    %15 = vector.shape_cast %14 : vector<1x128x256xbf16> to vector<128x256xbf16>
    %cst_15 = arith.constant dense<0.000000e+00> : vector<152x256xf32>
    %16 = tpu.matmul %13, %15, %cst_15 {dimension_numbers = #tpu.dot_dimension_numbers<[1], [0], [0], [1], [0, 0, 1, 1], [], []>} : vector<152x128xbf16>, vector<128x256xbf16>, vector<152x256xf32> -> vector<152x256xf32>
    %c0_16 = arith.constant 0 : index
    %c0_17 = arith.constant 0 : index
    %17 = vector.load %arg19[%c0_16, %c0_17] : memref<152x256xf32, #tpu.memory_space<vmem>>, vector<152x256xf32>
    tpu.vector_store %arg19[%c0_16, %c0_17], %16 {strides = array<i32>} : memref<152x256xf32, #tpu.memory_space<vmem>>, vector<152x256xf32>,
    %c0_18 = arith.constant 0 : index
    %c0_19 = arith.constant 0 : index
    %18 = vector.load %arg19[%c0_18, %c0_19] : memref<152x256xf32, #tpu.memory_space<vmem>>, vector<152x256xf32>
    %c8 = arith.constant 8 : index
    %c0_20 = arith.constant 0 : index
    %19 = vector.load %arg18[%c8, %c0_20] : memref<200x128xf32, #tpu.memory_space<vmem>>, vector<152x128xf32>
    %20 = arith.truncf %19 : vector<152x128xf32> to vector<152x128xbf16>
    %c1 = arith.constant 1 : index
    %c0_21 = arith.constant 0 : index
    %c0_22 = arith.constant 0 : index
    %21 = vector.load %arg5[%c1, %c0_21, %c0_22] : memref<7x128x256xbf16, #tpu.memory_space<vmem>>, vector<1x128x256xbf16>
    %22 = vector.shape_cast %21 : vector<1x128x256xbf16> to vector<128x256xbf16>
    %cst_23 = arith.constant dense<0.000000e+00> : vector<152x256xf32>
    %23 = tpu.matmul %20, %22, %cst_23 {dimension_numbers = #tpu.dot_dimension_numbers<[1], [0], [0], [1], [0, 0, 1, 1], [], []>} : vector<152x128xbf16>, vector<128x256xbf16>, vector<152x256xf32> -> vector<152x256xf32>
    %24 = arith.addf %18, %23 : vector<152x256xf32>
    %c0_24 = arith.constant 0 : index
    %c0_25 = arith.constant 0 : index
    %25 = vector.load %arg19[%c0_24, %c0_25] : memref<152x256xf32, #tpu.memory_space<vmem>>, vector<152x256xf32>
    tpu.vector_store %arg19[%c0_24, %c0_25], %24 {strides = array<i32>} : memref<152x256xf32, #tpu.memory_space<vmem>>, vector<152x256xf32>,
    %c0_26 = arith.constant 0 : index
    %c0_27 = arith.constant 0 : index
    %26 = vector.load %arg19[%c0_26, %c0_27] : memref<152x256xf32, #tpu.memory_space<vmem>>, vector<152x256xf32>
    %c16 = arith.constant 16 : index
    %c0_28 = arith.constant 0 : index
    %27 = vector.load %arg18[%c16, %c0_28] : memref<200x128xf32, #tpu.memory_space<vmem>>, vector<152x128xf32>
    %28 = arith.truncf %27 : vector<152x128xf32> to vector<152x128xbf16>
    %c2 = arith.constant 2 : index
    %c0_29 = arith.constant 0 : index
    %c0_30 = arith.constant 0 : index
    %29 = vector.load %arg5[%c2, %c0_29, %c0_30] : memref<7x128x256xbf16, #tpu.memory_space<vmem>>, vector<1x128x256xbf16>
    %30 = vector.shape_cast %29 : vector<1x128x256xbf16> to vector<128x256xbf16>
    %cst_31 = arith.constant dense<0.000000e+00> : vector<152x256xf32>
    %31 = tpu.matmul %28, %30, %cst_31 {dimension_numbers = #tpu.dot_dimension_numbers<[1], [0], [0], [1], [0, 0, 1, 1], [], []>} : vector<152x128xbf16>, vector<128x256xbf16>, vector<152x256xf32> -> vector<152x256xf32>
    %32 = arith.addf %26, %31 : vector<152x256xf32>
    %c0_32 = arith.constant 0 : index
    %c0_33 = arith.constant 0 : index
    %33 = vector.load %arg19[%c0_32, %c0_33] : memref<152x256xf32, #tpu.memory_space<vmem>>, vector<152x256xf32>
    tpu.vector_store %arg19[%c0_32, %c0_33], %32 {strides = array<i32>} : memref<152x256xf32, #tpu.memory_space<vmem>>, vector<152x256xf32>,
    %c0_34 = arith.constant 0 : index
    %c0_35 = arith.constant 0 : index
    %34 = vector.load %arg19[%c0_34, %c0_35] : memref<152x256xf32, #tpu.memory_space<vmem>>, vector<152x256xf32>
    %c24 = arith.constant 24 : index
    %c0_36 = arith.constant 0 : index
    %35 = vector.load %arg18[%c24, %c0_36] : memref<200x128xf32, #tpu.memory_space<vmem>>, vector<152x128xf32>
    %36 = arith.truncf %35 : vector<152x128xf32> to vector<152x128xbf16>
    %c3 = arith.constant 3 : index
    %c0_37 = arith.constant 0 : index
    %c0_38 = arith.constant 0 : index
    %37 = vector.load %arg5[%c3, %c0_37, %c0_38] : memref<7x128x256xbf16, #tpu.memory_space<vmem>>, vector<1x128x256xbf16>
    %38 = vector.shape_cast %37 : vector<1x128x256xbf16> to vector<128x256xbf16>
    %cst_39 = arith.constant dense<0.000000e+00> : vector<152x256xf32>
    %39 = tpu.matmul %36, %38, %cst_39 {dimension_numbers = #tpu.dot_dimension_numbers<[1], [0], [0], [1], [0, 0, 1, 1], [], []>} : vector<152x128xbf16>, vector<128x256xbf16>, vector<152x256xf32> -> vector<152x256xf32>
    %40 = arith.addf %34, %39 : vector<152x256xf32>
    %c0_40 = arith.constant 0 : index
    %c0_41 = arith.constant 0 : index
    %41 = vector.load %arg19[%c0_40, %c0_41] : memref<152x256xf32, #tpu.memory_space<vmem>>, vector<152x256xf32>
    tpu.vector_store %arg19[%c0_40, %c0_41], %40 {strides = array<i32>} : memref<152x256xf32, #tpu.memory_space<vmem>>, vector<152x256xf32>,
    %c0_42 = arith.constant 0 : index
    %c0_43 = arith.constant 0 : index
    %42 = vector.load %arg19[%c0_42, %c0_43] : memref<152x256xf32, #tpu.memory_space<vmem>>, vector<152x256xf32>
    %c32 = arith.constant 32 : index
    %c0_44 = arith.constant 0 : index
    %43 = vector.load %arg18[%c32, %c0_44] : memref<200x128xf32, #tpu.memory_space<vmem>>, vector<152x128xf32>
    %44 = arith.truncf %43 : vector<152x128xf32> to vector<152x128xbf16>
    %c4 = arith.constant 4 : index
    %c0_45 = arith.constant 0 : index
    %c0_46 = arith.constant 0 : index
    %45 = vector.load %arg5[%c4, %c0_45, %c0_46] : memref<7x128x256xbf16, #tpu.memory_space<vmem>>, vector<1x128x256xbf16>
    %46 = vector.shape_cast %45 : vector<1x128x256xbf16> to vector<128x256xbf16>
    %cst_47 = arith.constant dense<0.000000e+00> : vector<152x256xf32>
    %47 = tpu.matmul %44, %46, %cst_47 {dimension_numbers = #tpu.dot_dimension_numbers<[1], [0], [0], [1], [0, 0, 1, 1], [], []>} : vector<152x128xbf16>, vector<128x256xbf16>, vector<152x256xf32> -> vector<152x256xf32>
    %48 = arith.addf %42, %47 : vector<152x256xf32>
    %c0_48 = arith.constant 0 : index
    %c0_49 = arith.constant 0 : index
    %49 = vector.load %arg19[%c0_48, %c0_49] : memref<152x256xf32, #tpu.memory_space<vmem>>, vector<152x256xf32>
    tpu.vector_store %arg19[%c0_48, %c0_49], %48 {strides = array<i32>} : memref<152x256xf32, #tpu.memory_space<vmem>>, vector<152x256xf32>,
    %c0_50 = arith.constant 0 : index
    %c0_51 = arith.constant 0 : index
    %50 = vector.load %arg19[%c0_50, %c0_51] : memref<152x256xf32, #tpu.memory_space<vmem>>, vector<152x256xf32>
    %c40 = arith.constant 40 : index
    %c0_52 = arith.constant 0 : index
    %51 = vector.load %arg18[%c40, %c0_52] : memref<200x128xf32, #tpu.memory_space<vmem>>, vector<152x128xf32>
    %52 = arith.truncf %51 : vector<152x128xf32> to vector<152x128xbf16>
    %c5 = arith.constant 5 : index
    %c0_53 = arith.constant 0 : index
    %c0_54 = arith.constant 0 : index
    %53 = vector.load %arg5[%c5, %c0_53, %c0_54] : memref<7x128x256xbf16, #tpu.memory_space<vmem>>, vector<1x128x256xbf16>
    %54 = vector.shape_cast %53 : vector<1x128x256xbf16> to vector<128x256xbf16>
    %cst_55 = arith.constant dense<0.000000e+00> : vector<152x256xf32>
    %55 = tpu.matmul %52, %54, %cst_55 {dimension_numbers = #tpu.dot_dimension_numbers<[1], [0], [0], [1], [0, 0, 1, 1], [], []>} : vector<152x128xbf16>, vector<128x256xbf16>, vector<152x256xf32> -> vector<152x256xf32>
    %56 = arith.addf %50, %55 : vector<152x256xf32>
    %c0_56 = arith.constant 0 : index
    %c0_57 = arith.constant 0 : index
    %57 = vector.load %arg19[%c0_56, %c0_57] : memref<152x256xf32, #tpu.memory_space<vmem>>, vector<152x256xf32>
    tpu.vector_store %arg19[%c0_56, %c0_57], %56 {strides = array<i32>} : memref<152x256xf32, #tpu.memory_space<vmem>>, vector<152x256xf32>,
    %c0_58 = arith.constant 0 : index
    %c0_59 = arith.constant 0 : index
    %58 = vector.load %arg19[%c0_58, %c0_59] : memref<152x256xf32, #tpu.memory_space<vmem>>, vector<152x256xf32>
    %c48 = arith.constant 48 : index
    %c0_60 = arith.constant 0 : index
    %59 = vector.load %arg18[%c48, %c0_60] : memref<200x128xf32, #tpu.memory_space<vmem>>, vector<152x128xf32>
    %60 = arith.truncf %59 : vector<152x128xf32> to vector<152x128xbf16>
    %c6 = arith.constant 6 : index
    %c0_61 = arith.constant 0 : index
    %c0_62 = arith.constant 0 : index
    %61 = vector.load %arg5[%c6, %c0_61, %c0_62] : memref<7x128x256xbf16, #tpu.memory_space<vmem>>, vector<1x128x256xbf16>
    %62 = vector.shape_cast %61 : vector<1x128x256xbf16> to vector<128x256xbf16>
    %cst_63 = arith.constant dense<0.000000e+00> : vector<152x256xf32>
    %63 = tpu.matmul %60, %62, %cst_63 {dimension_numbers = #tpu.dot_dimension_numbers<[1], [0], [0], [1], [0, 0, 1, 1], [], []>} : vector<152x128xbf16>, vector<128x256xbf16>, vector<152x256xf32> -> vector<152x256xf32>
    %64 = arith.addf %58, %63 : vector<152x256xf32>
    %c0_64 = arith.constant 0 : index
    %c0_65 = arith.constant 0 : index
    %65 = vector.load %arg19[%c0_64, %c0_65] : memref<152x256xf32, #tpu.memory_space<vmem>>, vector<152x256xf32>
    tpu.vector_store %arg19[%c0_64, %c0_65], %64 {strides = array<i32>} : memref<152x256xf32, #tpu.memory_space<vmem>>, vector<152x256xf32>,
    %c0_66 = arith.constant 0 : index
    %c0_67 = arith.constant 0 : index
    %66 = vector.load %arg19[%c0_66, %c0_67] : memref<152x256xf32, #tpu.memory_space<vmem>>, vector<152x256xf32>
    %c0_68 = arith.constant 0 : index
    %c0_69 = arith.constant 0 : index
    %67 = vector.load %arg6[%c0_68, %c0_69] : memref<1x256xf32, #tpu.memory_space<vmem>>, vector<1x256xf32>
    %68 = vector.broadcast %67 : vector<1x256xf32> to vector<152x256xf32>
    %69 = arith.mulf %66, %68 : vector<152x256xf32>
    %c0_70 = arith.constant 0 : index
    %c0_71 = arith.constant 0 : index
    %70 = vector.load %arg7[%c0_70, %c0_71] : memref<1x256xf32, #tpu.memory_space<vmem>>, vector<1x256xf32>
    %71 = vector.broadcast %70 : vector<1x256xf32> to vector<152x256xf32>
    %72 = arith.addf %69, %71 : vector<152x256xf32>
    %cst_72 = arith.constant 0.000000e+00 : f32
    %73 = vector.broadcast %cst_72 : f32 to vector<152x256xf32>
    %74 = arith.maximumf %72, %73 : vector<152x256xf32>
    %75 = arith.truncf %74 : vector<152x256xf32> to vector<152x256xbf16>
    %c0_73 = arith.constant 0 : index
    %c0_74 = arith.constant 0 : index
    %76 = vector.load %arg8[%c0_73, %c0_74] : memref<256x384xbf16, #tpu.memory_space<vmem>>, vector<256x384xbf16>
    %cst_75 = arith.constant dense<0.000000e+00> : vector<152x384xf32>
    %77 = tpu.matmul %75, %76, %cst_75 {dimension_numbers = #tpu.dot_dimension_numbers<[1], [0], [0], [1], [0, 0, 1, 1], [], []>} : vector<152x256xbf16>, vector<256x384xbf16>, vector<152x384xf32> -> vector<152x384xf32>
    %c0_76 = arith.constant 0 : index
    %c0_77 = arith.constant 0 : index
    %78 = vector.load %arg9[%c0_76, %c0_77] : memref<1x384xf32, #tpu.memory_space<vmem>>, vector<1x384xf32>
    %79 = vector.broadcast %78 : vector<1x384xf32> to vector<152x384xf32>
    %80 = arith.addf %77, %79 : vector<152x384xf32>
    %c0_78 = arith.constant 0 : index
    %c0_79 = arith.constant 0 : index
    %81 = vector.load %arg20[%c0_78, %c0_79] : memref<152x384xf32, #tpu.memory_space<vmem>>, vector<152x384xf32>
    tpu.vector_store %arg20[%c0_78, %c0_79], %80 {strides = array<i32>} : memref<152x384xf32, #tpu.memory_space<vmem>>, vector<152x384xf32>,
    %c0_80 = arith.constant 0 : index
    %c0_81 = arith.constant 0 : index
    %82 = vector.load %arg11[%c0_80, %c0_81] : memref<1x128xf32, #tpu.memory_space<vmem>>, vector<1x128xf32>
    %cst_82 = arith.constant 0.000000e+00 : f32
    %83 = vector.broadcast %cst_82 : f32 to vector<8x128xf32>
    %cst_83 = arith.constant 0.000000e+00 : f32
    %84 = vector.broadcast %cst_83 : f32 to vector<8x64xf32>
    %c0_i32 = arith.constant 0 : i32
    %c8_i32 = arith.constant 8 : i32
    %85 = arith.muli %c0_i32, %c8_i32 : i32
    %86 = tpu.assume_multiple %85, 8 : i32
    %87 = arith.index_cast %86 : i32 to index
    %c0_84 = arith.constant 0 : index
    %88 = vector.load %arg20[%87, %c0_84] : memref<152x384xf32, #tpu.memory_space<vmem>>, vector<8x384xf32>
    %89 = arith.truncf %83 : vector<8x128xf32> to vector<8x128xbf16>
    %c0_85 = arith.constant 0 : index
    %c0_86 = arith.constant 0 : index
    %90 = vector.load %arg10[%c0_85, %c0_86] : memref<128x384xbf16, #tpu.memory_space<vmem>>, vector<128x384xbf16>
    %cst_87 = arith.constant dense<0.000000e+00> : vector<8x384xf32>
    %91 = tpu.matmul %89, %90, %cst_87 {dimension_numbers = #tpu.dot_dimension_numbers<[1], [0], [0], [1], [0, 0, 1, 1], [], []>} : vector<8x128xbf16>, vector<128x384xbf16>, vector<8x384xf32> -> vector<8x384xf32>
    %92 = vector.extract_strided_slice %88 {offsets = [0, 0], sizes = [8, 128], strides = [1, 1]} : vector<8x384xf32> to vector<8x128xf32>
    %93 = vector.extract_strided_slice %91 {offsets = [0, 0], sizes = [8, 128], strides = [1, 1]} : vector<8x384xf32> to vector<8x128xf32>
    %94 = arith.addf %92, %93 : vector<8x128xf32>
    %95 = arith.negf %94 : vector<8x128xf32>
    %96 = math.exp %95 : vector<8x128xf32>
    %cst_88 = arith.constant 1.000000e+00 : f32
    %97 = vector.broadcast %cst_88 : f32 to vector<8x128xf32>
    %98 = arith.addf %97, %96 : vector<8x128xf32>
    %99 = arith.divf %97, %98 : vector<8x128xf32>
    %100 = vector.extract_strided_slice %88 {offsets = [0, 128], sizes = [8, 128], strides = [1, 1]} : vector<8x384xf32> to vector<8x128xf32>
    %101 = vector.extract_strided_slice %91 {offsets = [0, 128], sizes = [8, 128], strides = [1, 1]} : vector<8x384xf32> to vector<8x128xf32>
    %102 = arith.addf %100, %101 : vector<8x128xf32>
    %103 = arith.negf %102 : vector<8x128xf32>
    %104 = math.exp %103 : vector<8x128xf32>
    %cst_89 = arith.constant 1.000000e+00 : f32
    %105 = vector.broadcast %cst_89 : f32 to vector<8x128xf32>
    %106 = arith.addf %105, %104 : vector<8x128xf32>
    %107 = arith.divf %105, %106 : vector<8x128xf32>
    %108 = vector.extract_strided_slice %88 {offsets = [0, 256], sizes = [8, 128], strides = [1, 1]} : vector<8x384xf32> to vector<8x128xf32>
    %109 = vector.extract_strided_slice %91 {offsets = [0, 256], sizes = [8, 128], strides = [1, 1]} : vector<8x384xf32> to vector<8x128xf32>
    %110 = vector.broadcast %82 : vector<1x128xf32> to vector<8x128xf32>
    %111 = arith.addf %109, %110 : vector<8x128xf32>
    %112 = arith.mulf %99, %111 : vector<8x128xf32>
    %113 = arith.addf %108, %112 : vector<8x128xf32>
    %114 = math.tanh %113 : vector<8x128xf32>
    %cst_90 = arith.constant 1.000000e+00 : f32
    %115 = vector.broadcast %cst_90 : f32 to vector<8x128xf32>
    %116 = arith.subf %115, %107 : vector<8x128xf32>
    %117 = arith.mulf %116, %114 : vector<8x128xf32>
    %118 = arith.mulf %107, %83 : vector<8x128xf32>
    %119 = arith.addf %117, %118 : vector<8x128xf32>
    %120 = arith.truncf %119 : vector<8x128xf32> to vector<8x128xbf16>
    %121 = arith.index_cast %c0_i32 : i32 to index
    %c0_91 = arith.constant 0 : index
    %c0_92 = arith.constant 0 : index
    %122 = vector.load %arg12[%121, %c0_91, %c0_92] : memref<19x128x64xbf16, #tpu.memory_space<vmem>>, vector<1x128x64xbf16>
    %123 = vector.shape_cast %122 : vector<1x128x64xbf16> to vector<128x64xbf16>
    %cst_93 = arith.constant dense<0.000000e+00> : vector<8x64xf32>
    %124 = tpu.matmul %120, %123, %cst_93 {dimension_numbers = #tpu.dot_dimension_numbers<[1], [0], [0], [1], [0, 0, 1, 1], [], []>} : vector<8x128xbf16>, vector<128x64xbf16>, vector<8x64xf32> -> vector<8x64xf32>
    %125 = arith.addf %84, %124 : vector<8x64xf32>
    %c1_i32 = arith.constant 1 : i32
    %c8_i32_94 = arith.constant 8 : i32
    %126 = arith.muli %c1_i32, %c8_i32_94 : i32
    %127 = tpu.assume_multiple %126, 8 : i32
    %128 = arith.index_cast %127 : i32 to index
    %c0_95 = arith.constant 0 : index
    %129 = vector.load %arg20[%128, %c0_95] : memref<152x384xf32, #tpu.memory_space<vmem>>, vector<8x384xf32>
    %130 = arith.truncf %119 : vector<8x128xf32> to vector<8x128xbf16>
    %c0_96 = arith.constant 0 : index
    %c0_97 = arith.constant 0 : index
    %131 = vector.load %arg10[%c0_96, %c0_97] : memref<128x384xbf16, #tpu.memory_space<vmem>>, vector<128x384xbf16>
    %cst_98 = arith.constant dense<0.000000e+00> : vector<8x384xf32>
    %132 = tpu.matmul %130, %131, %cst_98 {dimension_numbers = #tpu.dot_dimension_numbers<[1], [0], [0], [1], [0, 0, 1, 1], [], []>} : vector<8x128xbf16>, vector<128x384xbf16>, vector<8x384xf32> -> vector<8x384xf32>
    %133 = vector.extract_strided_slice %129 {offsets = [0, 0], sizes = [8, 128], strides = [1, 1]} : vector<8x384xf32> to vector<8x128xf32>
    %134 = vector.extract_strided_slice %132 {offsets = [0, 0], sizes = [8, 128], strides = [1, 1]} : vector<8x384xf32> to vector<8x128xf32>
    %135 = arith.addf %133, %134 : vector<8x128xf32>
    %136 = arith.negf %135 : vector<8x128xf32>
    %137 = math.exp %136 : vector<8x128xf32>
    %cst_99 = arith.constant 1.000000e+00 : f32
    %138 = vector.broadcast %cst_99 : f32 to vector<8x128xf32>
    %139 = arith.addf %138, %137 : vector<8x128xf32>
    %140 = arith.divf %138, %139 : vector<8x128xf32>
    %141 = vector.extract_strided_slice %129 {offsets = [0, 128], sizes = [8, 128], strides = [1, 1]} : vector<8x384xf32> to vector<8x128xf32>
    %142 = vector.extract_strided_slice %132 {offsets = [0, 128], sizes = [8, 128], strides = [1, 1]} : vector<8x384xf32> to vector<8x128xf32>
    %143 = arith.addf %141, %142 : vector<8x128xf32>
    %144 = arith.negf %143 : vector<8x128xf32>
    %145 = math.exp %144 : vector<8x128xf32>
    %cst_100 = arith.constant 1.000000e+00 : f32
    %146 = vector.broadcast %cst_100 : f32 to vector<8x128xf32>
    %147 = arith.addf %146, %145 : vector<8x128xf32>
    %148 = arith.divf %146, %147 : vector<8x128xf32>
    %149 = vector.extract_strided_slice %129 {offsets = [0, 256], sizes = [8, 128], strides = [1, 1]} : vector<8x384xf32> to vector<8x128xf32>
    %150 = vector.extract_strided_slice %132 {offsets = [0, 256], sizes = [8, 128], strides = [1, 1]} : vector<8x384xf32> to vector<8x128xf32>
    %151 = vector.broadcast %82 : vector<1x128xf32> to vector<8x128xf32>
    %152 = arith.addf %150, %151 : vector<8x128xf32>
    %153 = arith.mulf %140, %152 : vector<8x128xf32>
    %154 = arith.addf %149, %153 : vector<8x128xf32>
    %155 = math.tanh %154 : vector<8x128xf32>
    %cst_101 = arith.constant 1.000000e+00 : f32
    %156 = vector.broadcast %cst_101 : f32 to vector<8x128xf32>
    %157 = arith.subf %156, %148 : vector<8x128xf32>
    %158 = arith.mulf %157, %155 : vector<8x128xf32>
    %159 = arith.mulf %148, %119 : vector<8x128xf32>
    %160 = arith.addf %158, %159 : vector<8x128xf32>
    %161 = arith.truncf %160 : vector<8x128xf32> to vector<8x128xbf16>
    %162 = arith.index_cast %c1_i32 : i32 to index
    %c0_102 = arith.constant 0 : index
    %c0_103 = arith.constant 0 : index
    %163 = vector.load %arg12[%162, %c0_102, %c0_103] : memref<19x128x64xbf16, #tpu.memory_space<vmem>>, vector<1x128x64xbf16>
    %164 = vector.shape_cast %163 : vector<1x128x64xbf16> to vector<128x64xbf16>
    %cst_104 = arith.constant dense<0.000000e+00> : vector<8x64xf32>
    %165 = tpu.matmul %161, %164, %cst_104 {dimension_numbers = #tpu.dot_dimension_numbers<[1], [0], [0], [1], [0, 0, 1, 1], [], []>} : vector<8x128xbf16>, vector<128x64xbf16>, vector<8x64xf32> -> vector<8x64xf32>
    %166 = arith.addf %125, %165 : vector<8x64xf32>
    %c2_i32 = arith.constant 2 : i32
    %c8_i32_105 = arith.constant 8 : i32
    %167 = arith.muli %c2_i32, %c8_i32_105 : i32
    %168 = tpu.assume_multiple %167, 8 : i32
    %169 = arith.index_cast %168 : i32 to index
    %c0_106 = arith.constant 0 : index
    %170 = vector.load %arg20[%169, %c0_106] : memref<152x384xf32, #tpu.memory_space<vmem>>, vector<8x384xf32>
    %171 = arith.truncf %160 : vector<8x128xf32> to vector<8x128xbf16>
    %c0_107 = arith.constant 0 : index
    %c0_108 = arith.constant 0 : index
    %172 = vector.load %arg10[%c0_107, %c0_108] : memref<128x384xbf16, #tpu.memory_space<vmem>>, vector<128x384xbf16>
    %cst_109 = arith.constant dense<0.000000e+00> : vector<8x384xf32>
    %173 = tpu.matmul %171, %172, %cst_109 {dimension_numbers = #tpu.dot_dimension_numbers<[1], [0], [0], [1], [0, 0, 1, 1], [], []>} : vector<8x128xbf16>, vector<128x384xbf16>, vector<8x384xf32> -> vector<8x384xf32>
    %174 = vector.extract_strided_slice %170 {offsets = [0, 0], sizes = [8, 128], strides = [1, 1]} : vector<8x384xf32> to vector<8x128xf32>
    %175 = vector.extract_strided_slice %173 {offsets = [0, 0], sizes = [8, 128], strides = [1, 1]} : vector<8x384xf32> to vector<8x128xf32>
    %176 = arith.addf %174, %175 : vector<8x128xf32>
    %177 = arith.negf %176 : vector<8x128xf32>
    %178 = math.exp %177 : vector<8x128xf32>
    %cst_110 = arith.constant 1.000000e+00 : f32
    %179 = vector.broadcast %cst_110 : f32 to vector<8x128xf32>
    %180 = arith.addf %179, %178 : vector<8x128xf32>
    %181 = arith.divf %179, %180 : vector<8x128xf32>
    %182 = vector.extract_strided_slice %170 {offsets = [0, 128], sizes = [8, 128], strides = [1, 1]} : vector<8x384xf32> to vector<8x128xf32>
    %183 = vector.extract_strided_slice %173 {offsets = [0, 128], sizes = [8, 128], strides = [1, 1]} : vector<8x384xf32> to vector<8x128xf32>
    %184 = arith.addf %182, %183 : vector<8x128xf32>
    %185 = arith.negf %184 : vector<8x128xf32>
    %186 = math.exp %185 : vector<8x128xf32>
    %cst_111 = arith.constant 1.000000e+00 : f32
    %187 = vector.broadcast %cst_111 : f32 to vector<8x128xf32>
    %188 = arith.addf %187, %186 : vector<8x128xf32>
    %189 = arith.divf %187, %188 : vector<8x128xf32>
    %190 = vector.extract_strided_slice %170 {offsets = [0, 256], sizes = [8, 128], strides = [1, 1]} : vector<8x384xf32> to vector<8x128xf32>
    %191 = vector.extract_strided_slice %173 {offsets = [0, 256], sizes = [8, 128], strides = [1, 1]} : vector<8x384xf32> to vector<8x128xf32>
    %192 = vector.broadcast %82 : vector<1x128xf32> to vector<8x128xf32>
    %193 = arith.addf %191, %192 : vector<8x128xf32>
    %194 = arith.mulf %181, %193 : vector<8x128xf32>
    %195 = arith.addf %190, %194 : vector<8x128xf32>
    %196 = math.tanh %195 : vector<8x128xf32>
    %cst_112 = arith.constant 1.000000e+00 : f32
    %197 = vector.broadcast %cst_112 : f32 to vector<8x128xf32>
    %198 = arith.subf %197, %189 : vector<8x128xf32>
    %199 = arith.mulf %198, %196 : vector<8x128xf32>
    %200 = arith.mulf %189, %160 : vector<8x128xf32>
    %201 = arith.addf %199, %200 : vector<8x128xf32>
    %202 = arith.truncf %201 : vector<8x128xf32> to vector<8x128xbf16>
    %203 = arith.index_cast %c2_i32 : i32 to index
    %c0_113 = arith.constant 0 : index
    %c0_114 = arith.constant 0 : index
    %204 = vector.load %arg12[%203, %c0_113, %c0_114] : memref<19x128x64xbf16, #tpu.memory_space<vmem>>, vector<1x128x64xbf16>
    %205 = vector.shape_cast %204 : vector<1x128x64xbf16> to vector<128x64xbf16>
    %cst_115 = arith.constant dense<0.000000e+00> : vector<8x64xf32>
    %206 = tpu.matmul %202, %205, %cst_115 {dimension_numbers = #tpu.dot_dimension_numbers<[1], [0], [0], [1], [0, 0, 1, 1], [], []>} : vector<8x128xbf16>, vector<128x64xbf16>, vector<8x64xf32> -> vector<8x64xf32>
    %207 = arith.addf %166, %206 : vector<8x64xf32>
    %c3_i32 = arith.constant 3 : i32
    %c8_i32_116 = arith.constant 8 : i32
    %208 = arith.muli %c3_i32, %c8_i32_116 : i32
    %209 = tpu.assume_multiple %208, 8 : i32
    %210 = arith.index_cast %209 : i32 to index
    %c0_117 = arith.constant 0 : index
    %211 = vector.load %arg20[%210, %c0_117] : memref<152x384xf32, #tpu.memory_space<vmem>>, vector<8x384xf32>
    %212 = arith.truncf %201 : vector<8x128xf32> to vector<8x128xbf16>
    %c0_118 = arith.constant 0 : index
    %c0_119 = arith.constant 0 : index
    %213 = vector.load %arg10[%c0_118, %c0_119] : memref<128x384xbf16, #tpu.memory_space<vmem>>, vector<128x384xbf16>
    %cst_120 = arith.constant dense<0.000000e+00> : vector<8x384xf32>
    %214 = tpu.matmul %212, %213, %cst_120 {dimension_numbers = #tpu.dot_dimension_numbers<[1], [0], [0], [1], [0, 0, 1, 1], [], []>} : vector<8x128xbf16>, vector<128x384xbf16>, vector<8x384xf32> -> vector<8x384xf32>
    %215 = vector.extract_strided_slice %211 {offsets = [0, 0], sizes = [8, 128], strides = [1, 1]} : vector<8x384xf32> to vector<8x128xf32>
    %216 = vector.extract_strided_slice %214 {offsets = [0, 0], sizes = [8, 128], strides = [1, 1]} : vector<8x384xf32> to vector<8x128xf32>
    %217 = arith.addf %215, %216 : vector<8x128xf32>
    %218 = arith.negf %217 : vector<8x128xf32>
    %219 = math.exp %218 : vector<8x128xf32>
    %cst_121 = arith.constant 1.000000e+00 : f32
    %220 = vector.broadcast %cst_121 : f32 to vector<8x128xf32>
    %221 = arith.addf %220, %219 : vector<8x128xf32>
    %222 = arith.divf %220, %221 : vector<8x128xf32>
    %223 = vector.extract_strided_slice %211 {offsets = [0, 128], sizes = [8, 128], strides = [1, 1]} : vector<8x384xf32> to vector<8x128xf32>
    %224 = vector.extract_strided_slice %214 {offsets = [0, 128], sizes = [8, 128], strides = [1, 1]} : vector<8x384xf32> to vector<8x128xf32>
    %225 = arith.addf %223, %224 : vector<8x128xf32>
    %226 = arith.negf %225 : vector<8x128xf32>
    %227 = math.exp %226 : vector<8x128xf32>
    %cst_122 = arith.constant 1.000000e+00 : f32
    %228 = vector.broadcast %cst_122 : f32 to vector<8x128xf32>
    %229 = arith.addf %228, %227 : vector<8x128xf32>
    %230 = arith.divf %228, %229 : vector<8x128xf32>
    %231 = vector.extract_strided_slice %211 {offsets = [0, 256], sizes = [8, 128], strides = [1, 1]} : vector<8x384xf32> to vector<8x128xf32>
    %232 = vector.extract_strided_slice %214 {offsets = [0, 256], sizes = [8, 128], strides = [1, 1]} : vector<8x384xf32> to vector<8x128xf32>
    %233 = vector.broadcast %82 : vector<1x128xf32> to vector<8x128xf32>
    %234 = arith.addf %232, %233 : vector<8x128xf32>
    %235 = arith.mulf %222, %234 : vector<8x128xf32>
    %236 = arith.addf %231, %235 : vector<8x128xf32>
    %237 = math.tanh %236 : vector<8x128xf32>
    %cst_123 = arith.constant 1.000000e+00 : f32
    %238 = vector.broadcast %cst_123 : f32 to vector<8x128xf32>
    %239 = arith.subf %238, %230 : vector<8x128xf32>
    %240 = arith.mulf %239, %237 : vector<8x128xf32>
    %241 = arith.mulf %230, %201 : vector<8x128xf32>
    %242 = arith.addf %240, %241 : vector<8x128xf32>
    %243 = arith.truncf %242 : vector<8x128xf32> to vector<8x128xbf16>
    %244 = arith.index_cast %c3_i32 : i32 to index
    %c0_124 = arith.constant 0 : index
    %c0_125 = arith.constant 0 : index
    %245 = vector.load %arg12[%244, %c0_124, %c0_125] : memref<19x128x64xbf16, #tpu.memory_space<vmem>>, vector<1x128x64xbf16>
    %246 = vector.shape_cast %245 : vector<1x128x64xbf16> to vector<128x64xbf16>
    %cst_126 = arith.constant dense<0.000000e+00> : vector<8x64xf32>
    %247 = tpu.matmul %243, %246, %cst_126 {dimension_numbers = #tpu.dot_dimension_numbers<[1], [0], [0], [1], [0, 0, 1, 1], [], []>} : vector<8x128xbf16>, vector<128x64xbf16>, vector<8x64xf32> -> vector<8x64xf32>
    %248 = arith.addf %207, %247 : vector<8x64xf32>
    %c4_i32 = arith.constant 4 : i32
    %c8_i32_127 = arith.constant 8 : i32
    %249 = arith.muli %c4_i32, %c8_i32_127 : i32
    %250 = tpu.assume_multiple %249, 8 : i32
    %251 = arith.index_cast %250 : i32 to index
    %c0_128 = arith.constant 0 : index
    %252 = vector.load %arg20[%251, %c0_128] : memref<152x384xf32, #tpu.memory_space<vmem>>, vector<8x384xf32>
    %253 = arith.truncf %242 : vector<8x128xf32> to vector<8x128xbf16>
    %c0_129 = arith.constant 0 : index
    %c0_130 = arith.constant 0 : index
    %254 = vector.load %arg10[%c0_129, %c0_130] : memref<128x384xbf16, #tpu.memory_space<vmem>>, vector<128x384xbf16>
    %cst_131 = arith.constant dense<0.000000e+00> : vector<8x384xf32>
    %255 = tpu.matmul %253, %254, %cst_131 {dimension_numbers = #tpu.dot_dimension_numbers<[1], [0], [0], [1], [0, 0, 1, 1], [], []>} : vector<8x128xbf16>, vector<128x384xbf16>, vector<8x384xf32> -> vector<8x384xf32>
    %256 = vector.extract_strided_slice %252 {offsets = [0, 0], sizes = [8, 128], strides = [1, 1]} : vector<8x384xf32> to vector<8x128xf32>
    %257 = vector.extract_strided_slice %255 {offsets = [0, 0], sizes = [8, 128], strides = [1, 1]} : vector<8x384xf32> to vector<8x128xf32>
    %258 = arith.addf %256, %257 : vector<8x128xf32>
    %259 = arith.negf %258 : vector<8x128xf32>
    %260 = math.exp %259 : vector<8x128xf32>
    %cst_132 = arith.constant 1.000000e+00 : f32
    %261 = vector.broadcast %cst_132 : f32 to vector<8x128xf32>
    %262 = arith.addf %261, %260 : vector<8x128xf32>
    %263 = arith.divf %261, %262 : vector<8x128xf32>
    %264 = vector.extract_strided_slice %252 {offsets = [0, 128], sizes = [8, 128], strides = [1, 1]} : vector<8x384xf32> to vector<8x128xf32>
    %265 = vector.extract_strided_slice %255 {offsets = [0, 128], sizes = [8, 128], strides = [1, 1]} : vector<8x384xf32> to vector<8x128xf32>
    %266 = arith.addf %264, %265 : vector<8x128xf32>
    %267 = arith.negf %266 : vector<8x128xf32>
    %268 = math.exp %267 : vector<8x128xf32>
    %cst_133 = arith.constant 1.000000e+00 : f32
    %269 = vector.broadcast %cst_133 : f32 to vector<8x128xf32>
    %270 = arith.addf %269, %268 : vector<8x128xf32>
    %271 = arith.divf %269, %270 : vector<8x128xf32>
    %272 = vector.extract_strided_slice %252 {offsets = [0, 256], sizes = [8, 128], strides = [1, 1]} : vector<8x384xf32> to vector<8x128xf32>
    %273 = vector.extract_strided_slice %255 {offsets = [0, 256], sizes = [8, 128], strides = [1, 1]} : vector<8x384xf32> to vector<8x128xf32>
    %274 = vector.broadcast %82 : vector<1x128xf32> to vector<8x128xf32>
    %275 = arith.addf %273, %274 : vector<8x128xf32>
    %276 = arith.mulf %263, %275 : vector<8x128xf32>
    %277 = arith.addf %272, %276 : vector<8x128xf32>
    %278 = math.tanh %277 : vector<8x128xf32>
    %cst_134 = arith.constant 1.000000e+00 : f32
    %279 = vector.broadcast %cst_134 : f32 to vector<8x128xf32>
    %280 = arith.subf %279, %271 : vector<8x128xf32>
    %281 = arith.mulf %280, %278 : vector<8x128xf32>
    %282 = arith.mulf %271, %242 : vector<8x128xf32>
    %283 = arith.addf %281, %282 : vector<8x128xf32>
    %284 = arith.truncf %283 : vector<8x128xf32> to vector<8x128xbf16>
    %285 = arith.index_cast %c4_i32 : i32 to index
    %c0_135 = arith.constant 0 : index
    %c0_136 = arith.constant 0 : index
    %286 = vector.load %arg12[%285, %c0_135, %c0_136] : memref<19x128x64xbf16, #tpu.memory_space<vmem>>, vector<1x128x64xbf16>
    %287 = vector.shape_cast %286 : vector<1x128x64xbf16> to vector<128x64xbf16>
    %cst_137 = arith.constant dense<0.000000e+00> : vector<8x64xf32>
    %288 = tpu.matmul %284, %287, %cst_137 {dimension_numbers = #tpu.dot_dimension_numbers<[1], [0], [0], [1], [0, 0, 1, 1], [], []>} : vector<8x128xbf16>, vector<128x64xbf16>, vector<8x64xf32> -> vector<8x64xf32>
    %289 = arith.addf %248, %288 : vector<8x64xf32>
    %c5_i32 = arith.constant 5 : i32
    %c8_i32_138 = arith.constant 8 : i32
    %290 = arith.muli %c5_i32, %c8_i32_138 : i32
    %291 = tpu.assume_multiple %290, 8 : i32
    %292 = arith.index_cast %291 : i32 to index
    %c0_139 = arith.constant 0 : index
    %293 = vector.load %arg20[%292, %c0_139] : memref<152x384xf32, #tpu.memory_space<vmem>>, vector<8x384xf32>
    %294 = arith.truncf %283 : vector<8x128xf32> to vector<8x128xbf16>
    %c0_140 = arith.constant 0 : index
    %c0_141 = arith.constant 0 : index
    %295 = vector.load %arg10[%c0_140, %c0_141] : memref<128x384xbf16, #tpu.memory_space<vmem>>, vector<128x384xbf16>
    %cst_142 = arith.constant dense<0.000000e+00> : vector<8x384xf32>
    %296 = tpu.matmul %294, %295, %cst_142 {dimension_numbers = #tpu.dot_dimension_numbers<[1], [0], [0], [1], [0, 0, 1, 1], [], []>} : vector<8x128xbf16>, vector<128x384xbf16>, vector<8x384xf32> -> vector<8x384xf32>
    %297 = vector.extract_strided_slice %293 {offsets = [0, 0], sizes = [8, 128], strides = [1, 1]} : vector<8x384xf32> to vector<8x128xf32>
    %298 = vector.extract_strided_slice %296 {offsets = [0, 0], sizes = [8, 128], strides = [1, 1]} : vector<8x384xf32> to vector<8x128xf32>
    %299 = arith.addf %297, %298 : vector<8x128xf32>
    %300 = arith.negf %299 : vector<8x128xf32>
    %301 = math.exp %300 : vector<8x128xf32>
    %cst_143 = arith.constant 1.000000e+00 : f32
    %302 = vector.broadcast %cst_143 : f32 to vector<8x128xf32>
    %303 = arith.addf %302, %301 : vector<8x128xf32>
    %304 = arith.divf %302, %303 : vector<8x128xf32>
    %305 = vector.extract_strided_slice %293 {offsets = [0, 128], sizes = [8, 128], strides = [1, 1]} : vector<8x384xf32> to vector<8x128xf32>
    %306 = vector.extract_strided_slice %296 {offsets = [0, 128], sizes = [8, 128], strides = [1, 1]} : vector<8x384xf32> to vector<8x128xf32>
    %307 = arith.addf %305, %306 : vector<8x128xf32>
    %308 = arith.negf %307 : vector<8x128xf32>
    %309 = math.exp %308 : vector<8x128xf32>
    %cst_144 = arith.constant 1.000000e+00 : f32
    %310 = vector.broadcast %cst_144 : f32 to vector<8x128xf32>
    %311 = arith.addf %310, %309 : vector<8x128xf32>
    %312 = arith.divf %310, %311 : vector<8x128xf32>
    %313 = vector.extract_strided_slice %293 {offsets = [0, 256], sizes = [8, 128], strides = [1, 1]} : vector<8x384xf32> to vector<8x128xf32>
    %314 = vector.extract_strided_slice %296 {offsets = [0, 256], sizes = [8, 128], strides = [1, 1]} : vector<8x384xf32> to vector<8x128xf32>
    %315 = vector.broadcast %82 : vector<1x128xf32> to vector<8x128xf32>
    %316 = arith.addf %314, %315 : vector<8x128xf32>
    %317 = arith.mulf %304, %316 : vector<8x128xf32>
    %318 = arith.addf %313, %317 : vector<8x128xf32>
    %319 = math.tanh %318 : vector<8x128xf32>
    %cst_145 = arith.constant 1.000000e+00 : f32
    %320 = vector.broadcast %cst_145 : f32 to vector<8x128xf32>
    %321 = arith.subf %320, %312 : vector<8x128xf32>
    %322 = arith.mulf %321, %319 : vector<8x128xf32>
    %323 = arith.mulf %312, %283 : vector<8x128xf32>
    %324 = arith.addf %322, %323 : vector<8x128xf32>
    %325 = arith.truncf %324 : vector<8x128xf32> to vector<8x128xbf16>
    %326 = arith.index_cast %c5_i32 : i32 to index
    %c0_146 = arith.constant 0 : index
    %c0_147 = arith.constant 0 : index
    %327 = vector.load %arg12[%326, %c0_146, %c0_147] : memref<19x128x64xbf16, #tpu.memory_space<vmem>>, vector<1x128x64xbf16>
    %328 = vector.shape_cast %327 : vector<1x128x64xbf16> to vector<128x64xbf16>
    %cst_148 = arith.constant dense<0.000000e+00> : vector<8x64xf32>
    %329 = tpu.matmul %325, %328, %cst_148 {dimension_numbers = #tpu.dot_dimension_numbers<[1], [0], [0], [1], [0, 0, 1, 1], [], []>} : vector<8x128xbf16>, vector<128x64xbf16>, vector<8x64xf32> -> vector<8x64xf32>
    %330 = arith.addf %289, %329 : vector<8x64xf32>
    %c6_i32 = arith.constant 6 : i32
    %c8_i32_149 = arith.constant 8 : i32
    %331 = arith.muli %c6_i32, %c8_i32_149 : i32
    %332 = tpu.assume_multiple %331, 8 : i32
    %333 = arith.index_cast %332 : i32 to index
    %c0_150 = arith.constant 0 : index
    %334 = vector.load %arg20[%333, %c0_150] : memref<152x384xf32, #tpu.memory_space<vmem>>, vector<8x384xf32>
    %335 = arith.truncf %324 : vector<8x128xf32> to vector<8x128xbf16>
    %c0_151 = arith.constant 0 : index
    %c0_152 = arith.constant 0 : index
    %336 = vector.load %arg10[%c0_151, %c0_152] : memref<128x384xbf16, #tpu.memory_space<vmem>>, vector<128x384xbf16>
    %cst_153 = arith.constant dense<0.000000e+00> : vector<8x384xf32>
    %337 = tpu.matmul %335, %336, %cst_153 {dimension_numbers = #tpu.dot_dimension_numbers<[1], [0], [0], [1], [0, 0, 1, 1], [], []>} : vector<8x128xbf16>, vector<128x384xbf16>, vector<8x384xf32> -> vector<8x384xf32>
    %338 = vector.extract_strided_slice %334 {offsets = [0, 0], sizes = [8, 128], strides = [1, 1]} : vector<8x384xf32> to vector<8x128xf32>
    %339 = vector.extract_strided_slice %337 {offsets = [0, 0], sizes = [8, 128], strides = [1, 1]} : vector<8x384xf32> to vector<8x128xf32>
    %340 = arith.addf %338, %339 : vector<8x128xf32>
    %341 = arith.negf %340 : vector<8x128xf32>
    %342 = math.exp %341 : vector<8x128xf32>
    %cst_154 = arith.constant 1.000000e+00 : f32
    %343 = vector.broadcast %cst_154 : f32 to vector<8x128xf32>
    %344 = arith.addf %343, %342 : vector<8x128xf32>
    %345 = arith.divf %343, %344 : vector<8x128xf32>
    %346 = vector.extract_strided_slice %334 {offsets = [0, 128], sizes = [8, 128], strides = [1, 1]} : vector<8x384xf32> to vector<8x128xf32>
    %347 = vector.extract_strided_slice %337 {offsets = [0, 128], sizes = [8, 128], strides = [1, 1]} : vector<8x384xf32> to vector<8x128xf32>
    %348 = arith.addf %346, %347 : vector<8x128xf32>
    %349 = arith.negf %348 : vector<8x128xf32>
    %350 = math.exp %349 : vector<8x128xf32>
    %cst_155 = arith.constant 1.000000e+00 : f32
    %351 = vector.broadcast %cst_155 : f32 to vector<8x128xf32>
    %352 = arith.addf %351, %350 : vector<8x128xf32>
    %353 = arith.divf %351, %352 : vector<8x128xf32>
    %354 = vector.extract_strided_slice %334 {offsets = [0, 256], sizes = [8, 128], strides = [1, 1]} : vector<8x384xf32> to vector<8x128xf32>
    %355 = vector.extract_strided_slice %337 {offsets = [0, 256], sizes = [8, 128], strides = [1, 1]} : vector<8x384xf32> to vector<8x128xf32>
    %356 = vector.broadcast %82 : vector<1x128xf32> to vector<8x128xf32>
    %357 = arith.addf %355, %356 : vector<8x128xf32>
    %358 = arith.mulf %345, %357 : vector<8x128xf32>
    %359 = arith.addf %354, %358 : vector<8x128xf32>
    %360 = math.tanh %359 : vector<8x128xf32>
    %cst_156 = arith.constant 1.000000e+00 : f32
    %361 = vector.broadcast %cst_156 : f32 to vector<8x128xf32>
    %362 = arith.subf %361, %353 : vector<8x128xf32>
    %363 = arith.mulf %362, %360 : vector<8x128xf32>
    %364 = arith.mulf %353, %324 : vector<8x128xf32>
    %365 = arith.addf %363, %364 : vector<8x128xf32>
    %366 = arith.truncf %365 : vector<8x128xf32> to vector<8x128xbf16>
    %367 = arith.index_cast %c6_i32 : i32 to index
    %c0_157 = arith.constant 0 : index
    %c0_158 = arith.constant 0 : index
    %368 = vector.load %arg12[%367, %c0_157, %c0_158] : memref<19x128x64xbf16, #tpu.memory_space<vmem>>, vector<1x128x64xbf16>
    %369 = vector.shape_cast %368 : vector<1x128x64xbf16> to vector<128x64xbf16>
    %cst_159 = arith.constant dense<0.000000e+00> : vector<8x64xf32>
    %370 = tpu.matmul %366, %369, %cst_159 {dimension_numbers = #tpu.dot_dimension_numbers<[1], [0], [0], [1], [0, 0, 1, 1], [], []>} : vector<8x128xbf16>, vector<128x64xbf16>, vector<8x64xf32> -> vector<8x64xf32>
    %371 = arith.addf %330, %370 : vector<8x64xf32>
    %c7_i32 = arith.constant 7 : i32
    %c8_i32_160 = arith.constant 8 : i32
    %372 = arith.muli %c7_i32, %c8_i32_160 : i32
    %373 = tpu.assume_multiple %372, 8 : i32
    %374 = arith.index_cast %373 : i32 to index
    %c0_161 = arith.constant 0 : index
    %375 = vector.load %arg20[%374, %c0_161] : memref<152x384xf32, #tpu.memory_space<vmem>>, vector<8x384xf32>
    %376 = arith.truncf %365 : vector<8x128xf32> to vector<8x128xbf16>
    %c0_162 = arith.constant 0 : index
    %c0_163 = arith.constant 0 : index
    %377 = vector.load %arg10[%c0_162, %c0_163] : memref<128x384xbf16, #tpu.memory_space<vmem>>, vector<128x384xbf16>
    %cst_164 = arith.constant dense<0.000000e+00> : vector<8x384xf32>
    %378 = tpu.matmul %376, %377, %cst_164 {dimension_numbers = #tpu.dot_dimension_numbers<[1], [0], [0], [1], [0, 0, 1, 1], [], []>} : vector<8x128xbf16>, vector<128x384xbf16>, vector<8x384xf32> -> vector<8x384xf32>
    %379 = vector.extract_strided_slice %375 {offsets = [0, 0], sizes = [8, 128], strides = [1, 1]} : vector<8x384xf32> to vector<8x128xf32>
    %380 = vector.extract_strided_slice %378 {offsets = [0, 0], sizes = [8, 128], strides = [1, 1]} : vector<8x384xf32> to vector<8x128xf32>
    %381 = arith.addf %379, %380 : vector<8x128xf32>
    %382 = arith.negf %381 : vector<8x128xf32>
    %383 = math.exp %382 : vector<8x128xf32>
    %cst_165 = arith.constant 1.000000e+00 : f32
    %384 = vector.broadcast %cst_165 : f32 to vector<8x128xf32>
    %385 = arith.addf %384, %383 : vector<8x128xf32>
    %386 = arith.divf %384, %385 : vector<8x128xf32>
    %387 = vector.extract_strided_slice %375 {offsets = [0, 128], sizes = [8, 128], strides = [1, 1]} : vector<8x384xf32> to vector<8x128xf32>
    %388 = vector.extract_strided_slice %378 {offsets = [0, 128], sizes = [8, 128], strides = [1, 1]} : vector<8x384xf32> to vector<8x128xf32>
    %389 = arith.addf %387, %388 : vector<8x128xf32>
    %390 = arith.negf %389 : vector<8x128xf32>
    %391 = math.exp %390 : vector<8x128xf32>
    %cst_166 = arith.constant 1.000000e+00 : f32
    %392 = vector.broadcast %cst_166 : f32 to vector<8x128xf32>
    %393 = arith.addf %392, %391 : vector<8x128xf32>
    %394 = arith.divf %392, %393 : vector<8x128xf32>
    %395 = vector.extract_strided_slice %375 {offsets = [0, 256], sizes = [8, 128], strides = [1, 1]} : vector<8x384xf32> to vector<8x128xf32>
    %396 = vector.extract_strided_slice %378 {offsets = [0, 256], sizes = [8, 128], strides = [1, 1]} : vector<8x384xf32> to vector<8x128xf32>
    %397 = vector.broadcast %82 : vector<1x128xf32> to vector<8x128xf32>
    %398 = arith.addf %396, %397 : vector<8x128xf32>
    %399 = arith.mulf %386, %398 : vector<8x128xf32>
    %400 = arith.addf %395, %399 : vector<8x128xf32>
    %401 = math.tanh %400 : vector<8x128xf32>
    %cst_167 = arith.constant 1.000000e+00 : f32
    %402 = vector.broadcast %cst_167 : f32 to vector<8x128xf32>
    %403 = arith.subf %402, %394 : vector<8x128xf32>
    %404 = arith.mulf %403, %401 : vector<8x128xf32>
    %405 = arith.mulf %394, %365 : vector<8x128xf32>
    %406 = arith.addf %404, %405 : vector<8x128xf32>
    %407 = arith.truncf %406 : vector<8x128xf32> to vector<8x128xbf16>
    %408 = arith.index_cast %c7_i32 : i32 to index
    %c0_168 = arith.constant 0 : index
    %c0_169 = arith.constant 0 : index
    %409 = vector.load %arg12[%408, %c0_168, %c0_169] : memref<19x128x64xbf16, #tpu.memory_space<vmem>>, vector<1x128x64xbf16>
    %410 = vector.shape_cast %409 : vector<1x128x64xbf16> to vector<128x64xbf16>
    %cst_170 = arith.constant dense<0.000000e+00> : vector<8x64xf32>
    %411 = tpu.matmul %407, %410, %cst_170 {dimension_numbers = #tpu.dot_dimension_numbers<[1], [0], [0], [1], [0, 0, 1, 1], [], []>} : vector<8x128xbf16>, vector<128x64xbf16>, vector<8x64xf32> -> vector<8x64xf32>
    %412 = arith.addf %371, %411 : vector<8x64xf32>
    %c8_i32_171 = arith.constant 8 : i32
    %c8_i32_172 = arith.constant 8 : i32
    %413 = arith.muli %c8_i32_171, %c8_i32_172 : i32
    %414 = tpu.assume_multiple %413, 8 : i32
    %415 = arith.index_cast %414 : i32 to index
    %c0_173 = arith.constant 0 : index
    %416 = vector.load %arg20[%415, %c0_173] : memref<152x384xf32, #tpu.memory_space<vmem>>, vector<8x384xf32>
    %417 = arith.truncf %406 : vector<8x128xf32> to vector<8x128xbf16>
    %c0_174 = arith.constant 0 : index
    %c0_175 = arith.constant 0 : index
    %418 = vector.load %arg10[%c0_174, %c0_175] : memref<128x384xbf16, #tpu.memory_space<vmem>>, vector<128x384xbf16>
    %cst_176 = arith.constant dense<0.000000e+00> : vector<8x384xf32>
    %419 = tpu.matmul %417, %418, %cst_176 {dimension_numbers = #tpu.dot_dimension_numbers<[1], [0], [0], [1], [0, 0, 1, 1], [], []>} : vector<8x128xbf16>, vector<128x384xbf16>, vector<8x384xf32> -> vector<8x384xf32>
    %420 = vector.extract_strided_slice %416 {offsets = [0, 0], sizes = [8, 128], strides = [1, 1]} : vector<8x384xf32> to vector<8x128xf32>
    %421 = vector.extract_strided_slice %419 {offsets = [0, 0], sizes = [8, 128], strides = [1, 1]} : vector<8x384xf32> to vector<8x128xf32>
    %422 = arith.addf %420, %421 : vector<8x128xf32>
    %423 = arith.negf %422 : vector<8x128xf32>
    %424 = math.exp %423 : vector<8x128xf32>
    %cst_177 = arith.constant 1.000000e+00 : f32
    %425 = vector.broadcast %cst_177 : f32 to vector<8x128xf32>
    %426 = arith.addf %425, %424 : vector<8x128xf32>
    %427 = arith.divf %425, %426 : vector<8x128xf32>
    %428 = vector.extract_strided_slice %416 {offsets = [0, 128], sizes = [8, 128], strides = [1, 1]} : vector<8x384xf32> to vector<8x128xf32>
    %429 = vector.extract_strided_slice %419 {offsets = [0, 128], sizes = [8, 128], strides = [1, 1]} : vector<8x384xf32> to vector<8x128xf32>
    %430 = arith.addf %428, %429 : vector<8x128xf32>
    %431 = arith.negf %430 : vector<8x128xf32>
    %432 = math.exp %431 : vector<8x128xf32>
    %cst_178 = arith.constant 1.000000e+00 : f32
    %433 = vector.broadcast %cst_178 : f32 to vector<8x128xf32>
    %434 = arith.addf %433, %432 : vector<8x128xf32>
    %435 = arith.divf %433, %434 : vector<8x128xf32>
    %436 = vector.extract_strided_slice %416 {offsets = [0, 256], sizes = [8, 128], strides = [1, 1]} : vector<8x384xf32> to vector<8x128xf32>
    %437 = vector.extract_strided_slice %419 {offsets = [0, 256], sizes = [8, 128], strides = [1, 1]} : vector<8x384xf32> to vector<8x128xf32>
    %438 = vector.broadcast %82 : vector<1x128xf32> to vector<8x128xf32>
    %439 = arith.addf %437, %438 : vector<8x128xf32>
    %440 = arith.mulf %427, %439 : vector<8x128xf32>
    %441 = arith.addf %436, %440 : vector<8x128xf32>
    %442 = math.tanh %441 : vector<8x128xf32>
    %cst_179 = arith.constant 1.000000e+00 : f32
    %443 = vector.broadcast %cst_179 : f32 to vector<8x128xf32>
    %444 = arith.subf %443, %435 : vector<8x128xf32>
    %445 = arith.mulf %444, %442 : vector<8x128xf32>
    %446 = arith.mulf %435, %406 : vector<8x128xf32>
    %447 = arith.addf %445, %446 : vector<8x128xf32>
    %448 = arith.truncf %447 : vector<8x128xf32> to vector<8x128xbf16>
    %449 = arith.index_cast %c8_i32_171 : i32 to index
    %c0_180 = arith.constant 0 : index
    %c0_181 = arith.constant 0 : index
    %450 = vector.load %arg12[%449, %c0_180, %c0_181] : memref<19x128x64xbf16, #tpu.memory_space<vmem>>, vector<1x128x64xbf16>
    %451 = vector.shape_cast %450 : vector<1x128x64xbf16> to vector<128x64xbf16>
    %cst_182 = arith.constant dense<0.000000e+00> : vector<8x64xf32>
    %452 = tpu.matmul %448, %451, %cst_182 {dimension_numbers = #tpu.dot_dimension_numbers<[1], [0], [0], [1], [0, 0, 1, 1], [], []>} : vector<8x128xbf16>, vector<128x64xbf16>, vector<8x64xf32> -> vector<8x64xf32>
    %453 = arith.addf %412, %452 : vector<8x64xf32>
    %c9_i32 = arith.constant 9 : i32
    %c8_i32_183 = arith.constant 8 : i32
    %454 = arith.muli %c9_i32, %c8_i32_183 : i32
    %455 = tpu.assume_multiple %454, 8 : i32
    %456 = arith.index_cast %455 : i32 to index
    %c0_184 = arith.constant 0 : index
    %457 = vector.load %arg20[%456, %c0_184] : memref<152x384xf32, #tpu.memory_space<vmem>>, vector<8x384xf32>
    %458 = arith.truncf %447 : vector<8x128xf32> to vector<8x128xbf16>
    %c0_185 = arith.constant 0 : index
    %c0_186 = arith.constant 0 : index
    %459 = vector.load %arg10[%c0_185, %c0_186] : memref<128x384xbf16, #tpu.memory_space<vmem>>, vector<128x384xbf16>
    %cst_187 = arith.constant dense<0.000000e+00> : vector<8x384xf32>
    %460 = tpu.matmul %458, %459, %cst_187 {dimension_numbers = #tpu.dot_dimension_numbers<[1], [0], [0], [1], [0, 0, 1, 1], [], []>} : vector<8x128xbf16>, vector<128x384xbf16>, vector<8x384xf32> -> vector<8x384xf32>
    %461 = vector.extract_strided_slice %457 {offsets = [0, 0], sizes = [8, 128], strides = [1, 1]} : vector<8x384xf32> to vector<8x128xf32>
    %462 = vector.extract_strided_slice %460 {offsets = [0, 0], sizes = [8, 128], strides = [1, 1]} : vector<8x384xf32> to vector<8x128xf32>
    %463 = arith.addf %461, %462 : vector<8x128xf32>
    %464 = arith.negf %463 : vector<8x128xf32>
    %465 = math.exp %464 : vector<8x128xf32>
    %cst_188 = arith.constant 1.000000e+00 : f32
    %466 = vector.broadcast %cst_188 : f32 to vector<8x128xf32>
    %467 = arith.addf %466, %465 : vector<8x128xf32>
    %468 = arith.divf %466, %467 : vector<8x128xf32>
    %469 = vector.extract_strided_slice %457 {offsets = [0, 128], sizes = [8, 128], strides = [1, 1]} : vector<8x384xf32> to vector<8x128xf32>
    %470 = vector.extract_strided_slice %460 {offsets = [0, 128], sizes = [8, 128], strides = [1, 1]} : vector<8x384xf32> to vector<8x128xf32>
    %471 = arith.addf %469, %470 : vector<8x128xf32>
    %472 = arith.negf %471 : vector<8x128xf32>
    %473 = math.exp %472 : vector<8x128xf32>
    %cst_189 = arith.constant 1.000000e+00 : f32
    %474 = vector.broadcast %cst_189 : f32 to vector<8x128xf32>
    %475 = arith.addf %474, %473 : vector<8x128xf32>
    %476 = arith.divf %474, %475 : vector<8x128xf32>
    %477 = vector.extract_strided_slice %457 {offsets = [0, 256], sizes = [8, 128], strides = [1, 1]} : vector<8x384xf32> to vector<8x128xf32>
    %478 = vector.extract_strided_slice %460 {offsets = [0, 256], sizes = [8, 128], strides = [1, 1]} : vector<8x384xf32> to vector<8x128xf32>
    %479 = vector.broadcast %82 : vector<1x128xf32> to vector<8x128xf32>
    %480 = arith.addf %478, %479 : vector<8x128xf32>
    %481 = arith.mulf %468, %480 : vector<8x128xf32>
    %482 = arith.addf %477, %481 : vector<8x128xf32>
    %483 = math.tanh %482 : vector<8x128xf32>
    %cst_190 = arith.constant 1.000000e+00 : f32
    %484 = vector.broadcast %cst_190 : f32 to vector<8x128xf32>
    %485 = arith.subf %484, %476 : vector<8x128xf32>
    %486 = arith.mulf %485, %483 : vector<8x128xf32>
    %487 = arith.mulf %476, %447 : vector<8x128xf32>
    %488 = arith.addf %486, %487 : vector<8x128xf32>
    %489 = arith.truncf %488 : vector<8x128xf32> to vector<8x128xbf16>
    %490 = arith.index_cast %c9_i32 : i32 to index
    %c0_191 = arith.constant 0 : index
    %c0_192 = arith.constant 0 : index
    %491 = vector.load %arg12[%490, %c0_191, %c0_192] : memref<19x128x64xbf16, #tpu.memory_space<vmem>>, vector<1x128x64xbf16>
    %492 = vector.shape_cast %491 : vector<1x128x64xbf16> to vector<128x64xbf16>
    %cst_193 = arith.constant dense<0.000000e+00> : vector<8x64xf32>
    %493 = tpu.matmul %489, %492, %cst_193 {dimension_numbers = #tpu.dot_dimension_numbers<[1], [0], [0], [1], [0, 0, 1, 1], [], []>} : vector<8x128xbf16>, vector<128x64xbf16>, vector<8x64xf32> -> vector<8x64xf32>
    %494 = arith.addf %453, %493 : vector<8x64xf32>
    %c10_i32 = arith.constant 10 : i32
    %c8_i32_194 = arith.constant 8 : i32
    %495 = arith.muli %c10_i32, %c8_i32_194 : i32
    %496 = tpu.assume_multiple %495, 8 : i32
    %497 = arith.index_cast %496 : i32 to index
    %c0_195 = arith.constant 0 : index
    %498 = vector.load %arg20[%497, %c0_195] : memref<152x384xf32, #tpu.memory_space<vmem>>, vector<8x384xf32>
    %499 = arith.truncf %488 : vector<8x128xf32> to vector<8x128xbf16>
    %c0_196 = arith.constant 0 : index
    %c0_197 = arith.constant 0 : index
    %500 = vector.load %arg10[%c0_196, %c0_197] : memref<128x384xbf16, #tpu.memory_space<vmem>>, vector<128x384xbf16>
    %cst_198 = arith.constant dense<0.000000e+00> : vector<8x384xf32>
    %501 = tpu.matmul %499, %500, %cst_198 {dimension_numbers = #tpu.dot_dimension_numbers<[1], [0], [0], [1], [0, 0, 1, 1], [], []>} : vector<8x128xbf16>, vector<128x384xbf16>, vector<8x384xf32> -> vector<8x384xf32>
    %502 = vector.extract_strided_slice %498 {offsets = [0, 0], sizes = [8, 128], strides = [1, 1]} : vector<8x384xf32> to vector<8x128xf32>
    %503 = vector.extract_strided_slice %501 {offsets = [0, 0], sizes = [8, 128], strides = [1, 1]} : vector<8x384xf32> to vector<8x128xf32>
    %504 = arith.addf %502, %503 : vector<8x128xf32>
    %505 = arith.negf %504 : vector<8x128xf32>
    %506 = math.exp %505 : vector<8x128xf32>
    %cst_199 = arith.constant 1.000000e+00 : f32
    %507 = vector.broadcast %cst_199 : f32 to vector<8x128xf32>
    %508 = arith.addf %507, %506 : vector<8x128xf32>
    %509 = arith.divf %507, %508 : vector<8x128xf32>
    %510 = vector.extract_strided_slice %498 {offsets = [0, 128], sizes = [8, 128], strides = [1, 1]} : vector<8x384xf32> to vector<8x128xf32>
    %511 = vector.extract_strided_slice %501 {offsets = [0, 128], sizes = [8, 128], strides = [1, 1]} : vector<8x384xf32> to vector<8x128xf32>
    %512 = arith.addf %510, %511 : vector<8x128xf32>
    %513 = arith.negf %512 : vector<8x128xf32>
    %514 = math.exp %513 : vector<8x128xf32>
    %cst_200 = arith.constant 1.000000e+00 : f32
    %515 = vector.broadcast %cst_200 : f32 to vector<8x128xf32>
    %516 = arith.addf %515, %514 : vector<8x128xf32>
    %517 = arith.divf %515, %516 : vector<8x128xf32>
    %518 = vector.extract_strided_slice %498 {offsets = [0, 256], sizes = [8, 128], strides = [1, 1]} : vector<8x384xf32> to vector<8x128xf32>
    %519 = vector.extract_strided_slice %501 {offsets = [0, 256], sizes = [8, 128], strides = [1, 1]} : vector<8x384xf32> to vector<8x128xf32>
    %520 = vector.broadcast %82 : vector<1x128xf32> to vector<8x128xf32>
    %521 = arith.addf %519, %520 : vector<8x128xf32>
    %522 = arith.mulf %509, %521 : vector<8x128xf32>
    %523 = arith.addf %518, %522 : vector<8x128xf32>
    %524 = math.tanh %523 : vector<8x128xf32>
    %cst_201 = arith.constant 1.000000e+00 : f32
    %525 = vector.broadcast %cst_201 : f32 to vector<8x128xf32>
    %526 = arith.subf %525, %517 : vector<8x128xf32>
    %527 = arith.mulf %526, %524 : vector<8x128xf32>
    %528 = arith.mulf %517, %488 : vector<8x128xf32>
    %529 = arith.addf %527, %528 : vector<8x128xf32>
    %530 = arith.truncf %529 : vector<8x128xf32> to vector<8x128xbf16>
    %531 = arith.index_cast %c10_i32 : i32 to index
    %c0_202 = arith.constant 0 : index
    %c0_203 = arith.constant 0 : index
    %532 = vector.load %arg12[%531, %c0_202, %c0_203] : memref<19x128x64xbf16, #tpu.memory_space<vmem>>, vector<1x128x64xbf16>
    %533 = vector.shape_cast %532 : vector<1x128x64xbf16> to vector<128x64xbf16>
    %cst_204 = arith.constant dense<0.000000e+00> : vector<8x64xf32>
    %534 = tpu.matmul %530, %533, %cst_204 {dimension_numbers = #tpu.dot_dimension_numbers<[1], [0], [0], [1], [0, 0, 1, 1], [], []>} : vector<8x128xbf16>, vector<128x64xbf16>, vector<8x64xf32> -> vector<8x64xf32>
    %535 = arith.addf %494, %534 : vector<8x64xf32>
    %c11_i32 = arith.constant 11 : i32
    %c8_i32_205 = arith.constant 8 : i32
    %536 = arith.muli %c11_i32, %c8_i32_205 : i32
    %537 = tpu.assume_multiple %536, 8 : i32
    %538 = arith.index_cast %537 : i32 to index
    %c0_206 = arith.constant 0 : index
    %539 = vector.load %arg20[%538, %c0_206] : memref<152x384xf32, #tpu.memory_space<vmem>>, vector<8x384xf32>
    %540 = arith.truncf %529 : vector<8x128xf32> to vector<8x128xbf16>
    %c0_207 = arith.constant 0 : index
    %c0_208 = arith.constant 0 : index
    %541 = vector.load %arg10[%c0_207, %c0_208] : memref<128x384xbf16, #tpu.memory_space<vmem>>, vector<128x384xbf16>
    %cst_209 = arith.constant dense<0.000000e+00> : vector<8x384xf32>
    %542 = tpu.matmul %540, %541, %cst_209 {dimension_numbers = #tpu.dot_dimension_numbers<[1], [0], [0], [1], [0, 0, 1, 1], [], []>} : vector<8x128xbf16>, vector<128x384xbf16>, vector<8x384xf32> -> vector<8x384xf32>
    %543 = vector.extract_strided_slice %539 {offsets = [0, 0], sizes = [8, 128], strides = [1, 1]} : vector<8x384xf32> to vector<8x128xf32>
    %544 = vector.extract_strided_slice %542 {offsets = [0, 0], sizes = [8, 128], strides = [1, 1]} : vector<8x384xf32> to vector<8x128xf32>
    %545 = arith.addf %543, %544 : vector<8x128xf32>
    %546 = arith.negf %545 : vector<8x128xf32>
    %547 = math.exp %546 : vector<8x128xf32>
    %cst_210 = arith.constant 1.000000e+00 : f32
    %548 = vector.broadcast %cst_210 : f32 to vector<8x128xf32>
    %549 = arith.addf %548, %547 : vector<8x128xf32>
    %550 = arith.divf %548, %549 : vector<8x128xf32>
    %551 = vector.extract_strided_slice %539 {offsets = [0, 128], sizes = [8, 128], strides = [1, 1]} : vector<8x384xf32> to vector<8x128xf32>
    %552 = vector.extract_strided_slice %542 {offsets = [0, 128], sizes = [8, 128], strides = [1, 1]} : vector<8x384xf32> to vector<8x128xf32>
    %553 = arith.addf %551, %552 : vector<8x128xf32>
    %554 = arith.negf %553 : vector<8x128xf32>
    %555 = math.exp %554 : vector<8x128xf32>
    %cst_211 = arith.constant 1.000000e+00 : f32
    %556 = vector.broadcast %cst_211 : f32 to vector<8x128xf32>
    %557 = arith.addf %556, %555 : vector<8x128xf32>
    %558 = arith.divf %556, %557 : vector<8x128xf32>
    %559 = vector.extract_strided_slice %539 {offsets = [0, 256], sizes = [8, 128], strides = [1, 1]} : vector<8x384xf32> to vector<8x128xf32>
    %560 = vector.extract_strided_slice %542 {offsets = [0, 256], sizes = [8, 128], strides = [1, 1]} : vector<8x384xf32> to vector<8x128xf32>
    %561 = vector.broadcast %82 : vector<1x128xf32> to vector<8x128xf32>
    %562 = arith.addf %560, %561 : vector<8x128xf32>
    %563 = arith.mulf %550, %562 : vector<8x128xf32>
    %564 = arith.addf %559, %563 : vector<8x128xf32>
    %565 = math.tanh %564 : vector<8x128xf32>
    %cst_212 = arith.constant 1.000000e+00 : f32
    %566 = vector.broadcast %cst_212 : f32 to vector<8x128xf32>
    %567 = arith.subf %566, %558 : vector<8x128xf32>
    %568 = arith.mulf %567, %565 : vector<8x128xf32>
    %569 = arith.mulf %558, %529 : vector<8x128xf32>
    %570 = arith.addf %568, %569 : vector<8x128xf32>
    %571 = arith.truncf %570 : vector<8x128xf32> to vector<8x128xbf16>
    %572 = arith.index_cast %c11_i32 : i32 to index
    %c0_213 = arith.constant 0 : index
    %c0_214 = arith.constant 0 : index
    %573 = vector.load %arg12[%572, %c0_213, %c0_214] : memref<19x128x64xbf16, #tpu.memory_space<vmem>>, vector<1x128x64xbf16>
    %574 = vector.shape_cast %573 : vector<1x128x64xbf16> to vector<128x64xbf16>
    %cst_215 = arith.constant dense<0.000000e+00> : vector<8x64xf32>
    %575 = tpu.matmul %571, %574, %cst_215 {dimension_numbers = #tpu.dot_dimension_numbers<[1], [0], [0], [1], [0, 0, 1, 1], [], []>} : vector<8x128xbf16>, vector<128x64xbf16>, vector<8x64xf32> -> vector<8x64xf32>
    %576 = arith.addf %535, %575 : vector<8x64xf32>
    %c12_i32 = arith.constant 12 : i32
    %c8_i32_216 = arith.constant 8 : i32
    %577 = arith.muli %c12_i32, %c8_i32_216 : i32
    %578 = tpu.assume_multiple %577, 8 : i32
    %579 = arith.index_cast %578 : i32 to index
    %c0_217 = arith.constant 0 : index
    %580 = vector.load %arg20[%579, %c0_217] : memref<152x384xf32, #tpu.memory_space<vmem>>, vector<8x384xf32>
    %581 = arith.truncf %570 : vector<8x128xf32> to vector<8x128xbf16>
    %c0_218 = arith.constant 0 : index
    %c0_219 = arith.constant 0 : index
    %582 = vector.load %arg10[%c0_218, %c0_219] : memref<128x384xbf16, #tpu.memory_space<vmem>>, vector<128x384xbf16>
    %cst_220 = arith.constant dense<0.000000e+00> : vector<8x384xf32>
    %583 = tpu.matmul %581, %582, %cst_220 {dimension_numbers = #tpu.dot_dimension_numbers<[1], [0], [0], [1], [0, 0, 1, 1], [], []>} : vector<8x128xbf16>, vector<128x384xbf16>, vector<8x384xf32> -> vector<8x384xf32>
    %584 = vector.extract_strided_slice %580 {offsets = [0, 0], sizes = [8, 128], strides = [1, 1]} : vector<8x384xf32> to vector<8x128xf32>
    %585 = vector.extract_strided_slice %583 {offsets = [0, 0], sizes = [8, 128], strides = [1, 1]} : vector<8x384xf32> to vector<8x128xf32>
    %586 = arith.addf %584, %585 : vector<8x128xf32>
    %587 = arith.negf %586 : vector<8x128xf32>
    %588 = math.exp %587 : vector<8x128xf32>
    %cst_221 = arith.constant 1.000000e+00 : f32
    %589 = vector.broadcast %cst_221 : f32 to vector<8x128xf32>
    %590 = arith.addf %589, %588 : vector<8x128xf32>
    %591 = arith.divf %589, %590 : vector<8x128xf32>
    %592 = vector.extract_strided_slice %580 {offsets = [0, 128], sizes = [8, 128], strides = [1, 1]} : vector<8x384xf32> to vector<8x128xf32>
    %593 = vector.extract_strided_slice %583 {offsets = [0, 128], sizes = [8, 128], strides = [1, 1]} : vector<8x384xf32> to vector<8x128xf32>
    %594 = arith.addf %592, %593 : vector<8x128xf32>
    %595 = arith.negf %594 : vector<8x128xf32>
    %596 = math.exp %595 : vector<8x128xf32>
    %cst_222 = arith.constant 1.000000e+00 : f32
    %597 = vector.broadcast %cst_222 : f32 to vector<8x128xf32>
    %598 = arith.addf %597, %596 : vector<8x128xf32>
    %599 = arith.divf %597, %598 : vector<8x128xf32>
    %600 = vector.extract_strided_slice %580 {offsets = [0, 256], sizes = [8, 128], strides = [1, 1]} : vector<8x384xf32> to vector<8x128xf32>
    %601 = vector.extract_strided_slice %583 {offsets = [0, 256], sizes = [8, 128], strides = [1, 1]} : vector<8x384xf32> to vector<8x128xf32>
    %602 = vector.broadcast %82 : vector<1x128xf32> to vector<8x128xf32>
    %603 = arith.addf %601, %602 : vector<8x128xf32>
    %604 = arith.mulf %591, %603 : vector<8x128xf32>
    %605 = arith.addf %600, %604 : vector<8x128xf32>
    %606 = math.tanh %605 : vector<8x128xf32>
    %cst_223 = arith.constant 1.000000e+00 : f32
    %607 = vector.broadcast %cst_223 : f32 to vector<8x128xf32>
    %608 = arith.subf %607, %599 : vector<8x128xf32>
    %609 = arith.mulf %608, %606 : vector<8x128xf32>
    %610 = arith.mulf %599, %570 : vector<8x128xf32>
    %611 = arith.addf %609, %610 : vector<8x128xf32>
    %612 = arith.truncf %611 : vector<8x128xf32> to vector<8x128xbf16>
    %613 = arith.index_cast %c12_i32 : i32 to index
    %c0_224 = arith.constant 0 : index
    %c0_225 = arith.constant 0 : index
    %614 = vector.load %arg12[%613, %c0_224, %c0_225] : memref<19x128x64xbf16, #tpu.memory_space<vmem>>, vector<1x128x64xbf16>
    %615 = vector.shape_cast %614 : vector<1x128x64xbf16> to vector<128x64xbf16>
    %cst_226 = arith.constant dense<0.000000e+00> : vector<8x64xf32>
    %616 = tpu.matmul %612, %615, %cst_226 {dimension_numbers = #tpu.dot_dimension_numbers<[1], [0], [0], [1], [0, 0, 1, 1], [], []>} : vector<8x128xbf16>, vector<128x64xbf16>, vector<8x64xf32> -> vector<8x64xf32>
    %617 = arith.addf %576, %616 : vector<8x64xf32>
    %c13_i32 = arith.constant 13 : i32
    %c8_i32_227 = arith.constant 8 : i32
    %618 = arith.muli %c13_i32, %c8_i32_227 : i32
    %619 = tpu.assume_multiple %618, 8 : i32
    %620 = arith.index_cast %619 : i32 to index
    %c0_228 = arith.constant 0 : index
    %621 = vector.load %arg20[%620, %c0_228] : memref<152x384xf32, #tpu.memory_space<vmem>>, vector<8x384xf32>
    %622 = arith.truncf %611 : vector<8x128xf32> to vector<8x128xbf16>
    %c0_229 = arith.constant 0 : index
    %c0_230 = arith.constant 0 : index
    %623 = vector.load %arg10[%c0_229, %c0_230] : memref<128x384xbf16, #tpu.memory_space<vmem>>, vector<128x384xbf16>
    %cst_231 = arith.constant dense<0.000000e+00> : vector<8x384xf32>
    %624 = tpu.matmul %622, %623, %cst_231 {dimension_numbers = #tpu.dot_dimension_numbers<[1], [0], [0], [1], [0, 0, 1, 1], [], []>} : vector<8x128xbf16>, vector<128x384xbf16>, vector<8x384xf32> -> vector<8x384xf32>
    %625 = vector.extract_strided_slice %621 {offsets = [0, 0], sizes = [8, 128], strides = [1, 1]} : vector<8x384xf32> to vector<8x128xf32>
    %626 = vector.extract_strided_slice %624 {offsets = [0, 0], sizes = [8, 128], strides = [1, 1]} : vector<8x384xf32> to vector<8x128xf32>
    %627 = arith.addf %625, %626 : vector<8x128xf32>
    %628 = arith.negf %627 : vector<8x128xf32>
    %629 = math.exp %628 : vector<8x128xf32>
    %cst_232 = arith.constant 1.000000e+00 : f32
    %630 = vector.broadcast %cst_232 : f32 to vector<8x128xf32>
    %631 = arith.addf %630, %629 : vector<8x128xf32>
    %632 = arith.divf %630, %631 : vector<8x128xf32>
    %633 = vector.extract_strided_slice %621 {offsets = [0, 128], sizes = [8, 128], strides = [1, 1]} : vector<8x384xf32> to vector<8x128xf32>
    %634 = vector.extract_strided_slice %624 {offsets = [0, 128], sizes = [8, 128], strides = [1, 1]} : vector<8x384xf32> to vector<8x128xf32>
    %635 = arith.addf %633, %634 : vector<8x128xf32>
    %636 = arith.negf %635 : vector<8x128xf32>
    %637 = math.exp %636 : vector<8x128xf32>
    %cst_233 = arith.constant 1.000000e+00 : f32
    %638 = vector.broadcast %cst_233 : f32 to vector<8x128xf32>
    %639 = arith.addf %638, %637 : vector<8x128xf32>
    %640 = arith.divf %638, %639 : vector<8x128xf32>
    %641 = vector.extract_strided_slice %621 {offsets = [0, 256], sizes = [8, 128], strides = [1, 1]} : vector<8x384xf32> to vector<8x128xf32>
    %642 = vector.extract_strided_slice %624 {offsets = [0, 256], sizes = [8, 128], strides = [1, 1]} : vector<8x384xf32> to vector<8x128xf32>
    %643 = vector.broadcast %82 : vector<1x128xf32> to vector<8x128xf32>
    %644 = arith.addf %642, %643 : vector<8x128xf32>
    %645 = arith.mulf %632, %644 : vector<8x128xf32>
    %646 = arith.addf %641, %645 : vector<8x128xf32>
    %647 = math.tanh %646 : vector<8x128xf32>
    %cst_234 = arith.constant 1.000000e+00 : f32
    %648 = vector.broadcast %cst_234 : f32 to vector<8x128xf32>
    %649 = arith.subf %648, %640 : vector<8x128xf32>
    %650 = arith.mulf %649, %647 : vector<8x128xf32>
    %651 = arith.mulf %640, %611 : vector<8x128xf32>
    %652 = arith.addf %650, %651 : vector<8x128xf32>
    %653 = arith.truncf %652 : vector<8x128xf32> to vector<8x128xbf16>
    %654 = arith.index_cast %c13_i32 : i32 to index
    %c0_235 = arith.constant 0 : index
    %c0_236 = arith.constant 0 : index
    %655 = vector.load %arg12[%654, %c0_235, %c0_236] : memref<19x128x64xbf16, #tpu.memory_space<vmem>>, vector<1x128x64xbf16>
    %656 = vector.shape_cast %655 : vector<1x128x64xbf16> to vector<128x64xbf16>
    %cst_237 = arith.constant dense<0.000000e+00> : vector<8x64xf32>
    %657 = tpu.matmul %653, %656, %cst_237 {dimension_numbers = #tpu.dot_dimension_numbers<[1], [0], [0], [1], [0, 0, 1, 1], [], []>} : vector<8x128xbf16>, vector<128x64xbf16>, vector<8x64xf32> -> vector<8x64xf32>
    %658 = arith.addf %617, %657 : vector<8x64xf32>
    %c14_i32 = arith.constant 14 : i32
    %c8_i32_238 = arith.constant 8 : i32
    %659 = arith.muli %c14_i32, %c8_i32_238 : i32
    %660 = tpu.assume_multiple %659, 8 : i32
    %661 = arith.index_cast %660 : i32 to index
    %c0_239 = arith.constant 0 : index
    %662 = vector.load %arg20[%661, %c0_239] : memref<152x384xf32, #tpu.memory_space<vmem>>, vector<8x384xf32>
    %663 = arith.truncf %652 : vector<8x128xf32> to vector<8x128xbf16>
    %c0_240 = arith.constant 0 : index
    %c0_241 = arith.constant 0 : index
    %664 = vector.load %arg10[%c0_240, %c0_241] : memref<128x384xbf16, #tpu.memory_space<vmem>>, vector<128x384xbf16>
    %cst_242 = arith.constant dense<0.000000e+00> : vector<8x384xf32>
    %665 = tpu.matmul %663, %664, %cst_242 {dimension_numbers = #tpu.dot_dimension_numbers<[1], [0], [0], [1], [0, 0, 1, 1], [], []>} : vector<8x128xbf16>, vector<128x384xbf16>, vector<8x384xf32> -> vector<8x384xf32>
    %666 = vector.extract_strided_slice %662 {offsets = [0, 0], sizes = [8, 128], strides = [1, 1]} : vector<8x384xf32> to vector<8x128xf32>
    %667 = vector.extract_strided_slice %665 {offsets = [0, 0], sizes = [8, 128], strides = [1, 1]} : vector<8x384xf32> to vector<8x128xf32>
    %668 = arith.addf %666, %667 : vector<8x128xf32>
    %669 = arith.negf %668 : vector<8x128xf32>
    %670 = math.exp %669 : vector<8x128xf32>
    %cst_243 = arith.constant 1.000000e+00 : f32
    %671 = vector.broadcast %cst_243 : f32 to vector<8x128xf32>
    %672 = arith.addf %671, %670 : vector<8x128xf32>
    %673 = arith.divf %671, %672 : vector<8x128xf32>
    %674 = vector.extract_strided_slice %662 {offsets = [0, 128], sizes = [8, 128], strides = [1, 1]} : vector<8x384xf32> to vector<8x128xf32>
    %675 = vector.extract_strided_slice %665 {offsets = [0, 128], sizes = [8, 128], strides = [1, 1]} : vector<8x384xf32> to vector<8x128xf32>
    %676 = arith.addf %674, %675 : vector<8x128xf32>
    %677 = arith.negf %676 : vector<8x128xf32>
    %678 = math.exp %677 : vector<8x128xf32>
    %cst_244 = arith.constant 1.000000e+00 : f32
    %679 = vector.broadcast %cst_244 : f32 to vector<8x128xf32>
    %680 = arith.addf %679, %678 : vector<8x128xf32>
    %681 = arith.divf %679, %680 : vector<8x128xf32>
    %682 = vector.extract_strided_slice %662 {offsets = [0, 256], sizes = [8, 128], strides = [1, 1]} : vector<8x384xf32> to vector<8x128xf32>
    %683 = vector.extract_strided_slice %665 {offsets = [0, 256], sizes = [8, 128], strides = [1, 1]} : vector<8x384xf32> to vector<8x128xf32>
    %684 = vector.broadcast %82 : vector<1x128xf32> to vector<8x128xf32>
    %685 = arith.addf %683, %684 : vector<8x128xf32>
    %686 = arith.mulf %673, %685 : vector<8x128xf32>
    %687 = arith.addf %682, %686 : vector<8x128xf32>
    %688 = math.tanh %687 : vector<8x128xf32>
    %cst_245 = arith.constant 1.000000e+00 : f32
    %689 = vector.broadcast %cst_245 : f32 to vector<8x128xf32>
    %690 = arith.subf %689, %681 : vector<8x128xf32>
    %691 = arith.mulf %690, %688 : vector<8x128xf32>
    %692 = arith.mulf %681, %652 : vector<8x128xf32>
    %693 = arith.addf %691, %692 : vector<8x128xf32>
    %694 = arith.truncf %693 : vector<8x128xf32> to vector<8x128xbf16>
    %695 = arith.index_cast %c14_i32 : i32 to index
    %c0_246 = arith.constant 0 : index
    %c0_247 = arith.constant 0 : index
    %696 = vector.load %arg12[%695, %c0_246, %c0_247] : memref<19x128x64xbf16, #tpu.memory_space<vmem>>, vector<1x128x64xbf16>
    %697 = vector.shape_cast %696 : vector<1x128x64xbf16> to vector<128x64xbf16>
    %cst_248 = arith.constant dense<0.000000e+00> : vector<8x64xf32>
    %698 = tpu.matmul %694, %697, %cst_248 {dimension_numbers = #tpu.dot_dimension_numbers<[1], [0], [0], [1], [0, 0, 1, 1], [], []>} : vector<8x128xbf16>, vector<128x64xbf16>, vector<8x64xf32> -> vector<8x64xf32>
    %699 = arith.addf %658, %698 : vector<8x64xf32>
    %c15_i32 = arith.constant 15 : i32
    %c8_i32_249 = arith.constant 8 : i32
    %700 = arith.muli %c15_i32, %c8_i32_249 : i32
    %701 = tpu.assume_multiple %700, 8 : i32
    %702 = arith.index_cast %701 : i32 to index
    %c0_250 = arith.constant 0 : index
    %703 = vector.load %arg20[%702, %c0_250] : memref<152x384xf32, #tpu.memory_space<vmem>>, vector<8x384xf32>
    %704 = arith.truncf %693 : vector<8x128xf32> to vector<8x128xbf16>
    %c0_251 = arith.constant 0 : index
    %c0_252 = arith.constant 0 : index
    %705 = vector.load %arg10[%c0_251, %c0_252] : memref<128x384xbf16, #tpu.memory_space<vmem>>, vector<128x384xbf16>
    %cst_253 = arith.constant dense<0.000000e+00> : vector<8x384xf32>
    %706 = tpu.matmul %704, %705, %cst_253 {dimension_numbers = #tpu.dot_dimension_numbers<[1], [0], [0], [1], [0, 0, 1, 1], [], []>} : vector<8x128xbf16>, vector<128x384xbf16>, vector<8x384xf32> -> vector<8x384xf32>
    %707 = vector.extract_strided_slice %703 {offsets = [0, 0], sizes = [8, 128], strides = [1, 1]} : vector<8x384xf32> to vector<8x128xf32>
    %708 = vector.extract_strided_slice %706 {offsets = [0, 0], sizes = [8, 128], strides = [1, 1]} : vector<8x384xf32> to vector<8x128xf32>
    %709 = arith.addf %707, %708 : vector<8x128xf32>
    %710 = arith.negf %709 : vector<8x128xf32>
    %711 = math.exp %710 : vector<8x128xf32>
    %cst_254 = arith.constant 1.000000e+00 : f32
    %712 = vector.broadcast %cst_254 : f32 to vector<8x128xf32>
    %713 = arith.addf %712, %711 : vector<8x128xf32>
    %714 = arith.divf %712, %713 : vector<8x128xf32>
    %715 = vector.extract_strided_slice %703 {offsets = [0, 128], sizes = [8, 128], strides = [1, 1]} : vector<8x384xf32> to vector<8x128xf32>
    %716 = vector.extract_strided_slice %706 {offsets = [0, 128], sizes = [8, 128], strides = [1, 1]} : vector<8x384xf32> to vector<8x128xf32>
    %717 = arith.addf %715, %716 : vector<8x128xf32>
    %718 = arith.negf %717 : vector<8x128xf32>
    %719 = math.exp %718 : vector<8x128xf32>
    %cst_255 = arith.constant 1.000000e+00 : f32
    %720 = vector.broadcast %cst_255 : f32 to vector<8x128xf32>
    %721 = arith.addf %720, %719 : vector<8x128xf32>
    %722 = arith.divf %720, %721 : vector<8x128xf32>
    %723 = vector.extract_strided_slice %703 {offsets = [0, 256], sizes = [8, 128], strides = [1, 1]} : vector<8x384xf32> to vector<8x128xf32>
    %724 = vector.extract_strided_slice %706 {offsets = [0, 256], sizes = [8, 128], strides = [1, 1]} : vector<8x384xf32> to vector<8x128xf32>
    %725 = vector.broadcast %82 : vector<1x128xf32> to vector<8x128xf32>
    %726 = arith.addf %724, %725 : vector<8x128xf32>
    %727 = arith.mulf %714, %726 : vector<8x128xf32>
    %728 = arith.addf %723, %727 : vector<8x128xf32>
    %729 = math.tanh %728 : vector<8x128xf32>
    %cst_256 = arith.constant 1.000000e+00 : f32
    %730 = vector.broadcast %cst_256 : f32 to vector<8x128xf32>
    %731 = arith.subf %730, %722 : vector<8x128xf32>
    %732 = arith.mulf %731, %729 : vector<8x128xf32>
    %733 = arith.mulf %722, %693 : vector<8x128xf32>
    %734 = arith.addf %732, %733 : vector<8x128xf32>
    %735 = arith.truncf %734 : vector<8x128xf32> to vector<8x128xbf16>
    %736 = arith.index_cast %c15_i32 : i32 to index
    %c0_257 = arith.constant 0 : index
    %c0_258 = arith.constant 0 : index
    %737 = vector.load %arg12[%736, %c0_257, %c0_258] : memref<19x128x64xbf16, #tpu.memory_space<vmem>>, vector<1x128x64xbf16>
    %738 = vector.shape_cast %737 : vector<1x128x64xbf16> to vector<128x64xbf16>
    %cst_259 = arith.constant dense<0.000000e+00> : vector<8x64xf32>
    %739 = tpu.matmul %735, %738, %cst_259 {dimension_numbers = #tpu.dot_dimension_numbers<[1], [0], [0], [1], [0, 0, 1, 1], [], []>} : vector<8x128xbf16>, vector<128x64xbf16>, vector<8x64xf32> -> vector<8x64xf32>
    %740 = arith.addf %699, %739 : vector<8x64xf32>
    %c16_i32 = arith.constant 16 : i32
    %c8_i32_260 = arith.constant 8 : i32
    %741 = arith.muli %c16_i32, %c8_i32_260 : i32
    %742 = tpu.assume_multiple %741, 8 : i32
    %743 = arith.index_cast %742 : i32 to index
    %c0_261 = arith.constant 0 : index
    %744 = vector.load %arg20[%743, %c0_261] : memref<152x384xf32, #tpu.memory_space<vmem>>, vector<8x384xf32>
    %745 = arith.truncf %734 : vector<8x128xf32> to vector<8x128xbf16>
    %c0_262 = arith.constant 0 : index
    %c0_263 = arith.constant 0 : index
    %746 = vector.load %arg10[%c0_262, %c0_263] : memref<128x384xbf16, #tpu.memory_space<vmem>>, vector<128x384xbf16>
    %cst_264 = arith.constant dense<0.000000e+00> : vector<8x384xf32>
    %747 = tpu.matmul %745, %746, %cst_264 {dimension_numbers = #tpu.dot_dimension_numbers<[1], [0], [0], [1], [0, 0, 1, 1], [], []>} : vector<8x128xbf16>, vector<128x384xbf16>, vector<8x384xf32> -> vector<8x384xf32>
    %748 = vector.extract_strided_slice %744 {offsets = [0, 0], sizes = [8, 128], strides = [1, 1]} : vector<8x384xf32> to vector<8x128xf32>
    %749 = vector.extract_strided_slice %747 {offsets = [0, 0], sizes = [8, 128], strides = [1, 1]} : vector<8x384xf32> to vector<8x128xf32>
    %750 = arith.addf %748, %749 : vector<8x128xf32>
    %751 = arith.negf %750 : vector<8x128xf32>
    %752 = math.exp %751 : vector<8x128xf32>
    %cst_265 = arith.constant 1.000000e+00 : f32
    %753 = vector.broadcast %cst_265 : f32 to vector<8x128xf32>
    %754 = arith.addf %753, %752 : vector<8x128xf32>
    %755 = arith.divf %753, %754 : vector<8x128xf32>
    %756 = vector.extract_strided_slice %744 {offsets = [0, 128], sizes = [8, 128], strides = [1, 1]} : vector<8x384xf32> to vector<8x128xf32>
    %757 = vector.extract_strided_slice %747 {offsets = [0, 128], sizes = [8, 128], strides = [1, 1]} : vector<8x384xf32> to vector<8x128xf32>
    %758 = arith.addf %756, %757 : vector<8x128xf32>
    %759 = arith.negf %758 : vector<8x128xf32>
    %760 = math.exp %759 : vector<8x128xf32>
    %cst_266 = arith.constant 1.000000e+00 : f32
    %761 = vector.broadcast %cst_266 : f32 to vector<8x128xf32>
    %762 = arith.addf %761, %760 : vector<8x128xf32>
    %763 = arith.divf %761, %762 : vector<8x128xf32>
    %764 = vector.extract_strided_slice %744 {offsets = [0, 256], sizes = [8, 128], strides = [1, 1]} : vector<8x384xf32> to vector<8x128xf32>
    %765 = vector.extract_strided_slice %747 {offsets = [0, 256], sizes = [8, 128], strides = [1, 1]} : vector<8x384xf32> to vector<8x128xf32>
    %766 = vector.broadcast %82 : vector<1x128xf32> to vector<8x128xf32>
    %767 = arith.addf %765, %766 : vector<8x128xf32>
    %768 = arith.mulf %755, %767 : vector<8x128xf32>
    %769 = arith.addf %764, %768 : vector<8x128xf32>
    %770 = math.tanh %769 : vector<8x128xf32>
    %cst_267 = arith.constant 1.000000e+00 : f32
    %771 = vector.broadcast %cst_267 : f32 to vector<8x128xf32>
    %772 = arith.subf %771, %763 : vector<8x128xf32>
    %773 = arith.mulf %772, %770 : vector<8x128xf32>
    %774 = arith.mulf %763, %734 : vector<8x128xf32>
    %775 = arith.addf %773, %774 : vector<8x128xf32>
    %776 = arith.truncf %775 : vector<8x128xf32> to vector<8x128xbf16>
    %777 = arith.index_cast %c16_i32 : i32 to index
    %c0_268 = arith.constant 0 : index
    %c0_269 = arith.constant 0 : index
    %778 = vector.load %arg12[%777, %c0_268, %c0_269] : memref<19x128x64xbf16, #tpu.memory_space<vmem>>, vector<1x128x64xbf16>
    %779 = vector.shape_cast %778 : vector<1x128x64xbf16> to vector<128x64xbf16>
    %cst_270 = arith.constant dense<0.000000e+00> : vector<8x64xf32>
    %780 = tpu.matmul %776, %779, %cst_270 {dimension_numbers = #tpu.dot_dimension_numbers<[1], [0], [0], [1], [0, 0, 1, 1], [], []>} : vector<8x128xbf16>, vector<128x64xbf16>, vector<8x64xf32> -> vector<8x64xf32>
    %781 = arith.addf %740, %780 : vector<8x64xf32>
    %c17_i32 = arith.constant 17 : i32
    %c8_i32_271 = arith.constant 8 : i32
    %782 = arith.muli %c17_i32, %c8_i32_271 : i32
    %783 = tpu.assume_multiple %782, 8 : i32
    %784 = arith.index_cast %783 : i32 to index
    %c0_272 = arith.constant 0 : index
    %785 = vector.load %arg20[%784, %c0_272] : memref<152x384xf32, #tpu.memory_space<vmem>>, vector<8x384xf32>
    %786 = arith.truncf %775 : vector<8x128xf32> to vector<8x128xbf16>
    %c0_273 = arith.constant 0 : index
    %c0_274 = arith.constant 0 : index
    %787 = vector.load %arg10[%c0_273, %c0_274] : memref<128x384xbf16, #tpu.memory_space<vmem>>, vector<128x384xbf16>
    %cst_275 = arith.constant dense<0.000000e+00> : vector<8x384xf32>
    %788 = tpu.matmul %786, %787, %cst_275 {dimension_numbers = #tpu.dot_dimension_numbers<[1], [0], [0], [1], [0, 0, 1, 1], [], []>} : vector<8x128xbf16>, vector<128x384xbf16>, vector<8x384xf32> -> vector<8x384xf32>
    %789 = vector.extract_strided_slice %785 {offsets = [0, 0], sizes = [8, 128], strides = [1, 1]} : vector<8x384xf32> to vector<8x128xf32>
    %790 = vector.extract_strided_slice %788 {offsets = [0, 0], sizes = [8, 128], strides = [1, 1]} : vector<8x384xf32> to vector<8x128xf32>
    %791 = arith.addf %789, %790 : vector<8x128xf32>
    %792 = arith.negf %791 : vector<8x128xf32>
    %793 = math.exp %792 : vector<8x128xf32>
    %cst_276 = arith.constant 1.000000e+00 : f32
    %794 = vector.broadcast %cst_276 : f32 to vector<8x128xf32>
    %795 = arith.addf %794, %793 : vector<8x128xf32>
    %796 = arith.divf %794, %795 : vector<8x128xf32>
    %797 = vector.extract_strided_slice %785 {offsets = [0, 128], sizes = [8, 128], strides = [1, 1]} : vector<8x384xf32> to vector<8x128xf32>
    %798 = vector.extract_strided_slice %788 {offsets = [0, 128], sizes = [8, 128], strides = [1, 1]} : vector<8x384xf32> to vector<8x128xf32>
    %799 = arith.addf %797, %798 : vector<8x128xf32>
    %800 = arith.negf %799 : vector<8x128xf32>
    %801 = math.exp %800 : vector<8x128xf32>
    %cst_277 = arith.constant 1.000000e+00 : f32
    %802 = vector.broadcast %cst_277 : f32 to vector<8x128xf32>
    %803 = arith.addf %802, %801 : vector<8x128xf32>
    %804 = arith.divf %802, %803 : vector<8x128xf32>
    %805 = vector.extract_strided_slice %785 {offsets = [0, 256], sizes = [8, 128], strides = [1, 1]} : vector<8x384xf32> to vector<8x128xf32>
    %806 = vector.extract_strided_slice %788 {offsets = [0, 256], sizes = [8, 128], strides = [1, 1]} : vector<8x384xf32> to vector<8x128xf32>
    %807 = vector.broadcast %82 : vector<1x128xf32> to vector<8x128xf32>
    %808 = arith.addf %806, %807 : vector<8x128xf32>
    %809 = arith.mulf %796, %808 : vector<8x128xf32>
    %810 = arith.addf %805, %809 : vector<8x128xf32>
    %811 = math.tanh %810 : vector<8x128xf32>
    %cst_278 = arith.constant 1.000000e+00 : f32
    %812 = vector.broadcast %cst_278 : f32 to vector<8x128xf32>
    %813 = arith.subf %812, %804 : vector<8x128xf32>
    %814 = arith.mulf %813, %811 : vector<8x128xf32>
    %815 = arith.mulf %804, %775 : vector<8x128xf32>
    %816 = arith.addf %814, %815 : vector<8x128xf32>
    %817 = arith.truncf %816 : vector<8x128xf32> to vector<8x128xbf16>
    %818 = arith.index_cast %c17_i32 : i32 to index
    %c0_279 = arith.constant 0 : index
    %c0_280 = arith.constant 0 : index
    %819 = vector.load %arg12[%818, %c0_279, %c0_280] : memref<19x128x64xbf16, #tpu.memory_space<vmem>>, vector<1x128x64xbf16>
    %820 = vector.shape_cast %819 : vector<1x128x64xbf16> to vector<128x64xbf16>
    %cst_281 = arith.constant dense<0.000000e+00> : vector<8x64xf32>
    %821 = tpu.matmul %817, %820, %cst_281 {dimension_numbers = #tpu.dot_dimension_numbers<[1], [0], [0], [1], [0, 0, 1, 1], [], []>} : vector<8x128xbf16>, vector<128x64xbf16>, vector<8x64xf32> -> vector<8x64xf32>
    %822 = arith.addf %781, %821 : vector<8x64xf32>
    %c18_i32 = arith.constant 18 : i32
    %c8_i32_282 = arith.constant 8 : i32
    %823 = arith.muli %c18_i32, %c8_i32_282 : i32
    %824 = tpu.assume_multiple %823, 8 : i32
    %825 = arith.index_cast %824 : i32 to index
    %c0_283 = arith.constant 0 : index
    %826 = vector.load %arg20[%825, %c0_283] : memref<152x384xf32, #tpu.memory_space<vmem>>, vector<8x384xf32>
    %827 = arith.truncf %816 : vector<8x128xf32> to vector<8x128xbf16>
    %c0_284 = arith.constant 0 : index
    %c0_285 = arith.constant 0 : index
    %828 = vector.load %arg10[%c0_284, %c0_285] : memref<128x384xbf16, #tpu.memory_space<vmem>>, vector<128x384xbf16>
    %cst_286 = arith.constant dense<0.000000e+00> : vector<8x384xf32>
    %829 = tpu.matmul %827, %828, %cst_286 {dimension_numbers = #tpu.dot_dimension_numbers<[1], [0], [0], [1], [0, 0, 1, 1], [], []>} : vector<8x128xbf16>, vector<128x384xbf16>, vector<8x384xf32> -> vector<8x384xf32>
    %830 = vector.extract_strided_slice %826 {offsets = [0, 0], sizes = [8, 128], strides = [1, 1]} : vector<8x384xf32> to vector<8x128xf32>
    %831 = vector.extract_strided_slice %829 {offsets = [0, 0], sizes = [8, 128], strides = [1, 1]} : vector<8x384xf32> to vector<8x128xf32>
    %832 = arith.addf %830, %831 : vector<8x128xf32>
    %833 = arith.negf %832 : vector<8x128xf32>
    %834 = math.exp %833 : vector<8x128xf32>
    %cst_287 = arith.constant 1.000000e+00 : f32
    %835 = vector.broadcast %cst_287 : f32 to vector<8x128xf32>
    %836 = arith.addf %835, %834 : vector<8x128xf32>
    %837 = arith.divf %835, %836 : vector<8x128xf32>
    %838 = vector.extract_strided_slice %826 {offsets = [0, 128], sizes = [8, 128], strides = [1, 1]} : vector<8x384xf32> to vector<8x128xf32>
    %839 = vector.extract_strided_slice %829 {offsets = [0, 128], sizes = [8, 128], strides = [1, 1]} : vector<8x384xf32> to vector<8x128xf32>
    %840 = arith.addf %838, %839 : vector<8x128xf32>
    %841 = arith.negf %840 : vector<8x128xf32>
    %842 = math.exp %841 : vector<8x128xf32>
    %cst_288 = arith.constant 1.000000e+00 : f32
    %843 = vector.broadcast %cst_288 : f32 to vector<8x128xf32>
    %844 = arith.addf %843, %842 : vector<8x128xf32>
    %845 = arith.divf %843, %844 : vector<8x128xf32>
    %846 = vector.extract_strided_slice %826 {offsets = [0, 256], sizes = [8, 128], strides = [1, 1]} : vector<8x384xf32> to vector<8x128xf32>
    %847 = vector.extract_strided_slice %829 {offsets = [0, 256], sizes = [8, 128], strides = [1, 1]} : vector<8x384xf32> to vector<8x128xf32>
    %848 = vector.broadcast %82 : vector<1x128xf32> to vector<8x128xf32>
    %849 = arith.addf %847, %848 : vector<8x128xf32>
    %850 = arith.mulf %837, %849 : vector<8x128xf32>
    %851 = arith.addf %846, %850 : vector<8x128xf32>
    %852 = math.tanh %851 : vector<8x128xf32>
    %cst_289 = arith.constant 1.000000e+00 : f32
    %853 = vector.broadcast %cst_289 : f32 to vector<8x128xf32>
    %854 = arith.subf %853, %845 : vector<8x128xf32>
    %855 = arith.mulf %854, %852 : vector<8x128xf32>
    %856 = arith.mulf %845, %816 : vector<8x128xf32>
    %857 = arith.addf %855, %856 : vector<8x128xf32>
    %858 = arith.truncf %857 : vector<8x128xf32> to vector<8x128xbf16>
    %859 = arith.index_cast %c18_i32 : i32 to index
    %c0_290 = arith.constant 0 : index
    %c0_291 = arith.constant 0 : index
    %860 = vector.load %arg12[%859, %c0_290, %c0_291] : memref<19x128x64xbf16, #tpu.memory_space<vmem>>, vector<1x128x64xbf16>
    %861 = vector.shape_cast %860 : vector<1x128x64xbf16> to vector<128x64xbf16>
    %cst_292 = arith.constant dense<0.000000e+00> : vector<8x64xf32>
    %862 = tpu.matmul %858, %861, %cst_292 {dimension_numbers = #tpu.dot_dimension_numbers<[1], [0], [0], [1], [0, 0, 1, 1], [], []>} : vector<8x128xbf16>, vector<128x64xbf16>, vector<8x64xf32> -> vector<8x64xf32>
    %863 = arith.addf %822, %862 : vector<8x64xf32>
    %c19_i32 = arith.constant 19 : i32
    %c0_293 = arith.constant 0 : index
    %c0_294 = arith.constant 0 : index
    %864 = vector.load %arg13[%c0_293, %c0_294] : memref<1x64xf32, #tpu.memory_space<vmem>>, vector<1x64xf32>
    %865 = vector.broadcast %864 : vector<1x64xf32> to vector<8x64xf32>
    %866 = arith.mulf %863, %865 : vector<8x64xf32>
    %c0_295 = arith.constant 0 : index
    %c0_296 = arith.constant 0 : index
    %867 = vector.load %arg14[%c0_295, %c0_296] : memref<1x64xf32, #tpu.memory_space<vmem>>, vector<1x64xf32>
    %868 = vector.broadcast %867 : vector<1x64xf32> to vector<8x64xf32>
    %869 = arith.addf %866, %868 : vector<8x64xf32>
    %cst_297 = arith.constant 0.000000e+00 : f32
    %870 = vector.broadcast %cst_297 : f32 to vector<8x64xf32>
    %871 = arith.maximumf %869, %870 : vector<8x64xf32>
    %872 = arith.truncf %871 : vector<8x64xf32> to vector<8x64xbf16>
    %c0_298 = arith.constant 0 : index
    %c0_299 = arith.constant 0 : index
    %873 = vector.load %arg15[%c0_298, %c0_299] : memref<64x2xbf16, #tpu.memory_space<vmem>>, vector<64x2xbf16>
    %cst_300 = arith.constant dense<0.000000e+00> : vector<8x2xf32>
    %874 = tpu.matmul %872, %873, %cst_300 {dimension_numbers = #tpu.dot_dimension_numbers<[1], [0], [0], [1], [0, 0, 1, 1], [], []>} : vector<8x64xbf16>, vector<64x2xbf16>, vector<8x2xf32> -> vector<8x2xf32>
    %c0_301 = arith.constant 0 : index
    %c0_302 = arith.constant 0 : index
    %875 = vector.load %arg16[%c0_301, %c0_302] : memref<1x2xf32, #tpu.memory_space<vmem>>, vector<1x2xf32>
    %876 = vector.broadcast %875 : vector<1x2xf32> to vector<8x2xf32>
    %877 = arith.addf %874, %876 : vector<8x2xf32>
    %c0_303 = arith.constant 0 : index
    %c0_304 = arith.constant 0 : index
    %878 = vector.load %arg17[%c0_303, %c0_304] : memref<8x2xf32, #tpu.memory_space<vmem>>, vector<8x2xf32>
    tpu.vector_store %arg17[%c0_303, %c0_304], %877 {strides = array<i32>} : memref<8x2xf32, #tpu.memory_space<vmem>>, vector<8x2xf32>,
    return
  }
  func.func @transform_0(%arg0: i32) -> (i32, i32) {
    %c0_i32 = arith.constant 0 : i32
    %c0_i32_0 = arith.constant 0 : i32
    return %arg0, %c0_i32 : i32, i32
  }
  func.func @transform_1(%arg0: i32) -> (i32, i32) {
    %c0_i32 = arith.constant 0 : i32
    %c0_i32_0 = arith.constant 0 : i32
    %c0_i32_1 = arith.constant 0 : i32
    return %c0_i32, %c0_i32_0 : i32, i32
  }
  func.func @transform_2(%arg0: i32) -> (i32, i32) {
    %c0_i32 = arith.constant 0 : i32
    %c0_i32_0 = arith.constant 0 : i32
    %c0_i32_1 = arith.constant 0 : i32
    return %c0_i32, %c0_i32_0 : i32, i32
  }
  func.func @transform_3(%arg0: i32) -> (i32, i32) {
    %c0_i32 = arith.constant 0 : i32
    %c0_i32_0 = arith.constant 0 : i32
    %c0_i32_1 = arith.constant 0 : i32
    return %c0_i32, %c0_i32_0 : i32, i32
  }
  func.func @transform_4(%arg0: i32) -> (i32, i32, i32) {
    %c0_i32 = arith.constant 0 : i32
    %c0_i32_0 = arith.constant 0 : i32
    %c0_i32_1 = arith.constant 0 : i32
    %c0_i32_2 = arith.constant 0 : i32
    return %c0_i32, %c0_i32_0, %c0_i32_1 : i32, i32, i32
  }
  func.func @transform_5(%arg0: i32) -> (i32, i32) {
    %c0_i32 = arith.constant 0 : i32
    %c0_i32_0 = arith.constant 0 : i32
    %c0_i32_1 = arith.constant 0 : i32
    return %c0_i32, %c0_i32_0 : i32, i32
  }
  func.func @transform_6(%arg0: i32) -> (i32, i32) {
    %c0_i32 = arith.constant 0 : i32
    %c0_i32_0 = arith.constant 0 : i32
    %c0_i32_1 = arith.constant 0 : i32
    return %c0_i32, %c0_i32_0 : i32, i32
  }
  func.func @transform_7(%arg0: i32) -> (i32, i32) {
    %c0_i32 = arith.constant 0 : i32
    %c0_i32_0 = arith.constant 0 : i32
    %c0_i32_1 = arith.constant 0 : i32
    return %c0_i32, %c0_i32_0 : i32, i32
  }
  func.func @transform_8(%arg0: i32) -> (i32, i32) {
    %c0_i32 = arith.constant 0 : i32
    %c0_i32_0 = arith.constant 0 : i32
    %c0_i32_1 = arith.constant 0 : i32
    return %c0_i32, %c0_i32_0 : i32, i32
  }
  func.func @transform_9(%arg0: i32) -> (i32, i32) {
    %c0_i32 = arith.constant 0 : i32
    %c0_i32_0 = arith.constant 0 : i32
    %c0_i32_1 = arith.constant 0 : i32
    return %c0_i32, %c0_i32_0 : i32, i32
  }
  func.func @transform_10(%arg0: i32) -> (i32, i32) {
    %c0_i32 = arith.constant 0 : i32
    %c0_i32_0 = arith.constant 0 : i32
    %c0_i32_1 = arith.constant 0 : i32
    return %c0_i32, %c0_i32_0 : i32, i32
  }
  func.func @transform_11(%arg0: i32) -> (i32, i32, i32) {
    %c0_i32 = arith.constant 0 : i32
    %c0_i32_0 = arith.constant 0 : i32
    %c0_i32_1 = arith.constant 0 : i32
    %c0_i32_2 = arith.constant 0 : i32
    return %c0_i32, %c0_i32_0, %c0_i32_1 : i32, i32, i32
  }
  func.func @transform_12(%arg0: i32) -> (i32, i32) {
    %c0_i32 = arith.constant 0 : i32
    %c0_i32_0 = arith.constant 0 : i32
    %c0_i32_1 = arith.constant 0 : i32
    return %c0_i32, %c0_i32_0 : i32, i32
  }
  func.func @transform_13(%arg0: i32) -> (i32, i32) {
    %c0_i32 = arith.constant 0 : i32
    %c0_i32_0 = arith.constant 0 : i32
    %c0_i32_1 = arith.constant 0 : i32
    return %c0_i32, %c0_i32_0 : i32, i32
  }
  func.func @transform_14(%arg0: i32) -> (i32, i32) {
    %c0_i32 = arith.constant 0 : i32
    %c0_i32_0 = arith.constant 0 : i32
    %c0_i32_1 = arith.constant 0 : i32
    return %c0_i32, %c0_i32_0 : i32, i32
  }
  func.func @transform_15(%arg0: i32) -> (i32, i32) {
    %c0_i32 = arith.constant 0 : i32
    %c0_i32_0 = arith.constant 0 : i32
    %c0_i32_1 = arith.constant 0 : i32
    return %c0_i32, %c0_i32_0 : i32, i32
  }
  func.func @transform_16(%arg0: i32) -> (i32, i32) {
    %c0_i32 = arith.constant 0 : i32
    %c0_i32_0 = arith.constant 0 : i32
    return %arg0, %c0_i32 : i32, i32
  }
}

</mosaic_0001>

<bundles_post_ra>
// kernel: cnn_bigru_forward.1
= control target key start
LH: loop header
LB: loop body
LE: loop exit
PB: predicated region body
PF: predicated region fallthrough
CT: control target
= control target key end

     0   :  { %v14892_v0 = vmov 0   ;;  %vm305_vm0 = vcmask 785408   ;;  %vm11450_vm1 = vmmov 0   ;;  %vm8273_vm2 = vcmask 523264   ;;  %s14874_s1 = inlined_call_operand.vmem [shape: bf16[224,128], index: 1, kind: input, shape index: {}]   ;;  %s14875_s0 = inlined_call_operand.vmem [shape: bf16[200,224], index: 0, kind: input, shape index: {}]   ;;  %s14876_s4 = inlined_call_operand.vmem [shape: bf16[7,128,256], index: 4, kind: input, shape index: {}]   ;;  %s14877_s2 = inlined_call_operand.vmem [shape: f32[1,128], index: 2, kind: input, shape index: {}]   ;;  %s14878_s3 = inlined_call_operand.vmem [shape: f32[1,128], index: 3, kind: input, shape index: {}]   ;;  %s14879_s7 = inlined_call_operand.vmem [shape: bf16[256,384], index: 7, kind: input, shape index: {}]   ;;  %s14880_s9 = inlined_call_operand.vmem [shape: bf16[128,384], index: 9, kind: input, shape index: {}]   ;;  %s14881_s5 = inlined_call_operand.vmem [shape: f32[1,256], index: 5, kind: input, shape index: {}]   ;;  %s14882_s6 = inlined_call_operand.vmem [shape: f32[1,256], index: 6, kind: input, shape index: {}]   ;;  %s14883_s8 = inlined_call_operand.vmem [shape: f32[1,384], index: 8, kind: input, shape index: {}]   ;;  %s14884_s10 = inlined_call_operand.vmem [shape: f32[1,128], index: 10, kind: input, shape index: {}]   ;;  %s14885_s11 = inlined_call_operand.vmem [shape: bf16[19,128,64], index: 11, kind: input, shape index: {}]   ;;  %s14886_s14 = inlined_call_operand.vmem [shape: bf16[64,2], index: 14, kind: input, shape index: {}]   ;;  %s14887_s12 = inlined_call_operand.vmem [shape: f32[1,64], index: 12, kind: input, shape index: {}]   ;;  %s14888_s13 = inlined_call_operand.vmem [shape: f32[1,64], index: 13, kind: input, shape index: {}]   ;;  %s14889_s15 = inlined_call_operand.vmem [shape: f32[1,2], index: 15, kind: input, shape index: {}]   ;;  %s14890_s16 = inlined_call_operand.vmem [shape: f32[8,2], index: 16, kind: output, shape index: {}]  }
   0x1   :  { %14896 = sst [smem:[#allocation40_spill]] %s14874_s1  ;;  %345 = vmatprep.subr.bf16.mxu0 %v14892_v0  ;;  %752 = vmatprep.mubr.bf16.mxu1 %v14892_v0  ;;  %v10725_v6 = vld [vmem:[%s14875_s0 + $0x4] ss:$8 sps:$4 sm:$0xff]   ;;  %v10758_v12 = vld [vmem:[%s14876_s4] ss:$8 sps:$4 sm:$0xff]   ;;  %vm8317_vm3 = vcmask 15360  }
   0x2   :  { %s14897_s23 = sld [smem:[#allocation40_spill]]  ;;  %8381 = vmatprep.mubr.msk.bf16.mxu0 %vm305_vm0, %v10725_v6  ;;  %v10756_v11 = vld [vmem:[%s14876_s4 + $0x4] ss:$8 sps:$4 sm:$0xff]   ;;  %v10759_v13 = vld [vmem:[%s14876_s4 + $0x14] ss:$8 sps:$4 sm:$0xff]  }
   0x3   :  { %720 = vmatprep.subr.bf16.mxu1 %v10756_v11  ;;  %v10761_v14 = vld [vmem:[%s14876_s4 + $0x10] ss:$8 sps:$4 sm:$0xff]   ;;  %v10762_v15 = vld [vmem:[%s14876_s4 + $0x24] ss:$8 sps:$4 sm:$0xff]   ;;  %v10764_v18 = vld [vmem:[%s14876_s4 + $0x20] ss:$8 sps:$4 sm:$0xff]  }
   0x4   :  { %721 = vmatpush1.bf16.msra.mxu1 %v10758_v12  ;;  %v10765_v19 = vld [vmem:[%s14876_s4 + $0x34] ss:$8 sps:$4 sm:$0xff]   ;;  %v10767_v20 = vld [vmem:[%s14876_s4 + $0x30] ss:$8 sps:$4 sm:$0xff]   ;;  %v10768_v21 = vld [vmem:[%s14876_s4 + $0x44] ss:$8 sps:$4 sm:$0xff]  }
   0x5   :  { %722 = vmatprep.subr.bf16.mxu1 %v10759_v13  ;;  %v10770_v23 = vld [vmem:[%s14876_s4 + $0x40] ss:$8 sps:$4 sm:$0xff]   ;;  %v10771_v24 = vld [vmem:[%s14876_s4 + $0x54] ss:$8 sps:$4 sm:$0xff]   ;;  %v10773_v26 = vld [vmem:[%s14876_s4 + $0x50] ss:$8 sps:$4 sm:$0xff]  }
   0x6   :  { %v10723_v28 = vld [vmem:[%s14875_s0] ss:$8 sps:$4 sm:$0xff]   ;;  %v10726_v29 = vld [vmem:[%s14875_s0 + $0x14] ss:$8 sps:$4 sm:$0xff]   ;;  %v10728_v30 = vld [vmem:[%s14875_s0 + $0x10] ss:$8 sps:$4 sm:$0xff]  }
   0x7   :  { %v10729_v31 = vld [vmem:[%s14875_s0 + $0x24] ss:$8 sps:$4 sm:$0xff]   ;;  %v10731_v32 = vld [vmem:[%s14875_s0 + $0x20] ss:$8 sps:$4 sm:$0xff]   ;;  %v10732_v33 = vld [vmem:[%s14875_s0 + $0x34] ss:$8 sps:$4 sm:$0xff]  }
   0x8   :  { %v10709_v1 = vld [vmem:[%s14897_s23] sm:$0xff]   ;;  %v10710_v2 = vld [vmem:[%s14897_s23 + $0x8] sm:$0xff]   ;;  %v10711_v3 = vld [vmem:[%s14897_s23 + $0x10] sm:$0xff]   ;;  %723 = vmatpush1.bf16.msra.mxu1 %v10761_v14 }
   0x9   :  { %346 = vmatpush1.bf16.msra.mxu0 %v10709_v1  ;;  %v10712_v4 = vld [vmem:[%s14897_s23 + $0x18] sm:$0xff]   ;;  %v10713_v5 = vld [vmem:[%s14897_s23 + $0x20] sm:$0xff]   ;;  %v10714_v7 = vld [vmem:[%s14897_s23 + $0x28] sm:$0xff]   ;;  %724 = vmatprep.subr.bf16.mxu1 %v10762_v15 }
   0xa   :  { %347 = vmatprep.subr.bf16.mxu0 %v14892_v0  ;;  %v10715_v8 = vld [vmem:[%s14897_s23 + $0x30] sm:$0xff]   ;;  %v10716_v9 = vld [vmem:[%s14897_s23 + $0x38] sm:$0xff]   ;;  %v10717_v10 = vld [vmem:[%s14897_s23 + $0x40] sm:$0xff]  }
   0xb   :  { %v10718_v16 = vld [vmem:[%s14897_s23 + $0x48] sm:$0xff]   ;;  %v10719_v17 = vld [vmem:[%s14897_s23 + $0x50] sm:$0xff]   ;;  %v10720_v22 = vld [vmem:[%s14897_s23 + $0x58] sm:$0xff]  }
   0xc   :  { %725 = vmatpush1.bf16.msra.mxu1 %v10764_v18  ;;  %v10721_v25 = vld [vmem:[%s14897_s23 + $0x60] sm:$0xff]   ;;  %v10722_v27 = vld [vmem:[%s14897_s23 + $0x68] sm:$0xff]   ;;  %v10734_v34 = vld [vmem:[%s14875_s0 + $0x30] ss:$8 sps:$4 sm:$0xff]  }
   0xd   :  { %348 = vmatpush1.bf16.msra.mxu0 %v10710_v2  ;;  %726 = vmatprep.subr.bf16.mxu1 %v10765_v19  ;;  %v10735_v35 = vld [vmem:[%s14875_s0 + $0x44] ss:$8 sps:$4 sm:$0xff]   ;;  %v10737_v36 = vld [vmem:[%s14875_s0 + $0x40] ss:$8 sps:$4 sm:$0xff]   ;;  %v10738_v37 = vld [vmem:[%s14875_s0 + $0x54] ss:$8 sps:$4 sm:$0xff]  }
   0xe   :  { %349 = vmatprep.subr.bf16.mxu0 %v14892_v0  ;;  %v10740_v38 = vld [vmem:[%s14875_s0 + $0x50] ss:$8 sps:$4 sm:$0xff]   ;;  %v10741_v39 = vld [vmem:[%s14875_s0 + $0x64] ss:$8 sps:$4 sm:$0xff]   ;;  %v10743_v40 = vld [vmem:[%s14875_s0 + $0x60] ss:$8 sps:$4 sm:$0xff]  }
   0xf   :  { %v10744_v41 = vld [vmem:[%s14875_s0 + $0x74] ss:$8 sps:$4 sm:$0xff]   ;;  %v10746_v42 = vld [vmem:[%s14875_s0 + $0x70] ss:$8 sps:$4 sm:$0xff]   ;;  %v10747_v43 = vld [vmem:[%s14875_s0 + $0x84] ss:$8 sps:$4 sm:$0xff]  }
  0x10   :  { %727 = vmatpush1.bf16.msra.mxu1 %v10767_v20  ;;  %v10749_v44 = vld [vmem:[%s14875_s0 + $0x80] ss:$8 sps:$4 sm:$0xff]   ;;  %v10750_v45 = vld [vmem:[%s14875_s0 + $0x94] ss:$8 sps:$4 sm:$0xff]   ;;  %v10752_v46 = vld [vmem:[%s14875_s0 + $0x90] ss:$8 sps:$4 sm:$0xff]  }
  0x11   :  { %350 = vmatpush1.bf16.msra.mxu0 %v10711_v3  ;;  %728 = vmatprep.subr.bf16.mxu1 %v10768_v21  ;;  %v10753_v47 = vld [vmem:[%s14875_s0 + $0xa4] ss:$8 sps:$4 sm:$0xff]   ;;  %v10755_v48 = vld [vmem:[%s14875_s0 + $0xa0] ss:$8 sps:$4 sm:$0xff]   ;;  %v10777_v51 = vld [vmem:[%s14876_s4 + $0x74] ss:$8 sps:$4 sm:$0xff]  }
  0x12   :  { %351 = vmatprep.subr.bf16.mxu0 %v14892_v0  ;;  %v10774_v49 = vld [vmem:[%s14876_s4 + $0x64] ss:$8 sps:$4 sm:$0xff]   ;;  %v10776_v50 = vld [vmem:[%s14876_s4 + $0x60] ss:$8 sps:$4 sm:$0xff]   ;;  %v10779_v52 = vld [vmem:[%s14876_s4 + $0x70] ss:$8 sps:$4 sm:$0xff]  }
  0x13   :  { %v10782_v53 = vld [vmem:[%s14876_s4 + $0x84] ss:$8 sps:$4 sm:$0xff]   ;;  %v10786_v54 = vld [vmem:[%s14875_s0 + $0xb4] ss:$8 sps:$4 sm:$0xff]   ;;  %v10788_v55 = vld [vmem:[%s14875_s0 + $0xb0] ss:$8 sps:$4 sm:$0xff]  }
  0x14   :  { %729 = vmatpush1.bf16.msra.mxu1 %v10770_v23  ;;  %v11731_v56 = vld [vmem:[%s14877_s2] ss:$0 sm:$0xff]  ;;  %v10783_v15 = vld [vmem:[%s14876_s4 + $0x90] ss:$8 sps:$4 sm:$0xff]   ;;  %v10791_v18 = vld [vmem:[%s14876_s4 + $0xa4] ss:$8 sps:$4 sm:$0xff]  }
  0x15   :  { %352 = vmatpush1.bf16.msra.mxu0 %v10712_v4  ;;  %730 = vmatprep.subr.bf16.mxu1 %v10771_v24  ;;  %v11736_v58 = vld [vmem:[%s14878_s3] ss:$0 sm:$0xff] }
  0x16   :  { %353 = vmatprep.subr.bf16.mxu0 %v14892_v0  ;;  %v10780_v6 = vld [vmem:[%s14876_s4 + $0x80] ss:$8 sps:$4 sm:$0xff]  }
  0x18   :  { %731 = vmatpush1.bf16.msra.mxu1 %v10773_v26  ;;  %v10794_v26 = vld [vmem:[%s14876_s4 + $0xb4] ss:$8 sps:$4 sm:$0xff]  }
  0x19   :  { %354 = vmatpush1.bf16.msra.mxu0 %v10713_v5  ;;  %732 = vmatprep.subr.bf16.mxu1 %v10774_v49 }
  0x1a   :  { %355 = vmatprep.subr.bf16.mxu0 %v14892_v0 }
  0x1c   :  { %733 = vmatpush1.bf16.msra.mxu1 %v10776_v50  ;;  %v10803_v50 = vld [vmem:[%s14876_s4 + $0xe4] ss:$8 sps:$4 sm:$0xff]  }
  0x1d   :  { %356 = vmatpush1.bf16.msra.mxu0 %v10714_v7  ;;  %734 = vmatprep.subr.bf16.mxu1 %v10777_v51 }
  0x1e   :  { %357 = vmatprep.subr.bf16.mxu0 %v14892_v0 }
  0x20   :  { %735 = vmatpush1.bf16.msra.mxu1 %v10779_v52 }
  0x21   :  { %358 = vmatpush1.bf16.msra.mxu0 %v10715_v8  ;;  %1053 = vmatprep.subr.bf16.mxu1 %v10782_v53 }
  0x22   :  { %359 = vmatprep.subr.bf16.mxu0 %v14892_v0 }
  0x25   :  { %360 = vmatpush1.bf16.msra.mxu0 %v10716_v9 }
  0x26   :  { %361 = vmatprep.subr.bf16.mxu0 %v14892_v0 }
  0x29   :  { %362 = vmatpush1.bf16.msra.mxu0 %v10717_v10  ;;  %v10785_v10 = vld [vmem:[%s14876_s4 + $0x94] ss:$8 sps:$4 sm:$0xff]  }
  0x2a   :  { %363 = vmatprep.subr.bf16.mxu0 %v14892_v0 }
  0x2d   :  { %364 = vmatpush1.bf16.msra.mxu0 %v10718_v16 }
  0x2e   :  { %365 = vmatprep.subr.bf16.mxu0 %v14892_v0 }
  0x31   :  { %366 = vmatpush1.bf16.msra.mxu0 %v10719_v17 }
  0x32   :  { %367 = vmatprep.subr.bf16.mxu0 %v14892_v0 }
  0x35   :  { %368 = vmatpush1.bf16.msra.mxu0 %v10720_v22  ;;  %v10789_v22 = vld [vmem:[%s14876_s4 + $0xa0] ss:$8 sps:$4 sm:$0xff]  }
  0x36   :  { %369 = vmatprep.subr.bf16.mxu0 %v14892_v0 }
  0x39   :  { %370 = vmatpush1.bf16.msra.mxu0 %v10721_v25 }
  0x3a   :  { %371 = vmatprep.subr.bf16.mxu0 %v14892_v0 }
  0x3d   :  { %372 = vmatpush1.bf16.msra.mxu0 %v10722_v27 }
  0x40   :  { %378 = vmatmul.mubr.bf16.vlgmr.msra.gmra.mrb[0].mxu0 %v10723_v28 }
  0x41   :  { %8382 = vmatprep.mubr.msk.bf16.mxu0 %vm305_vm0, %v10726_v29 }
  0x48   :  { %386 = vmatmul.mubr.bf16.gmra.mrb[4].mxu0 %v10728_v30 }
  0x49   :  { %8383 = vmatprep.mubr.msk.bf16.mxu0 %vm305_vm0, %v10729_v31  ;;  %v10792_v31 = vld [vmem:[%s14876_s4 + $0xb0] ss:$8 sps:$4 sm:$0xff]  }
  0x50   :  { %394 = vmatmul.mubr.bf16.gmra.mrb[8].mxu0 %v10731_v32 }
  0x51   :  { %8384 = vmatprep.mubr.msk.bf16.mxu0 %vm305_vm0, %v10732_v33 }
  0x58   :  { %402 = vmatmul.mubr.bf16.gmra.mrb[12].mxu0 %v10734_v34  ;;  %v10797_v34 = vld [vmem:[%s14876_s4 + $0xc4] ss:$8 sps:$4 sm:$0xff]  }
  0x59   :  { %8385 = vmatprep.mubr.msk.bf16.mxu0 %vm305_vm0, %v10735_v35 }
  0x60   :  { %410 = vmatmul.mubr.bf16.gmra.mrb[16].mxu0 %v10737_v36 }
  0x61   :  { %8386 = vmatprep.mubr.msk.bf16.mxu0 %vm305_vm0, %v10738_v37 }
  0x68   :  { %418 = vmatmul.mubr.bf16.gmra.mrb[20].mxu0 %v10740_v38  ;;  %v10795_v38 = vld [vmem:[%s14876_s4 + $0xc0] ss:$8 sps:$4 sm:$0xff]  }
  0x69   :  { %8387 = vmatprep.mubr.msk.bf16.mxu0 %vm305_vm0, %v10741_v39 }
  0x70   :  { %426 = vmatmul.mubr.bf16.gmra.mrb[24].mxu0 %v10743_v40 }
  0x71   :  { %8388 = vmatprep.mubr.msk.bf16.mxu0 %vm305_vm0, %v10744_v41 }
  0x78   :  { %434 = vmatmul.mubr.bf16.gmra.mrb[28].mxu0 %v10746_v42  ;;  %v10800_v42 = vld [vmem:[%s14876_s4 + $0xd4] ss:$8 sps:$4 sm:$0xff]  }
  0x79   :  { %8389 = vmatprep.mubr.msk.bf16.mxu0 %vm305_vm0, %v10747_v43 }
  0x80   :  { %442 = vmatmul.mubr.bf16.gmra.mrb[32].mxu0 %v10749_v44 }
  0x81   :  { %8390 = vmatprep.mubr.msk.bf16.mxu0 %vm305_vm0, %v10750_v45 }
  0x88   :  { %450 = vmatmul.mubr.bf16.gmra.mrb[36].mxu0 %v10752_v46 }
  0x89   :  { %8391 = vmatprep.mubr.msk.bf16.mxu0 %vm305_vm0, %v10753_v47  ;;  %v10798_v47 = vld [vmem:[%s14876_s4 + $0xd0] ss:$8 sps:$4 sm:$0xff]  }
  0x90   :  { %458 = vmatmul.mubr.bf16.gmra.mrb[40].mxu0 %v10755_v48 }
  0x91   :  { %8392 = vmatprep.mubr.msk.bf16.mxu0 %vm305_vm0, %v10786_v54  ;;  %v10801_v54 = vld [vmem:[%s14876_s4 + $0xe0] ss:$8 sps:$4 sm:$0xff]  }
  0x98   :  { %466 = vmatmul.mubr.bf16.gmra.mrb[44].mxu0 %v10788_v55 }
 0x113   :  { %v379_v57 = vpop.f32.mrb[0].mxu0 }
 0x114   :  { %v488_v59 = vmul.f32 %v11731_v56, %v379_v57  ;;  %v381_v60 = vpop.f32.mrb[1].mxu0 }
 0x115   :  { %v382_v61 = vpop.f32.mrb[2].mxu0  ;;  %v10806_v60 = vld [vmem:[%s14876_s4 + $0xf4] ss:$8 sps:$4 sm:$0xff]  }
 0x116   :  { %v520_v62 = vadd.f32 %v11736_v58, %v488_v59  ;;  %v489_v63 = vmul.f32 %v11731_v56, %v382_v61  ;;  %v384_v1 = vpop.f32.mrb[3].mxu0 }
 0x118   :  { %v521_v2 = vadd.f32 %v11736_v58, %v489_v63  ;;  %v545_v3 = vmax.f32 %v520_v62, 0.0 }
 0x11a   :  { %v546_v4 = vmax.f32 %v521_v2, 0.0  ;;  %v10804_v2 = vld [vmem:[%s14876_s4 + $0xf0] ss:$8 sps:$4 sm:$0xff]  }
 0x11b   :  { %v387_v5 = vpop.f32.mrb[4].mxu0 }
 0x11c   :  { %v490_v7 = vmul.f32 %v11731_v56, %v387_v5  ;;  %v389_v8 = vpop.f32.mrb[5].mxu0  ;;  %v614_v9 = vpack.c.bf16 %v546_v4, %v545_v3  ;;  %v10809_v5 = vld [vmem:[%s14876_s4 + $0x104] ss:$8 sps:$4 sm:$0xff]  }
 0x11d   :  { %v390_v11 = vpop.f32.mrb[6].mxu0 }
 0x11e   :  { %v522_v12 = vadd.f32 %v11736_v58, %v490_v7  ;;  %v491_v13 = vmul.f32 %v11731_v56, %v390_v11  ;;  %v392_v14 = vpop.f32.mrb[7].mxu0  ;;  %753 = vmatmul.mubr.bf16.vlgmr.msra.gmra.mrb[0].mxu1 %v614_v9 }
 0x11f   :  { %1054 = vmatpush1.bf16.msra.mxu1 %v10780_v6  ;;  %762 = vmatprep.mubr.bf16.mxu1 %v14892_v0 }
 0x120   :  { %v547_v16 = vmax.f32 %v522_v12, 0.0  ;;  %v523_v17 = vadd.f32 %v11736_v58, %v491_v13  ;;  %1055 = vmatprep.subr.bf16.mxu1 %v10785_v10 }
 0x122   :  { %v11759_v19 = vpack.c.bf16 %v547_v16, %v546_v4  ;;  %v548_v20 = vmax.f32 %v523_v17, 0.0 }
 0x123   :  { %v395_v21 = vpop.f32.mrb[8].mxu0  ;;  %1056 = vmatpush1.bf16.msra.mxu1 %v10783_v15 }
 0x124   :  { %v492_v23 = vmul.f32 %v11731_v56, %v395_v21  ;;  %v397_v24 = vpop.f32.mrb[9].mxu0  ;;  %v11765_v25 = vpack.c.bf16 %v548_v20, %v547_v16  ;;  %1057 = vmatprep.subr.bf16.mxu1 %v10791_v18 }
 0x125   :  { %v398_v27 = vpop.f32.mrb[10].mxu0 }
 0x126   :  { %v524_v28 = vadd.f32 %v11736_v58, %v492_v23  ;;  %v493_v29 = vmul.f32 %v11731_v56, %v398_v27  ;;  %v400_v30 = vpop.f32.mrb[11].mxu0  ;;  %763 = vmatmul.mubr.bf16.gmra.mrb[4].mxu1 %v11765_v25 }
 0x127   :  { %772 = vmatprep.mubr.bf16.mxu1 %v14892_v0  ;;  %1058 = vmatpush1.bf16.msra.mxu1 %v10789_v22 }
 0x128   :  { %v549_v32 = vmax.f32 %v524_v28, 0.0  ;;  %v525_v33 = vadd.f32 %v11736_v58, %v493_v29  ;;  %1059 = vmatprep.subr.bf16.mxu1 %v10794_v26 }
 0x12a   :  { %v550_v35 = vmax.f32 %v525_v33, 0.0  ;;  %v11781_v36 = vpack.c.bf16 %v549_v32, %v548_v20 }
 0x12b   :  { %v403_v37 = vpop.f32.mrb[12].mxu0  ;;  %1060 = vmatpush1.bf16.msra.mxu1 %v10792_v31 }
 0x12c   :  { %v494_v39 = vmul.f32 %v11731_v56, %v403_v37  ;;  %v405_v40 = vpop.f32.mrb[13].mxu0  ;;  %v11787_v41 = vpack.c.bf16 %v550_v35, %v549_v32  ;;  %1061 = vmatprep.subr.bf16.mxu1 %v10797_v34 }
 0x12d   :  { %v406_v43 = vpop.f32.mrb[14].mxu0 }
 0x12e   :  { %v526_v44 = vadd.f32 %v11736_v58, %v494_v39  ;;  %v495_v45 = vmul.f32 %v11731_v56, %v406_v43  ;;  %v408_v46 = vpop.f32.mrb[15].mxu0  ;;  %773 = vmatmul.mubr.bf16.gmra.mrb[8].mxu1 %v11787_v41 }
 0x12f   :  { %782 = vmatprep.mubr.bf16.mxu1 %v14892_v0  ;;  %1062 = vmatpush1.bf16.msra.mxu1 %v10795_v38 }
 0x130   :  { %v551_v48 = vmax.f32 %v526_v44, 0.0  ;;  %v527_v49 = vadd.f32 %v11736_v58, %v495_v45  ;;  %1063 = vmatprep.subr.bf16.mxu1 %v10800_v42 }
 0x132   :  { %v552_v51 = vmax.f32 %v527_v49, 0.0  ;;  %v11803_v52 = vpack.c.bf16 %v551_v48, %v550_v35 }
 0x133   :  { %v411_v53 = vpop.f32.mrb[16].mxu0  ;;  %1064 = vmatpush1.bf16.msra.mxu1 %v10798_v47 }
 0x134   :  { %v11808_v55 = vpack.c.bf16 %v552_v51, %v551_v48  ;;  %v496_v57 = vmul.f32 %v11731_v56, %v411_v53  ;;  %v413_v59 = vpop.f32.mrb[17].mxu0  ;;  %1065 = vmatprep.subr.bf16.mxu1 %v10803_v50 }
 0x135   :  { %v414_v61 = vpop.f32.mrb[18].mxu0 }
 0x136   :  { %v528_v62 = vadd.f32 %v11736_v58, %v496_v57  ;;  %v497_v63 = vmul.f32 %v11731_v56, %v414_v61  ;;  %v416_v1 = vpop.f32.mrb[19].mxu0  ;;  %783 = vmatmul.mubr.bf16.gmra.mrb[12].mxu1 %v11808_v55 }
 0x137   :  { %792 = vmatprep.mubr.bf16.mxu1 %v14892_v0  ;;  %1066 = vmatpush1.bf16.msra.mxu1 %v10801_v54 }
 0x138   :  { %v553_v3 = vmax.f32 %v528_v62, 0.0  ;;  %v529_v4 = vadd.f32 %v11736_v58, %v497_v63  ;;  %1067 = vmatprep.subr.bf16.mxu1 %v10806_v60 }
 0x13a   :  { %v554_v6 = vmax.f32 %v529_v4, 0.0  ;;  %v11825_v7 = vpack.c.bf16 %v553_v3, %v552_v51 }
 0x13b   :  { %v419_v8 = vpop.f32.mrb[20].mxu0  ;;  %1068 = vmatpush1.bf16.msra.mxu1 %v10804_v2 }
 0x13c   :  { %v11827_v9 = vpack.c.bf16 %v554_v6, %v553_v3  ;;  %v498_v10 = vmul.f32 %v11731_v56, %v419_v8  ;;  %v421_v11 = vpop.f32.mrb[21].mxu0  ;;  %1424 = vmatprep.subr.bf16.mxu1 %v10809_v5 }
 0x13d   :  { %v422_v12 = vpop.f32.mrb[22].mxu0 }
 0x13e   :  { %v530_v13 = vadd.f32 %v11736_v58, %v498_v10  ;;  %v499_v14 = vmul.f32 %v11731_v56, %v422_v12  ;;  %v424_v15 = vpop.f32.mrb[23].mxu0  ;;  %793 = vmatmul.mubr.bf16.gmra.mrb[16].mxu1 %v11827_v9 }
 0x13f   :  { %802 = vmatprep.mubr.bf16.mxu1 %v14892_v0 }
 0x140   :  { %v555_v16 = vmax.f32 %v530_v13, 0.0  ;;  %v531_v17 = vadd.f32 %v11736_v58, %v499_v14 }
 0x142   :  { %v556_v18 = vmax.f32 %v531_v17, 0.0  ;;  %v11835_v20 = vpack.c.bf16 %v555_v16, %v554_v6 }
 0x143   :  { %v427_v21 = vpop.f32.mrb[24].mxu0 }
 0x144   :  { %v11837_v22 = vpack.c.bf16 %v556_v18, %v555_v16  ;;  %v500_v23 = vmul.f32 %v11731_v56, %v427_v21  ;;  %v429_v24 = vpop.f32.mrb[25].mxu0 }
 0x145   :  { %v430_v26 = vpop.f32.mrb[26].mxu0 }
 0x146   :  { %v532_v27 = vadd.f32 %v11736_v58, %v500_v23  ;;  %v501_v28 = vmul.f32 %v11731_v56, %v430_v26  ;;  %v432_v29 = vpop.f32.mrb[27].mxu0  ;;  %803 = vmatmul.mubr.bf16.gmra.mrb[20].mxu1 %v11837_v22 }
 0x147   :  { %812 = vmatprep.mubr.bf16.mxu1 %v14892_v0  ;;  %v10810_v29 = vld [vmem:[%s14876_s4 + $0x110] ss:$8 sps:$4 sm:$0xff]  }
 0x148   :  { %v557_v30 = vmax.f32 %v532_v27, 0.0  ;;  %v533_v31 = vadd.f32 %v11736_v58, %v501_v28  ;;  %v10807_v27 = vld [vmem:[%s14876_s4 + $0x100] ss:$8 sps:$4 sm:$0xff]   ;;  %v10812_v28 = vld [vmem:[%s14876_s4 + $0x114] ss:$8 sps:$4 sm:$0xff]  }
 0x14a   :  { %v558_v32 = vmax.f32 %v533_v31, 0.0  ;;  %v11845_v33 = vpack.c.bf16 %v557_v30, %v556_v18  ;;  %v10813_v31 = vld [vmem:[%s14876_s4 + $0x120] ss:$8 sps:$4 sm:$0xff]  }
 0x14b   :  { %v435_v34 = vpop.f32.mrb[28].mxu0 }
 0x14c   :  { %v11847_v35 = vpack.c.bf16 %v558_v32, %v557_v30  ;;  %v502_v37 = vmul.f32 %v11731_v56, %v435_v34  ;;  %v437_v38 = vpop.f32.mrb[29].mxu0  ;;  %v10815_v30 = vld [vmem:[%s14876_s4 + $0x124] ss:$8 sps:$4 sm:$0xff]   ;;  %v10816_v34 = vld [vmem:[%s14876_s4 + $0x130] ss:$8 sps:$4 sm:$0xff]  }
 0x14d   :  { %v438_v39 = vpop.f32.mrb[30].mxu0  ;;  %v10821_v38 = vld [vmem:[%s14876_s4 + $0x144] ss:$8 sps:$4 sm:$0xff]  }
 0x14e   :  { %v534_v40 = vadd.f32 %v11736_v58, %v502_v37  ;;  %v503_v42 = vmul.f32 %v11731_v56, %v438_v39  ;;  %v440_v43 = vpop.f32.mrb[31].mxu0  ;;  %813 = vmatmul.mubr.bf16.gmra.mrb[24].mxu1 %v11847_v35 }
 0x14f   :  { %822 = vmatprep.mubr.bf16.mxu1 %v14892_v0 }
 0x150   :  { %v559_v44 = vmax.f32 %v534_v40, 0.0  ;;  %v535_v45 = vadd.f32 %v11736_v58, %v503_v42  ;;  %v10819_v40 = vld [vmem:[%s14876_s4 + $0x140] ss:$8 sps:$4 sm:$0xff]   ;;  %v10824_v42 = vld [vmem:[%s14876_s4 + $0x154] ss:$8 sps:$4 sm:$0xff]  }
 0x152   :  { %v560_v46 = vmax.f32 %v535_v45, 0.0  ;;  %v11855_v47 = vpack.c.bf16 %v559_v44, %v558_v32 }
 0x153   :  { %v443_v48 = vpop.f32.mrb[32].mxu0 }
 0x154   :  { %v11857_v49 = vpack.c.bf16 %v560_v46, %v559_v44  ;;  %v504_v50 = vmul.f32 %v11731_v56, %v443_v48  ;;  %v445_v51 = vpop.f32.mrb[33].mxu0  ;;  %v10827_v48 = vld [vmem:[%s14876_s4 + $0x164] ss:$8 sps:$4 sm:$0xff]  }
 0x155   :  { %v446_v53 = vpop.f32.mrb[34].mxu0  ;;  %v10825_v51 = vld [vmem:[%s14876_s4 + $0x160] ss:$8 sps:$4 sm:$0xff]  }
 0x156   :  { %v536_v54 = vadd.f32 %v11736_v58, %v504_v50  ;;  %v505_v57 = vmul.f32 %v11731_v56, %v446_v53  ;;  %v448_v59 = vpop.f32.mrb[35].mxu0  ;;  %823 = vmatmul.mubr.bf16.gmra.mrb[28].mxu1 %v11857_v49  ;;  %v10830_v53 = vld [vmem:[%s14876_s4 + $0x174] ss:$8 sps:$4 sm:$0xff]  }
 0x157   :  { %832 = vmatprep.mubr.bf16.mxu1 %v14892_v0  ;;  %v10833_v59 = vld [vmem:[%s14876_s4 + $0x184] ss:$8 sps:$4 sm:$0xff]  }
 0x158   :  { %v561_v60 = vmax.f32 %v536_v54, 0.0  ;;  %v537_v61 = vadd.f32 %v11736_v58, %v505_v57  ;;  %v10828_v57 = vld [vmem:[%s14876_s4 + $0x170] ss:$8 sps:$4 sm:$0xff]  }
 0x15a   :  { %v562_v62 = vmax.f32 %v537_v61, 0.0  ;;  %v11865_v63 = vpack.c.bf16 %v561_v60, %v560_v46  ;;  %v10822_v46 = vld [vmem:[%s14876_s4 + $0x150] ss:$8 sps:$4 sm:$0xff]   ;;  %v10831_v61 = vld [vmem:[%s14876_s4 + $0x180] ss:$8 sps:$4 sm:$0xff]  }
 0x15b   :  { %v451_v1 = vpop.f32.mrb[36].mxu0 }
 0x15c   :  { %v11867_v2 = vpack.c.bf16 %v562_v62, %v561_v60  ;;  %v506_v3 = vmul.f32 %v11731_v56, %v451_v1  ;;  %v453_v4 = vpop.f32.mrb[37].mxu0  ;;  %v10834_v1 = vld [vmem:[%s14876_s4 + $0x190] ss:$8 sps:$4 sm:$0xff]  }
 0x15d   :  { %v454_v5 = vpop.f32.mrb[38].mxu0  ;;  %v10837_v4 = vld [vmem:[%s14876_s4 + $0x1a0] ss:$8 sps:$4 sm:$0xff]  }
 0x15e   :  { %v538_v6 = vadd.f32 %v11736_v58, %v506_v3  ;;  %v507_v8 = vmul.f32 %v11731_v56, %v454_v5  ;;  %v456_v10 = vpop.f32.mrb[39].mxu0  ;;  %833 = vmatmul.mubr.bf16.gmra.mrb[32].mxu1 %v11867_v2  ;;  %v10839_v3 = vld [vmem:[%s14876_s4 + $0x1a4] ss:$8 sps:$4 sm:$0xff]   ;;  %v10840_v5 = vld [vmem:[%s14876_s4 + $0x1b0] ss:$8 sps:$4 sm:$0xff]  }
 0x15f   :  { %842 = vmatprep.mubr.bf16.mxu1 %v14892_v0  ;;  %v10848_v10 = vld [vmem:[%s14876_s4 + $0x1d4] ss:$8 sps:$4 sm:$0xff]  }
 0x160   :  { %v563_v11 = vmax.f32 %v538_v6, 0.0  ;;  %v539_v12 = vadd.f32 %v11736_v58, %v507_v8  ;;  %v10845_v6 = vld [vmem:[%s14876_s4 + $0x1c4] ss:$8 sps:$4 sm:$0xff]   ;;  %v10843_v8 = vld [vmem:[%s14876_s4 + $0x1c0] ss:$8 sps:$4 sm:$0xff]  }
 0x162   :  { %v11875_v13 = vmax.f32 %v539_v12, 0.0  ;;  %v623_v14 = vpack.c.bf16 %v563_v11, %v563_v11  ;;  %v11877_v15 = vpack.c.bf16 %v563_v11, %v562_v62  ;;  %v10836_v62 = vld [vmem:[%s14876_s4 + $0x194] ss:$8 sps:$4 sm:$0xff]   ;;  %v10851_v12 = vld [vmem:[%s14876_s4 + $0x1e4] ss:$8 sps:$4 sm:$0xff]  }
 0x163   :  { %v459_v16 = vpop.f32.mrb[40].mxu0 }
 0x164   :  { %v508_v17 = vmul.f32 %v11731_v56, %v459_v16  ;;  %v461_v18 = vpop.f32.mrb[41].mxu0  ;;  %v11881_v21 = vpack.c.bf16 %v11875_v13, %v563_v11  ;;  %v955_v60 = vpack.c.bf16 %v11875_v13, %v11875_v13  ;;  %v10846_v11 = vld [vmem:[%s14876_s4 + $0x1d0] ss:$8 sps:$4 sm:$0xff]  }
 0x165   :  { %v462_v32 = vpop.f32.mrb[42].mxu0  ;;  %v10852_v16 = vld [vmem:[%s14876_s4 + $0x1f0] ss:$8 sps:$4 sm:$0xff]   ;;  %v78_v18 = vld [vmem:[%s14875_s0 + $0xc0] sm:$0xff] }
 0x166   :  { %v540_v23 = vadd.f32 %v11736_v58, %v508_v17  ;;  %843 = vmatmul.mubr.bf16.gmra.mrb[36].mxu1 %v623_v14  ;;  %v464_v37 = vpop.f32.mrb[43].mxu0  ;;  %v509_v39 = vmul.f32 %v11731_v56, %v462_v32  ;;  %v10854_v14 = vld [vmem:[%s14876_s4 + $0x1f4] ss:$8 sps:$4 sm:$0xff]   ;;  %v10857_v17 = vld [vmem:[%s14876_s4 + $0x204] ss:$8 sps:$4 sm:$0xff]  }
 0x167   :  { %1085 = vmatprep.mubr.bf16.mxu1 %v14892_v0 }
 0x168   :  { %v11885_v24 = vmax.f32 %v540_v23, 0.0  ;;  %v541_v43 = vadd.f32 %v11736_v58, %v509_v39  ;;  %v8366_v23 = vcombine.high %v78_v18, %v78_v18  ;;  %v10867_v39 = vld [vmem:[%s14876_s4 + $0x240] ss:$8 sps:$4 sm:$0xff]  }
 0x16a   :  { %v11889_v26 = vpack.c.bf16 %v11885_v24, %v11875_v13  ;;  %v11937_v50 = vmax.f32 %v541_v43, 0.0  ;;  %v10849_v13 = vld [vmem:[%s14876_s4 + $0x1e0] ss:$8 sps:$4 sm:$0xff]   ;;  %8393 = vmatprep.mubr.msk.bf16.mxu0 %vm305_vm0, %v8366_v23  ;;  %v10875_v43 = vld [vmem:[%s14876_s4 + $0x264] ss:$8 sps:$4 sm:$0xff]  }
 0x16b   :  { %v11927_v44 = vpop.f32.mrb[44].mxu0  ;;  %v10911_v23 = vld [vmem:[%s14876_s4 + $0x320] ss:$8 sps:$4 sm:$0xff]  }
 0x16c   :  { %v469_v45 = vpop.f32.mrb[45].mxu0  ;;  %v11947_v54 = vpack.c.bf16 %v11937_v50, %v11885_v24 }
 0x16d   :  { %v12064_v32 = vpop.f32.mrb[46].mxu0  ;;  %v10873_v45 = vld [vmem:[%s14876_s4 + $0x260] ss:$8 sps:$4 sm:$0xff]  }
 0x16e   :  { %1086 = vmatmul.mubr.bf16.vlgmr.msra.gmra.mrb[0].mxu1 %v11759_v19  ;;  %v10818_v19 = vld [vmem:[%s14876_s4 + $0x134] ss:$8 sps:$4 sm:$0xff]   ;;  %v472_v37 = vpop.f32.mrb[47].mxu0 }
 0x16f   :  { %1425 = vmatpush1.bf16.msra.mxu1 %v10807_v27  ;;  %1095 = vmatprep.mubr.bf16.mxu1 %v14892_v0  ;;  %v8365_v27 = vcombine.low %v78_v18, %v78_v18  ;;  %v10905_v18 = vld [vmem:[%s14876_s4 + $0x300] ss:$8 sps:$4 sm:$0xff]   ;;  %v10928_v37 = vld [vmem:[%s14876_s4 + $0x374] ss:$8 sps:$4 sm:$0xff]  }
 0x170   :  { %1426 = vmatprep.subr.bf16.mxu1 %v10812_v28  ;;  %v1326_v28 = vpack.c.bf16 %v11885_v24, %v11885_v24  ;;  %v10858_v24 = vld [vmem:[%s14876_s4 + $0x210] ss:$8 sps:$4 sm:$0xff]  }
 0x171   :  { %474 = vmatmul.mubr.bf16.gmra.mrb[48].mxu0 %v8365_v27  ;;  %v10914_v27 = vld [vmem:[%s14876_s4 + $0x330] ss:$8 sps:$4 sm:$0xff]  }
 0x173   :  { %1427 = vmatpush1.bf16.msra.mxu1 %v10810_v29  ;;  %v10855_v29 = vld [vmem:[%s14876_s4 + $0x200] ss:$8 sps:$4 sm:$0xff]  }
 0x174   :  { %1428 = vmatprep.subr.bf16.mxu1 %v10815_v30  ;;  %v10860_v30 = vld [vmem:[%s14876_s4 + $0x214] ss:$8 sps:$4 sm:$0xff]  }
 0x176   :  { %1096 = vmatmul.mubr.bf16.gmra.mrb[4].mxu1 %v11781_v36 }
 0x177   :  { %1105 = vmatprep.mubr.bf16.mxu1 %v14892_v0  ;;  %1429 = vmatpush1.bf16.msra.mxu1 %v10813_v31  ;;  %v10863_v31 = vld [vmem:[%s14876_s4 + $0x224] ss:$8 sps:$4 sm:$0xff]  }
 0x178   :  { %1430 = vmatprep.subr.bf16.mxu1 %v10818_v19  ;;  %v10861_v19 = vld [vmem:[%s14876_s4 + $0x220] ss:$8 sps:$4 sm:$0xff]  }
 0x17b   :  { %1431 = vmatpush1.bf16.msra.mxu1 %v10816_v34  ;;  %v10864_v34 = vld [vmem:[%s14876_s4 + $0x230] ss:$8 sps:$4 sm:$0xff]  }
 0x17c   :  { %1432 = vmatprep.subr.bf16.mxu1 %v10821_v38  ;;  %v10869_v38 = vld [vmem:[%s14876_s4 + $0x244] ss:$8 sps:$4 sm:$0xff]  }
 0x17e   :  { %1106 = vmatmul.mubr.bf16.gmra.mrb[8].mxu1 %v11803_v52 }
 0x17f   :  { %1115 = vmatprep.mubr.bf16.mxu1 %v14892_v0  ;;  %1433 = vmatpush1.bf16.msra.mxu1 %v10819_v40  ;;  %v10872_v40 = vld [vmem:[%s14876_s4 + $0x254] ss:$8 sps:$4 sm:$0xff]  }
 0x180   :  { %1434 = vmatprep.subr.bf16.mxu1 %v10824_v42  ;;  %v10870_v42 = vld [vmem:[%s14876_s4 + $0x250] ss:$8 sps:$4 sm:$0xff]  }
 0x183   :  { %1435 = vmatpush1.bf16.msra.mxu1 %v10822_v46  ;;  %v10878_v46 = vld [vmem:[%s14876_s4 + $0x274] ss:$8 sps:$4 sm:$0xff]  }
 0x184   :  { %1436 = vmatprep.subr.bf16.mxu1 %v10827_v48  ;;  %v10876_v48 = vld [vmem:[%s14876_s4 + $0x270] ss:$8 sps:$4 sm:$0xff]  }
 0x186   :  { %1116 = vmatmul.mubr.bf16.gmra.mrb[12].mxu1 %v11825_v7 }
 0x187   :  { %1125 = vmatprep.mubr.bf16.mxu1 %v14892_v0  ;;  %1437 = vmatpush1.bf16.msra.mxu1 %v10825_v51  ;;  %v10881_v51 = vld [vmem:[%s14876_s4 + $0x284] ss:$8 sps:$4 sm:$0xff]  }
 0x188   :  { %1438 = vmatprep.subr.bf16.mxu1 %v10830_v53  ;;  %v1697_v53 = vpack.c.bf16 %v11937_v50, %v11937_v50 }
 0x18b   :  { %1439 = vmatpush1.bf16.msra.mxu1 %v10828_v57  ;;  %v10879_v57 = vld [vmem:[%s14876_s4 + $0x280] ss:$8 sps:$4 sm:$0xff]  }
 0x18c   :  { %1795 = vmatprep.subr.bf16.mxu1 %v10833_v59  ;;  %v10884_v59 = vld [vmem:[%s14876_s4 + $0x294] ss:$8 sps:$4 sm:$0xff]  }
 0x18e   :  { %1126 = vmatmul.mubr.bf16.gmra.mrb[16].mxu1 %v11835_v20 }
 0x18f   :  { %1135 = vmatprep.mubr.bf16.mxu1 %v14892_v0 }
 0x196   :  { %1136 = vmatmul.mubr.bf16.gmra.mrb[20].mxu1 %v11845_v33 }
 0x197   :  { %1145 = vmatprep.mubr.bf16.mxu1 %v14892_v0 }
 0x19e   :  { %1146 = vmatmul.mubr.bf16.gmra.mrb[24].mxu1 %v11855_v47 }
 0x19f   :  { %1155 = vmatprep.mubr.bf16.mxu1 %v14892_v0 }
 0x1a6   :  { %1156 = vmatmul.mubr.bf16.gmra.mrb[28].mxu1 %v11865_v63 }
 0x1a7   :  { %1165 = vmatprep.mubr.bf16.mxu1 %v14892_v0 }
 0x1ae   :  { %1166 = vmatmul.mubr.bf16.gmra.mrb[32].mxu1 %v11877_v15 }
 0x1af   :  { %1175 = vmatprep.mubr.bf16.mxu1 %v14892_v0 }
 0x1b6   :  { %1176 = vmatmul.mubr.bf16.gmra.mrb[36].mxu1 %v955_v60  ;;  %v10882_v60 = vld [vmem:[%s14876_s4 + $0x290] ss:$8 sps:$4 sm:$0xff]  }
 0x1b7   :  { %1456 = vmatprep.mubr.bf16.mxu1 %v14892_v0 }
 0x1be   :  { %1457 = vmatmul.mubr.bf16.vlgmr.msra.gmra.mrb[0].mxu1 %v11765_v25  ;;  %v10842_v25 = vld [vmem:[%s14876_s4 + $0x1b4] ss:$8 sps:$4 sm:$0xff]  }
 0x1bf   :  { %1796 = vmatpush1.bf16.msra.mxu1 %v10831_v61  ;;  %1466 = vmatprep.mubr.bf16.mxu1 %v14892_v0  ;;  %v10889_v61 = vld [vmem:[%s14876_s4 + $0x2a4] ss:$8 sps:$4 sm:$0xff]  }
 0x1c0   :  { %1797 = vmatprep.subr.bf16.mxu1 %v10836_v62  ;;  %v10887_v62 = vld [vmem:[%s14876_s4 + $0x2a0] ss:$8 sps:$4 sm:$0xff]  }
 0x1c3   :  { %1798 = vmatpush1.bf16.msra.mxu1 %v10834_v1  ;;  %v10890_v1 = vld [vmem:[%s14876_s4 + $0x2b0] ss:$8 sps:$4 sm:$0xff]  }
 0x1c4   :  { %1799 = vmatprep.subr.bf16.mxu1 %v10839_v3  ;;  %v10895_v3 = vld [vmem:[%s14876_s4 + $0x2c4] ss:$8 sps:$4 sm:$0xff]  }
 0x1c6   :  { %1467 = vmatmul.mubr.bf16.gmra.mrb[4].mxu1 %v11787_v41 }
 0x1c7   :  { %1476 = vmatprep.mubr.bf16.mxu1 %v14892_v0  ;;  %1800 = vmatpush1.bf16.msra.mxu1 %v10837_v4  ;;  %v10893_v4 = vld [vmem:[%s14876_s4 + $0x2c0] ss:$8 sps:$4 sm:$0xff]  }
 0x1c8   :  { %1801 = vmatprep.subr.bf16.mxu1 %v10842_v25  ;;  %v10898_v25 = vld [vmem:[%s14876_s4 + $0x2d4] ss:$8 sps:$4 sm:$0xff]  }
 0x1cb   :  { %1802 = vmatpush1.bf16.msra.mxu1 %v10840_v5  ;;  %v10896_v5 = vld [vmem:[%s14876_s4 + $0x2d0] ss:$8 sps:$4 sm:$0xff]  }
 0x1cc   :  { %1803 = vmatprep.subr.bf16.mxu1 %v10845_v6  ;;  %v10901_v6 = vld [vmem:[%s14876_s4 + $0x2e4] ss:$8 sps:$4 sm:$0xff]  }
 0x1ce   :  { %1477 = vmatmul.mubr.bf16.gmra.mrb[8].mxu1 %v11808_v55 }
 0x1cf   :  { %1486 = vmatprep.mubr.bf16.mxu1 %v14892_v0  ;;  %1804 = vmatpush1.bf16.msra.mxu1 %v10843_v8  ;;  %v10899_v8 = vld [vmem:[%s14876_s4 + $0x2e0] ss:$8 sps:$4 sm:$0xff]  }
 0x1d0   :  { %1805 = vmatprep.subr.bf16.mxu1 %v10848_v10  ;;  %v10904_v10 = vld [vmem:[%s14876_s4 + $0x2f4] ss:$8 sps:$4 sm:$0xff]  }
 0x1d3   :  { %1806 = vmatpush1.bf16.msra.mxu1 %v10846_v11  ;;  %v10902_v11 = vld [vmem:[%s14876_s4 + $0x2f0] ss:$8 sps:$4 sm:$0xff]  }
 0x1d4   :  { %1807 = vmatprep.subr.bf16.mxu1 %v10851_v12  ;;  %v10907_v12 = vld [vmem:[%s14876_s4 + $0x304] ss:$8 sps:$4 sm:$0xff]  }
 0x1d6   :  { %1487 = vmatmul.mubr.bf16.gmra.mrb[12].mxu1 %v11827_v9 }
 0x1d7   :  { %1496 = vmatprep.mubr.bf16.mxu1 %v14892_v0  ;;  %1808 = vmatpush1.bf16.msra.mxu1 %v10849_v13  ;;  %v510_v13 = vmul.f32 %v11731_v56, %v11927_v44  ;;  %v10910_v56 = vld [vmem:[%s14876_s4 + $0x314] ss:$8 sps:$4 sm:$0xff]   ;;  %v10913_v44 = vld [vmem:[%s14876_s4 + $0x324] ss:$8 sps:$4 sm:$0xff]  }
 0x1d8   :  { %1809 = vmatprep.subr.bf16.mxu1 %v10854_v14 }
 0x1d9   :  { %v542_v14 = vadd.f32 %v11736_v58, %v510_v13  ;;  %v10908_v58 = vld [vmem:[%s14876_s4 + $0x310] ss:$8 sps:$4 sm:$0xff]   ;;  %v10965_v13 = vld [vmem:[%s14879_s7 + $0x120] ss:$12 sps:$4 sm:$0xff]  }
 0x1db   :  { %1810 = vmatpush1.bf16.msra.mxu1 %v10852_v16  ;;  %v12183_v16 = vmax.f32 %v542_v14, 0.0  ;;  %v10970_v14 = vld [vmem:[%s14879_s7 + $0x13c] ss:$12 sps:$4 sm:$0xff]  }
 0x1dc   :  { %2166 = vmatprep.subr.bf16.mxu1 %v10857_v17 }
 0x1dd   :  { %v2068_v17 = vpack.c.bf16 %v12183_v16, %v12183_v16 }
 0x1de   :  { %1497 = vmatmul.mubr.bf16.gmra.mrb[16].mxu1 %v11837_v22 }
 0x1df   :  { %1506 = vmatprep.mubr.bf16.mxu1 %v14892_v0 }
 0x1e6   :  { %1507 = vmatmul.mubr.bf16.gmra.mrb[20].mxu1 %v11847_v35 }
 0x1e7   :  { %1516 = vmatprep.mubr.bf16.mxu1 %v14892_v0 }
 0x1ee   :  { %1517 = vmatmul.mubr.bf16.gmra.mrb[24].mxu1 %v11857_v49 }
 0x1ef   :  { %1526 = vmatprep.mubr.bf16.mxu1 %v14892_v0 }
 0x1f6   :  { %1527 = vmatmul.mubr.bf16.gmra.mrb[28].mxu1 %v11867_v2 }
 0x1f7   :  { %1536 = vmatprep.mubr.bf16.mxu1 %v14892_v0 }
 0x1fe   :  { %1537 = vmatmul.mubr.bf16.gmra.mrb[32].mxu1 %v11881_v21 }
 0x1ff   :  { %1546 = vmatprep.mubr.bf16.mxu1 %v14892_v0 }
 0x206   :  { %1547 = vmatmul.mubr.bf16.gmra.mrb[36].mxu1 %v1326_v28  ;;  %v10919_v28 = vld [vmem:[%s14876_s4 + $0x344] ss:$8 sps:$4 sm:$0xff]  }
 0x207   :  { %1827 = vmatprep.mubr.bf16.mxu1 %v14892_v0 }
 0x20e   :  { %1828 = vmatmul.mubr.bf16.vlgmr.msra.gmra.mrb[0].mxu1 %v11781_v36  ;;  %v10866_v36 = vld [vmem:[%s14876_s4 + $0x234] ss:$8 sps:$4 sm:$0xff]  }
 0x20f   :  { %2167 = vmatpush1.bf16.msra.mxu1 %v10855_v29  ;;  %1837 = vmatprep.mubr.bf16.mxu1 %v14892_v0  ;;  %v10917_v29 = vld [vmem:[%s14876_s4 + $0x340] ss:$8 sps:$4 sm:$0xff]  }
 0x210   :  { %2168 = vmatprep.subr.bf16.mxu1 %v10860_v30 }
 0x213   :  { %2169 = vmatpush1.bf16.msra.mxu1 %v10858_v24 }
 0x214   :  { %2170 = vmatprep.subr.bf16.mxu1 %v10863_v31  ;;  %v10920_v31 = vld [vmem:[%s14876_s4 + $0x350] ss:$8 sps:$4 sm:$0xff]  }
 0x216   :  { %1838 = vmatmul.mubr.bf16.gmra.mrb[4].mxu1 %v11803_v52 }
 0x217   :  { %1847 = vmatprep.mubr.bf16.mxu1 %v14892_v0  ;;  %2171 = vmatpush1.bf16.msra.mxu1 %v10861_v19 }
 0x218   :  { %2172 = vmatprep.subr.bf16.mxu1 %v10866_v36  ;;  %v10925_v36 = vld [vmem:[%s14876_s4 + $0x364] ss:$8 sps:$4 sm:$0xff]  }
 0x21b   :  { %2173 = vmatpush1.bf16.msra.mxu1 %v10864_v34 }
 0x21c   :  { %2174 = vmatprep.subr.bf16.mxu1 %v10869_v38  ;;  %v10926_v38 = vld [vmem:[%s14876_s4 + $0x370] ss:$8 sps:$4 sm:$0xff]  }
 0x21e   :  { %1848 = vmatmul.mubr.bf16.gmra.mrb[8].mxu1 %v11825_v7 }
 0x21f   :  { %1857 = vmatprep.mubr.bf16.mxu1 %v14892_v0  ;;  %2175 = vmatpush1.bf16.msra.mxu1 %v10867_v39  ;;  %v12246_v39 = vld [vmem:[%s14879_s7] ss:$12 sps:$4 sm:$0xff]  }
 0x220   :  { %2176 = vmatprep.subr.bf16.mxu1 %v10872_v40  ;;  %v10931_v40 = vld [vmem:[%s14879_s7 + $0x4] ss:$12 sps:$4 sm:$0xff]  }
 0x221   :  { %3648 = vmatprep.subr.bf16.mxu0 %v10931_v40 }
 0x222   :  { %3649 = vmatpush1.bf16.msra.mxu0 %v12246_v39 }
 0x223   :  { %2177 = vmatpush1.bf16.msra.mxu1 %v10870_v42  ;;  %v12260_v42 = vld [vmem:[%s14879_s7 + $0x18] ss:$12 sps:$4 sm:$0xff]  }
 0x224   :  { %2178 = vmatprep.subr.bf16.mxu1 %v10875_v43  ;;  %v12266_v43 = vld [vmem:[%s14879_s7 + $0x34] ss:$12 sps:$4 sm:$0xff]  }
 0x226   :  { %1858 = vmatmul.mubr.bf16.gmra.mrb[12].mxu1 %v11835_v20 }
 0x227   :  { %1867 = vmatprep.mubr.bf16.mxu1 %v14892_v0  ;;  %2179 = vmatpush1.bf16.msra.mxu1 %v10873_v45  ;;  %v12274_v45 = vld [vmem:[%s14879_s7 + $0x30] ss:$12 sps:$4 sm:$0xff]  }
 0x228   :  { %2180 = vmatprep.subr.bf16.mxu1 %v10878_v46  ;;  %v12280_v46 = vld [vmem:[%s14879_s7 + $0x4c] ss:$12 sps:$4 sm:$0xff]  }
 0x22b   :  { %2181 = vmatpush1.bf16.msra.mxu1 %v10876_v48  ;;  %v12292_v48 = vld [vmem:[%s14879_s7 + $0x64] ss:$12 sps:$4 sm:$0xff]  }
 0x22c   :  { %2537 = vmatprep.subr.bf16.mxu1 %v10881_v51  ;;  %v12300_v51 = vld [vmem:[%s14879_s7 + $0x60] ss:$12 sps:$4 sm:$0xff]  }
 0x22e   :  { %1868 = vmatmul.mubr.bf16.gmra.mrb[16].mxu1 %v11845_v33 }
 0x22f   :  { %1877 = vmatprep.mubr.bf16.mxu1 %v14892_v0 }
 0x236   :  { %1878 = vmatmul.mubr.bf16.gmra.mrb[20].mxu1 %v11855_v47 }
 0x237   :  { %1887 = vmatprep.mubr.bf16.mxu1 %v14892_v0 }
 0x23e   :  { %1888 = vmatmul.mubr.bf16.gmra.mrb[24].mxu1 %v11865_v63 }
 0x23f   :  { %1897 = vmatprep.mubr.bf16.mxu1 %v14892_v0 }
 0x244   :  { %v12222_v30 = vpop.f32.mrb[48].mxu0 }
 0x245   :  { %v477_v24 = vpop.f32.mrb[49].mxu0 }
 0x246   :  { %1898 = vmatmul.mubr.bf16.gmra.mrb[28].mxu1 %v11877_v15  ;;  %v478_v19 = vpop.f32.mrb[50].mxu0 }
 0x247   :  { %1907 = vmatprep.mubr.bf16.mxu1 %v14892_v0  ;;  %v479_v34 = vpop.f32.mrb[51].mxu0 }
 0x24e   :  { %1908 = vmatmul.mubr.bf16.gmra.mrb[32].mxu1 %v11889_v26 }
 0x24f   :  { %1917 = vmatprep.mubr.bf16.mxu1 %v14892_v0 }
 0x256   :  { %1918 = vmatmul.mubr.bf16.gmra.mrb[36].mxu1 %v1697_v53  ;;  %v12306_v53 = vld [vmem:[%s14879_s7 + $0x7c] ss:$12 sps:$4 sm:$0xff]  }
 0x257   :  { %2198 = vmatprep.mubr.bf16.mxu1 %v14892_v0 }
 0x25e   :  { %2199 = vmatmul.mubr.bf16.vlgmr.msra.gmra.mrb[0].mxu1 %v11787_v41  ;;  %v10892_v41 = vld [vmem:[%s14876_s4 + $0x2b4] ss:$8 sps:$4 sm:$0xff]  }
 0x25f   :  { %2538 = vmatpush1.bf16.msra.mxu1 %v10879_v57  ;;  %2208 = vmatprep.mubr.bf16.mxu1 %v14892_v0  ;;  %v12316_v57 = vld [vmem:[%s14879_s7 + $0x94] ss:$12 sps:$4 sm:$0xff]  }
 0x260   :  { %2539 = vmatprep.subr.bf16.mxu1 %v10884_v59  ;;  %v12323_v59 = vld [vmem:[%s14879_s7 + $0x90] ss:$12 sps:$4 sm:$0xff]  }
 0x263   :  { %2540 = vmatpush1.bf16.msra.mxu1 %v10882_v60  ;;  %v12329_v60 = vld [vmem:[%s14879_s7 + $0xac] ss:$12 sps:$4 sm:$0xff]  }
 0x264   :  { %2541 = vmatprep.subr.bf16.mxu1 %v10889_v61  ;;  %v12337_v61 = vld [vmem:[%s14879_s7 + $0xa8] ss:$12 sps:$4 sm:$0xff]  }
 0x266   :  { %2209 = vmatmul.mubr.bf16.gmra.mrb[4].mxu1 %v11808_v55 }
 0x267   :  { %2218 = vmatprep.mubr.bf16.mxu1 %v14892_v0  ;;  %2542 = vmatpush1.bf16.msra.mxu1 %v10887_v62  ;;  %v12352_v62 = vld [vmem:[%s14879_s7 + $0xc0] ss:$12 sps:$4 sm:$0xff]  }
 0x268   :  { %2543 = vmatprep.subr.bf16.mxu1 %v10892_v41  ;;  %v12357_v41 = vld [vmem:[%s14877_s2] ss:$0 sm:$0xff] }
 0x26b   :  { %2544 = vmatpush1.bf16.msra.mxu1 %v10890_v1  ;;  %v511_v1 = vmul.f32 %v12357_v41, %v12064_v32  ;;  %v2438_v32 = vpack.c.bf16 %v12183_v16, %v11937_v50  ;;  %v10964_v50 = vld [vmem:[%s14879_s7 + $0x10c] ss:$12 sps:$4 sm:$0xff]  }
 0x26c   :  { %2545 = vmatprep.subr.bf16.mxu1 %v10895_v3  ;;  %v10956_v3 = vld [vmem:[%s14879_s7 + $0xd8] ss:$12 sps:$4 sm:$0xff]  }
 0x26e   :  { %2219 = vmatmul.mubr.bf16.gmra.mrb[8].mxu1 %v11827_v9 }
 0x26f   :  { %2228 = vmatprep.mubr.bf16.mxu1 %v14892_v0  ;;  %2546 = vmatpush1.bf16.msra.mxu1 %v10893_v4  ;;  %v12372_v4 = vld [vmem:[%s14878_s3] ss:$0 sm:$0xff] }
 0x270   :  { %2547 = vmatprep.subr.bf16.mxu1 %v10898_v25  ;;  %v543_v25 = vadd.f32 %v12372_v4, %v511_v1 }
 0x273   :  { %2548 = vmatpush1.bf16.msra.mxu1 %v10896_v5  ;;  %v10961_v5 = vld [vmem:[%s14879_s7 + $0xf4] ss:$12 sps:$4 sm:$0xff]  }
 0x274   :  { %2549 = vmatprep.subr.bf16.mxu1 %v10901_v6  ;;  %v10959_v6 = vld [vmem:[%s14879_s7 + $0xf0] ss:$12 sps:$4 sm:$0xff]  }
 0x276   :  { %2229 = vmatmul.mubr.bf16.gmra.mrb[12].mxu1 %v11837_v22 }
 0x277   :  { %2238 = vmatprep.mubr.bf16.mxu1 %v14892_v0  ;;  %2550 = vmatpush1.bf16.msra.mxu1 %v10899_v8  ;;  %v12384_v8 = vmax.f32 %v543_v25, 0.0 }
 0x278   :  { %2551 = vmatprep.subr.bf16.mxu1 %v10904_v10  ;;  %v10962_v10 = vld [vmem:[%s14879_s7 + $0x108] ss:$12 sps:$4 sm:$0xff]  }
 0x27b   :  { %2552 = vmatpush1.bf16.msra.mxu1 %v10902_v11  ;;  %v2439_v11 = vpack.c.bf16 %v12384_v8, %v12384_v8 }
 0x27c   :  { %2908 = vmatprep.subr.bf16.mxu1 %v10907_v12  ;;  %v10967_v12 = vld [vmem:[%s14879_s7 + $0x124] ss:$12 sps:$4 sm:$0xff]  }
 0x27e   :  { %2239 = vmatmul.mubr.bf16.gmra.mrb[16].mxu1 %v11847_v35 }
 0x27f   :  { %2248 = vmatprep.mubr.bf16.mxu1 %v14892_v0 }
 0x286   :  { %2249 = vmatmul.mubr.bf16.gmra.mrb[20].mxu1 %v11857_v49 }
 0x287   :  { %2258 = vmatprep.mubr.bf16.mxu1 %v14892_v0 }
 0x28e   :  { %2259 = vmatmul.mubr.bf16.gmra.mrb[24].mxu1 %v11867_v2 }
 0x28f   :  { %2268 = vmatprep.mubr.bf16.mxu1 %v14892_v0 }
 0x296   :  { %2269 = vmatmul.mubr.bf16.gmra.mrb[28].mxu1 %v11881_v21 }
 0x297   :  { %2278 = vmatprep.mubr.bf16.mxu1 %v14892_v0 }
 0x29e   :  { %2279 = vmatmul.mubr.bf16.gmra.mrb[32].mxu1 %v11947_v54 }
 0x29f   :  { %2288 = vmatprep.mubr.bf16.mxu1 %v14892_v0 }
 0x2a6   :  { %2289 = vmatmul.mubr.bf16.gmra.mrb[36].mxu1 %v2068_v17  ;;  %v10968_v17 = vld [vmem:[%s14879_s7 + $0x138] ss:$12 sps:$4 sm:$0xff]  }
 0x2a7   :  { %2569 = vmatprep.mubr.bf16.mxu1 %v14892_v0 }
 0x2ae   :  { %2570 = vmatmul.mubr.bf16.vlgmr.msra.gmra.mrb[0].mxu1 %v11803_v52  ;;  %v10916_v52 = vld [vmem:[%s14876_s4 + $0x334] ss:$8 sps:$4 sm:$0xff]  }
 0x2af   :  { %2909 = vmatpush1.bf16.msra.mxu1 %v10905_v18  ;;  %2579 = vmatprep.mubr.bf16.mxu1 %v14892_v0  ;;  %v10973_v18 = vld [vmem:[%s14879_s7 + $0x154] ss:$12 sps:$4 sm:$0xff]  }
 0x2b0   :  { %2910 = vmatprep.subr.bf16.mxu1 %v10910_v56  ;;  %v10971_v56 = vld [vmem:[%s14879_s7 + $0x150] ss:$12 sps:$4 sm:$0xff]  }
 0x2b3   :  { %2911 = vmatpush1.bf16.msra.mxu1 %v10908_v58  ;;  %v3155_v58 = vlaneseq }
 0x2b4   :  { %2912 = vmatprep.subr.bf16.mxu1 %v10913_v44 }
 0x2b5   :  { %v12467_v44 = vshrl.u32 %v3155_v58, 7 }
 0x2b6   :  { %2580 = vmatmul.mubr.bf16.gmra.mrb[4].mxu1 %v11825_v7  ;;  %v10922_v7 = vld [vmem:[%s14876_s4 + $0x354] ss:$8 sps:$4 sm:$0xff]  }
 0x2b7   :  { %2589 = vmatprep.mubr.bf16.mxu1 %v14892_v0  ;;  %2913 = vmatpush1.bf16.msra.mxu1 %v10911_v23  ;;  %v12470_v23 = vsub.s32 0, %v12467_v44 }
 0x2b8   :  { %2914 = vmatprep.subr.bf16.mxu1 %v10916_v52  ;;  %v3153_v52 = vld [vmem:[%s14881_s5] sm:$0x3] }
 0x2bb   :  { %2915 = vmatpush1.bf16.msra.mxu1 %v10914_v27  ;;  %v12476_v27 = vsub.s32 1, %v12467_v44 }
 0x2bc   :  { %2916 = vmatprep.subr.bf16.mxu1 %v10919_v28  ;;  %v3203_v28 = vld [vmem:[%s14882_s6] sm:$0x3] }
 0x2be   :  { %2590 = vmatmul.mubr.bf16.gmra.mrb[8].mxu1 %v11835_v20  ;;  %v10923_v20 = vld [vmem:[%s14876_s4 + $0x360] ss:$8 sps:$4 sm:$0xff]  }
 0x2bf   :  { %2599 = vmatprep.mubr.bf16.mxu1 %v14892_v0  ;;  %2917 = vmatpush1.bf16.msra.mxu1 %v10917_v29  ;;  %v12482_v29 = vrot.slane %v3153_v52, %v12470_v23 }
 0x2c0   :  { %2918 = vmatprep.subr.bf16.mxu1 %v10922_v7  ;;  %v12485_v7 = vrot.slane %v3153_v52, %v12476_v27 }
 0x2c3   :  { %2919 = vmatpush1.bf16.msra.mxu1 %v10920_v31  ;;  %v12491_v31 = vrot.slane %v3203_v28, %v12476_v27 }
 0x2c4   :  { %2920 = vmatprep.subr.bf16.mxu1 %v10925_v36 }
 0x2c6   :  { %2600 = vmatmul.mubr.bf16.gmra.mrb[12].mxu1 %v11845_v33  ;;  %v12254_v33 = vld [vmem:[%s14879_s7 + $0x1c] ss:$12 sps:$4 sm:$0xff]  }
 0x2c7   :  { %2609 = vmatprep.mubr.bf16.mxu1 %v14892_v0  ;;  %2921 = vmatpush1.bf16.msra.mxu1 %v10923_v20 }
 0x2c8   :  { %2922 = vmatprep.subr.bf16.mxu1 %v10928_v37  ;;  %3650 = vmatprep.subr.bf16.mxu0 %v12254_v33 }
 0x2c9   :  { %3651 = vmatpush1.bf16.msra.mxu0 %v12260_v42 }
 0x2ca   :  { %3652 = vmatprep.subr.bf16.mxu0 %v12266_v43 }
 0x2cb   :  { %2923 = vmatpush1.bf16.msra.mxu1 %v10926_v38 }
 0x2cc   :  { %10358 = vmatprep.subr.bf16.mxu1 %v10931_v40 }
 0x2cd   :  { %3653 = vmatpush1.bf16.msra.mxu0 %v12274_v45 }
 0x2ce   :  { %2610 = vmatmul.mubr.bf16.gmra.mrb[16].mxu1 %v11855_v47  ;;  %v12286_v47 = vld [vmem:[%s14879_s7 + $0x48] ss:$12 sps:$4 sm:$0xff]   ;;  %3654 = vmatprep.subr.bf16.mxu0 %v12280_v46 }
 0x2cf   :  { %2619 = vmatprep.mubr.bf16.mxu1 %v14892_v0 }
 0x2d1   :  { %3655 = vmatpush1.bf16.msra.mxu0 %v12286_v47 }
 0x2d2   :  { %3656 = vmatprep.subr.bf16.mxu0 %v12292_v48 }
 0x2d5   :  { %3657 = vmatpush1.bf16.msra.mxu0 %v12300_v51 }
 0x2d6   :  { %2620 = vmatmul.mubr.bf16.gmra.mrb[20].mxu1 %v11865_v63  ;;  %v12311_v63 = vld [vmem:[%s14879_s7 + $0x78] ss:$12 sps:$4 sm:$0xff]   ;;  %3658 = vmatprep.subr.bf16.mxu0 %v12306_v53 }
 0x2d7   :  { %2629 = vmatprep.mubr.bf16.mxu1 %v14892_v0 }
 0x2d9   :  { %3659 = vmatpush1.bf16.msra.mxu0 %v12311_v63 }
 0x2da   :  { %3660 = vmatprep.subr.bf16.mxu0 %v12316_v57 }
 0x2dd   :  { %3661 = vmatpush1.bf16.msra.mxu0 %v12323_v59 }
 0x2de   :  { %2630 = vmatmul.mubr.bf16.gmra.mrb[24].mxu1 %v11877_v15  ;;  %v12342_v15 = vld [vmem:[%s14879_s7 + $0xc4] ss:$12 sps:$4 sm:$0xff]   ;;  %3662 = vmatprep.subr.bf16.mxu0 %v12329_v60 }
 0x2df   :  { %2639 = vmatprep.mubr.bf16.mxu1 %v14892_v0 }
 0x2e1   :  { %3663 = vmatpush1.bf16.msra.mxu0 %v12337_v61 }
 0x2e2   :  { %3664 = vmatprep.subr.bf16.mxu0 %v12342_v15 }
 0x2e5   :  { %3665 = vmatpush1.bf16.msra.mxu0 %v12352_v62 }
 0x2e6   :  { %2640 = vmatmul.mubr.bf16.gmra.mrb[28].mxu1 %v11889_v26  ;;  %v10958_v26 = vld [vmem:[%s14879_s7 + $0xdc] ss:$12 sps:$4 sm:$0xff]  }
 0x2e7   :  { %2649 = vmatprep.mubr.bf16.mxu1 %v14892_v0  ;;  %3666 = vmatprep.subr.bf16.mxu0 %v10958_v26 }
 0x2e9   :  { %3667 = vmatpush1.bf16.msra.mxu0 %v10956_v3 }
 0x2ea   :  { %3668 = vmatprep.subr.bf16.mxu0 %v10961_v5 }
 0x2ed   :  { %3669 = vmatpush1.bf16.msra.mxu0 %v10959_v6 }
 0x2ee   :  { %2650 = vmatmul.mubr.bf16.gmra.mrb[32].mxu1 %v2438_v32  ;;  %3670 = vmatprep.subr.bf16.mxu0 %v10964_v50 }
 0x2ef   :  { %2659 = vmatprep.mubr.bf16.mxu1 %v14892_v0 }
 0x2f1   :  { %3671 = vmatpush1.bf16.msra.mxu0 %v10962_v10 }
 0x2f2   :  { %3672 = vmatprep.subr.bf16.mxu0 %v10967_v12 }
 0x2f5   :  { %3673 = vmatpush1.bf16.msra.mxu0 %v10965_v13 }
 0x2f6   :  { %2660 = vmatmul.mubr.bf16.gmra.mrb[36].mxu1 %v2439_v11  ;;  %3674 = vmatprep.subr.bf16.mxu0 %v10970_v14 }
 0x2f7   :  { %2940 = vmatprep.mubr.bf16.mxu1 %v14892_v0 }
 0x2f9   :  { %3675 = vmatpush1.bf16.msra.mxu0 %v10968_v17 }
 0x2fa   :  { %3676 = vmatprep.subr.bf16.mxu0 %v10973_v18 }
 0x2fd   :  { %3677 = vmatpush1.bf16.msra.mxu0 %v10971_v56 }
 0x2fe   :  { %2941 = vmatmul.mubr.bf16.vlgmr.msra.gmra.mrb[0].mxu1 %v11808_v55  ;;  %v512_v55 = vmul.f32 %v12357_v41, %v12222_v30  ;;  %v12488_v30 = vrot.slane %v3203_v28, %v12470_v23  ;;  %v10984_v28 = vld [vmem:[%s14879_s7 + $0x50] ss:$12 sps:$4 sm:$0xff]  }
 0x2ff   :  { %2950 = vmatprep.mubr.bf16.mxu1 %v14892_v0  ;;  %10374 = vmatpush1.bf16.msra.mxu1 %v12246_v39 }
 0x300   :  { %10359 = vmatprep.subr.bf16.mxu1 %v12254_v33 }
 0x303   :  { %10375 = vmatpush1.bf16.msra.mxu1 %v12260_v42 }
 0x304   :  { %10360 = vmatprep.subr.bf16.mxu1 %v12266_v43 }
 0x306   :  { %2951 = vmatmul.mubr.bf16.gmra.mrb[4].mxu1 %v11827_v9  ;;  %v544_v9 = vadd.f32 %v12372_v4, %v512_v55 }
 0x307   :  { %2960 = vmatprep.mubr.bf16.mxu1 %v14892_v0  ;;  %10376 = vmatpush1.bf16.msra.mxu1 %v12274_v45 }
 0x308   :  { %10361 = vmatprep.subr.bf16.mxu1 %v12280_v46 }
 0x30b   :  { %10377 = vmatpush1.bf16.msra.mxu1 %v12286_v47 }
 0x30c   :  { %10362 = vmatprep.subr.bf16.mxu1 %v12292_v48 }
 0x30e   :  { %2961 = vmatmul.mubr.bf16.gmra.mrb[8].mxu1 %v11837_v22  ;;  %v2809_v22 = vpack.c.bf16 %v12384_v8, %v12183_v16  ;;  %v12464_v16 = vld [vmem:[%s14880_s9 + $0x4] ss:$12 sps:$4 sm:$0xff]  }
 0x30f   :  { %2970 = vmatprep.mubr.bf16.mxu1 %v14892_v0  ;;  %10378 = vmatpush1.bf16.msra.mxu1 %v12300_v51 }
 0x310   :  { %10363 = vmatprep.subr.bf16.mxu1 %v12306_v53 }
 0x313   :  { %10379 = vmatpush1.bf16.msra.mxu1 %v12311_v63 }
 0x314   :  { %10364 = vmatprep.subr.bf16.mxu1 %v12316_v57 }
 0x316   :  { %2971 = vmatmul.mubr.bf16.gmra.mrb[12].mxu1 %v11847_v35  ;;  %v569_v35 = vmax.f32 %v544_v9, 0.0  ;;  %v10982_v9 = vld [vmem:[%s14879_s7 + $0x38] ss:$12 sps:$4 sm:$0xff]  }
 0x317   :  { %2980 = vmatprep.mubr.bf16.mxu1 %v14892_v0  ;;  %10380 = vmatpush1.bf16.msra.mxu1 %v12323_v59 }
 0x318   :  { %10365 = vmatprep.subr.bf16.mxu1 %v12329_v60 }
 0x31b   :  { %10381 = vmatpush1.bf16.msra.mxu1 %v12337_v61 }
 0x31c   :  { %10366 = vmatprep.subr.bf16.mxu1 %v12342_v15  ;;  %v10978_v15 = vld [vmem:[%s14879_s7 + $0x8] ss:$12 sps:$4 sm:$0xff]  }
 0x31e   :  { %2981 = vmatmul.mubr.bf16.gmra.mrb[16].mxu1 %v11857_v49  ;;  %v2810_v49 = vpack.c.bf16 %v569_v35, %v569_v35 }
 0x31f   :  { %2990 = vmatprep.mubr.bf16.mxu1 %v14892_v0  ;;  %10382 = vmatpush1.bf16.msra.mxu1 %v12352_v62 }
 0x320   :  { %10367 = vmatprep.subr.bf16.mxu1 %v10958_v26  ;;  %v10979_v26 = vld [vmem:[%s14879_s7 + $0xe0] ss:$12 sps:$4 sm:$0xff]  }
 0x323   :  { %10383 = vmatpush1.bf16.msra.mxu1 %v10956_v3 }
 0x324   :  { %10368 = vmatprep.subr.bf16.mxu1 %v10961_v5  ;;  %v10980_v5 = vld [vmem:[%s14879_s7 + $0x20] ss:$12 sps:$4 sm:$0xff]  }
 0x326   :  { %2991 = vmatmul.mubr.bf16.gmra.mrb[20].mxu1 %v11867_v2  ;;  %v10976_v2 = vld [vmem:[%s14879_s7 + $0x16c] ss:$12 sps:$4 sm:$0xff]  }
 0x327   :  { %3000 = vmatprep.mubr.bf16.mxu1 %v14892_v0  ;;  %10384 = vmatpush1.bf16.msra.mxu1 %v10959_v6 }
 0x328   :  { %10369 = vmatprep.subr.bf16.mxu1 %v10964_v50  ;;  %3678 = vmatprep.subr.bf16.mxu0 %v10976_v2  ;;  %v10981_v50 = vld [vmem:[%s14879_s7 + $0xf8] ss:$12 sps:$4 sm:$0xff]  }
 0x32b   :  { %10385 = vmatpush1.bf16.msra.mxu1 %v10962_v10 }
 0x32c   :  { %10370 = vmatprep.subr.bf16.mxu1 %v10967_v12 }
 0x32e   :  { %3001 = vmatmul.mubr.bf16.gmra.mrb[24].mxu1 %v11881_v21  ;;  %v10974_v21 = vld [vmem:[%s14879_s7 + $0x168] ss:$12 sps:$4 sm:$0xff]  }
 0x32f   :  { %3010 = vmatprep.mubr.bf16.mxu1 %v14892_v0  ;;  %10386 = vmatpush1.bf16.msra.mxu1 %v10965_v13 }
 0x330   :  { %10371 = vmatprep.subr.bf16.mxu1 %v10970_v14  ;;  %3679 = vmatpush1.bf16.msra.mxu0 %v10974_v21 }
 0x333   :  { %10387 = vmatpush1.bf16.msra.mxu1 %v10968_v17 }
 0x334   :  { %10372 = vmatprep.subr.bf16.mxu1 %v10973_v18 }
 0x336   :  { %3011 = vmatmul.mubr.bf16.gmra.mrb[28].mxu1 %v11947_v54  ;;  %v10977_v54 = vld [vmem:[%s14879_s7 + $0xc8] ss:$12 sps:$4 sm:$0xff]  }
 0x337   :  { %3020 = vmatprep.mubr.bf16.mxu1 %v14892_v0  ;;  %10388 = vmatpush1.bf16.msra.mxu1 %v10971_v56 }
 0x338   :  { %10373 = vmatprep.subr.bf16.mxu1 %v10976_v2  ;;  %9163 = vmatprep.subr.bf16.mxu0 %v10977_v54  ;;  %v10983_v2 = vld [vmem:[%s14879_s7 + $0x110] ss:$12 sps:$4 sm:$0xff]  }
 0x33b   :  { %10389 = vmatpush1.bf16.msra.mxu1 %v10974_v21 }
 0x33c   :  { %4766 = vmatprep.subr.bf16.mxu1 %v12464_v16 }
 0x33e   :  { %3021 = vmatmul.mubr.bf16.gmra.mrb[32].mxu1 %v2809_v22 }
 0x33f   :  { %3030 = vmatprep.mubr.bf16.mxu1 %v14892_v0 }
 0x346   :  { %3031 = vmatmul.mubr.bf16.gmra.mrb[36].mxu1 %v2810_v49 }
 0x3d1   :  { %v2942_v24 = vpop.f32.mrb[0].mxu1 }
 0x3d2   :  { %v3165_v19 = vmul.f32 %v12482_v29, %v2942_v24  ;;  %v2944_v36 = vpop.f32.mrb[1].mxu1 }
 0x3d3   :  { %v3166_v34 = vmul.f32 %v12485_v7, %v2944_v36  ;;  %v2946_v20 = vpop.f32.mrb[2].mxu1  ;;  %v10985_v36 = vld [vmem:[%s14879_s7 + $0x128] ss:$12 sps:$4 sm:$0xff]  }
 0x3d4   :  { %v3215_v37 = vadd.f32 %v12488_v30, %v3165_v19  ;;  %v3167_v38 = vmul.f32 %v12482_v29, %v2946_v20  ;;  %v2948_v39 = vpop.f32.mrb[3].mxu1 }
 0x3d5   :  { %v3216_v40 = vadd.f32 %v12491_v31, %v3166_v34  ;;  %v3168_v33 = vmul.f32 %v12485_v7, %v2948_v39 }
 0x3d6   :  { %v3217_v42 = vadd.f32 %v12488_v30, %v3167_v38  ;;  %v3253_v45 = vmax.f32 %v3215_v37, 0.0 }
 0x3d7   :  { %v3218_v43 = vadd.f32 %v12491_v31, %v3168_v33  ;;  %v3254_v47 = vmax.f32 %v3216_v40, 0.0 }
 0x3d8   :  { %v3255_v46 = vmax.f32 %v3217_v42, 0.0 }
 0x3d9   :  { %v3256_v48 = vmax.f32 %v3218_v43, 0.0  ;;  %v2952_v51 = vpop.f32.mrb[4].mxu1 }
 0x3da   :  { %v12501_v53 = vpack.c.bf16 %v3255_v46, %v3253_v45  ;;  %v3169_v63 = vmul.f32 %v12482_v29, %v2952_v51  ;;  %v2954_v57 = vpop.f32.mrb[5].mxu1  ;;  %v10986_v45 = vld [vmem:[%s14879_s7 + $0x68] ss:$12 sps:$4 sm:$0xff]   ;;  %v10987_v51 = vld [vmem:[%s14879_s7 + $0x140] ss:$12 sps:$4 sm:$0xff]  }
 0x3db   :  { %v3170_v59 = vmul.f32 %v12485_v7, %v2954_v57  ;;  %v2956_v60 = vpop.f32.mrb[6].mxu1  ;;  %v12505_v61 = vpack.c.bf16 %v3256_v48, %v3254_v47 }
 0x3dc   :  { %v3219_v62 = vadd.f32 %v12488_v30, %v3169_v63  ;;  %v3171_v41 = vmul.f32 %v12482_v29, %v2956_v60  ;;  %v2958_v1 = vpop.f32.mrb[7].mxu1 }
 0x3dd   :  { %v3220_v3 = vadd.f32 %v12491_v31, %v3170_v59  ;;  %v3172_v4 = vmul.f32 %v12485_v7, %v2958_v1  ;;  %3680 = vmatprep.mubr.bf16.mxu0 %v12505_v61  ;;  %v10989_v1 = vld [vmem:[%s14879_s7 + $0x158] ss:$12 sps:$4 sm:$0xff]  }
 0x3de   :  { %v3221_v25 = vadd.f32 %v12488_v30, %v3171_v41  ;;  %3681 = vmatmul.mubr.bf16.vlgmr.msra.gmra.mrb[52].mxu0 %v12501_v53  ;;  %v3257_v6 = vmax.f32 %v3219_v62, 0.0 }
 0x3df   :  { %v3222_v32 = vadd.f32 %v12491_v31, %v3172_v4  ;;  %9164 = vmatpush3.bf16.msra.mxu0 %v10978_v15  ;;  %v3258_v10 = vmax.f32 %v3220_v3, 0.0  ;;  %v10988_v15 = vld [vmem:[%s14879_s7 + $0x80] ss:$12 sps:$4 sm:$0xff]  }
 0x3e0   :  { %v3259_v8 = vmax.f32 %v3221_v25, 0.0  ;;  %9165 = vmatprep.subr.bf16.mxu0 %v10979_v26 }
 0x3e1   :  { %v3260_v11 = vmax.f32 %v3222_v32, 0.0  ;;  %v2962_v12 = vpop.f32.mrb[8].mxu1 }
 0x3e2   :  { %v3173_v13 = vmul.f32 %v12482_v29, %v2962_v12  ;;  %v2964_v14 = vpop.f32.mrb[9].mxu1  ;;  %v12528_v17 = vpack.c.bf16 %v3259_v8, %v3257_v6 }
 0x3e3   :  { %v3174_v18 = vmul.f32 %v12485_v7, %v2964_v14  ;;  %v2966_v56 = vpop.f32.mrb[10].mxu1  ;;  %9166 = vmatpush3.bf16.msra.mxu0 %v10980_v5  ;;  %v12531_v55 = vpack.c.bf16 %v3260_v11, %v3258_v10  ;;  %v10990_v10 = vld [vmem:[%s14879_s7 + $0x98] ss:$12 sps:$4 sm:$0xff]   ;;  %v10991_v14 = vld [vmem:[%s14879_s7 + $0x170] ss:$12 sps:$4 sm:$0xff]  }
 0x3e4   :  { %v3223_v22 = vadd.f32 %v12488_v30, %v3173_v13  ;;  %v3175_v35 = vmul.f32 %v12482_v29, %v2966_v56  ;;  %v2968_v49 = vpop.f32.mrb[11].mxu1  ;;  %9167 = vmatprep.subr.bf16.mxu0 %v10981_v50 }
 0x3e5   :  { %v3224_v21 = vadd.f32 %v12491_v31, %v3174_v18  ;;  %v3176_v54 = vmul.f32 %v12485_v7, %v2968_v49  ;;  %3690 = vmatprep.mubr.bf16.mxu0 %v12531_v55 }
 0x3e6   :  { %v3225_v58 = vadd.f32 %v12488_v30, %v3175_v35  ;;  %3691 = vmatmul.mubr.bf16.gmra.mrb[56].mxu0 %v12528_v17  ;;  %v3261_v24 = vmax.f32 %v3223_v22, 0.0  ;;  %v10992_v35 = vld [vmem:[%s14879_s7 + $0xb0] ss:$12 sps:$4 sm:$0xff]  }
 0x3e7   :  { %v3226_v52 = vadd.f32 %v12491_v31, %v3176_v54  ;;  %9168 = vmatpush3.bf16.msra.mxu0 %v10982_v9  ;;  %v3262_v34 = vmax.f32 %v3224_v21, 0.0 }
 0x3e8   :  { %v3263_v19 = vmax.f32 %v3225_v58, 0.0  ;;  %9169 = vmatprep.subr.bf16.mxu0 %v10983_v2 }
 0x3e9   :  { %v3264_v20 = vmax.f32 %v3226_v52, 0.0  ;;  %v2972_v37 = vpop.f32.mrb[12].mxu1 }
 0x3ea   :  { %v3177_v38 = vmul.f32 %v12482_v29, %v2972_v37  ;;  %v2974_v39 = vpop.f32.mrb[13].mxu1  ;;  %v12554_v40 = vpack.c.bf16 %v3263_v19, %v3261_v24 }
 0x3eb   :  { %v3178_v33 = vmul.f32 %v12485_v7, %v2974_v39  ;;  %v2976_v42 = vpop.f32.mrb[14].mxu1  ;;  %v12557_v43 = vpack.c.bf16 %v3264_v20, %v3262_v34  ;;  %9170 = vmatpush3.bf16.msra.mxu0 %v10984_v28 }
 0x3ec   :  { %v3227_v46 = vadd.f32 %v12488_v30, %v3177_v38  ;;  %v3179_v47 = vmul.f32 %v12482_v29, %v2976_v42  ;;  %v2978_v48 = vpop.f32.mrb[15].mxu1  ;;  %9171 = vmatprep.subr.bf16.mxu0 %v10985_v36 }
 0x3ed   :  { %v3228_v63 = vadd.f32 %v12491_v31, %v3178_v33  ;;  %v3180_v57 = vmul.f32 %v12485_v7, %v2978_v48  ;;  %3700 = vmatprep.mubr.bf16.mxu0 %v12557_v43 }
 0x3ee   :  { %v3229_v59 = vadd.f32 %v12488_v30, %v3179_v47  ;;  %3701 = vmatmul.mubr.bf16.gmra.mrb[60].mxu0 %v12554_v40  ;;  %v3265_v62 = vmax.f32 %v3227_v46, 0.0 }
 0x3ef   :  { %v3230_v60 = vadd.f32 %v12491_v31, %v3180_v57  ;;  %9172 = vmatpush3.bf16.msra.mxu0 %v10986_v45  ;;  %v3266_v26 = vmax.f32 %v3228_v63, 0.0 }
 0x3f0   :  { %v3267_v41 = vmax.f32 %v3229_v59, 0.0  ;;  %9173 = vmatprep.subr.bf16.mxu0 %v10987_v51 }
 0x3f1   :  { %v3268_v3 = vmax.f32 %v3230_v60, 0.0  ;;  %v2982_v4 = vpop.f32.mrb[16].mxu1 }
 0x3f2   :  { %v3181_v25 = vmul.f32 %v12482_v29, %v2982_v4  ;;  %v2984_v32 = vpop.f32.mrb[17].mxu1  ;;  %v12580_v5 = vpack.c.bf16 %v3267_v41, %v3265_v62 }
 0x3f3   :  { %v3182_v6 = vmul.f32 %v12485_v7, %v2984_v32  ;;  %v2986_v8 = vpop.f32.mrb[18].mxu1  ;;  %v12583_v50 = vpack.c.bf16 %v3268_v3, %v3266_v26  ;;  %9174 = vmatpush3.bf16.msra.mxu0 %v10988_v15 }
 0x3f4   :  { %v3231_v11 = vadd.f32 %v12488_v30, %v3181_v25  ;;  %v3183_v12 = vmul.f32 %v12482_v29, %v2986_v8  ;;  %v2988_v13 = vpop.f32.mrb[19].mxu1  ;;  %9175 = vmatprep.subr.bf16.mxu0 %v10989_v1 }
 0x3f5   :  { %v3232_v18 = vadd.f32 %v12491_v31, %v3182_v6  ;;  %v3184_v56 = vmul.f32 %v12485_v7, %v2988_v13  ;;  %3710 = vmatprep.mubr.bf16.mxu0 %v12583_v50 }
 0x3f6   :  { %v3233_v9 = vadd.f32 %v12488_v30, %v3183_v12  ;;  %3711 = vmatmul.mubr.bf16.gmra.mrb[64].mxu0 %v12580_v5  ;;  %v3269_v49 = vmax.f32 %v3231_v11, 0.0 }
 0x3f7   :  { %v3234_v22 = vadd.f32 %v12491_v31, %v3184_v56  ;;  %9176 = vmatpush3.bf16.msra.mxu0 %v10990_v10  ;;  %v3270_v21 = vmax.f32 %v3232_v18, 0.0 }
 0x3f8   :  { %v3271_v2 = vmax.f32 %v3233_v9, 0.0  ;;  %9177 = vmatprep.subr.bf16.mxu0 %v10991_v14 }
 0x3f9   :  { %v3272_v54 = vmax.f32 %v3234_v22, 0.0  ;;  %v2992_v58 = vpop.f32.mrb[20].mxu1 }
 0x3fa   :  { %v3185_v52 = vmul.f32 %v12482_v29, %v2992_v58  ;;  %v2994_v28 = vpop.f32.mrb[21].mxu1  ;;  %v12603_v24 = vpack.c.bf16 %v3271_v2, %v3269_v49  ;;  %v12641_v49 = vld [vmem:[%s14880_s9] ss:$12 sps:$4 sm:$0xff]  }
 0x3fb   :  { %v3186_v19 = vmul.f32 %v12485_v7, %v2994_v28  ;;  %v2996_v36 = vpop.f32.mrb[22].mxu1  ;;  %v12606_v34 = vpack.c.bf16 %v3272_v54, %v3270_v21  ;;  %9178 = vmatpush3.bf16.msra.mxu0 %v10992_v35  ;;  %v12648_v54 = vld [vmem:[%s14880_s9 + $0x1c] ss:$12 sps:$4 sm:$0xff]  }
 0x3fc   :  { %v3235_v20 = vadd.f32 %v12488_v30, %v3185_v52  ;;  %v3187_v37 = vmul.f32 %v12482_v29, %v2996_v36  ;;  %v2998_v38 = vpop.f32.mrb[23].mxu1  ;;  %4115 = vmatprep.subr.bf16.mxu0 %v12464_v16  ;;  %v12662_v36 = vld [vmem:[%s14880_s9 + $0x18] ss:$12 sps:$4 sm:$0xff]  }
 0x3fd   :  { %v3236_v39 = vadd.f32 %v12491_v31, %v3186_v19  ;;  %v3188_v33 = vmul.f32 %v12485_v7, %v2998_v38  ;;  %3720 = vmatprep.mubr.bf16.mxu0 %v12606_v34  ;;  %v12668_v38 = vld [vmem:[%s14880_s9 + $0x34] ss:$12 sps:$4 sm:$0xff]  }
 0x3fe   :  { %v3237_v42 = vadd.f32 %v12488_v30, %v3187_v37  ;;  %3721 = vmatmul.mubr.bf16.gmra.mrb[68].mxu0 %v12603_v24  ;;  %v3273_v46 = vmax.f32 %v3235_v20, 0.0 }
 0x3ff   :  { %v3238_v45 = vadd.f32 %v12491_v31, %v3188_v33  ;;  %v3274_v48 = vmax.f32 %v3236_v39, 0.0 }
 0x400   :  { %v3275_v47 = vmax.f32 %v3237_v42, 0.0 }
 0x401   :  { %v3276_v51 = vmax.f32 %v3238_v45, 0.0  ;;  %v3002_v63 = vpop.f32.mrb[24].mxu1 }
 0x402   :  { %v3189_v57 = vmul.f32 %v12482_v29, %v3002_v63  ;;  %v3004_v59 = vpop.f32.mrb[25].mxu1  ;;  %v12618_v60 = vpack.c.bf16 %v3275_v47, %v3273_v46 }
 0x403   :  { %v3190_v15 = vmul.f32 %v12485_v7, %v3004_v59  ;;  %v3006_v62 = vpop.f32.mrb[26].mxu1  ;;  %v12621_v41 = vpack.c.bf16 %v3276_v51, %v3274_v48  ;;  %v12682_v51 = vld [vmem:[%s14880_s9 + $0x30] ss:$12 sps:$4 sm:$0xff]  }
 0x404   :  { %v3239_v1 = vadd.f32 %v12488_v30, %v3189_v57  ;;  %v3191_v26 = vmul.f32 %v12482_v29, %v3006_v62  ;;  %v3008_v3 = vpop.f32.mrb[27].mxu1 }
 0x405   :  { %v3240_v4 = vadd.f32 %v12491_v31, %v3190_v15  ;;  %v3192_v25 = vmul.f32 %v12485_v7, %v3008_v3  ;;  %3730 = vmatprep.mubr.bf16.mxu0 %v12621_v41  ;;  %v12690_v15 = vld [vmem:[%s14880_s9 + $0x4c] ss:$12 sps:$4 sm:$0xff]  }
 0x406   :  { %v3241_v32 = vadd.f32 %v12488_v30, %v3191_v26  ;;  %3731 = vmatmul.mubr.bf16.gmra.mrb[72].mxu0 %v12618_v60  ;;  %v3277_v8 = vmax.f32 %v3239_v1, 0.0 }
 0x407   :  { %v3242_v6 = vadd.f32 %v12491_v31, %v3192_v25  ;;  %3811 = vmatprep.mubr.bf16.mxu0 %v12505_v61  ;;  %v3278_v11 = vmax.f32 %v3240_v4, 0.0  ;;  %v12706_v4 = vld [vmem:[%s14880_s9 + $0x48] ss:$12 sps:$4 sm:$0xff]  }
 0x408   :  { %v3279_v10 = vmax.f32 %v3241_v32, 0.0 }
 0x409   :  { %v3280_v12 = vmax.f32 %v3242_v6, 0.0  ;;  %v3012_v13 = vpop.f32.mrb[28].mxu1  ;;  %v12712_v6 = vld [vmem:[%s14880_s9 + $0x64] ss:$12 sps:$4 sm:$0xff]  }
 0x40a   :  { %v12632_v14 = vpack.c.bf16 %v3279_v10, %v3277_v8  ;;  %v3193_v18 = vmul.f32 %v12482_v29, %v3012_v13  ;;  %v3014_v56 = vpop.f32.mrb[29].mxu1 }
 0x40b   :  { %v3194_v9 = vmul.f32 %v12485_v7, %v3014_v56  ;;  %v3016_v22 = vpop.f32.mrb[30].mxu1  ;;  %v12636_v35 = vpack.c.bf16 %v3280_v12, %v3278_v11 }
 0x40c   :  { %v3243_v61 = vadd.f32 %v12488_v30, %v3193_v18  ;;  %v3195_v2 = vmul.f32 %v12482_v29, %v3016_v22  ;;  %v3018_v21 = vpop.f32.mrb[31].mxu1 }
 0x40d   :  { %v3244_v58 = vadd.f32 %v12491_v31, %v3194_v9  ;;  %v3196_v52 = vmul.f32 %v12485_v7, %v3018_v21  ;;  %3740 = vmatprep.mubr.bf16.mxu1 %v12636_v35  ;;  %v12722_v9 = vld [vmem:[%s14880_s9 + $0x60] ss:$12 sps:$4 sm:$0xff]  }
 0x40e   :  { %v3245_v28 = vadd.f32 %v12488_v30, %v3195_v2  ;;  %3741 = vmatmul.mubr.bf16.vlgmr.msra.gmra.mrb[40].mxu1 %v12632_v14  ;;  %3812 = vmatmul.mubr.bf16.vlgmr.msra.gmra.mrb[76].mxu0 %v12501_v53  ;;  %v3281_v20 = vmax.f32 %v3243_v61, 0.0 }
 0x40f   :  { %v3246_v19 = vadd.f32 %v12491_v31, %v3196_v52  ;;  %4116 = vmatpush1.bf16.msra.mxu0 %v12641_v49  ;;  %3819 = vmatprep.mubr.bf16.mxu0 %v12531_v55  ;;  %v3282_v53 = vmax.f32 %v3244_v58, 0.0  ;;  %v12760_v52 = vld [vmem:[%s14880_s9 + $0xac] ss:$12 sps:$4 sm:$0xff]  }
 0x410   :  { %v3283_v37 = vmax.f32 %v3245_v28, 0.0  ;;  %4117 = vmatprep.subr.bf16.mxu0 %v12648_v54  ;;  %4767 = vmatpush1.bf16.msra.mxu1 %v12641_v49  ;;  %v12770_v28 = vld [vmem:[%s14880_s9 + $0xa8] ss:$12 sps:$4 sm:$0xff]  }
 0x411   :  { %v3284_v39 = vmax.f32 %v3246_v19, 0.0  ;;  %v3022_v33 = vpop.f32.mrb[32].mxu1  ;;  %4768 = vmatprep.subr.bf16.mxu1 %v12648_v54  ;;  %v12835_v19 = vld [vmem:[%s14880_s9 + $0x98] ss:$12 sps:$4 sm:$0xff]  }
 0x412   :  { %v3197_v55 = vmul.f32 %v12482_v29, %v3022_v33  ;;  %v3024_v42 = vpop.f32.mrb[33].mxu1  ;;  %v12673_v45 = vpack.c.bf16 %v3283_v37, %v3281_v20  ;;  %v12842_v20 = vld [vmem:[%s14880_s9 + $0xb0] ss:$12 sps:$4 sm:$0xff]  }
 0x413   :  { %v3198_v46 = vmul.f32 %v12485_v7, %v3024_v42  ;;  %v3026_v47 = vpop.f32.mrb[34].mxu1  ;;  %v12676_v48 = vpack.c.bf16 %v3284_v39, %v3282_v53  ;;  %4118 = vmatpush1.bf16.msra.mxu0 %v12662_v36 }
 0x414   :  { %v3247_v63 = vadd.f32 %v12488_v30, %v3197_v55  ;;  %v3199_v57 = vmul.f32 %v12482_v29, %v3026_v47  ;;  %v3028_v59 = vpop.f32.mrb[35].mxu1  ;;  %4119 = vmatprep.subr.bf16.mxu0 %v12668_v38  ;;  %4769 = vmatpush1.bf16.msra.mxu1 %v12662_v36 }
 0x415   :  { %v3248_v62 = vadd.f32 %v12491_v31, %v3198_v46  ;;  %v3200_v1 = vmul.f32 %v12485_v7, %v3028_v59  ;;  %3750 = vmatprep.mubr.bf16.mxu1 %v12676_v48  ;;  %4770 = vmatprep.subr.bf16.mxu1 %v12668_v38 }
 0x416   :  { %v3249_v26 = vadd.f32 %v12488_v30, %v3199_v57  ;;  %3751 = vmatmul.mubr.bf16.gmra.mrb[44].mxu1 %v12673_v45  ;;  %3820 = vmatmul.mubr.bf16.gmra.mrb[80].mxu0 %v12528_v17  ;;  %v3285_v25 = vmax.f32 %v3247_v63, 0.0 }
 0x417   :  { %v3250_v3 = vadd.f32 %v12491_v31, %v3200_v1  ;;  %3827 = vmatprep.mubr.bf16.mxu0 %v12557_v43  ;;  %4120 = vmatpush1.bf16.msra.mxu0 %v12682_v51  ;;  %v3286_v17 = vmax.f32 %v3248_v62, 0.0 }
 0x418   :  { %v3287_v32 = vmax.f32 %v3249_v26, 0.0  ;;  %4121 = vmatprep.subr.bf16.mxu0 %v12690_v15  ;;  %4771 = vmatpush1.bf16.msra.mxu1 %v12682_v51 }
 0x419   :  { %v3288_v43 = vmax.f32 %v3250_v3, 0.0  ;;  %v3032_v8 = vpop.f32.mrb[36].mxu1  ;;  %4772 = vmatprep.subr.bf16.mxu1 %v12690_v15 }
 0x41a   :  { %v3201_v10 = vmul.f32 %v12482_v29, %v3032_v8  ;;  %v3034_v11 = vpop.f32.mrb[37].mxu1  ;;  %v3307_v12 = vpack.c.bf16 %v3287_v32, %v3285_v25  ;;  %v12729_v29 = vld [vmem:[%s14880_s9 + $0x7c] ss:$12 sps:$4 sm:$0xff]  }
 0x41b   :  { %v3202_v13 = vmul.f32 %v12485_v7, %v3034_v11  ;;  %v3036_v18 = vpop.f32.mrb[38].mxu1  ;;  %v3308_v56 = vpack.c.bf16 %v3288_v43, %v3286_v17  ;;  %4122 = vmatpush1.bf16.msra.mxu0 %v12706_v4 }
 0x41c   :  { %v3251_v22 = vadd.f32 %v12488_v30, %v3201_v10  ;;  %v3037_v61 = vpop.f32.mrb[39].mxu1  ;;  %4123 = vmatprep.subr.bf16.mxu0 %v12712_v6  ;;  %4773 = vmatpush1.bf16.msra.mxu1 %v12706_v4  ;;  %v12740_v30 = vld [vmem:[%s14880_s9 + $0x78] ss:$12 sps:$4 sm:$0xff]  }
 0x41d   :  { %v3252_v7 = vadd.f32 %v12491_v31, %v3202_v13  ;;  %3760 = vmatprep.mubr.bf16.mxu1 %v3308_v56  ;;  %4774 = vmatprep.subr.bf16.mxu1 %v12712_v6  ;;  %v12746_v31 = vld [vmem:[%s14880_s9 + $0x94] ss:$12 sps:$4 sm:$0xff]  }
 0x41e   :  { %3761 = vmatmul.mubr.bf16.gmra.mrb[48].mxu1 %v3307_v12  ;;  %3828 = vmatmul.mubr.bf16.gmra.mrb[84].mxu0 %v12554_v40  ;;  %v3289_v21 = vmax.f32 %v3251_v22, 0.0 }
 0x41f   :  { %v3290_v2 = vmax.f32 %v3252_v7, 0.0  ;;  %3835 = vmatprep.mubr.bf16.mxu0 %v12583_v50  ;;  %4124 = vmatpush1.bf16.msra.mxu0 %v12722_v9  ;;  %v12754_v50 = vld [vmem:[%s14880_s9 + $0x90] ss:$12 sps:$4 sm:$0xff]  }
 0x420   :  { %4125 = vmatprep.subr.bf16.mxu0 %v12729_v29  ;;  %4775 = vmatpush1.bf16.msra.mxu1 %v12722_v9  ;;  %v3309_v58 = vpack.c.bf16 %v3289_v21, %v3289_v21 }
 0x421   :  { %v3310_v40 = vpack.c.bf16 %v3290_v2, %v3290_v2  ;;  %4776 = vmatprep.subr.bf16.mxu1 %v12729_v29 }
 0x423   :  { %3770 = vmatprep.mubr.bf16.mxu1 %v3310_v40  ;;  %4126 = vmatpush1.bf16.msra.mxu0 %v12740_v30 }
 0x424   :  { %4127 = vmatprep.subr.bf16.mxu0 %v12746_v31  ;;  %4777 = vmatpush1.bf16.msra.mxu1 %v12740_v30 }
 0x425   :  { %4778 = vmatprep.subr.bf16.mxu1 %v12746_v31 }
 0x426   :  { %3771 = vmatmul.mubr.bf16.gmra.mrb[52].mxu1 %v3309_v58  ;;  %3836 = vmatmul.mubr.bf16.gmra.mrb[88].mxu0 %v12580_v5  ;;  %v14894_v5 = vmov 0.0  }
 0x427   :  { %3843 = vmatprep.mubr.bf16.mxu0 %v12606_v34  ;;  %4128 = vmatpush1.bf16.msra.mxu0 %v12754_v50  ;;  %v12798_v34 = vld [vmem:[%s14880_s9 + $0x20] ss:$12 sps:$4 sm:$0xff]  }
 0x428   :  { %4129 = vmatprep.subr.bf16.mxu0 %v12760_v52  ;;  %4779 = vmatpush1.bf16.msra.mxu1 %v12754_v50 }
 0x429   :  { %4780 = vmatprep.subr.bf16.mxu1 %v12760_v52  ;;  %4798 = vmatprep.mubr.bf16.mxu1 %v14892_v0 }
 0x42b   :  { %4130 = vmatpush1.bf16.msra.mxu0 %v12770_v28 }
 0x42c   :  { %9586 = vmatprep.subr.bf16.mxu0 %v14894_v5  ;;  %4781 = vmatpush1.bf16.msra.mxu1 %v12770_v28 }
 0x42d   :  { %4982 = vmatprep.subr.bf16.mxu1 %v12464_v16 }
 0x42e   :  { %3844 = vmatmul.mubr.bf16.gmra.mrb[92].mxu0 %v12603_v24  ;;  %v12791_v24 = vld [vmem:[%s14880_s9 + $0x8] ss:$12 sps:$4 sm:$0xff]  }
 0x42f   :  { %3851 = vmatprep.mubr.bf16.mxu0 %v12621_v41  ;;  %v12814_v41 = vld [vmem:[%s14880_s9 + $0x50] ss:$12 sps:$4 sm:$0xff]  }
 0x436   :  { %3852 = vmatmul.mubr.bf16.gmra.mrb[96].mxu0 %v12618_v60  ;;  %v12807_v60 = vld [vmem:[%s14880_s9 + $0x38] ss:$12 sps:$4 sm:$0xff]  }
 0x437   :  { %3859 = vmatprep.mubr.bf16.mxu0 %v12636_v35  ;;  %v12828_v35 = vld [vmem:[%s14880_s9 + $0x80] ss:$12 sps:$4 sm:$0xff]  }
 0x43e   :  { %3860 = vmatmul.mubr.bf16.gmra.mrb[100].mxu0 %v12632_v14  ;;  %v12821_v14 = vld [vmem:[%s14880_s9 + $0x68] ss:$12 sps:$4 sm:$0xff]  }
 0x43f   :  { %3867 = vmatprep.mubr.bf16.mxu0 %v12676_v48 }
 0x446   :  { %3868 = vmatmul.mubr.bf16.gmra.mrb[104].mxu0 %v12673_v45 }
 0x447   :  { %3875 = vmatprep.mubr.bf16.mxu0 %v3308_v56 }
 0x44e   :  { %3876 = vmatmul.mubr.bf16.gmra.mrb[108].mxu0 %v3307_v12 }
 0x44f   :  { %3883 = vmatprep.mubr.bf16.mxu0 %v3310_v40 }
 0x456   :  { %3884 = vmatmul.mubr.bf16.gmra.mrb[112].mxu0 %v3309_v58 }
 0x457   :  { %4147 = vmatprep.mubr.bf16.mxu0 %v14892_v0 }
 0x45e   :  { %4148 = vmatmul.mubr.bf16.vlgmr.msra.gmra.mrb[116].mxu0 %v14892_v0 }
 0x45f   :  { %9587 = vmatpush3.bf16.msra.mxu0 %v12791_v24  ;;  %9602 = vmatprep.mubr.msk.bf16.mxu0 %vm11450_vm1, %v14894_v5 }
 0x460   :  { %9588 = vmatprep.subr.bf16.mxu0 %v14894_v5 }
 0x463   :  { %9589 = vmatpush3.bf16.msra.mxu0 %v12798_v34 }
 0x464   :  { %9590 = vmatprep.subr.bf16.mxu0 %v14894_v5 }
 0x467   :  { %9591 = vmatpush3.bf16.msra.mxu0 %v12807_v60 }
 0x468   :  { %9592 = vmatprep.subr.bf16.mxu0 %v14894_v5 }
 0x46b   :  { %9593 = vmatpush3.bf16.msra.mxu0 %v12814_v41 }
 0x46c   :  { %9594 = vmatprep.subr.bf16.mxu0 %v14894_v5 }
 0x46f   :  { %9595 = vmatpush3.bf16.msra.mxu0 %v12821_v14 }
 0x470   :  { %9596 = vmatprep.subr.bf16.mxu0 %v14894_v5 }
 0x473   :  { %9597 = vmatpush3.bf16.msra.mxu0 %v12828_v35 }
 0x474   :  { %9598 = vmatprep.subr.bf16.mxu0 %v14894_v5 }
 0x477   :  { %9599 = vmatpush3.bf16.msra.mxu0 %v12835_v19 }
 0x478   :  { %9600 = vmatprep.subr.bf16.mxu0 %v14894_v5 }
 0x47b   :  { %9601 = vmatpush3.bf16.msra.mxu0 %v12842_v20 }
 0x47c   :  { %4247 = vmatprep.subr.bf16.mxu0 %v12464_v16 }
 0x47e   :  { %9603 = vmatmul.mubr.bf16.vlgmr.msra.gmra.mrb[120].mxu0 %v14892_v0 }
 0x47f   :  { %4248 = vmatpush1.bf16.msra.mxu0 %v12641_v49  ;;  %4279 = vmatprep.mubr.bf16.mxu0 %v14892_v0 }
 0x480   :  { %4249 = vmatprep.subr.bf16.mxu0 %v12648_v54 }
 0x483   :  { %4250 = vmatpush1.bf16.msra.mxu0 %v12662_v36 }
 0x484   :  { %4251 = vmatprep.subr.bf16.mxu0 %v12668_v38 }
 0x487   :  { %4252 = vmatpush1.bf16.msra.mxu0 %v12682_v51 }
 0x488   :  { %4253 = vmatprep.subr.bf16.mxu0 %v12690_v15 }
 0x48b   :  { %4254 = vmatpush1.bf16.msra.mxu0 %v12706_v4 }
 0x48c   :  { %4255 = vmatprep.subr.bf16.mxu0 %v12712_v6 }
 0x48f   :  { %4256 = vmatpush1.bf16.msra.mxu0 %v12722_v9 }
 0x490   :  { %4257 = vmatprep.subr.bf16.mxu0 %v12729_v29 }
 0x493   :  { %4258 = vmatpush1.bf16.msra.mxu0 %v12740_v30 }
 0x494   :  { %4259 = vmatprep.subr.bf16.mxu0 %v12746_v31 }
 0x497   :  { %4260 = vmatpush1.bf16.msra.mxu0 %v12754_v50 }
 0x498   :  { %4261 = vmatprep.subr.bf16.mxu0 %v12760_v52 }
 0x49b   :  { %4262 = vmatpush1.bf16.msra.mxu0 %v12770_v28 }
 0x49c   :  { %9606 = vmatprep.subr.bf16.mxu0 %v14894_v5 }
 0x4b1   :  { %v12865_v16 = vpop.f32.mrb[52].mxu0 }
 0x4b2   :  { %v12867_v49 = vpop.f32.mrb[53].mxu0 }
 0x4b3   :  { %v12869_v54 = vpop.f32.mrb[54].mxu0 }
 0x4b4   :  { %v12871_v36 = vpop.f32.mrb[55].mxu0 }
 0x4b9   :  { %v12873_v37 = vpop.f32.mrb[56].mxu0 }
 0x4ba   :  { %v12875_v38 = vpop.f32.mrb[57].mxu0 }
 0x4bb   :  { %v12877_v53 = vpop.f32.mrb[58].mxu0 }
 0x4bc   :  { %v12879_v39 = vpop.f32.mrb[59].mxu0 }
 0x4c1   :  { %v12881_v33 = vpop.f32.mrb[60].mxu0 }
 0x4c2   :  { %v12883_v55 = vpop.f32.mrb[61].mxu0 }
 0x4c3   :  { %v12885_v42 = vpop.f32.mrb[62].mxu0 }
 0x4c4   :  { %v12887_v45 = vpop.f32.mrb[63].mxu0 }
 0x4c9   :  { %v12889_v46 = vpop.f32.mrb[64].mxu0 }
 0x4ca   :  { %v12891_v47 = vpop.f32.mrb[65].mxu0 }
 0x4cb   :  { %v12893_v48 = vpop.f32.mrb[66].mxu0 }
 0x4cc   :  { %v12895_v51 = vpop.f32.mrb[67].mxu0 }
 0x4cd   :  { %14898 = vst [vmem:[#allocation5_spill] sm:$0xff] %v12895_v51 }
 0x4d1   :  { %v12897_v63 = vpop.f32.mrb[68].mxu0 }
 0x4d2   :  { %14899 = vst [vmem:[#allocation6_spill] sm:$0xff] %v12897_v63  ;;  %v12899_v57 = vpop.f32.mrb[69].mxu0 }
 0x4d3   :  { %14900 = vst [vmem:[#allocation7_spill] sm:$0xff] %v12899_v57  ;;  %v12901_v59 = vpop.f32.mrb[70].mxu0 }
 0x4d4   :  { %14901 = vst [vmem:[#allocation8_spill] sm:$0xff] %v12901_v59  ;;  %v12903_v15 = vpop.f32.mrb[71].mxu0 }
 0x4d5   :  { %14902 = vst [vmem:[#allocation9_spill] sm:$0xff] %v12903_v15 }
 0x4d9   :  { %v12905_v62 = vpop.f32.mrb[72].mxu0 }
 0x4da   :  { %14903 = vst [vmem:[#allocation10_spill] sm:$0xff] %v12905_v62  ;;  %v12907_v1 = vpop.f32.mrb[73].mxu0 }
 0x4db   :  { %14904 = vst [vmem:[#allocation11_spill] sm:$0xff] %v12907_v1  ;;  %v12909_v26 = vpop.f32.mrb[74].mxu0 }
 0x4dc   :  { %14905 = vst [vmem:[#allocation12_spill] sm:$0xff] %v12909_v26  ;;  %v12911_v3 = vpop.f32.mrb[75].mxu0 }
 0x4dd   :  { %14906 = vst [vmem:[#allocation13_spill] sm:$0xff] %v12911_v3 }
 0x4e1   :  { %v12913_v4 = vpop.f32.mrb[40].mxu1  ;;  %v9179_v25 = vpop.f32.mrb[76].mxu0 }
 0x4e2   :  { %14907 = vst [vmem:[#allocation14_spill] sm:$0xff] %v12913_v4  ;;  %v12915_v32 = vpop.f32.mrb[41].mxu1  ;;  %v9180_v6 = vpop.f32.mrb[77].mxu0 }
 0x4e3   :  { %14908 = vst [vmem:[#allocation15_spill] sm:$0xff] %v12915_v32  ;;  %v12917_v17 = vadd.f32 %v9180_v6, %v9179_v25  ;;  %v12919_v43 = vpop.f32.mrb[42].mxu1  ;;  %v9182_v8 = vpop.f32.mrb[78].mxu0 }
 0x4e4   :  { %14909 = vst [vmem:[#allocation16_spill] sm:$0xff] %v12919_v43  ;;  %v12921_v10 = vpop.f32.mrb[43].mxu1  ;;  %v9183_v11 = vpop.f32.mrb[79].mxu0 }
 0x4e5   :  { %14910 = vst [vmem:[#allocation17_spill] sm:$0xff] %v12921_v10  ;;  %v12923_v12 = vadd.f32 %v9183_v11, %v9182_v8 }
 0x4e9   :  { %v12925_v13 = vpop.f32.mrb[44].mxu1  ;;  %v9185_v18 = vpop.f32.mrb[80].mxu0 }
 0x4ea   :  { %14911 = vst [vmem:[#allocation18_spill] sm:$0xff] %v12925_v13  ;;  %v12927_v56 = vpop.f32.mrb[45].mxu1  ;;  %v9186_v9 = vpop.f32.mrb[81].mxu0 }
 0x4eb   :  { %14912 = vst [vmem:[#allocation19_spill] sm:$0xff] %v12927_v56  ;;  %v12929_v22 = vadd.f32 %v9186_v9, %v9185_v18  ;;  %v12931_v61 = vpop.f32.mrb[46].mxu1  ;;  %v9188_v29 = vpop.f32.mrb[82].mxu0 }
 0x4ec   :  { %14913 = vst [vmem:[#allocation20_spill] sm:$0xff] %v12931_v61  ;;  %v12933_v7 = vpop.f32.mrb[47].mxu1  ;;  %v9189_v2 = vpop.f32.mrb[83].mxu0 }
 0x4ed   :  { %14914 = vst [vmem:[#allocation21_spill] sm:$0xff] %v12933_v7  ;;  %v12935_v30 = vadd.f32 %v9189_v2, %v9188_v29 }
 0x4f1   :  { %v12937_v21 = vpop.f32.mrb[48].mxu1  ;;  %v9191_v31 = vpop.f32.mrb[84].mxu0 }
 0x4f2   :  { %14915 = vst [vmem:[#allocation22_spill] sm:$0xff] %v12937_v21  ;;  %v12939_v40 = vpop.f32.mrb[49].mxu1  ;;  %v9192_v50 = vpop.f32.mrb[85].mxu0 }
 0x4f3   :  { %14916 = vst [vmem:[#allocation23_spill] sm:$0xff] %v12939_v40  ;;  %v12941_v58 = vadd.f32 %v9192_v50, %v9191_v31  ;;  %v12943_v52 = vpop.f32.mrb[50].mxu1  ;;  %v9194_v28 = vpop.f32.mrb[86].mxu0 }
 0x4f4   :  { %14917 = vst [vmem:[#allocation24_spill] sm:$0xff] %v12943_v52  ;;  %v12945_v25 = vpop.f32.mrb[51].mxu1  ;;  %v9195_v6 = vpop.f32.mrb[87].mxu0 }
 0x4f5   :  { %14918 = vst [vmem:[#allocation25_spill] sm:$0xff] %v12945_v25  ;;  %v12947_v8 = vadd.f32 %v9195_v6, %v9194_v28 }
 0x4f9   :  { %v12949_v11 = vpop.f32.mrb[52].mxu1  ;;  %v9197_v18 = vpop.f32.mrb[88].mxu0 }
 0x4fa   :  { %14919 = vst [vmem:[#allocation26_spill] sm:$0xff] %v12949_v11  ;;  %v12951_v9 = vpop.f32.mrb[53].mxu1  ;;  %v9198_v29 = vpop.f32.mrb[89].mxu0 }
 0x4fb   :  { %14920 = vst [vmem:[#allocation27_spill] sm:$0xff] %v12951_v9  ;;  %v12953_v2 = vadd.f32 %v9198_v29, %v9197_v18  ;;  %v3776_v0 = vpop.f32.mrb[54].mxu1  ;;  %v9200_v5 = vpop.f32.mrb[90].mxu0 }
 0x4fc   :  { %v3777_v31 = vpop.f32.mrb[55].mxu1  ;;  %v9201_v50 = vpop.f32.mrb[91].mxu0 }
 0x4fd   :  { %v12955_v40 = vadd.f32 %v9201_v50, %v9200_v5 }
 0x4ff   :  { %14921 = vst [vmem:[#allocation28_spill] sm:$0xff] %v12955_v40 }
 0x501   :  { %v9203_v52 = vpop.f32.mrb[92].mxu0 }
 0x502   :  { %v9204_v21 = vpop.f32.mrb[93].mxu0 }
 0x503   :  { %v12957_v25 = vadd.f32 %v9204_v21, %v9203_v52  ;;  %v9206_v28 = vpop.f32.mrb[94].mxu0 }
 0x504   :  { %v9207_v6 = vpop.f32.mrb[95].mxu0 }
 0x505   :  { %14922 = vst [vmem:[#allocation29_spill] sm:$0xff] %v12957_v25  ;;  %v12959_v7 = vadd.f32 %v9207_v6, %v9206_v28 }
 0x507   :  { %14923 = vst [vmem:[#allocation30_spill] sm:$0xff] %v12959_v7 }
 0x509   :  { %v9209_v11 = vpop.f32.mrb[96].mxu0 }
 0x50a   :  { %v9210_v61 = vpop.f32.mrb[97].mxu0 }
 0x50b   :  { %v12961_v9 = vadd.f32 %v9210_v61, %v9209_v11  ;;  %v9212_v18 = vpop.f32.mrb[98].mxu0 }
 0x50c   :  { %v9213_v29 = vpop.f32.mrb[99].mxu0 }
 0x50d   :  { %14924 = vst [vmem:[#allocation31_spill] sm:$0xff] %v12961_v9  ;;  %v12963_v0 = vadd.f32 %v9213_v29, %v9212_v18 }
 0x50f   :  { %14925 = vst [vmem:[#allocation32_spill] sm:$0xff] %v12963_v0  ;;  %v11046_v0 = vld [vmem:[%s14885_s11 + $0xa8] sm:$0xff]  }
 0x511   :  { %v9215_v31 = vpop.f32.mrb[100].mxu0 }
 0x512   :  { %v9216_v56 = vpop.f32.mrb[101].mxu0 }
 0x513   :  { %v12965_v5 = vadd.f32 %v9216_v56, %v9215_v31  ;;  %v9218_v50 = vpop.f32.mrb[102].mxu0 }
 0x514   :  { %v9219_v13 = vpop.f32.mrb[103].mxu0 }
 0x515   :  { %14926 = vst [vmem:[#allocation33_spill] sm:$0xff] %v12965_v5  ;;  %v12967_v21 = vadd.f32 %v9219_v13, %v9218_v50  ;;  %v3375_v13 = vld [vmem:[%s14883_s8] sm:$0x7]  ;;  %v11042_v5 = vld [vmem:[%s14885_s11 + $0x88] sm:$0xff]  }
 0x517   :  { %14927 = vst [vmem:[#allocation34_spill] sm:$0xff] %v12967_v21  ;;  %v11041_v21 = vld [vmem:[%s14885_s11 + $0x80] sm:$0xff]  }
 0x519   :  { %v9221_v52 = vpop.f32.mrb[104].mxu0 }
 0x51a   :  { %v9222_v10 = vpop.f32.mrb[105].mxu0 }
 0x51b   :  { %v12969_v28 = vadd.f32 %v9222_v10, %v9221_v52  ;;  %v9224_v6 = vpop.f32.mrb[106].mxu0 }
 0x51c   :  { %v9225_v43 = vpop.f32.mrb[107].mxu0 }
 0x51d   :  { %14928 = vst [vmem:[#allocation35_spill] sm:$0xff] %v12969_v28  ;;  %v12971_v61 = vadd.f32 %v9225_v43, %v9224_v6  ;;  %v12983_v43 = vrot.slane %v3375_v13, %v12470_v23 }
 0x51f   :  { %14929 = vst [vmem:[#allocation36_spill] sm:$0xff] %v12971_v61 }
 0x521   :  { %v9227_v11 = vpop.f32.mrb[108].mxu0 }
 0x522   :  { %v9228_v32 = vpop.f32.mrb[109].mxu0 }
 0x523   :  { %v12973_v18 = vadd.f32 %v9228_v32, %v9227_v11  ;;  %v9230_v29 = vpop.f32.mrb[110].mxu0  ;;  %v12986_v32 = vrot.slane %v3375_v13, %v12476_v27  ;;  %v3387_v27 = vsub.s32 2, %v12467_v44 }
 0x524   :  { %v9231_v4 = vpop.f32.mrb[111].mxu0 }
 0x525   :  { %14930 = vst [vmem:[#allocation37_spill] sm:$0xff] %v12973_v18  ;;  %v12975_v56 = vadd.f32 %v9231_v4, %v9230_v29  ;;  %v3683_v4 = vadd.f32 %v12865_v16, %v12983_v43  ;;  %v3685_v11 = vadd.f32 %v12867_v49, %v12986_v32  ;;  %v12996_v16 = vld [vmem:[%s14884_s10] ss:$0 sm:$0xff]  ;;  %v12998_v49 = vrot.slane %v3375_v13, %v3387_v27 }
 0x527   :  { %14931 = vst [vmem:[#allocation38_spill] sm:$0xff] %v12975_v56 }
 0x529   :  { %v9233_v31 = vpop.f32.mrb[112].mxu0 }
 0x52a   :  { %v9234_v50 = vpop.f32.mrb[113].mxu0 }
 0x52b   :  { %v12980_v10 = vadd.f32 %v9234_v50, %v9233_v31  ;;  %v9236_v52 = vpop.f32.mrb[114].mxu0 }
 0x52c   :  { %v9237_v6 = vpop.f32.mrb[115].mxu0 }
 0x52d   :  { %14932 = vst [vmem:[#allocation39_spill] sm:$0xff] %v12980_v10 }
 0x531   :  { %v4149_v29 = vpop.f32.mrb[116].mxu0 }
 0x532   :  { %v4196_v56 = vadd.f32 %v4149_v29, %v3683_v4  ;;  %v4151_v18 = vpop.f32.mrb[117].mxu0 }
 0x533   :  { %v4203_v61 = vadd.f32 %v4151_v18, %v3685_v11  ;;  %v4153_v31 = vpop.f32.mrb[118].mxu0 }
 0x534   :  { %v8676_v50 = vmul.f32 -1.442695, %v4196_v56  ;;  %v4154_v52 = vpop.f32.mrb[119].mxu0 }
 0x535   :  { %v8677_v23 = vmul.f32 -1.442695, %v4203_v61 }
 0x536   :  { %11181 = vpow2.f32 %v8676_v50 }
 0x537   :  { %11183 = vpow2.f32 %v8677_v23 }
 0x540   :  { %v11182_v10 = vpop.eup %11181 }
 0x541   :  { %v4200_v6 = vadd.f32 1.0, %v11182_v10  ;;  %v11184_v28 = vpop.eup %11183  ;;  %v3814_v10 = vadd.f32 %v12917_v17, %v12998_v49  ;;  %v14933_v17 = vmov 0.0  }
 0x542   :  { %v4207_v18 = vadd.f32 1.0, %v11184_v28 }
 0x543   :  { %11185 = vrcp.f32 %v4200_v6 }
 0x544   :  { %11187 = vrcp.f32 %v4207_v18  ;;  %v3687_v18 = vadd.f32 %v12869_v54, %v12983_v43 }
 0x54d   :  { %v11186_v61 = vpop.eup %11185 }
 0x54e   :  { %v11188_v52 = vpop.eup %11187 }
 0x54f   :  { %v4220_v23 = vsub.f32 1.0, %v11188_v52  ;;  %v4222_v27 = vmul.f32 0.0, %v11188_v52 }
 0x551   :  { %v4190_v4 = vpop.f32.mrb[120].mxu0 }
 0x552   :  { %v4216_v56 = vadd.f32 %v12996_v16, %v4190_v4  ;;  %v9604_v11 = vpop.f32.mrb[121].mxu0 }
 0x553   :  { %v4193_v29 = vpop.f32.mrb[122].mxu0 }
 0x554   :  { %v4217_v44 = vmul.f32 %v11186_v61, %v4216_v56  ;;  %v9605_v31 = vpop.f32.mrb[123].mxu0  ;;  %v3689_v56 = vadd.f32 %v12871_v36, %v12986_v32 }
 0x556   :  { %v4218_v50 = vadd.f32 %v4217_v44, %v3814_v10 }
 0x558   :  { %11189 = vtanh.f32 %v4218_v50 }
 0x562   :  { %v11190_v6 = vpop.eup %11189 }
 0x563   :  { %v4221_v13 = vmul.f32 %v11190_v6, %v4220_v23 }
 0x565   :  { %v13003_v28 = vadd.f32 %v4222_v27, %v4221_v13 }
 0x567   :  { %v13007_v4 = vpack.c.bf16 %v13003_v28, %v13003_v28 }
 0x569   :  { %4280 = vmatmul.mubr.bf16.vlgmr.msra.gmra.mrb[124].mxu0 %v13007_v4 }
 0x56a   :  { %9607 = vmatpush3.bf16.msra.mxu0 %v12791_v24  ;;  %9622 = vmatprep.mubr.msk.bf16.mxu0 %vm11450_vm1, %v14933_v17  ;;  %v11025_v24 = vld [vmem:[%s14885_s11 + $0x40] sm:$0xff]  }
 0x56b   :  { %9608 = vmatprep.subr.bf16.mxu0 %v14933_v17 }
 0x56e   :  { %9609 = vmatpush3.bf16.msra.mxu0 %v12798_v34  ;;  %v11026_v34 = vld [vmem:[%s14885_s11 + $0x48] sm:$0xff]  }
 0x56f   :  { %9610 = vmatprep.subr.bf16.mxu0 %v14933_v17 }
 0x572   :  { %9611 = vmatpush3.bf16.msra.mxu0 %v12807_v60  ;;  %v11027_v60 = vld [vmem:[%s14885_s11 + $0x50] sm:$0xff]  }
 0x573   :  { %9612 = vmatprep.subr.bf16.mxu0 %v14933_v17 }
 0x576   :  { %9613 = vmatpush3.bf16.msra.mxu0 %v12814_v41  ;;  %v11028_v41 = vld [vmem:[%s14885_s11 + $0x58] sm:$0xff]  }
 0x577   :  { %9614 = vmatprep.subr.bf16.mxu0 %v14933_v17 }
 0x57a   :  { %9615 = vmatpush3.bf16.msra.mxu0 %v12821_v14  ;;  %v11029_v14 = vld [vmem:[%s14885_s11 + $0x60] sm:$0xff]  }
 0x57b   :  { %9616 = vmatprep.subr.bf16.mxu0 %v14933_v17 }
 0x57e   :  { %9617 = vmatpush3.bf16.msra.mxu0 %v12828_v35  ;;  %v11030_v35 = vld [vmem:[%s14885_s11 + $0x68] sm:$0xff]  }
 0x57f   :  { %9618 = vmatprep.subr.bf16.mxu0 %v14933_v17 }
 0x582   :  { %9619 = vmatpush3.bf16.msra.mxu0 %v12835_v19  ;;  %v11031_v19 = vld [vmem:[%s14885_s11 + $0x70] sm:$0xff]  }
 0x583   :  { %9620 = vmatprep.subr.bf16.mxu0 %v14933_v17 }
 0x586   :  { %9621 = vmatpush3.bf16.msra.mxu0 %v12842_v20  ;;  %v11032_v20 = vld [vmem:[%s14885_s11 + $0x78] sm:$0xff]  }
 0x587   :  { %9626 = vmatprep.subr.bf16.mxu0 %v14933_v17 }
 0x589   :  { %9623 = vmatmul.mubr.bf16.vlgmr.msra.gmra.mrb[128].mxu0 %v13007_v4 }
 0x58a   :  { %9642 = vmatprep.mubr.msk.bf16.mxu0 %vm11450_vm1, %v14933_v17  ;;  %9627 = vmatpush3.bf16.msra.mxu0 %v11025_v24 }
 0x58b   :  { %9628 = vmatprep.subr.bf16.mxu0 %v14933_v17 }
 0x58e   :  { %9629 = vmatpush3.bf16.msra.mxu0 %v11026_v34 }
 0x58f   :  { %9630 = vmatprep.subr.bf16.mxu0 %v14933_v17 }
 0x592   :  { %9631 = vmatpush3.bf16.msra.mxu0 %v11027_v60 }
 0x593   :  { %9632 = vmatprep.subr.bf16.mxu0 %v14933_v17 }
 0x596   :  { %9633 = vmatpush3.bf16.msra.mxu0 %v11028_v41  ;;  %v3817_v41 = vadd.f32 %v12923_v12, %v12998_v49 }
 0x597   :  { %9634 = vmatprep.subr.bf16.mxu0 %v14933_v17 }
 0x59a   :  { %9635 = vmatpush3.bf16.msra.mxu0 %v11029_v14 }
 0x59b   :  { %9636 = vmatprep.subr.bf16.mxu0 %v14933_v17 }
 0x59e   :  { %9637 = vmatpush3.bf16.msra.mxu0 %v11030_v35 }
 0x59f   :  { %9638 = vmatprep.subr.bf16.mxu0 %v14933_v17 }
 0x5a2   :  { %9639 = vmatpush3.bf16.msra.mxu0 %v11031_v19 }
 0x5a3   :  { %9640 = vmatprep.subr.bf16.mxu0 %v14933_v17 }
 0x5a6   :  { %9641 = vmatpush3.bf16.msra.mxu0 %v11032_v20 }
 0x5a7   :  { %9646 = vmatprep.subr.bf16.mxu0 %v14933_v17 }
 0x63c   :  { %v4281_v11 = vpop.f32.mrb[124].mxu0 }
 0x63d   :  { %v4328_v61 = vadd.f32 %v4281_v11, %v3687_v18  ;;  %v4283_v29 = vpop.f32.mrb[125].mxu0 }
 0x63e   :  { %v4335_v10 = vadd.f32 %v4283_v29, %v3689_v56  ;;  %v4285_v44 = vpop.f32.mrb[126].mxu0 }
 0x63f   :  { %v8679_v31 = vmul.f32 -1.442695, %v4328_v61  ;;  %v4286_v50 = vpop.f32.mrb[127].mxu0  ;;  %v11034_v44 = vld [vmem:[%s14885_s11 + $0x8] sm:$0xff]  }
 0x640   :  { %v8680_v52 = vmul.f32 -1.442695, %v4335_v10  ;;  %v11033_v10 = vld [vmem:[%s14885_s11] sm:$0xff]  }
 0x641   :  { %11191 = vpow2.f32 %v8679_v31  ;;  %v11036_v31 = vld [vmem:[%s14885_s11 + $0x18] sm:$0xff]   ;;  %v11037_v50 = vld [vmem:[%s14885_s11 + $0x20] sm:$0xff]  }
 0x642   :  { %11193 = vpow2.f32 %v8680_v52  ;;  %v11038_v52 = vld [vmem:[%s14885_s11 + $0x28] sm:$0xff]  }
 0x64b   :  { %v11192_v23 = vpop.eup %11191 }
 0x64c   :  { %v4332_v6 = vadd.f32 1.0, %v11192_v23  ;;  %v11194_v13 = vpop.eup %11193  ;;  %v11039_v23 = vld [vmem:[%s14885_s11 + $0x30] sm:$0xff]  }
 0x64d   :  { %v4339_v27 = vadd.f32 1.0, %v11194_v13  ;;  %v13114_v13 = vld [vmem:[%s14880_s9 + $0x4] ss:$12 sps:$4 sm:$0xff]  }
 0x64e   :  { %11195 = vrcp.f32 %v4332_v6  ;;  %v11040_v6 = vld [vmem:[%s14885_s11 + $0x38] sm:$0xff]  }
 0x64f   :  { %11197 = vrcp.f32 %v4339_v27  ;;  %v13121_v27 = vld [vmem:[%s14880_s9] ss:$12 sps:$4 sm:$0xff]  }
 0x658   :  { %v11196_v36 = vpop.eup %11195 }
 0x659   :  { %v11198_v20 = vpop.eup %11197 }
 0x65a   :  { %v4346_v18 = vsub.f32 1.0, %v11198_v20  ;;  %v4348_v61 = vmul.f32 %v11198_v20, %v13003_v28  ;;  %v11035_v28 = vld [vmem:[%s14885_s11 + $0x10] sm:$0xff]   ;;  %v13182_v20 = vld [vmem:[%s14880_s9 + $0x78] ss:$12 sps:$4 sm:$0xff]  }
 0x65c   :  { %v4322_v24 = vpop.f32.mrb[128].mxu0 }
 0x65d   :  { %v4342_v54 = vadd.f32 %v12996_v16, %v4322_v24  ;;  %v9624_v34 = vpop.f32.mrb[129].mxu0  ;;  %v14934_v24 = vmov 0  }
 0x65e   :  { %v4325_v60 = vpop.f32.mrb[130].mxu0  ;;  %v13140_v34 = vld [vmem:[%s14880_s9 + $0x34] ss:$12 sps:$4 sm:$0xff]  }
 0x65f   :  { %v4343_v14 = vmul.f32 %v11196_v36, %v4342_v54  ;;  %v9625_v35 = vpop.f32.mrb[131].mxu0  ;;  %v13128_v54 = vld [vmem:[%s14880_s9 + $0x1c] ss:$12 sps:$4 sm:$0xff]   ;;  %v13152_v60 = vld [vmem:[%s14880_s9 + $0x4c] ss:$12 sps:$4 sm:$0xff]  }
 0x660   :  { %v13146_v36 = vld [vmem:[%s14880_s9 + $0x30] ss:$12 sps:$4 sm:$0xff]   ;;  %v13170_v35 = vld [vmem:[%s14880_s9 + $0x60] ss:$12 sps:$4 sm:$0xff]  }
 0x661   :  { %v4344_v19 = vadd.f32 %v4343_v14, %v3817_v41  ;;  %v13158_v41 = vld [vmem:[%s14880_s9 + $0x48] ss:$12 sps:$4 sm:$0xff]   ;;  %v13164_v14 = vld [vmem:[%s14880_s9 + $0x64] ss:$12 sps:$4 sm:$0xff]  }
 0x663   :  { %11199 = vtanh.f32 %v4344_v19  ;;  %v13176_v19 = vld [vmem:[%s14880_s9 + $0x7c] ss:$12 sps:$4 sm:$0xff]  }
 0x66d   :  { %v11200_v56 = vpop.eup %11199 }
 0x66e   :  { %v4347_v11 = vmul.f32 %v11200_v56, %v4346_v18  ;;  %v13188_v18 = vld [vmem:[%s14880_s9 + $0x94] ss:$12 sps:$4 sm:$0xff]   ;;  %v13194_v56 = vld [vmem:[%s14880_s9 + $0x90] ss:$12 sps:$4 sm:$0xff]  }
 0x670   :  { %v13071_v29 = vadd.f32 %v4348_v61, %v4347_v11  ;;  %v13200_v11 = vld [vmem:[%s14880_s9 + $0xac] ss:$12 sps:$4 sm:$0xff]   ;;  %v13206_v61 = vld [vmem:[%s14880_s9 + $0xa8] ss:$12 sps:$4 sm:$0xff]  }
 0x672   :  { %v13078_v12 = vpack.c.bf16 %v13071_v29, %v13071_v29 }
 0x674   :  { %9643 = vmatmul.mubr.bf16.vlgmr.msra.gmra.mrb[132].mxu0 %v13078_v12 }
 0x675   :  { %9647 = vmatpush3.bf16.msra.mxu0 %v11033_v10  ;;  %9662 = vmatprep.mubr.msk.bf16.mxu0 %vm11450_vm1, %v14933_v17  ;;  %v13214_v10 = vld [vmem:[%s14880_s9 + $0x8] ss:$12 sps:$4 sm:$0xff]  }
 0x676   :  { %9648 = vmatprep.subr.bf16.mxu0 %v14933_v17 }
 0x679   :  { %9649 = vmatpush3.bf16.msra.mxu0 %v11034_v44  ;;  %v13223_v44 = vld [vmem:[%s14880_s9 + $0x20] ss:$12 sps:$4 sm:$0xff]  }
 0x67a   :  { %9650 = vmatprep.subr.bf16.mxu0 %v14933_v17 }
 0x67d   :  { %9651 = vmatpush3.bf16.msra.mxu0 %v11035_v28  ;;  %v13230_v28 = vld [vmem:[%s14880_s9 + $0x38] ss:$12 sps:$4 sm:$0xff]  }
 0x67e   :  { %9652 = vmatprep.subr.bf16.mxu0 %v14933_v17 }
 0x681   :  { %9653 = vmatpush3.bf16.msra.mxu0 %v11036_v31  ;;  %v13237_v31 = vld [vmem:[%s14880_s9 + $0x50] ss:$12 sps:$4 sm:$0xff]  }
 0x682   :  { %9654 = vmatprep.subr.bf16.mxu0 %v14933_v17 }
 0x685   :  { %9655 = vmatpush3.bf16.msra.mxu0 %v11037_v50  ;;  %v13244_v50 = vld [vmem:[%s14880_s9 + $0x68] ss:$12 sps:$4 sm:$0xff]  }
 0x686   :  { %9656 = vmatprep.subr.bf16.mxu0 %v14933_v17 }
 0x689   :  { %9657 = vmatpush3.bf16.msra.mxu0 %v11038_v52  ;;  %v13251_v52 = vld [vmem:[%s14880_s9 + $0x80] ss:$12 sps:$4 sm:$0xff]  }
 0x68a   :  { %9658 = vmatprep.subr.bf16.mxu0 %v14933_v17 }
 0x68d   :  { %9659 = vmatpush3.bf16.msra.mxu0 %v11039_v23  ;;  %v13258_v23 = vld [vmem:[%s14880_s9 + $0x98] ss:$12 sps:$4 sm:$0xff]  }
 0x68e   :  { %9660 = vmatprep.subr.bf16.mxu0 %v14933_v17 }
 0x691   :  { %9661 = vmatpush3.bf16.msra.mxu0 %v11040_v6  ;;  %v13265_v6 = vld [vmem:[%s14880_s9 + $0xb0] ss:$12 sps:$4 sm:$0xff]  }
 0x692   :  { %4550 = vmatprep.subr.bf16.mxu0 %v13114_v13 }
 0x694   :  { %9663 = vmatmul.mubr.bf16.vlgmr.msra.gmra.mrb[132].mxu0 %v13007_v4  ;;  %v13134_v4 = vld [vmem:[%s14880_s9 + $0x18] ss:$12 sps:$4 sm:$0xff]  }
 0x695   :  { %4551 = vmatpush1.bf16.msra.mxu0 %v13121_v27  ;;  %4582 = vmatprep.mubr.bf16.mxu0 %v14934_v24 }
 0x696   :  { %4552 = vmatprep.subr.bf16.mxu0 %v13128_v54 }
 0x699   :  { %4553 = vmatpush1.bf16.msra.mxu0 %v13134_v4 }
 0x69a   :  { %4554 = vmatprep.subr.bf16.mxu0 %v13140_v34 }
 0x69d   :  { %4555 = vmatpush1.bf16.msra.mxu0 %v13146_v36 }
 0x69e   :  { %4556 = vmatprep.subr.bf16.mxu0 %v13152_v60 }
 0x6a1   :  { %4557 = vmatpush1.bf16.msra.mxu0 %v13158_v41 }
 0x6a2   :  { %4558 = vmatprep.subr.bf16.mxu0 %v13164_v14 }
 0x6a5   :  { %4559 = vmatpush1.bf16.msra.mxu0 %v13170_v35 }
 0x6a6   :  { %4560 = vmatprep.subr.bf16.mxu0 %v13176_v19 }
 0x6a9   :  { %4561 = vmatpush1.bf16.msra.mxu0 %v13182_v20 }
 0x6aa   :  { %4562 = vmatprep.subr.bf16.mxu0 %v13188_v18 }
 0x6ad   :  { %4563 = vmatpush1.bf16.msra.mxu0 %v13194_v56 }
 0x6ae   :  { %4564 = vmatprep.subr.bf16.mxu0 %v13200_v11 }
 0x6b1   :  { %4565 = vmatpush1.bf16.msra.mxu0 %v13206_v61 }
 0x6b2   :  { %9666 = vmatprep.subr.bf16.mxu0 %v14933_v17 }
 0x6b4   :  { %4583 = vmatmul.mubr.bf16.vlgmr.msra.gmra.mrb[136].mxu0 %v13078_v12 }
 0x6b5   :  { %9667 = vmatpush3.bf16.msra.mxu0 %v13214_v10  ;;  %9682 = vmatprep.mubr.msk.bf16.mxu0 %vm11450_vm1, %v14933_v17 }
 0x6b6   :  { %9668 = vmatprep.subr.bf16.mxu0 %v14933_v17 }
 0x6b9   :  { %9669 = vmatpush3.bf16.msra.mxu0 %v13223_v44 }
 0x6ba   :  { %9670 = vmatprep.subr.bf16.mxu0 %v14933_v17 }
 0x6bd   :  { %9671 = vmatpush3.bf16.msra.mxu0 %v13230_v28 }
 0x6be   :  { %9672 = vmatprep.subr.bf16.mxu0 %v14933_v17 }
 0x6c1   :  { %9673 = vmatpush3.bf16.msra.mxu0 %v13237_v31 }
 0x6c2   :  { %9674 = vmatprep.subr.bf16.mxu0 %v14933_v17 }
 0x6c5   :  { %9675 = vmatpush3.bf16.msra.mxu0 %v13244_v50 }
 0x6c6   :  { %9676 = vmatprep.subr.bf16.mxu0 %v14933_v17 }
 0x6c9   :  { %9677 = vmatpush3.bf16.msra.mxu0 %v13251_v52 }
 0x6ca   :  { %9678 = vmatprep.subr.bf16.mxu0 %v14933_v17 }
 0x6cd   :  { %9679 = vmatpush3.bf16.msra.mxu0 %v13258_v23 }
 0x6ce   :  { %9680 = vmatprep.subr.bf16.mxu0 %v14933_v17 }
 0x6d1   :  { %9681 = vmatpush3.bf16.msra.mxu0 %v13265_v6 }
 0x6d2   :  { %9686 = vmatprep.subr.bf16.mxu0 %v14933_v17 }
 0x6d4   :  { %9683 = vmatmul.mubr.bf16.vlgmr.msra.gmra.mrb[140].mxu0 %v13078_v12  ;;  %v11043_v12 = vld [vmem:[%s14885_s11 + $0x90] sm:$0xff]  }
 0x6d5   :  { %9702 = vmatprep.mubr.msk.bf16.mxu0 %vm11450_vm1, %v14933_v17  ;;  %9687 = vmatpush3.bf16.msra.mxu0 %v11041_v21  ;;  %v11044_v21 = vld [vmem:[%s14885_s11 + $0x98] sm:$0xff]  }
 0x6d6   :  { %9688 = vmatprep.subr.bf16.mxu0 %v14933_v17 }
 0x6d9   :  { %9689 = vmatpush3.bf16.msra.mxu0 %v11042_v5  ;;  %v11045_v5 = vld [vmem:[%s14885_s11 + $0xa0] sm:$0xff]  }
 0x6da   :  { %9690 = vmatprep.subr.bf16.mxu0 %v14933_v17 }
 0x6dd   :  { %9691 = vmatpush3.bf16.msra.mxu0 %v11043_v12  ;;  %v11047_v12 = vld [vmem:[%s14885_s11 + $0xb0] sm:$0xff]  }
 0x6de   :  { %9692 = vmatprep.subr.bf16.mxu0 %v14933_v17 }
 0x6e1   :  { %9693 = vmatpush3.bf16.msra.mxu0 %v11044_v21  ;;  %v11048_v21 = vld [vmem:[%s14885_s11 + $0xb8] sm:$0xff]  }
 0x6e2   :  { %9694 = vmatprep.subr.bf16.mxu0 %v14933_v17 }
 0x6e5   :  { %9695 = vmatpush3.bf16.msra.mxu0 %v11045_v5  ;;  %v3693_v5 = vadd.f32 %v12873_v37, %v12983_v43 }
 0x6e6   :  { %9696 = vmatprep.subr.bf16.mxu0 %v14933_v17 }
 0x6e9   :  { %9697 = vmatpush3.bf16.msra.mxu0 %v11046_v0  ;;  %v3695_v0 = vadd.f32 %v12875_v38, %v12986_v32 }
 0x6ea   :  { %9698 = vmatprep.subr.bf16.mxu0 %v14933_v17 }
 0x6ed   :  { %9699 = vmatpush3.bf16.msra.mxu0 %v11047_v12 }
 0x6ee   :  { %9700 = vmatprep.subr.bf16.mxu0 %v14933_v17 }
 0x6f1   :  { %9701 = vmatpush3.bf16.msra.mxu0 %v11048_v21 }
 0x6f2   :  { %9706 = vmatprep.subr.bf16.mxu0 %v14933_v17 }
 0x787   :  { %v4584_v3 = vpop.f32.mrb[136].mxu0 }
 0x788   :  { %v4631_v26 = vadd.f32 %v4584_v3, %v3693_v5  ;;  %v4586_v9 = vpop.f32.mrb[137].mxu0  ;;  %v3822_v3 = vadd.f32 %v12929_v22, %v12998_v49  ;;  %v11051_v22 = vld [vmem:[%s14885_s11 + $0xd0] sm:$0xff]  }
 0x789   :  { %v4638_v1 = vadd.f32 %v4586_v9, %v3695_v0  ;;  %v4588_v12 = vpop.f32.mrb[138].mxu0  ;;  %v11055_v0 = vld [vmem:[%s14885_s11 + $0xf0] sm:$0xff]  }
 0x78a   :  { %v8713_v62 = vmul.f32 -1.442695, %v4631_v26  ;;  %v4589_v7 = vpop.f32.mrb[139].mxu0  ;;  %v11056_v12 = vld [vmem:[%s14885_s11 + $0xf8] sm:$0xff]  }
 0x78b   :  { %v8714_v15 = vmul.f32 -1.442695, %v4638_v1 }
 0x78c   :  { %11201 = vpow2.f32 %v8713_v62 }
 0x78d   :  { %11203 = vpow2.f32 %v8714_v15 }
 0x796   :  { %v11202_v59 = vpop.eup %11201 }
 0x797   :  { %v4635_v21 = vadd.f32 1.0, %v11202_v59  ;;  %v11204_v25 = vpop.eup %11203 }
 0x798   :  { %v4642_v57 = vadd.f32 1.0, %v11204_v25 }
 0x799   :  { %11205 = vrcp.f32 %v4635_v21  ;;  %v3697_v21 = vadd.f32 %v12877_v53, %v12983_v43  ;;  %v13392_v53 = vld [vmem:[%s14884_s10] ss:$0 sm:$0xff] }
 0x79a   :  { %11207 = vrcp.f32 %v4642_v57  ;;  %v11050_v57 = vld [vmem:[%s14885_s11 + $0xc8] sm:$0xff]  }
 0x7a3   :  { %v11206_v38 = vpop.eup %11205 }
 0x7a4   :  { %v11208_v1 = vpop.eup %11207 }
 0x7a5   :  { %v4649_v15 = vsub.f32 1.0, %v11208_v1  ;;  %v4651_v25 = vmul.f32 %v11208_v1, %v13071_v29  ;;  %v11054_v29 = vld [vmem:[%s14885_s11 + $0xe8] sm:$0xff]  }
 0x7a7   :  { %v4625_v63 = vpop.f32.mrb[140].mxu0 }
 0x7a8   :  { %v4645_v37 = vadd.f32 %v12996_v16, %v4625_v63  ;;  %v9684_v40 = vpop.f32.mrb[141].mxu0  ;;  %v11053_v16 = vld [vmem:[%s14885_s11 + $0xe0] sm:$0xff]  }
 0x7a9   :  { %v4628_v51 = vpop.f32.mrb[142].mxu0  ;;  %v11052_v40 = vld [vmem:[%s14885_s11 + $0xd8] sm:$0xff]  }
 0x7aa   :  { %v4646_v26 = vmul.f32 %v11206_v38, %v4645_v37  ;;  %v9685_v7 = vpop.f32.mrb[143].mxu0  ;;  %v11049_v51 = vld [vmem:[%s14885_s11 + $0xc0] sm:$0xff]   ;;  %v3699_v37 = vadd.f32 %v12879_v39, %v12986_v32 }
 0x7ac   :  { %v4647_v62 = vadd.f32 %v4646_v26, %v3822_v3 }
 0x7ae   :  { %11209 = vtanh.f32 %v4647_v62 }
 0x7b8   :  { %v11210_v59 = vpop.eup %11209 }
 0x7b9   :  { %v4650_v9 = vmul.f32 %v11210_v59, %v4649_v15 }
 0x7bb   :  { %v13312_v5 = vadd.f32 %v4651_v25, %v4650_v9 }
 0x7bd   :  { %v4653_v63 = vpack.c.bf16 %v13312_v5, %v13312_v5 }
 0x7bf   :  { %9703 = vmatmul.mubr.bf16.vlgmr.msra.gmra.mrb[132].mxu0 %v4653_v63  ;;  %4799 = vmatmul.mubr.bf16.vlgmr.msra.gmra.mrb[56].mxu1 %v4653_v63 }
 0x7c0   :  { %9707 = vmatpush3.bf16.msra.mxu0 %v13214_v10  ;;  %9722 = vmatprep.mubr.msk.bf16.mxu0 %vm11450_vm1, %v14933_v17 }
 0x7c1   :  { %9708 = vmatprep.subr.bf16.mxu0 %v14933_v17  ;;  %4983 = vmatpush1.bf16.msra.mxu1 %v13121_v27 }
 0x7c2   :  { %4984 = vmatprep.subr.bf16.mxu1 %v13128_v54  ;;  %5014 = vmatprep.mubr.bf16.mxu1 %v14934_v24 }
 0x7c4   :  { %9709 = vmatpush3.bf16.msra.mxu0 %v13223_v44 }
 0x7c5   :  { %9710 = vmatprep.subr.bf16.mxu0 %v14933_v17  ;;  %4985 = vmatpush1.bf16.msra.mxu1 %v13134_v4 }
 0x7c6   :  { %4986 = vmatprep.subr.bf16.mxu1 %v13140_v34 }
 0x7c8   :  { %9711 = vmatpush3.bf16.msra.mxu0 %v13230_v28 }
 0x7c9   :  { %9712 = vmatprep.subr.bf16.mxu0 %v14933_v17  ;;  %4987 = vmatpush1.bf16.msra.mxu1 %v13146_v36 }
 0x7ca   :  { %4988 = vmatprep.subr.bf16.mxu1 %v13152_v60 }
 0x7cc   :  { %9713 = vmatpush3.bf16.msra.mxu0 %v13237_v31 }
 0x7cd   :  { %9714 = vmatprep.subr.bf16.mxu0 %v14933_v17  ;;  %4989 = vmatpush1.bf16.msra.mxu1 %v13158_v41 }
 0x7ce   :  { %4990 = vmatprep.subr.bf16.mxu1 %v13164_v14 }
 0x7d0   :  { %9715 = vmatpush3.bf16.msra.mxu0 %v13244_v50 }
 0x7d1   :  { %9716 = vmatprep.subr.bf16.mxu0 %v14933_v17  ;;  %4991 = vmatpush1.bf16.msra.mxu1 %v13170_v35 }
 0x7d2   :  { %4992 = vmatprep.subr.bf16.mxu1 %v13176_v19 }
 0x7d4   :  { %9717 = vmatpush3.bf16.msra.mxu0 %v13251_v52 }
 0x7d5   :  { %9718 = vmatprep.subr.bf16.mxu0 %v14933_v17  ;;  %4993 = vmatpush1.bf16.msra.mxu1 %v13182_v20 }
 0x7d6   :  { %4994 = vmatprep.subr.bf16.mxu1 %v13188_v18 }
 0x7d8   :  { %9719 = vmatpush3.bf16.msra.mxu0 %v13258_v23 }
 0x7d9   :  { %9720 = vmatprep.subr.bf16.mxu0 %v14933_v17  ;;  %4995 = vmatpush1.bf16.msra.mxu1 %v13194_v56 }
 0x7da   :  { %4996 = vmatprep.subr.bf16.mxu1 %v13200_v11 }
 0x7dc   :  { %9721 = vmatpush3.bf16.msra.mxu0 %v13265_v6 }
 0x7dd   :  { %9726 = vmatprep.subr.bf16.mxu0 %v14933_v17  ;;  %4997 = vmatpush1.bf16.msra.mxu1 %v13206_v61 }
 0x7de   :  { %9746 = vmatprep.subr.bf16.mxu1 %v14933_v17 }
 0x7df   :  { %9723 = vmatmul.mubr.bf16.vlgmr.msra.gmra.mrb[144].mxu0 %v4653_v63 }
 0x7e0   :  { %9742 = vmatprep.mubr.msk.bf16.mxu0 %vm11450_vm1, %v14933_v17  ;;  %9727 = vmatpush3.bf16.msra.mxu0 %v11049_v51 }
 0x7e1   :  { %9728 = vmatprep.subr.bf16.mxu0 %v14933_v17 }
 0x7e4   :  { %9729 = vmatpush3.bf16.msra.mxu0 %v11050_v57 }
 0x7e5   :  { %9730 = vmatprep.subr.bf16.mxu0 %v14933_v17 }
 0x7e8   :  { %9731 = vmatpush3.bf16.msra.mxu0 %v11051_v22 }
 0x7e9   :  { %9732 = vmatprep.subr.bf16.mxu0 %v14933_v17 }
 0x7ec   :  { %9733 = vmatpush3.bf16.msra.mxu0 %v11052_v40 }
 0x7ed   :  { %9734 = vmatprep.subr.bf16.mxu0 %v14933_v17 }
 0x7f0   :  { %9735 = vmatpush3.bf16.msra.mxu0 %v11053_v16 }
 0x7f1   :  { %9736 = vmatprep.subr.bf16.mxu0 %v14933_v17 }
 0x7f4   :  { %9737 = vmatpush3.bf16.msra.mxu0 %v11054_v29  ;;  %v3825_v29 = vadd.f32 %v12935_v30, %v12998_v49  ;;  %v11057_v30 = vld [vmem:[%s14885_s11 + $0x100] sm:$0xff]  }
 0x7f5   :  { %9738 = vmatprep.subr.bf16.mxu0 %v14933_v17 }
 0x7f8   :  { %9739 = vmatpush3.bf16.msra.mxu0 %v11055_v0 }
 0x7f9   :  { %9740 = vmatprep.subr.bf16.mxu0 %v14933_v17 }
 0x7fc   :  { %9741 = vmatpush3.bf16.msra.mxu0 %v11056_v12 }
 0x7fd   :  { %9766 = vmatprep.subr.bf16.mxu0 %v14933_v17 }
 0x892   :  { %v4800_v38 = vpop.f32.mrb[56].mxu1 }
 0x893   :  { %v4847_v3 = vadd.f32 %v4800_v38, %v3697_v21  ;;  %v4802_v26 = vpop.f32.mrb[57].mxu1 }
 0x894   :  { %v4854_v7 = vadd.f32 %v4802_v26, %v3699_v37  ;;  %v4804_v62 = vpop.f32.mrb[58].mxu1 }
 0x895   :  { %v8739_v1 = vmul.f32 -1.442695, %v4847_v3  ;;  %v4805_v15 = vpop.f32.mrb[59].mxu1 }
 0x896   :  { %v8740_v59 = vmul.f32 -1.442695, %v4854_v7  ;;  %v11059_v15 = vld [vmem:[%s14885_s11 + $0x110] sm:$0xff]  }
 0x897   :  { %11211 = vpow2.f32 %v8739_v1 }
 0x898   :  { %11213 = vpow2.f32 %v8740_v59  ;;  %v11060_v59 = vld [vmem:[%s14885_s11 + $0x118] sm:$0xff]  }
 0x8a1   :  { %v11212_v9 = vpop.eup %11211 }
 0x8a2   :  { %v4851_v25 = vadd.f32 1.0, %v11212_v9  ;;  %v11214_v63 = vpop.eup %11213  ;;  %v11061_v9 = vld [vmem:[%s14885_s11 + $0x120] sm:$0xff]  }
 0x8a3   :  { %v4858_v51 = vadd.f32 1.0, %v11214_v63  ;;  %v11063_v63 = vld [vmem:[%s14885_s11 + $0x130] sm:$0xff]  }
 0x8a4   :  { %11215 = vrcp.f32 %v4851_v25  ;;  %v11062_v25 = vld [vmem:[%s14885_s11 + $0x128] sm:$0xff]  }
 0x8a5   :  { %11217 = vrcp.f32 %v4858_v51  ;;  %v11064_v51 = vld [vmem:[%s14885_s11 + $0x138] sm:$0xff]  }
 0x8ae   :  { %v11216_v40 = vpop.eup %11215 }
 0x8af   :  { %v11218_v37 = vpop.eup %11217 }
 0x8b0   :  { %v4865_v38 = vsub.f32 1.0, %v11218_v37  ;;  %v4867_v7 = vmul.f32 %v11218_v37, %v13312_v5  ;;  %v11058_v5 = vld [vmem:[%s14885_s11 + $0x108] sm:$0xff]  }
 0x8b2   :  { %v4841_v57 = vpop.f32.mrb[144].mxu0 }
 0x8b3   :  { %v4861_v39 = vadd.f32 %v13392_v53, %v4841_v57  ;;  %v9724_v22 = vpop.f32.mrb[145].mxu0  ;;  %v3703_v57 = vadd.f32 %v12881_v33, %v12983_v43 }
 0x8b4   :  { %v4844_v16 = vpop.f32.mrb[146].mxu0 }
 0x8b5   :  { %v4862_v0 = vmul.f32 %v11216_v40, %v4861_v39  ;;  %v9725_v12 = vpop.f32.mrb[147].mxu0  ;;  %v3705_v39 = vadd.f32 %v12883_v55, %v12986_v32 }
 0x8b7   :  { %v4863_v21 = vadd.f32 %v4862_v0, %v3825_v29 }
 0x8b9   :  { %11219 = vtanh.f32 %v4863_v21 }
 0x8c3   :  { %v11220_v3 = vpop.eup %11219 }
 0x8c4   :  { %v4866_v26 = vmul.f32 %v11220_v3, %v4865_v38 }
 0x8c6   :  { %v13398_v62 = vadd.f32 %v4867_v7, %v4866_v26 }
 0x8c8   :  { %v4869_v1 = vpack.c.bf16 %v13398_v62, %v13398_v62 }
 0x8ca   :  { %9743 = vmatmul.mubr.bf16.vlgmr.msra.gmra.mrb[132].mxu0 %v4869_v1  ;;  %5015 = vmatmul.mubr.bf16.vlgmr.msra.gmra.mrb[60].mxu1 %v4869_v1 }
 0x8cb   :  { %9747 = vmatpush3.bf16.msra.mxu1 %v13214_v10  ;;  %9762 = vmatprep.mubr.msk.bf16.mxu1 %vm11450_vm1, %v14933_v17 }
 0x8cc   :  { %9748 = vmatprep.subr.bf16.mxu1 %v14933_v17  ;;  %9782 = vmatprep.mubr.msk.bf16.mxu0 %vm11450_vm1, %v14933_v17 }
 0x8cd   :  { %9767 = vmatpush3.bf16.msra.mxu0 %v11057_v30 }
 0x8ce   :  { %9768 = vmatprep.subr.bf16.mxu0 %v14933_v17 }
 0x8cf   :  { %9749 = vmatpush3.bf16.msra.mxu1 %v13223_v44 }
 0x8d0   :  { %9750 = vmatprep.subr.bf16.mxu1 %v14933_v17 }
 0x8d1   :  { %9769 = vmatpush3.bf16.msra.mxu0 %v11058_v5 }
 0x8d2   :  { %9770 = vmatprep.subr.bf16.mxu0 %v14933_v17 }
 0x8d3   :  { %9751 = vmatpush3.bf16.msra.mxu1 %v13230_v28 }
 0x8d4   :  { %9752 = vmatprep.subr.bf16.mxu1 %v14933_v17 }
 0x8d5   :  { %9771 = vmatpush3.bf16.msra.mxu0 %v11059_v15  ;;  %v3830_v15 = vadd.f32 %v12941_v58, %v12998_v49  ;;  %v11065_v58 = vld [vmem:[%s14885_s11 + $0x140] sm:$0xff]  }
 0x8d6   :  { %9772 = vmatprep.subr.bf16.mxu0 %v14933_v17 }
 0x8d7   :  { %9753 = vmatpush3.bf16.msra.mxu1 %v13237_v31 }
 0x8d8   :  { %9754 = vmatprep.subr.bf16.mxu1 %v14933_v17 }
 0x8d9   :  { %9773 = vmatpush3.bf16.msra.mxu0 %v11060_v59 }
 0x8da   :  { %9774 = vmatprep.subr.bf16.mxu0 %v14933_v17 }
 0x8db   :  { %9755 = vmatpush3.bf16.msra.mxu1 %v13244_v50 }
 0x8dc   :  { %9756 = vmatprep.subr.bf16.mxu1 %v14933_v17 }
 0x8dd   :  { %9775 = vmatpush3.bf16.msra.mxu0 %v11061_v9 }
 0x8de   :  { %9776 = vmatprep.subr.bf16.mxu0 %v14933_v17 }
 0x8df   :  { %9757 = vmatpush3.bf16.msra.mxu1 %v13251_v52 }
 0x8e0   :  { %9758 = vmatprep.subr.bf16.mxu1 %v14933_v17 }
 0x8e1   :  { %9777 = vmatpush3.bf16.msra.mxu0 %v11062_v25 }
 0x8e2   :  { %9778 = vmatprep.subr.bf16.mxu0 %v14933_v17 }
 0x8e3   :  { %9759 = vmatpush3.bf16.msra.mxu1 %v13258_v23 }
 0x8e4   :  { %9760 = vmatprep.subr.bf16.mxu1 %v14933_v17 }
 0x8e5   :  { %9779 = vmatpush3.bf16.msra.mxu0 %v11063_v63 }
 0x8e6   :  { %9780 = vmatprep.subr.bf16.mxu0 %v14933_v17 }
 0x8e7   :  { %9761 = vmatpush3.bf16.msra.mxu1 %v13265_v6 }
 0x8e8   :  { %5198 = vmatprep.subr.bf16.mxu1 %v13114_v13 }
 0x8e9   :  { %9781 = vmatpush3.bf16.msra.mxu0 %v11064_v51 }
 0x8ea   :  { %9763 = vmatmul.mubr.bf16.vlgmr.msra.gmra.mrb[64].mxu1 %v4869_v1  ;;  %9786 = vmatprep.subr.bf16.mxu0 %v14933_v17 }
 0x8eb   :  { %5199 = vmatpush1.bf16.msra.mxu1 %v13121_v27  ;;  %5230 = vmatprep.mubr.bf16.mxu1 %v14934_v24 }
 0x8ec   :  { %5200 = vmatprep.subr.bf16.mxu1 %v13128_v54 }
 0x8ef   :  { %5201 = vmatpush1.bf16.msra.mxu1 %v13134_v4 }
 0x8f0   :  { %5202 = vmatprep.subr.bf16.mxu1 %v13140_v34 }
 0x8f3   :  { %5203 = vmatpush1.bf16.msra.mxu1 %v13146_v36 }
 0x8f4   :  { %5204 = vmatprep.subr.bf16.mxu1 %v13152_v60 }
 0x8f7   :  { %5205 = vmatpush1.bf16.msra.mxu1 %v13158_v41 }
 0x8f8   :  { %5206 = vmatprep.subr.bf16.mxu1 %v13164_v14 }
 0x8fb   :  { %5207 = vmatpush1.bf16.msra.mxu1 %v13170_v35 }
 0x8fc   :  { %5208 = vmatprep.subr.bf16.mxu1 %v13176_v19 }
 0x8ff   :  { %5209 = vmatpush1.bf16.msra.mxu1 %v13182_v20 }
 0x900   :  { %5210 = vmatprep.subr.bf16.mxu1 %v13188_v18 }
 0x903   :  { %5211 = vmatpush1.bf16.msra.mxu1 %v13194_v56 }
 0x904   :  { %5212 = vmatprep.subr.bf16.mxu1 %v13200_v11 }
 0x907   :  { %5213 = vmatpush1.bf16.msra.mxu1 %v13206_v61 }
 0x908   :  { %5414 = vmatprep.subr.bf16.mxu1 %v13114_v13 }
 0x99d   :  { %v5016_v22 = vpop.f32.mrb[60].mxu1 }
 0x99e   :  { %v5063_v40 = vadd.f32 %v5016_v22, %v3703_v57  ;;  %v5018_v16 = vpop.f32.mrb[61].mxu1 }
 0x99f   :  { %v5070_v29 = vadd.f32 %v5018_v16, %v3705_v39  ;;  %v5020_v0 = vpop.f32.mrb[62].mxu1 }
 0x9a0   :  { %v8765_v12 = vmul.f32 -1.442695, %v5063_v40  ;;  %v5021_v21 = vpop.f32.mrb[63].mxu1  ;;  %v11068_v0 = vld [vmem:[%s14885_s11 + $0x158] sm:$0xff]  }
 0x9a1   :  { %v8766_v37 = vmul.f32 -1.442695, %v5070_v29  ;;  %v11067_v29 = vld [vmem:[%s14885_s11 + $0x150] sm:$0xff]   ;;  %v11070_v21 = vld [vmem:[%s14885_s11 + $0x168] sm:$0xff]  }
 0x9a2   :  { %11221 = vpow2.f32 %v8765_v12  ;;  %v11069_v12 = vld [vmem:[%s14885_s11 + $0x160] sm:$0xff]  }
 0x9a3   :  { %11223 = vpow2.f32 %v8766_v37  ;;  %v11071_v37 = vld [vmem:[%s14885_s11 + $0x170] sm:$0xff]  }
 0x9ac   :  { %v11222_v38 = vpop.eup %11221 }
 0x9ad   :  { %v5067_v3 = vadd.f32 1.0, %v11222_v38  ;;  %v11224_v26 = vpop.eup %11223  ;;  %v11072_v38 = vld [vmem:[%s14885_s11 + $0x178] sm:$0xff]  }
 0x9ae   :  { %v5074_v7 = vadd.f32 1.0, %v11224_v26  ;;  %v3709_v26 = vadd.f32 %v12887_v45, %v12986_v32 }
 0x9af   :  { %11225 = vrcp.f32 %v5067_v3  ;;  %v3707_v3 = vadd.f32 %v12885_v42, %v12983_v43 }
 0x9b0   :  { %11227 = vrcp.f32 %v5074_v7 }
 0x9b9   :  { %v11226_v55 = vpop.eup %11225 }
 0x9ba   :  { %v11228_v63 = vpop.eup %11227 }
 0x9bb   :  { %v5081_v51 = vsub.f32 1.0, %v11228_v63  ;;  %v5083_v22 = vmul.f32 %v11228_v63, %v13398_v62  ;;  %v11066_v62 = vld [vmem:[%s14885_s11 + $0x148] sm:$0xff]  }
 0x9bd   :  { %v5057_v1 = vpop.f32.mrb[64].mxu1 }
 0x9be   :  { %v5077_v33 = vadd.f32 %v13392_v53, %v5057_v1  ;;  %v9764_v30 = vpop.f32.mrb[65].mxu1 }
 0x9bf   :  { %v5060_v5 = vpop.f32.mrb[66].mxu1 }
 0x9c0   :  { %v5078_v59 = vmul.f32 %v11226_v55, %v5077_v33  ;;  %v9765_v9 = vpop.f32.mrb[67].mxu1 }
 0x9c2   :  { %v5079_v25 = vadd.f32 %v5078_v59, %v3830_v15 }
 0x9c4   :  { %11229 = vtanh.f32 %v5079_v25 }
 0x9ce   :  { %v11230_v57 = vpop.eup %11229 }
 0x9cf   :  { %v5082_v39 = vmul.f32 %v11230_v57, %v5081_v51 }
 0x9d1   :  { %v13479_v40 = vadd.f32 %v5083_v22, %v5082_v39 }
 0x9d3   :  { %v5085_v16 = vpack.c.bf16 %v13479_v40, %v13479_v40 }
 0x9d5   :  { %9783 = vmatmul.mubr.bf16.vlgmr.msra.gmra.mrb[132].mxu0 %v5085_v16  ;;  %5231 = vmatmul.mubr.bf16.vlgmr.msra.gmra.mrb[68].mxu1 %v5085_v16 }
 0x9d6   :  { %9787 = vmatpush3.bf16.msra.mxu0 %v13214_v10  ;;  %9802 = vmatprep.mubr.msk.bf16.mxu0 %vm11450_vm1, %v14933_v17 }
 0x9d7   :  { %9788 = vmatprep.subr.bf16.mxu0 %v14933_v17  ;;  %5415 = vmatpush1.bf16.msra.mxu1 %v13121_v27 }
 0x9d8   :  { %5416 = vmatprep.subr.bf16.mxu1 %v13128_v54  ;;  %5446 = vmatprep.mubr.bf16.mxu1 %v14934_v24 }
 0x9da   :  { %9789 = vmatpush3.bf16.msra.mxu0 %v13223_v44 }
 0x9db   :  { %9790 = vmatprep.subr.bf16.mxu0 %v14933_v17  ;;  %5417 = vmatpush1.bf16.msra.mxu1 %v13134_v4 }
 0x9dc   :  { %5418 = vmatprep.subr.bf16.mxu1 %v13140_v34 }
 0x9de   :  { %9791 = vmatpush3.bf16.msra.mxu0 %v13230_v28 }
 0x9df   :  { %9792 = vmatprep.subr.bf16.mxu0 %v14933_v17  ;;  %5419 = vmatpush1.bf16.msra.mxu1 %v13146_v36 }
 0x9e0   :  { %5420 = vmatprep.subr.bf16.mxu1 %v13152_v60 }
 0x9e2   :  { %9793 = vmatpush3.bf16.msra.mxu0 %v13237_v31 }
 0x9e3   :  { %9794 = vmatprep.subr.bf16.mxu0 %v14933_v17  ;;  %5421 = vmatpush1.bf16.msra.mxu1 %v13158_v41 }
 0x9e4   :  { %5422 = vmatprep.subr.bf16.mxu1 %v13164_v14 }
 0x9e6   :  { %9795 = vmatpush3.bf16.msra.mxu0 %v13244_v50 }
 0x9e7   :  { %9796 = vmatprep.subr.bf16.mxu0 %v14933_v17  ;;  %5423 = vmatpush1.bf16.msra.mxu1 %v13170_v35 }
 0x9e8   :  { %5424 = vmatprep.subr.bf16.mxu1 %v13176_v19 }
 0x9ea   :  { %9797 = vmatpush3.bf16.msra.mxu0 %v13251_v52 }
 0x9eb   :  { %9798 = vmatprep.subr.bf16.mxu0 %v14933_v17  ;;  %5425 = vmatpush1.bf16.msra.mxu1 %v13182_v20 }
 0x9ec   :  { %5426 = vmatprep.subr.bf16.mxu1 %v13188_v18 }
 0x9ee   :  { %9799 = vmatpush3.bf16.msra.mxu0 %v13258_v23 }
 0x9ef   :  { %9800 = vmatprep.subr.bf16.mxu0 %v14933_v17  ;;  %5427 = vmatpush1.bf16.msra.mxu1 %v13194_v56 }
 0x9f0   :  { %5428 = vmatprep.subr.bf16.mxu1 %v13200_v11 }
 0x9f2   :  { %9801 = vmatpush3.bf16.msra.mxu0 %v13265_v6 }
 0x9f3   :  { %9806 = vmatprep.subr.bf16.mxu0 %v14933_v17  ;;  %5429 = vmatpush1.bf16.msra.mxu1 %v13206_v61 }
 0x9f4   :  { %9826 = vmatprep.subr.bf16.mxu1 %v14933_v17 }
 0x9f5   :  { %9803 = vmatmul.mubr.bf16.vlgmr.msra.gmra.mrb[148].mxu0 %v5085_v16  ;;  %v3833_v16 = vadd.f32 %v12947_v8, %v12998_v49  ;;  %v11073_v8 = vld [vmem:[%s14885_s11 + $0x180] sm:$0xff]  }
 0x9f6   :  { %9822 = vmatprep.mubr.msk.bf16.mxu0 %vm11450_vm1, %v14933_v17  ;;  %9807 = vmatpush3.bf16.msra.mxu0 %v11065_v58 }
 0x9f7   :  { %9808 = vmatprep.subr.bf16.mxu0 %v14933_v17 }
 0x9fa   :  { %9809 = vmatpush3.bf16.msra.mxu0 %v11066_v62 }
 0x9fb   :  { %9810 = vmatprep.subr.bf16.mxu0 %v14933_v17 }
 0x9fe   :  { %9811 = vmatpush3.bf16.msra.mxu0 %v11067_v29 }
 0x9ff   :  { %9812 = vmatprep.subr.bf16.mxu0 %v14933_v17 }
 0xa02   :  { %9813 = vmatpush3.bf16.msra.mxu0 %v11068_v0 }
 0xa03   :  { %9814 = vmatprep.subr.bf16.mxu0 %v14933_v17 }
 0xa06   :  { %9815 = vmatpush3.bf16.msra.mxu0 %v11069_v12 }
 0xa07   :  { %9816 = vmatprep.subr.bf16.mxu0 %v14933_v17 }
 0xa0a   :  { %9817 = vmatpush3.bf16.msra.mxu0 %v11070_v21 }
 0xa0b   :  { %9818 = vmatprep.subr.bf16.mxu0 %v14933_v17 }
 0xa0e   :  { %9819 = vmatpush3.bf16.msra.mxu0 %v11071_v37 }
 0xa0f   :  { %9820 = vmatprep.subr.bf16.mxu0 %v14933_v17 }
 0xa12   :  { %9821 = vmatpush3.bf16.msra.mxu0 %v11072_v38 }
 0xa13   :  { %9846 = vmatprep.subr.bf16.mxu0 %v14933_v17 }
 0xaa8   :  { %v5232_v7 = vpop.f32.mrb[68].mxu1 }
 0xaa9   :  { %v5279_v1 = vadd.f32 %v5232_v7, %v3707_v3  ;;  %v5234_v33 = vpop.f32.mrb[69].mxu1  ;;  %v11075_v7 = vld [vmem:[%s14885_s11 + $0x190] sm:$0xff]  }
 0xaaa   :  { %v5286_v30 = vadd.f32 %v5234_v33, %v3709_v26  ;;  %v5236_v55 = vpop.f32.mrb[70].mxu1  ;;  %v11078_v33 = vld [vmem:[%s14885_s11 + $0x1a8] sm:$0xff]  }
 0xaab   :  { %v8791_v5 = vmul.f32 -1.442695, %v5279_v1  ;;  %v5237_v15 = vpop.f32.mrb[71].mxu1  ;;  %v11077_v1 = vld [vmem:[%s14885_s11 + $0x1a0] sm:$0xff]   ;;  %v11080_v55 = vld [vmem:[%s14885_s11 + $0x1b8] sm:$0xff]  }
 0xaac   :  { %v8792_v59 = vmul.f32 -1.442695, %v5286_v30  ;;  %v11079_v30 = vld [vmem:[%s14885_s11 + $0x1b0] sm:$0xff]   ;;  %v3715_v15 = vadd.f32 %v12891_v47, %v12986_v32 }
 0xaad   :  { %11231 = vpow2.f32 %v8791_v5  ;;  %v3713_v5 = vadd.f32 %v12889_v46, %v12983_v43 }
 0xaae   :  { %11233 = vpow2.f32 %v8792_v59 }
 0xab7   :  { %v11232_v9 = vpop.eup %11231 }
 0xab8   :  { %v5283_v25 = vadd.f32 1.0, %v11232_v9  ;;  %v11234_v63 = vpop.eup %11233 }
 0xab9   :  { %v5290_v51 = vadd.f32 1.0, %v11234_v63 }
 0xaba   :  { %11235 = vrcp.f32 %v5283_v25 }
 0xabb   :  { %11237 = vrcp.f32 %v5290_v51 }
 0xac4   :  { %v11236_v45 = vpop.eup %11235 }
 0xac5   :  { %v11238_v0 = vpop.eup %11237 }
 0xac6   :  { %v5297_v12 = vsub.f32 1.0, %v11238_v0  ;;  %v5299_v38 = vmul.f32 %v11238_v0, %v13479_v40  ;;  %v11074_v40 = vld [vmem:[%s14885_s11 + $0x188] sm:$0xff]  }
 0xac8   :  { %v5273_v57 = vpop.f32.mrb[148].mxu0 }
 0xac9   :  { %v5293_v42 = vadd.f32 %v13392_v53, %v5273_v57  ;;  %v9804_v39 = vpop.f32.mrb[149].mxu0 }
 0xaca   :  { %v5276_v22 = vpop.f32.mrb[150].mxu0 }
 0xacb   :  { %v5294_v58 = vmul.f32 %v11236_v45, %v5293_v42  ;;  %v9805_v62 = vpop.f32.mrb[151].mxu0 }
 0xacd   :  { %v5295_v29 = vadd.f32 %v5294_v58, %v3833_v16 }
 0xacf   :  { %11239 = vtanh.f32 %v5295_v29 }
 0xad9   :  { %v11240_v21 = vpop.eup %11239 }
 0xada   :  { %v5298_v37 = vmul.f32 %v11240_v21, %v5297_v12  ;;  %v3838_v12 = vadd.f32 %v12953_v2, %v12998_v49  ;;  %v11081_v2 = vld [vmem:[%s14885_s11 + $0x1c0] sm:$0xff]  }
 0xadc   :  { %v13560_v3 = vadd.f32 %v5299_v38, %v5298_v37 }
 0xade   :  { %v5301_v26 = vpack.c.bf16 %v13560_v3, %v13560_v3 }
 0xae0   :  { %9823 = vmatmul.mubr.bf16.vlgmr.msra.gmra.mrb[132].mxu0 %v5301_v26  ;;  %5447 = vmatmul.mubr.bf16.vlgmr.msra.gmra.mrb[72].mxu1 %v5301_v26 }
 0xae1   :  { %9827 = vmatpush3.bf16.msra.mxu1 %v13214_v10  ;;  %9842 = vmatprep.mubr.msk.bf16.mxu1 %vm11450_vm1, %v14933_v17 }
 0xae2   :  { %9828 = vmatprep.subr.bf16.mxu1 %v14933_v17  ;;  %9862 = vmatprep.mubr.msk.bf16.mxu0 %vm11450_vm1, %v14933_v17 }
 0xae3   :  { %9847 = vmatpush3.bf16.msra.mxu0 %v11073_v8 }
 0xae4   :  { %9848 = vmatprep.subr.bf16.mxu0 %v14933_v17 }
 0xae5   :  { %9829 = vmatpush3.bf16.msra.mxu1 %v13223_v44 }
 0xae6   :  { %9830 = vmatprep.subr.bf16.mxu1 %v14933_v17 }
 0xae7   :  { %9849 = vmatpush3.bf16.msra.mxu0 %v11074_v40 }
 0xae8   :  { %9850 = vmatprep.subr.bf16.mxu0 %v14933_v17 }
 0xae9   :  { %9831 = vmatpush3.bf16.msra.mxu1 %v13230_v28 }
 0xaea   :  { %9832 = vmatprep.subr.bf16.mxu1 %v14933_v17 }
 0xaeb   :  { %9851 = vmatpush3.bf16.msra.mxu0 %v11075_v7 }
 0xaec   :  { %9852 = vmatprep.subr.bf16.mxu0 %v14933_v17 }
 0xaed   :  { %9833 = vmatpush3.bf16.msra.mxu1 %v13237_v31 }
 0xaee   :  { %9834 = vmatprep.subr.bf16.mxu1 %v14933_v17 }
 0xaf1   :  { %9835 = vmatpush3.bf16.msra.mxu1 %v13244_v50 }
 0xaf2   :  { %9836 = vmatprep.subr.bf16.mxu1 %v14933_v17 }
 0xaf5   :  { %9837 = vmatpush3.bf16.msra.mxu1 %v13251_v52 }
 0xaf6   :  { %9838 = vmatprep.subr.bf16.mxu1 %v14933_v17 }
 0xaf9   :  { %9839 = vmatpush3.bf16.msra.mxu1 %v13258_v23 }
 0xafa   :  { %9840 = vmatprep.subr.bf16.mxu1 %v14933_v17 }
 0xafd   :  { %9841 = vmatpush3.bf16.msra.mxu1 %v13265_v6 }
 0xafe   :  { %5630 = vmatprep.subr.bf16.mxu1 %v13114_v13 }
 0xb00   :  { %9843 = vmatmul.mubr.bf16.vlgmr.msra.gmra.mrb[76].mxu1 %v5301_v26 }
 0xb01   :  { %5631 = vmatpush1.bf16.msra.mxu1 %v13121_v27  ;;  %5662 = vmatprep.mubr.bf16.mxu1 %v14934_v24 }
 0xb02   :  { %5632 = vmatprep.subr.bf16.mxu1 %v13128_v54 }
 0xb05   :  { %5633 = vmatpush1.bf16.msra.mxu1 %v13134_v4 }
 0xb06   :  { %5634 = vmatprep.subr.bf16.mxu1 %v13140_v34 }
 0xb09   :  { %5635 = vmatpush1.bf16.msra.mxu1 %v13146_v36 }
 0xb0a   :  { %5636 = vmatprep.subr.bf16.mxu1 %v13152_v60 }
 0xb0d   :  { %5637 = vmatpush1.bf16.msra.mxu1 %v13158_v41 }
 0xb0e   :  { %5638 = vmatprep.subr.bf16.mxu1 %v13164_v14 }
 0xb11   :  { %5639 = vmatpush1.bf16.msra.mxu1 %v13170_v35 }
 0xb12   :  { %5640 = vmatprep.subr.bf16.mxu1 %v13176_v19 }
 0xb15   :  { %5641 = vmatpush1.bf16.msra.mxu1 %v13182_v20 }
 0xb16   :  { %5642 = vmatprep.subr.bf16.mxu1 %v13188_v18 }
 0xb19   :  { %5643 = vmatpush1.bf16.msra.mxu1 %v13194_v56 }
 0xb1a   :  { %5644 = vmatprep.subr.bf16.mxu1 %v13200_v11 }
 0xb1d   :  { %5645 = vmatpush1.bf16.msra.mxu1 %v13206_v61 }
 0xb1e   :  { %5846 = vmatprep.subr.bf16.mxu1 %v13114_v13  ;;  %v11076_v13 = vld [vmem:[%s14885_s11 + $0x198] sm:$0xff]  }
 0xb1f   :  { %9853 = vmatpush3.bf16.msra.mxu0 %v11076_v13 }
 0xb20   :  { %9854 = vmatprep.subr.bf16.mxu0 %v14933_v17 }
 0xb23   :  { %9855 = vmatpush3.bf16.msra.mxu0 %v11077_v1 }
 0xb24   :  { %9856 = vmatprep.subr.bf16.mxu0 %v14933_v17 }
 0xb27   :  { %9857 = vmatpush3.bf16.msra.mxu0 %v11078_v33 }
 0xb28   :  { %9858 = vmatprep.subr.bf16.mxu0 %v14933_v17 }
 0xb2b   :  { %9859 = vmatpush3.bf16.msra.mxu0 %v11079_v30 }
 0xb2c   :  { %9860 = vmatprep.subr.bf16.mxu0 %v14933_v17 }
 0xb2f   :  { %9861 = vmatpush3.bf16.msra.mxu0 %v11080_v55 }
 0xb30   :  { %9866 = vmatprep.subr.bf16.mxu0 %v14933_v17 }
 0xbb3   :  { %v5448_v59 = vpop.f32.mrb[72].mxu1 }
 0xbb4   :  { %v5495_v9 = vadd.f32 %v5448_v59, %v3713_v5  ;;  %v5450_v25 = vpop.f32.mrb[73].mxu1  ;;  %v14936_v5 = vld [vmem:[#allocation28_spill] sm:$0xff] }
 0xbb5   :  { %v5502_v63 = vadd.f32 %v5450_v25, %v3715_v15  ;;  %v5452_v51 = vpop.f32.mrb[74].mxu1  ;;  %v3841_v15 = vadd.f32 %v14936_v5, %v12998_v49 }
 0xbb6   :  { %v8817_v57 = vmul.f32 -1.442695, %v5495_v9  ;;  %v5453_v42 = vpop.f32.mrb[75].mxu1 }
 0xbb7   :  { %v8818_v39 = vmul.f32 -1.442695, %v5502_v63 }
 0xbb8   :  { %11241 = vpow2.f32 %v8817_v57 }
 0xbb9   :  { %11243 = vpow2.f32 %v8818_v39 }
 0xbc2   :  { %v11242_v45 = vpop.eup %11241 }
 0xbc3   :  { %v5499_v22 = vadd.f32 1.0, %v11242_v45  ;;  %v11244_v16 = vpop.eup %11243 }
 0xbc4   :  { %v5506_v58 = vadd.f32 1.0, %v11244_v16  ;;  %v13729_v16 = vld [vmem:[%s14880_s9 + $0x8] ss:$12 sps:$4 sm:$0xff]  }
 0xbc5   :  { %11245 = vrcp.f32 %v5499_v22 }
 0xbc6   :  { %11247 = vrcp.f32 %v5506_v58  ;;  %v13740_v58 = vld [vmem:[%s14880_s9 + $0x20] ss:$12 sps:$4 sm:$0xff]  }
 0xbcf   :  { %v11246_v47 = vpop.eup %11245 }
 0xbd0   :  { %v11248_v26 = vpop.eup %11247 }
 0xbd1   :  { %v5513_v8 = vsub.f32 1.0, %v11248_v26  ;;  %v5515_v13 = vmul.f32 %v11248_v26, %v13560_v3  ;;  %v13807_v26 = vld [vmem:[%s14880_s9 + $0x18] ss:$12 sps:$4 sm:$0xff]  }
 0xbd3   :  { %v5489_v62 = vpop.f32.mrb[76].mxu1 }
 0xbd4   :  { %v5509_v46 = vadd.f32 %v13392_v53, %v5489_v62  ;;  %v9844_v29 = vpop.f32.mrb[77].mxu1  ;;  %v13747_v62 = vld [vmem:[%s14880_s9 + $0x38] ss:$12 sps:$4 sm:$0xff]  }
 0xbd5   :  { %v5492_v0 = vpop.f32.mrb[78].mxu1  ;;  %v13761_v29 = vld [vmem:[%s14880_s9 + $0x68] ss:$12 sps:$4 sm:$0xff]  }
 0xbd6   :  { %v5510_v21 = vmul.f32 %v11246_v47, %v5509_v46  ;;  %v9845_v37 = vpop.f32.mrb[79].mxu1  ;;  %v13754_v46 = vld [vmem:[%s14880_s9 + $0x50] ss:$12 sps:$4 sm:$0xff]   ;;  %v13768_v47 = vld [vmem:[%s14880_s9 + $0x80] ss:$12 sps:$4 sm:$0xff]  }
 0xbd7   :  { %v13775_v0 = vld [vmem:[%s14880_s9 + $0x98] ss:$12 sps:$4 sm:$0xff]   ;;  %v13794_v37 = vld [vmem:[%s14880_s9] ss:$12 sps:$4 sm:$0xff]  }
 0xbd8   :  { %v5511_v38 = vadd.f32 %v5510_v21, %v3838_v12  ;;  %v13782_v12 = vld [vmem:[%s14880_s9 + $0xb0] ss:$12 sps:$4 sm:$0xff]  }
 0xbd9   :  { %v13788_v21 = vld [vmem:[%s14880_s9 + $0x4] ss:$12 sps:$4 sm:$0xff]  }
 0xbda   :  { %11249 = vtanh.f32 %v5511_v38  ;;  %v13801_v38 = vld [vmem:[%s14880_s9 + $0x1c] ss:$12 sps:$4 sm:$0xff]  }
 0xbe4   :  { %v11250_v40 = vpop.eup %11249 }
 0xbe5   :  { %v5514_v7 = vmul.f32 %v11250_v40, %v5513_v8  ;;  %v13813_v8 = vld [vmem:[%s14880_s9 + $0x34] ss:$12 sps:$4 sm:$0xff]   ;;  %v13819_v40 = vld [vmem:[%s14880_s9 + $0x30] ss:$12 sps:$4 sm:$0xff]  }
 0xbe7   :  { %v13641_v1 = vadd.f32 %v5515_v13, %v5514_v7  ;;  %v13825_v7 = vld [vmem:[%s14880_s9 + $0x4c] ss:$12 sps:$4 sm:$0xff]   ;;  %v13831_v13 = vld [vmem:[%s14880_s9 + $0x48] ss:$12 sps:$4 sm:$0xff]  }
 0xbe9   :  { %v5517_v33 = vpack.c.bf16 %v13641_v1, %v13641_v1 }
 0xbeb   :  { %9863 = vmatmul.mubr.bf16.vlgmr.msra.gmra.mrb[132].mxu0 %v5517_v33  ;;  %5663 = vmatmul.mubr.bf16.vlgmr.msra.gmra.mrb[80].mxu1 %v5517_v33 }
 0xbec   :  { %9867 = vmatpush3.bf16.msra.mxu0 %v13214_v10  ;;  %9882 = vmatprep.mubr.msk.bf16.mxu0 %vm11450_vm1, %v14933_v17 }
 0xbed   :  { %9868 = vmatprep.subr.bf16.mxu0 %v14933_v17  ;;  %5847 = vmatpush1.bf16.msra.mxu1 %v13121_v27  ;;  %v11082_v27 = vld [vmem:[%s14885_s11 + $0x1c8] sm:$0xff]  }
 0xbee   :  { %5848 = vmatprep.subr.bf16.mxu1 %v13128_v54  ;;  %5878 = vmatprep.mubr.bf16.mxu1 %v14934_v24  ;;  %v11083_v54 = vld [vmem:[%s14885_s11 + $0x1d0] sm:$0xff]  }
 0xbf0   :  { %9869 = vmatpush3.bf16.msra.mxu0 %v13223_v44 }
 0xbf1   :  { %9870 = vmatprep.subr.bf16.mxu0 %v14933_v17  ;;  %5849 = vmatpush1.bf16.msra.mxu1 %v13134_v4  ;;  %v11084_v4 = vld [vmem:[%s14885_s11 + $0x1d8] sm:$0xff]  }
 0xbf2   :  { %5850 = vmatprep.subr.bf16.mxu1 %v13140_v34  ;;  %v11085_v34 = vld [vmem:[%s14885_s11 + $0x1e0] sm:$0xff]  }
 0xbf4   :  { %9871 = vmatpush3.bf16.msra.mxu0 %v13230_v28 }
 0xbf5   :  { %9872 = vmatprep.subr.bf16.mxu0 %v14933_v17  ;;  %5851 = vmatpush1.bf16.msra.mxu1 %v13146_v36  ;;  %v11086_v36 = vld [vmem:[%s14885_s11 + $0x1e8] sm:$0xff]  }
 0xbf6   :  { %5852 = vmatprep.subr.bf16.mxu1 %v13152_v60  ;;  %v11087_v60 = vld [vmem:[%s14885_s11 + $0x1f0] sm:$0xff]  }
 0xbf8   :  { %9873 = vmatpush3.bf16.msra.mxu0 %v13237_v31 }
 0xbf9   :  { %9874 = vmatprep.subr.bf16.mxu0 %v14933_v17  ;;  %5853 = vmatpush1.bf16.msra.mxu1 %v13158_v41  ;;  %v11088_v41 = vld [vmem:[%s14885_s11 + $0x1f8] sm:$0xff]  }
 0xbfa   :  { %5854 = vmatprep.subr.bf16.mxu1 %v13164_v14  ;;  %v3717_v14 = vadd.f32 %v12893_v48, %v12983_v43 }
 0xbfc   :  { %9875 = vmatpush3.bf16.msra.mxu0 %v13244_v50 }
 0xbfd   :  { %9876 = vmatprep.subr.bf16.mxu0 %v14933_v17  ;;  %5855 = vmatpush1.bf16.msra.mxu1 %v13170_v35  ;;  %v14935_v35 = vld [vmem:[#allocation5_spill] sm:$0xff] }
 0xbfe   :  { %5856 = vmatprep.subr.bf16.mxu1 %v13176_v19  ;;  %v3719_v19 = vadd.f32 %v14935_v35, %v12986_v32  ;;  %v11092_v35 = vld [vmem:[%s14885_s11 + $0x218] sm:$0xff]  }
 0xc00   :  { %9877 = vmatpush3.bf16.msra.mxu0 %v13251_v52 }
 0xc01   :  { %9878 = vmatprep.subr.bf16.mxu0 %v14933_v17  ;;  %5857 = vmatpush1.bf16.msra.mxu1 %v13182_v20 }
 0xc02   :  { %5858 = vmatprep.subr.bf16.mxu1 %v13188_v18 }
 0xc04   :  { %9879 = vmatpush3.bf16.msra.mxu0 %v13258_v23 }
 0xc05   :  { %9880 = vmatprep.subr.bf16.mxu0 %v14933_v17  ;;  %5859 = vmatpush1.bf16.msra.mxu1 %v13194_v56 }
 0xc06   :  { %5860 = vmatprep.subr.bf16.mxu1 %v13200_v11 }
 0xc08   :  { %9881 = vmatpush3.bf16.msra.mxu0 %v13265_v6 }
 0xc09   :  { %9886 = vmatprep.subr.bf16.mxu0 %v14933_v17  ;;  %5861 = vmatpush1.bf16.msra.mxu1 %v13206_v61 }
 0xc0a   :  { %9906 = vmatprep.subr.bf16.mxu1 %v14933_v17 }
 0xc0b   :  { %9883 = vmatmul.mubr.bf16.vlgmr.msra.gmra.mrb[152].mxu0 %v5517_v33  ;;  %v13843_v33 = vld [vmem:[%s14880_s9 + $0x60] ss:$12 sps:$4 sm:$0xff]  }
 0xc0c   :  { %9902 = vmatprep.mubr.msk.bf16.mxu0 %vm11450_vm1, %v14933_v17  ;;  %9887 = vmatpush3.bf16.msra.mxu0 %v11081_v2  ;;  %v13849_v2 = vld [vmem:[%s14880_s9 + $0x7c] ss:$12 sps:$4 sm:$0xff]  }
 0xc0d   :  { %9888 = vmatprep.subr.bf16.mxu0 %v14933_v17 }
 0xc10   :  { %9889 = vmatpush3.bf16.msra.mxu0 %v11082_v27  ;;  %v13855_v27 = vld [vmem:[%s14880_s9 + $0x78] ss:$12 sps:$4 sm:$0xff]  }
 0xc11   :  { %9890 = vmatprep.subr.bf16.mxu0 %v14933_v17 }
 0xc14   :  { %9891 = vmatpush3.bf16.msra.mxu0 %v11083_v54  ;;  %v13861_v54 = vld [vmem:[%s14880_s9 + $0x94] ss:$12 sps:$4 sm:$0xff]  }
 0xc15   :  { %9892 = vmatprep.subr.bf16.mxu0 %v14933_v17 }
 0xc18   :  { %9893 = vmatpush3.bf16.msra.mxu0 %v11084_v4  ;;  %v13867_v4 = vld [vmem:[%s14880_s9 + $0x90] ss:$12 sps:$4 sm:$0xff]  }
 0xc19   :  { %9894 = vmatprep.subr.bf16.mxu0 %v14933_v17 }
 0xc1c   :  { %9895 = vmatpush3.bf16.msra.mxu0 %v11085_v34  ;;  %v13873_v34 = vld [vmem:[%s14880_s9 + $0xac] ss:$12 sps:$4 sm:$0xff]  }
 0xc1d   :  { %9896 = vmatprep.subr.bf16.mxu0 %v14933_v17 }
 0xc20   :  { %9897 = vmatpush3.bf16.msra.mxu0 %v11086_v36  ;;  %v13879_v36 = vld [vmem:[%s14880_s9 + $0xa8] ss:$12 sps:$4 sm:$0xff]  }
 0xc21   :  { %9898 = vmatprep.subr.bf16.mxu0 %v14933_v17 }
 0xc24   :  { %9899 = vmatpush3.bf16.msra.mxu0 %v11087_v60  ;;  %v11089_v60 = vld [vmem:[%s14885_s11 + $0x200] sm:$0xff]  }
 0xc25   :  { %9900 = vmatprep.subr.bf16.mxu0 %v14933_v17 }
 0xc28   :  { %9901 = vmatpush3.bf16.msra.mxu0 %v11088_v41  ;;  %v11090_v41 = vld [vmem:[%s14885_s11 + $0x208] sm:$0xff]  }
 0xc29   :  { %9926 = vmatprep.subr.bf16.mxu0 %v14933_v17 }
 0xcbe   :  { %v5664_v20 = vpop.f32.mrb[80].mxu1 }
 0xcbf   :  { %v5711_v18 = vadd.f32 %v5664_v20, %v3717_v14  ;;  %v5666_v56 = vpop.f32.mrb[81].mxu1  ;;  %v11091_v14 = vld [vmem:[%s14885_s11 + $0x210] sm:$0xff]   ;;  %v11094_v20 = vld [vmem:[%s14885_s11 + $0x228] sm:$0xff]  }
 0xcc0   :  { %v5718_v11 = vadd.f32 %v5666_v56, %v3719_v19  ;;  %v5668_v61 = vpop.f32.mrb[82].mxu1  ;;  %v11093_v19 = vld [vmem:[%s14885_s11 + $0x220] sm:$0xff]   ;;  %v11096_v56 = vld [vmem:[%s14885_s11 + $0x238] sm:$0xff]  }
 0xcc1   :  { %v8843_v10 = vmul.f32 -1.442695, %v5711_v18  ;;  %v5669_v44 = vpop.f32.mrb[83].mxu1  ;;  %v11095_v18 = vld [vmem:[%s14885_s11 + $0x230] sm:$0xff]  }
 0xcc2   :  { %v8844_v28 = vmul.f32 -1.442695, %v5718_v11  ;;  %v14937_v11 = vld [vmem:[#allocation6_spill] sm:$0xff] }
 0xcc3   :  { %11251 = vpow2.f32 %v8843_v10  ;;  %v3723_v61 = vadd.f32 %v14937_v11, %v12983_v43  ;;  %v14938_v10 = vld [vmem:[#allocation7_spill] sm:$0xff] }
 0xcc4   :  { %11253 = vpow2.f32 %v8844_v28  ;;  %v3725_v44 = vadd.f32 %v14938_v10, %v12986_v32  ;;  %v11099_v11 = vld [vmem:[%s14885_s11 + $0x250] sm:$0xff]   ;;  %v11101_v10 = vld [vmem:[%s14885_s11 + $0x260] sm:$0xff]  }
 0xccd   :  { %v11252_v31 = vpop.eup %11251 }
 0xcce   :  { %v5715_v50 = vadd.f32 1.0, %v11252_v31  ;;  %v11254_v52 = vpop.eup %11253 }
 0xccf   :  { %v5722_v23 = vadd.f32 1.0, %v11254_v52 }
 0xcd0   :  { %11255 = vrcp.f32 %v5715_v50 }
 0xcd1   :  { %11257 = vrcp.f32 %v5722_v23 }
 0xcda   :  { %v11256_v30 = vpop.eup %11255 }
 0xcdb   :  { %v11258_v63 = vpop.eup %11257 }
 0xcdc   :  { %v5729_v51 = vsub.f32 1.0, %v11258_v63  ;;  %v5731_v39 = vmul.f32 %v11258_v63, %v13641_v1  ;;  %v13837_v1 = vld [vmem:[%s14880_s9 + $0x64] ss:$12 sps:$4 sm:$0xff]  }
 0xcde   :  { %v5705_v6 = vpop.f32.mrb[152].mxu0 }
 0xcdf   :  { %v5725_v48 = vadd.f32 %v13392_v53, %v5705_v6  ;;  %v9884_v3 = vpop.f32.mrb[153].mxu0 }
 0xce0   :  { %v5708_v55 = vpop.f32.mrb[154].mxu0 }
 0xce1   :  { %v5726_v59 = vmul.f32 %v11256_v30, %v5725_v48  ;;  %v9885_v9 = vpop.f32.mrb[155].mxu0 }
 0xce3   :  { %v5727_v25 = vadd.f32 %v5726_v59, %v3841_v15 }
 0xce5   :  { %11259 = vtanh.f32 %v5727_v25 }
 0xcef   :  { %v11260_v57 = vpop.eup %11259 }
 0xcf0   :  { %v5730_v42 = vmul.f32 %v11260_v57, %v5729_v51  ;;  %v14939_v57 = vld [vmem:[#allocation29_spill] sm:$0xff] }
 0xcf2   :  { %v13722_v45 = vadd.f32 %v5731_v39, %v5730_v42  ;;  %v3846_v42 = vadd.f32 %v14939_v57, %v12998_v49 }
 0xcf4   :  { %v5733_v22 = vpack.c.bf16 %v13722_v45, %v13722_v45 }
 0xcf6   :  { %9903 = vmatmul.mubr.bf16.vlgmr.msra.gmra.mrb[132].mxu0 %v5733_v22  ;;  %5879 = vmatmul.mubr.bf16.vlgmr.msra.gmra.mrb[84].mxu1 %v5733_v22 }
 0xcf7   :  { %9907 = vmatpush3.bf16.msra.mxu1 %v13729_v16  ;;  %9922 = vmatprep.mubr.msk.bf16.mxu1 %vm11450_vm1, %v14933_v17 }
 0xcf8   :  { %9908 = vmatprep.subr.bf16.mxu1 %v14933_v17  ;;  %9942 = vmatprep.mubr.msk.bf16.mxu0 %vm11450_vm1, %v14933_v17 }
 0xcf9   :  { %9927 = vmatpush3.bf16.msra.mxu0 %v11089_v60 }
 0xcfa   :  { %9928 = vmatprep.subr.bf16.mxu0 %v14933_v17 }
 0xcfb   :  { %9909 = vmatpush3.bf16.msra.mxu1 %v13740_v58 }
 0xcfc   :  { %9910 = vmatprep.subr.bf16.mxu1 %v14933_v17 }
 0xcfd   :  { %9929 = vmatpush3.bf16.msra.mxu0 %v11090_v41 }
 0xcfe   :  { %9930 = vmatprep.subr.bf16.mxu0 %v14933_v17 }
 0xcff   :  { %9911 = vmatpush3.bf16.msra.mxu1 %v13747_v62 }
 0xd00   :  { %9912 = vmatprep.subr.bf16.mxu1 %v14933_v17 }
 0xd01   :  { %9931 = vmatpush3.bf16.msra.mxu0 %v11091_v14 }
 0xd02   :  { %9932 = vmatprep.subr.bf16.mxu0 %v14933_v17 }
 0xd03   :  { %9913 = vmatpush3.bf16.msra.mxu1 %v13754_v46 }
 0xd04   :  { %9914 = vmatprep.subr.bf16.mxu1 %v14933_v17 }
 0xd05   :  { %9933 = vmatpush3.bf16.msra.mxu0 %v11092_v35 }
 0xd06   :  { %9934 = vmatprep.subr.bf16.mxu0 %v14933_v17 }
 0xd07   :  { %9915 = vmatpush3.bf16.msra.mxu1 %v13761_v29 }
 0xd08   :  { %9916 = vmatprep.subr.bf16.mxu1 %v14933_v17 }
 0xd09   :  { %9935 = vmatpush3.bf16.msra.mxu0 %v11093_v19 }
 0xd0a   :  { %9936 = vmatprep.subr.bf16.mxu0 %v14933_v17 }
 0xd0b   :  { %9917 = vmatpush3.bf16.msra.mxu1 %v13768_v47 }
 0xd0c   :  { %9918 = vmatprep.subr.bf16.mxu1 %v14933_v17 }
 0xd0d   :  { %9937 = vmatpush3.bf16.msra.mxu0 %v11094_v20 }
 0xd0e   :  { %9938 = vmatprep.subr.bf16.mxu0 %v14933_v17 }
 0xd0f   :  { %9919 = vmatpush3.bf16.msra.mxu1 %v13775_v0 }
 0xd10   :  { %9920 = vmatprep.subr.bf16.mxu1 %v14933_v17 }
 0xd11   :  { %9939 = vmatpush3.bf16.msra.mxu0 %v11095_v18 }
 0xd12   :  { %9940 = vmatprep.subr.bf16.mxu0 %v14933_v17 }
 0xd13   :  { %9921 = vmatpush3.bf16.msra.mxu1 %v13782_v12 }
 0xd14   :  { %6062 = vmatprep.subr.bf16.mxu1 %v13788_v21 }
 0xd15   :  { %9941 = vmatpush3.bf16.msra.mxu0 %v11096_v56  ;;  %v11098_v56 = vld [vmem:[%s14885_s11 + $0x248] sm:$0xff]  }
 0xd16   :  { %9923 = vmatmul.mubr.bf16.vlgmr.msra.gmra.mrb[88].mxu1 %v5733_v22  ;;  %9946 = vmatprep.subr.bf16.mxu0 %v14933_v17 }
 0xd17   :  { %6063 = vmatpush1.bf16.msra.mxu1 %v13794_v37  ;;  %6094 = vmatprep.mubr.bf16.mxu1 %v14934_v24 }
 0xd18   :  { %6064 = vmatprep.subr.bf16.mxu1 %v13801_v38 }
 0xd1b   :  { %6065 = vmatpush1.bf16.msra.mxu1 %v13807_v26 }
 0xd1c   :  { %6066 = vmatprep.subr.bf16.mxu1 %v13813_v8 }
 0xd1f   :  { %6067 = vmatpush1.bf16.msra.mxu1 %v13819_v40 }
 0xd20   :  { %6068 = vmatprep.subr.bf16.mxu1 %v13825_v7 }
 0xd23   :  { %6069 = vmatpush1.bf16.msra.mxu1 %v13831_v13 }
 0xd24   :  { %6070 = vmatprep.subr.bf16.mxu1 %v13837_v1 }
 0xd27   :  { %6071 = vmatpush1.bf16.msra.mxu1 %v13843_v33 }
 0xd28   :  { %6072 = vmatprep.subr.bf16.mxu1 %v13849_v2 }
 0xd2b   :  { %6073 = vmatpush1.bf16.msra.mxu1 %v13855_v27 }
 0xd2c   :  { %6074 = vmatprep.subr.bf16.mxu1 %v13861_v54 }
 0xd2f   :  { %6075 = vmatpush1.bf16.msra.mxu1 %v13867_v4 }
 0xd30   :  { %6076 = vmatprep.subr.bf16.mxu1 %v13873_v34 }
 0xd33   :  { %6077 = vmatpush1.bf16.msra.mxu1 %v13879_v36 }
 0xd34   :  { %6278 = vmatprep.subr.bf16.mxu1 %v13788_v21 }
 0xdc9   :  { %v5880_v28 = vpop.f32.mrb[84].mxu1 }
 0xdca   :  { %v5927_v31 = vadd.f32 %v5880_v28, %v3723_v61  ;;  %v5882_v50 = vpop.f32.mrb[85].mxu1  ;;  %v11100_v61 = vld [vmem:[%s14885_s11 + $0x258] sm:$0xff]   ;;  %v11103_v28 = vld [vmem:[%s14885_s11 + $0x270] sm:$0xff]  }
 0xdcb   :  { %v5934_v52 = vadd.f32 %v5882_v50, %v3725_v44  ;;  %v5884_v23 = vpop.f32.mrb[86].mxu1  ;;  %v11102_v44 = vld [vmem:[%s14885_s11 + $0x268] sm:$0xff]   ;;  %v14940_v50 = vld [vmem:[#allocation8_spill] sm:$0xff] }
 0xdcc   :  { %v8869_v6 = vmul.f32 -1.442695, %v5927_v31  ;;  %v5885_v48 = vpop.f32.mrb[87].mxu1  ;;  %v11104_v31 = vld [vmem:[%s14885_s11 + $0x278] sm:$0xff]   ;;  %v14941_v23 = vld [vmem:[#allocation9_spill] sm:$0xff] }
 0xdcd   :  { %v8870_v3 = vmul.f32 -1.442695, %v5934_v52  ;;  %v3727_v52 = vadd.f32 %v14940_v50, %v12983_v43  ;;  %v11106_v50 = vld [vmem:[%s14885_s11 + $0x288] sm:$0xff]  }
 0xdce   :  { %11261 = vpow2.f32 %v8869_v6  ;;  %v3729_v6 = vadd.f32 %v14941_v23, %v12986_v32  ;;  %v11108_v23 = vld [vmem:[%s14885_s11 + $0x298] sm:$0xff]  }
 0xdcf   :  { %11263 = vpow2.f32 %v8870_v3 }
 0xdd8   :  { %v11262_v30 = vpop.eup %11261 }
 0xdd9   :  { %v5931_v55 = vadd.f32 1.0, %v11262_v30  ;;  %v11264_v5 = vpop.eup %11263 }
 0xdda   :  { %v5938_v15 = vadd.f32 1.0, %v11264_v5 }
 0xddb   :  { %11265 = vrcp.f32 %v5931_v55 }
 0xddc   :  { %11267 = vrcp.f32 %v5938_v15 }
 0xde5   :  { %v11266_v63 = vpop.eup %11265 }
 0xde6   :  { %v11268_v41 = vpop.eup %11267 }
 0xde7   :  { %v5945_v14 = vsub.f32 1.0, %v11268_v41  ;;  %v5947_v20 = vmul.f32 %v11268_v41, %v13722_v45  ;;  %v11097_v45 = vld [vmem:[%s14885_s11 + $0x240] sm:$0xff]  }
 0xde9   :  { %v5921_v59 = vpop.f32.mrb[88].mxu1 }
 0xdea   :  { %v5941_v9 = vadd.f32 %v13392_v53, %v5921_v59  ;;  %v9924_v25 = vpop.f32.mrb[89].mxu1 }
 0xdeb   :  { %v5924_v51 = vpop.f32.mrb[90].mxu1 }
 0xdec   :  { %v5942_v39 = vmul.f32 %v11266_v63, %v5941_v9  ;;  %v9925_v22 = vpop.f32.mrb[91].mxu1 }
 0xdee   :  { %v5943_v60 = vadd.f32 %v5942_v39, %v3846_v42  ;;  %v14003_v39 = vld [vmem:[%s14884_s10] ss:$0 sm:$0xff] }
 0xdf0   :  { %11269 = vtanh.f32 %v5943_v60 }
 0xdfa   :  { %v11270_v35 = vpop.eup %11269 }
 0xdfb   :  { %v5946_v19 = vmul.f32 %v11270_v35, %v5945_v14  ;;  %v14942_v35 = vld [vmem:[#allocation30_spill] sm:$0xff] }
 0xdfd   :  { %v13923_v18 = vadd.f32 %v5947_v20, %v5946_v19  ;;  %v3849_v19 = vadd.f32 %v14942_v35, %v12998_v49 }
 0xdff   :  { %v5949_v53 = vpack.c.bf16 %v13923_v18, %v13923_v18 }
 0xe01   :  { %9943 = vmatmul.mubr.bf16.vlgmr.msra.gmra.mrb[132].mxu0 %v5949_v53  ;;  %6095 = vmatmul.mubr.bf16.vlgmr.msra.gmra.mrb[92].mxu1 %v5949_v53 }
 0xe02   :  { %9947 = vmatpush3.bf16.msra.mxu0 %v13729_v16  ;;  %9962 = vmatprep.mubr.msk.bf16.mxu0 %vm11450_vm1, %v14933_v17 }
 0xe03   :  { %9948 = vmatprep.subr.bf16.mxu0 %v14933_v17  ;;  %6279 = vmatpush1.bf16.msra.mxu1 %v13794_v37 }
 0xe04   :  { %6280 = vmatprep.subr.bf16.mxu1 %v13801_v38  ;;  %6310 = vmatprep.mubr.bf16.mxu1 %v14934_v24 }
 0xe06   :  { %9949 = vmatpush3.bf16.msra.mxu0 %v13740_v58 }
 0xe07   :  { %9950 = vmatprep.subr.bf16.mxu0 %v14933_v17  ;;  %6281 = vmatpush1.bf16.msra.mxu1 %v13807_v26 }
 0xe08   :  { %6282 = vmatprep.subr.bf16.mxu1 %v13813_v8 }
 0xe0a   :  { %9951 = vmatpush3.bf16.msra.mxu0 %v13747_v62 }
 0xe0b   :  { %9952 = vmatprep.subr.bf16.mxu0 %v14933_v17  ;;  %6283 = vmatpush1.bf16.msra.mxu1 %v13819_v40 }
 0xe0c   :  { %6284 = vmatprep.subr.bf16.mxu1 %v13825_v7 }
 0xe0e   :  { %9953 = vmatpush3.bf16.msra.mxu0 %v13754_v46 }
 0xe0f   :  { %9954 = vmatprep.subr.bf16.mxu0 %v14933_v17  ;;  %6285 = vmatpush1.bf16.msra.mxu1 %v13831_v13 }
 0xe10   :  { %6286 = vmatprep.subr.bf16.mxu1 %v13837_v1 }
 0xe12   :  { %9955 = vmatpush3.bf16.msra.mxu0 %v13761_v29 }
 0xe13   :  { %9956 = vmatprep.subr.bf16.mxu0 %v14933_v17  ;;  %6287 = vmatpush1.bf16.msra.mxu1 %v13843_v33 }
 0xe14   :  { %6288 = vmatprep.subr.bf16.mxu1 %v13849_v2 }
 0xe16   :  { %9957 = vmatpush3.bf16.msra.mxu0 %v13768_v47 }
 0xe17   :  { %9958 = vmatprep.subr.bf16.mxu0 %v14933_v17  ;;  %6289 = vmatpush1.bf16.msra.mxu1 %v13855_v27 }
 0xe18   :  { %6290 = vmatprep.subr.bf16.mxu1 %v13861_v54 }
 0xe1a   :  { %9959 = vmatpush3.bf16.msra.mxu0 %v13775_v0 }
 0xe1b   :  { %9960 = vmatprep.subr.bf16.mxu0 %v14933_v17  ;;  %6291 = vmatpush1.bf16.msra.mxu1 %v13867_v4 }
 0xe1c   :  { %6292 = vmatprep.subr.bf16.mxu1 %v13873_v34 }
 0xe1e   :  { %9961 = vmatpush3.bf16.msra.mxu0 %v13782_v12 }
 0xe1f   :  { %9966 = vmatprep.subr.bf16.mxu0 %v14933_v17  ;;  %6293 = vmatpush1.bf16.msra.mxu1 %v13879_v36 }
 0xe20   :  { %9986 = vmatprep.subr.bf16.mxu1 %v14933_v17 }
 0xe21   :  { %9963 = vmatmul.mubr.bf16.vlgmr.msra.gmra.mrb[156].mxu0 %v5949_v53 }
 0xe22   :  { %9982 = vmatprep.mubr.msk.bf16.mxu0 %vm11450_vm1, %v14933_v17  ;;  %9967 = vmatpush3.bf16.msra.mxu0 %v11097_v45 }
 0xe23   :  { %9968 = vmatprep.subr.bf16.mxu0 %v14933_v17 }
 0xe26   :  { %9969 = vmatpush3.bf16.msra.mxu0 %v11098_v56 }
 0xe27   :  { %9970 = vmatprep.subr.bf16.mxu0 %v14933_v17 }
 0xe2a   :  { %9971 = vmatpush3.bf16.msra.mxu0 %v11099_v11 }
 0xe2b   :  { %9972 = vmatprep.subr.bf16.mxu0 %v14933_v17 }
 0xe2e   :  { %9973 = vmatpush3.bf16.msra.mxu0 %v11100_v61 }
 0xe2f   :  { %9974 = vmatprep.subr.bf16.mxu0 %v14933_v17 }
 0xe32   :  { %9975 = vmatpush3.bf16.msra.mxu0 %v11101_v10 }
 0xe33   :  { %9976 = vmatprep.subr.bf16.mxu0 %v14933_v17 }
 0xe36   :  { %9977 = vmatpush3.bf16.msra.mxu0 %v11102_v44 }
 0xe37   :  { %9978 = vmatprep.subr.bf16.mxu0 %v14933_v17 }
 0xe3a   :  { %9979 = vmatpush3.bf16.msra.mxu0 %v11103_v28 }
 0xe3b   :  { %9980 = vmatprep.subr.bf16.mxu0 %v14933_v17 }
 0xe3e   :  { %9981 = vmatpush3.bf16.msra.mxu0 %v11104_v31 }
 0xe3f   :  { %10006 = vmatprep.subr.bf16.mxu0 %v14933_v17 }
 0xed4   :  { %v6096_v48 = vpop.f32.mrb[92].mxu1 }
 0xed5   :  { %v6143_v3 = vadd.f32 %v6096_v48, %v3727_v52  ;;  %v6098_v30 = vpop.f32.mrb[93].mxu1  ;;  %v11107_v52 = vld [vmem:[%s14885_s11 + $0x290] sm:$0xff]   ;;  %v11110_v48 = vld [vmem:[%s14885_s11 + $0x2a8] sm:$0xff]  }
 0xed6   :  { %v6150_v55 = vadd.f32 %v6098_v30, %v3729_v6  ;;  %v6100_v5 = vpop.f32.mrb[94].mxu1  ;;  %v11109_v6 = vld [vmem:[%s14885_s11 + $0x2a0] sm:$0xff]   ;;  %v11112_v30 = vld [vmem:[%s14885_s11 + $0x2b8] sm:$0xff]  }
 0xed7   :  { %v8895_v15 = vmul.f32 -1.442695, %v6143_v3  ;;  %v6101_v59 = vpop.f32.mrb[95].mxu1  ;;  %v11111_v3 = vld [vmem:[%s14885_s11 + $0x2b0] sm:$0xff]  }
 0xed8   :  { %v8896_v9 = vmul.f32 -1.442695, %v6150_v55  ;;  %v14943_v55 = vld [vmem:[#allocation10_spill] sm:$0xff] }
 0xed9   :  { %11271 = vpow2.f32 %v8895_v15  ;;  %v3733_v5 = vadd.f32 %v14943_v55, %v12983_v43  ;;  %v14944_v15 = vld [vmem:[#allocation11_spill] sm:$0xff]  ;;  %v11114_v55 = vld [vmem:[%s14885_s11 + $0x2c8] sm:$0xff]  }
 0xeda   :  { %11273 = vpow2.f32 %v8896_v9  ;;  %v3735_v59 = vadd.f32 %v14944_v15, %v12986_v32  ;;  %v11116_v15 = vld [vmem:[%s14885_s11 + $0x2d8] sm:$0xff]  }
 0xee3   :  { %v11272_v25 = vpop.eup %11271 }
 0xee4   :  { %v6147_v63 = vadd.f32 1.0, %v11272_v25  ;;  %v11274_v51 = vpop.eup %11273 }
 0xee5   :  { %v6154_v57 = vadd.f32 1.0, %v11274_v51 }
 0xee6   :  { %11275 = vrcp.f32 %v6147_v63 }
 0xee7   :  { %11277 = vrcp.f32 %v6154_v57 }
 0xef0   :  { %v11276_v41 = vpop.eup %11275 }
 0xef1   :  { %v11278_v56 = vpop.eup %11277 }
 0xef2   :  { %v6161_v11 = vsub.f32 1.0, %v11278_v56  ;;  %v6163_v44 = vmul.f32 %v11278_v56, %v13923_v18  ;;  %v11105_v18 = vld [vmem:[%s14885_s11 + $0x280] sm:$0xff]  }
 0xef4   :  { %v6137_v42 = vpop.f32.mrb[156].mxu0 }
 0xef5   :  { %v6157_v22 = vadd.f32 %v14003_v39, %v6137_v42  ;;  %v9964_v60 = vpop.f32.mrb[157].mxu0 }
 0xef6   :  { %v6140_v14 = vpop.f32.mrb[158].mxu0 }
 0xef7   :  { %v6158_v20 = vmul.f32 %v11276_v41, %v6157_v22  ;;  %v9965_v53 = vpop.f32.mrb[159].mxu0 }
 0xef9   :  { %v6159_v45 = vadd.f32 %v6158_v20, %v3849_v19 }
 0xefb   :  { %11279 = vtanh.f32 %v6159_v45 }
 0xf05   :  { %v11280_v61 = vpop.eup %11279 }
 0xf06   :  { %v6162_v10 = vmul.f32 %v11280_v61, %v6161_v11  ;;  %v14945_v61 = vld [vmem:[#allocation31_spill] sm:$0xff] }
 0xf08   :  { %v14009_v28 = vadd.f32 %v6163_v44, %v6162_v10  ;;  %v3854_v10 = vadd.f32 %v14945_v61, %v12998_v49 }
 0xf0a   :  { %v6165_v31 = vpack.c.bf16 %v14009_v28, %v14009_v28 }
 0xf0c   :  { %9983 = vmatmul.mubr.bf16.vlgmr.msra.gmra.mrb[132].mxu0 %v6165_v31  ;;  %6311 = vmatmul.mubr.bf16.vlgmr.msra.gmra.mrb[96].mxu1 %v6165_v31 }
 0xf0d   :  { %9987 = vmatpush3.bf16.msra.mxu1 %v13729_v16  ;;  %10002 = vmatprep.mubr.msk.bf16.mxu1 %vm11450_vm1, %v14933_v17 }
 0xf0e   :  { %9988 = vmatprep.subr.bf16.mxu1 %v14933_v17  ;;  %10022 = vmatprep.mubr.msk.bf16.mxu0 %vm11450_vm1, %v14933_v17 }
 0xf0f   :  { %10007 = vmatpush3.bf16.msra.mxu0 %v11105_v18 }
 0xf10   :  { %10008 = vmatprep.subr.bf16.mxu0 %v14933_v17 }
 0xf11   :  { %9989 = vmatpush3.bf16.msra.mxu1 %v13740_v58 }
 0xf12   :  { %9990 = vmatprep.subr.bf16.mxu1 %v14933_v17 }
 0xf13   :  { %10009 = vmatpush3.bf16.msra.mxu0 %v11106_v50 }
 0xf14   :  { %10010 = vmatprep.subr.bf16.mxu0 %v14933_v17 }
 0xf15   :  { %9991 = vmatpush3.bf16.msra.mxu1 %v13747_v62 }
 0xf16   :  { %9992 = vmatprep.subr.bf16.mxu1 %v14933_v17 }
 0xf17   :  { %10011 = vmatpush3.bf16.msra.mxu0 %v11107_v52 }
 0xf18   :  { %10012 = vmatprep.subr.bf16.mxu0 %v14933_v17 }
 0xf19   :  { %9993 = vmatpush3.bf16.msra.mxu1 %v13754_v46 }
 0xf1a   :  { %9994 = vmatprep.subr.bf16.mxu1 %v14933_v17 }
 0xf1b   :  { %10013 = vmatpush3.bf16.msra.mxu0 %v11108_v23 }
 0xf1c   :  { %10014 = vmatprep.subr.bf16.mxu0 %v14933_v17 }
 0xf1d   :  { %9995 = vmatpush3.bf16.msra.mxu1 %v13761_v29 }
 0xf1e   :  { %9996 = vmatprep.subr.bf16.mxu1 %v14933_v17 }
 0xf1f   :  { %10015 = vmatpush3.bf16.msra.mxu0 %v11109_v6 }
 0xf20   :  { %10016 = vmatprep.subr.bf16.mxu0 %v14933_v17 }
 0xf21   :  { %9997 = vmatpush3.bf16.msra.mxu1 %v13768_v47 }
 0xf22   :  { %9998 = vmatprep.subr.bf16.mxu1 %v14933_v17 }
 0xf23   :  { %10017 = vmatpush3.bf16.msra.mxu0 %v11110_v48 }
 0xf24   :  { %10018 = vmatprep.subr.bf16.mxu0 %v14933_v17 }
 0xf25   :  { %9999 = vmatpush3.bf16.msra.mxu1 %v13775_v0 }
 0xf26   :  { %10000 = vmatprep.subr.bf16.mxu1 %v14933_v17 }
 0xf27   :  { %10019 = vmatpush3.bf16.msra.mxu0 %v11111_v3 }
 0xf28   :  { %10020 = vmatprep.subr.bf16.mxu0 %v14933_v17 }
 0xf29   :  { %10001 = vmatpush3.bf16.msra.mxu1 %v13782_v12 }
 0xf2a   :  { %6494 = vmatprep.subr.bf16.mxu1 %v13788_v21 }
 0xf2b   :  { %10021 = vmatpush3.bf16.msra.mxu0 %v11112_v30 }
 0xf2c   :  { %10003 = vmatmul.mubr.bf16.vlgmr.msra.gmra.mrb[100].mxu1 %v6165_v31  ;;  %10026 = vmatprep.subr.bf16.mxu0 %v14933_v17 }
 0xf2d   :  { %6495 = vmatpush1.bf16.msra.mxu1 %v13794_v37  ;;  %6526 = vmatprep.mubr.bf16.mxu1 %v14934_v24 }
 0xf2e   :  { %6496 = vmatprep.subr.bf16.mxu1 %v13801_v38 }
 0xf31   :  { %6497 = vmatpush1.bf16.msra.mxu1 %v13807_v26 }
 0xf32   :  { %6498 = vmatprep.subr.bf16.mxu1 %v13813_v8 }
 0xf35   :  { %6499 = vmatpush1.bf16.msra.mxu1 %v13819_v40 }
 0xf36   :  { %6500 = vmatprep.subr.bf16.mxu1 %v13825_v7 }
 0xf39   :  { %6501 = vmatpush1.bf16.msra.mxu1 %v13831_v13 }
 0xf3a   :  { %6502 = vmatprep.subr.bf16.mxu1 %v13837_v1 }
 0xf3d   :  { %6503 = vmatpush1.bf16.msra.mxu1 %v13843_v33 }
 0xf3e   :  { %6504 = vmatprep.subr.bf16.mxu1 %v13849_v2 }
 0xf41   :  { %6505 = vmatpush1.bf16.msra.mxu1 %v13855_v27 }
 0xf42   :  { %6506 = vmatprep.subr.bf16.mxu1 %v13861_v54 }
 0xf45   :  { %6507 = vmatpush1.bf16.msra.mxu1 %v13867_v4 }
 0xf46   :  { %6508 = vmatprep.subr.bf16.mxu1 %v13873_v34 }
 0xf49   :  { %6509 = vmatpush1.bf16.msra.mxu1 %v13879_v36 }
 0xf4a   :  { %6710 = vmatprep.subr.bf16.mxu1 %v13788_v21 }
 0xfdf   :  { %v6312_v9 = vpop.f32.mrb[96].mxu1 }
 0xfe0   :  { %v6359_v25 = vadd.f32 %v6312_v9, %v3733_v5  ;;  %v6314_v63 = vpop.f32.mrb[97].mxu1  ;;  %v11115_v5 = vld [vmem:[%s14885_s11 + $0x2d0] sm:$0xff]   ;;  %v11118_v9 = vld [vmem:[%s14885_s11 + $0x2e8] sm:$0xff]  }
 0xfe1   :  { %v6366_v51 = vadd.f32 %v6314_v63, %v3735_v59  ;;  %v6316_v57 = vpop.f32.mrb[98].mxu1  ;;  %v11117_v59 = vld [vmem:[%s14885_s11 + $0x2e0] sm:$0xff]   ;;  %v11120_v63 = vld [vmem:[%s14885_s11 + $0x2f8] sm:$0xff]  }
 0xfe2   :  { %v8921_v42 = vmul.f32 -1.442695, %v6359_v25  ;;  %v6317_v22 = vpop.f32.mrb[99].mxu1  ;;  %v11119_v25 = vld [vmem:[%s14885_s11 + $0x2f0] sm:$0xff]  }
 0xfe3   :  { %v8922_v60 = vmul.f32 -1.442695, %v6366_v51  ;;  %v14946_v51 = vld [vmem:[#allocation12_spill] sm:$0xff] }
 0xfe4   :  { %11281 = vpow2.f32 %v8921_v42  ;;  %v3737_v57 = vadd.f32 %v14946_v51, %v12983_v43  ;;  %v14947_v42 = vld [vmem:[#allocation13_spill] sm:$0xff]  ;;  %v11122_v51 = vld [vmem:[%s14885_s11 + $0x308] sm:$0xff]  }
 0xfe5   :  { %11283 = vpow2.f32 %v8922_v60  ;;  %v3739_v22 = vadd.f32 %v14947_v42, %v12986_v32  ;;  %v11125_v42 = vld [vmem:[%s14885_s11 + $0x320] sm:$0xff]  }
 0xfee   :  { %v11282_v41 = vpop.eup %11281 }
 0xfef   :  { %v6363_v14 = vadd.f32 1.0, %v11282_v41  ;;  %v11284_v35 = vpop.eup %11283 }
 0xff0   :  { %v6370_v19 = vadd.f32 1.0, %v11284_v35 }
 0xff1   :  { %11285 = vrcp.f32 %v6363_v14 }
 0xff2   :  { %11287 = vrcp.f32 %v6370_v19 }
 0xffb   :  { %v11286_v56 = vpop.eup %11285 }
 0xffc   :  { %v11288_v50 = vpop.eup %11287 }
 0xffd   :  { %v6377_v52 = vsub.f32 1.0, %v11288_v50  ;;  %v6379_v48 = vmul.f32 %v11288_v50, %v14009_v28  ;;  %v11113_v28 = vld [vmem:[%s14885_s11 + $0x2c0] sm:$0xff]  }
 0xfff   :  { %v6353_v20 = vpop.f32.mrb[100].mxu1 }
0x1000   :  { %v6373_v53 = vadd.f32 %v14003_v39, %v6353_v20  ;;  %v10004_v45 = vpop.f32.mrb[101].mxu1 }
0x1001   :  { %v6356_v11 = vpop.f32.mrb[102].mxu1 }
0x1002   :  { %v6374_v44 = vmul.f32 %v11286_v56, %v6373_v53  ;;  %v10005_v31 = vpop.f32.mrb[103].mxu1 }
0x1004   :  { %v6375_v18 = vadd.f32 %v6374_v44, %v3854_v10 }
0x1006   :  { %11289 = vtanh.f32 %v6375_v18 }
0x1010   :  { %v11290_v23 = vpop.eup %11289 }
0x1011   :  { %v6378_v6 = vmul.f32 %v11290_v23, %v6377_v52  ;;  %v14948_v23 = vld [vmem:[#allocation32_spill] sm:$0xff] }
0x1013   :  { %v14090_v3 = vadd.f32 %v6379_v48, %v6378_v6  ;;  %v3857_v6 = vadd.f32 %v14948_v23, %v12998_v49 }
0x1015   :  { %v6381_v30 = vpack.c.bf16 %v14090_v3, %v14090_v3 }
0x1017   :  { %10023 = vmatmul.mubr.bf16.vlgmr.msra.gmra.mrb[132].mxu0 %v6381_v30  ;;  %6527 = vmatmul.mubr.bf16.vlgmr.msra.gmra.mrb[104].mxu1 %v6381_v30 }
0x1018   :  { %10027 = vmatpush3.bf16.msra.mxu0 %v13729_v16  ;;  %10042 = vmatprep.mubr.msk.bf16.mxu0 %vm11450_vm1, %v14933_v17 }
0x1019   :  { %10028 = vmatprep.subr.bf16.mxu0 %v14933_v17  ;;  %6711 = vmatpush1.bf16.msra.mxu1 %v13794_v37 }
0x101a   :  { %6712 = vmatprep.subr.bf16.mxu1 %v13801_v38  ;;  %6742 = vmatprep.mubr.bf16.mxu1 %v14934_v24 }
0x101c   :  { %10029 = vmatpush3.bf16.msra.mxu0 %v13740_v58 }
0x101d   :  { %10030 = vmatprep.subr.bf16.mxu0 %v14933_v17  ;;  %6713 = vmatpush1.bf16.msra.mxu1 %v13807_v26 }
0x101e   :  { %6714 = vmatprep.subr.bf16.mxu1 %v13813_v8 }
0x1020   :  { %10031 = vmatpush3.bf16.msra.mxu0 %v13747_v62 }
0x1021   :  { %10032 = vmatprep.subr.bf16.mxu0 %v14933_v17  ;;  %6715 = vmatpush1.bf16.msra.mxu1 %v13819_v40 }
0x1022   :  { %6716 = vmatprep.subr.bf16.mxu1 %v13825_v7 }
0x1024   :  { %10033 = vmatpush3.bf16.msra.mxu0 %v13754_v46 }
0x1025   :  { %10034 = vmatprep.subr.bf16.mxu0 %v14933_v17  ;;  %6717 = vmatpush1.bf16.msra.mxu1 %v13831_v13 }
0x1026   :  { %6718 = vmatprep.subr.bf16.mxu1 %v13837_v1 }
0x1028   :  { %10035 = vmatpush3.bf16.msra.mxu0 %v13761_v29 }
0x1029   :  { %10036 = vmatprep.subr.bf16.mxu0 %v14933_v17  ;;  %6719 = vmatpush1.bf16.msra.mxu1 %v13843_v33 }
0x102a   :  { %6720 = vmatprep.subr.bf16.mxu1 %v13849_v2 }
0x102c   :  { %10037 = vmatpush3.bf16.msra.mxu0 %v13768_v47 }
0x102d   :  { %10038 = vmatprep.subr.bf16.mxu0 %v14933_v17  ;;  %6721 = vmatpush1.bf16.msra.mxu1 %v13855_v27 }
0x102e   :  { %6722 = vmatprep.subr.bf16.mxu1 %v13861_v54 }
0x1030   :  { %10039 = vmatpush3.bf16.msra.mxu0 %v13775_v0 }
0x1031   :  { %10040 = vmatprep.subr.bf16.mxu0 %v14933_v17  ;;  %6723 = vmatpush1.bf16.msra.mxu1 %v13867_v4 }
0x1032   :  { %6724 = vmatprep.subr.bf16.mxu1 %v13873_v34 }
0x1034   :  { %10041 = vmatpush3.bf16.msra.mxu0 %v13782_v12 }
0x1035   :  { %10046 = vmatprep.subr.bf16.mxu0 %v14933_v17  ;;  %6725 = vmatpush1.bf16.msra.mxu1 %v13879_v36 }
0x1036   :  { %10066 = vmatprep.subr.bf16.mxu1 %v14933_v17 }
0x1037   :  { %10043 = vmatmul.mubr.bf16.vlgmr.msra.gmra.mrb[160].mxu0 %v6381_v30 }
0x1038   :  { %10062 = vmatprep.mubr.msk.bf16.mxu0 %vm11450_vm1, %v14933_v17  ;;  %10047 = vmatpush3.bf16.msra.mxu0 %v11113_v28 }
0x1039   :  { %10048 = vmatprep.subr.bf16.mxu0 %v14933_v17 }
0x103c   :  { %10049 = vmatpush3.bf16.msra.mxu0 %v11114_v55 }
0x103d   :  { %10050 = vmatprep.subr.bf16.mxu0 %v14933_v17 }
0x1040   :  { %10051 = vmatpush3.bf16.msra.mxu0 %v11115_v5 }
0x1041   :  { %10052 = vmatprep.subr.bf16.mxu0 %v14933_v17 }
0x1044   :  { %10053 = vmatpush3.bf16.msra.mxu0 %v11116_v15 }
0x1045   :  { %10054 = vmatprep.subr.bf16.mxu0 %v14933_v17 }
0x1048   :  { %10055 = vmatpush3.bf16.msra.mxu0 %v11117_v59 }
0x1049   :  { %10056 = vmatprep.subr.bf16.mxu0 %v14933_v17 }
0x104c   :  { %10057 = vmatpush3.bf16.msra.mxu0 %v11118_v9 }
0x104d   :  { %10058 = vmatprep.subr.bf16.mxu0 %v14933_v17 }
0x1050   :  { %10059 = vmatpush3.bf16.msra.mxu0 %v11119_v25 }
0x1051   :  { %10060 = vmatprep.subr.bf16.mxu0 %v14933_v17 }
0x1054   :  { %10061 = vmatpush3.bf16.msra.mxu0 %v11120_v63 }
0x1055   :  { %10086 = vmatprep.subr.bf16.mxu0 %v14933_v17 }
0x10ea   :  { %v6528_v60 = vpop.f32.mrb[104].mxu1 }
0x10eb   :  { %v6575_v41 = vadd.f32 %v6528_v60, %v3737_v57  ;;  %v6530_v14 = vpop.f32.mrb[105].mxu1  ;;  %v11123_v57 = vld [vmem:[%s14885_s11 + $0x310] sm:$0xff]  }
0x10ec   :  { %v6582_v35 = vadd.f32 %v6530_v14, %v3739_v22  ;;  %v6532_v19 = vpop.f32.mrb[106].mxu1  ;;  %v11126_v22 = vld [vmem:[%s14885_s11 + $0x328] sm:$0xff]   ;;  %v11127_v60 = vld [vmem:[%s14885_s11 + $0x330] sm:$0xff]  }
0x10ed   :  { %v8947_v20 = vmul.f32 -1.442695, %v6575_v41  ;;  %v6533_v53 = vpop.f32.mrb[107].mxu1  ;;  %v11128_v41 = vld [vmem:[%s14885_s11 + $0x338] sm:$0xff]   ;;  %v14949_v14 = vld [vmem:[#allocation14_spill] sm:$0xff]  ;;  %v14950_v19 = vld [vmem:[#allocation15_spill] sm:$0xff] }
0x10ee   :  { %v8948_v45 = vmul.f32 -1.442695, %v6582_v35  ;;  %v3743_v35 = vadd.f32 %v14949_v14, %v12983_v43 }
0x10ef   :  { %11291 = vpow2.f32 %v8947_v20  ;;  %v3745_v20 = vadd.f32 %v14950_v19, %v12986_v32 }
0x10f0   :  { %11293 = vpow2.f32 %v8948_v45 }
0x10f9   :  { %v11292_v56 = vpop.eup %11291 }
0x10fa   :  { %v6579_v11 = vadd.f32 1.0, %v11292_v56  ;;  %v11294_v61 = vpop.eup %11293 }
0x10fb   :  { %v6586_v10 = vadd.f32 1.0, %v11294_v61 }
0x10fc   :  { %11295 = vrcp.f32 %v6579_v11 }
0x10fd   :  { %11297 = vrcp.f32 %v6586_v10 }
0x1106   :  { %v11296_v50 = vpop.eup %11295 }
0x1107   :  { %v11298_v55 = vpop.eup %11297 }
0x1108   :  { %v6593_v5 = vsub.f32 1.0, %v11298_v55  ;;  %v6595_v9 = vmul.f32 %v11298_v55, %v14090_v3  ;;  %v11121_v3 = vld [vmem:[%s14885_s11 + $0x300] sm:$0xff]  }
0x110a   :  { %v6569_v44 = vpop.f32.mrb[160].mxu0 }
0x110b   :  { %v6589_v31 = vadd.f32 %v14003_v39, %v6569_v44  ;;  %v10044_v18 = vpop.f32.mrb[161].mxu0 }
0x110c   :  { %v6572_v52 = vpop.f32.mrb[162].mxu0 }
0x110d   :  { %v6590_v48 = vmul.f32 %v11296_v50, %v6589_v31  ;;  %v10045_v30 = vpop.f32.mrb[163].mxu0 }
0x110f   :  { %v6591_v28 = vadd.f32 %v6590_v48, %v3857_v6 }
0x1111   :  { %11299 = vtanh.f32 %v6591_v28 }
0x111b   :  { %v11300_v15 = vpop.eup %11299 }
0x111c   :  { %v6594_v59 = vmul.f32 %v11300_v15, %v6593_v5  ;;  %v14951_v5 = vld [vmem:[#allocation33_spill] sm:$0xff] }
0x111d   :  { %v3862_v15 = vadd.f32 %v14951_v5, %v12998_v49  ;;  %v14379_v5 = vld [vmem:[%s14880_s9 + $0x80] ss:$12 sps:$4 sm:$0xff]  }
0x111e   :  { %v14171_v25 = vadd.f32 %v6595_v9, %v6594_v59 }
0x1120   :  { %v6597_v63 = vpack.c.bf16 %v14171_v25, %v14171_v25 }
0x1122   :  { %10063 = vmatmul.mubr.bf16.vlgmr.msra.gmra.mrb[132].mxu0 %v6597_v63  ;;  %6743 = vmatmul.mubr.bf16.vlgmr.msra.gmra.mrb[108].mxu1 %v6597_v63 }
0x1123   :  { %10067 = vmatpush3.bf16.msra.mxu1 %v13729_v16  ;;  %10082 = vmatprep.mubr.msk.bf16.mxu1 %vm11450_vm1, %v14933_v17 }
0x1124   :  { %10068 = vmatprep.subr.bf16.mxu1 %v14933_v17  ;;  %10102 = vmatprep.mubr.msk.bf16.mxu0 %vm11450_vm1, %v14933_v17 }
0x1125   :  { %10087 = vmatpush3.bf16.msra.mxu0 %v11121_v3 }
0x1126   :  { %10088 = vmatprep.subr.bf16.mxu0 %v14933_v17 }
0x1127   :  { %10069 = vmatpush3.bf16.msra.mxu1 %v13740_v58 }
0x1128   :  { %10070 = vmatprep.subr.bf16.mxu1 %v14933_v17 }
0x1129   :  { %10089 = vmatpush3.bf16.msra.mxu0 %v11122_v51 }
0x112a   :  { %10090 = vmatprep.subr.bf16.mxu0 %v14933_v17 }
0x112b   :  { %10071 = vmatpush3.bf16.msra.mxu1 %v13747_v62 }
0x112c   :  { %10072 = vmatprep.subr.bf16.mxu1 %v14933_v17 }
0x112d   :  { %10091 = vmatpush3.bf16.msra.mxu0 %v11123_v57 }
0x112e   :  { %10092 = vmatprep.subr.bf16.mxu0 %v14933_v17 }
0x112f   :  { %10073 = vmatpush3.bf16.msra.mxu1 %v13754_v46 }
0x1130   :  { %10074 = vmatprep.subr.bf16.mxu1 %v14933_v17 }
0x1133   :  { %10075 = vmatpush3.bf16.msra.mxu1 %v13761_v29 }
0x1134   :  { %10076 = vmatprep.subr.bf16.mxu1 %v14933_v17 }
0x1137   :  { %10077 = vmatpush3.bf16.msra.mxu1 %v13768_v47 }
0x1138   :  { %10078 = vmatprep.subr.bf16.mxu1 %v14933_v17 }
0x113b   :  { %10079 = vmatpush3.bf16.msra.mxu1 %v13775_v0 }
0x113c   :  { %10080 = vmatprep.subr.bf16.mxu1 %v14933_v17 }
0x113f   :  { %10081 = vmatpush3.bf16.msra.mxu1 %v13782_v12 }
0x1140   :  { %6926 = vmatprep.subr.bf16.mxu1 %v13788_v21 }
0x1142   :  { %10083 = vmatmul.mubr.bf16.vlgmr.msra.gmra.mrb[112].mxu1 %v6597_v63 }
0x1143   :  { %6927 = vmatpush1.bf16.msra.mxu1 %v13794_v37  ;;  %6958 = vmatprep.mubr.bf16.mxu1 %v14934_v24 }
0x1144   :  { %6928 = vmatprep.subr.bf16.mxu1 %v13801_v38 }
0x1147   :  { %6929 = vmatpush1.bf16.msra.mxu1 %v13807_v26 }
0x1148   :  { %6930 = vmatprep.subr.bf16.mxu1 %v13813_v8 }
0x114b   :  { %6931 = vmatpush1.bf16.msra.mxu1 %v13819_v40 }
0x114c   :  { %6932 = vmatprep.subr.bf16.mxu1 %v13825_v7 }
0x114f   :  { %6933 = vmatpush1.bf16.msra.mxu1 %v13831_v13 }
0x1150   :  { %6934 = vmatprep.subr.bf16.mxu1 %v13837_v1 }
0x1153   :  { %6935 = vmatpush1.bf16.msra.mxu1 %v13843_v33 }
0x1154   :  { %6936 = vmatprep.subr.bf16.mxu1 %v13849_v2 }
0x1157   :  { %6937 = vmatpush1.bf16.msra.mxu1 %v13855_v27 }
0x1158   :  { %6938 = vmatprep.subr.bf16.mxu1 %v13861_v54 }
0x115b   :  { %6939 = vmatpush1.bf16.msra.mxu1 %v13867_v4 }
0x115c   :  { %6940 = vmatprep.subr.bf16.mxu1 %v13873_v34 }
0x115f   :  { %6941 = vmatpush1.bf16.msra.mxu1 %v13879_v36 }
0x1160   :  { %7142 = vmatprep.subr.bf16.mxu1 %v13788_v21  ;;  %v11124_v21 = vld [vmem:[%s14885_s11 + $0x318] sm:$0xff]  }
0x1161   :  { %10093 = vmatpush3.bf16.msra.mxu0 %v11124_v21 }
0x1162   :  { %10094 = vmatprep.subr.bf16.mxu0 %v14933_v17 }
0x1165   :  { %10095 = vmatpush3.bf16.msra.mxu0 %v11125_v42 }
0x1166   :  { %10096 = vmatprep.subr.bf16.mxu0 %v14933_v17 }
0x1169   :  { %10097 = vmatpush3.bf16.msra.mxu0 %v11126_v22 }
0x116a   :  { %10098 = vmatprep.subr.bf16.mxu0 %v14933_v17 }
0x116d   :  { %10099 = vmatpush3.bf16.msra.mxu0 %v11127_v60 }
0x116e   :  { %10100 = vmatprep.subr.bf16.mxu0 %v14933_v17 }
0x1171   :  { %10101 = vmatpush3.bf16.msra.mxu0 %v11128_v41 }
0x1172   :  { %10106 = vmatprep.subr.bf16.mxu0 %v14933_v17 }
0x11f5   :  { %v6744_v53 = vpop.f32.mrb[108].mxu1 }
0x11f6   :  { %v6791_v45 = vadd.f32 %v6744_v53, %v3743_v35  ;;  %v6746_v56 = vpop.f32.mrb[109].mxu1  ;;  %v14954_v53 = vld [vmem:[#allocation34_spill] sm:$0xff] }
0x11f7   :  { %v6798_v11 = vadd.f32 %v6746_v56, %v3745_v20  ;;  %v6748_v61 = vpop.f32.mrb[110].mxu1 }
0x11f8   :  { %v8973_v10 = vmul.f32 -1.442695, %v6791_v45  ;;  %v6749_v44 = vpop.f32.mrb[111].mxu1  ;;  %v3865_v45 = vadd.f32 %v14954_v53, %v12998_v49 }
0x11f9   :  { %v8974_v31 = vmul.f32 -1.442695, %v6798_v11 }
0x11fa   :  { %11301 = vpow2.f32 %v8973_v10 }
0x11fb   :  { %11303 = vpow2.f32 %v8974_v31 }
0x1204   :  { %v11302_v18 = vpop.eup %11301 }
0x1205   :  { %v6795_v50 = vadd.f32 1.0, %v11302_v18  ;;  %v11304_v52 = vpop.eup %11303 }
0x1206   :  { %v6802_v23 = vadd.f32 1.0, %v11304_v52 }
0x1207   :  { %11305 = vrcp.f32 %v6795_v50 }
0x1208   :  { %11307 = vrcp.f32 %v6802_v23 }
0x1211   :  { %v11306_v28 = vpop.eup %11305 }
0x1212   :  { %v11308_v3 = vpop.eup %11307 }
0x1213   :  { %v6809_v51 = vsub.f32 1.0, %v11308_v3  ;;  %v6811_v42 = vmul.f32 %v11308_v3, %v14171_v25  ;;  %v14412_v3 = vld [vmem:[%s14880_s9 + $0x1c] ss:$12 sps:$4 sm:$0xff]  }
0x1215   :  { %v6785_v6 = vpop.f32.mrb[112].mxu1 }
0x1216   :  { %v6805_v48 = vadd.f32 %v14003_v39, %v6785_v6  ;;  %v10084_v30 = vpop.f32.mrb[113].mxu1  ;;  %v14340_v6 = vld [vmem:[%s14880_s9 + $0x8] ss:$12 sps:$4 sm:$0xff]  }
0x1217   :  { %v6788_v55 = vpop.f32.mrb[114].mxu1  ;;  %v14358_v30 = vld [vmem:[%s14880_s9 + $0x38] ss:$12 sps:$4 sm:$0xff]  }
0x1218   :  { %v6806_v59 = vmul.f32 %v11306_v28, %v6805_v48  ;;  %v10085_v9 = vpop.f32.mrb[115].mxu1  ;;  %v14351_v48 = vld [vmem:[%s14880_s9 + $0x20] ss:$12 sps:$4 sm:$0xff]   ;;  %v14365_v28 = vld [vmem:[%s14880_s9 + $0x50] ss:$12 sps:$4 sm:$0xff]  }
0x1219   :  { %v14372_v55 = vld [vmem:[%s14880_s9 + $0x68] ss:$12 sps:$4 sm:$0xff]   ;;  %v14399_v9 = vld [vmem:[%s14880_s9 + $0x4] ss:$12 sps:$4 sm:$0xff]  }
0x121a   :  { %v6807_v63 = vadd.f32 %v6806_v59, %v3862_v15  ;;  %v14386_v15 = vld [vmem:[%s14880_s9 + $0x98] ss:$12 sps:$4 sm:$0xff]   ;;  %v14393_v59 = vld [vmem:[%s14880_s9 + $0xb0] ss:$12 sps:$4 sm:$0xff]  }
0x121c   :  { %11309 = vtanh.f32 %v6807_v63  ;;  %v14405_v63 = vld [vmem:[%s14880_s9] ss:$12 sps:$4 sm:$0xff]  }
0x1226   :  { %v11310_v57 = vpop.eup %11309 }
0x1227   :  { %v6810_v21 = vmul.f32 %v11310_v57, %v6809_v51  ;;  %v14418_v51 = vld [vmem:[%s14880_s9 + $0x18] ss:$12 sps:$4 sm:$0xff]   ;;  %v14424_v57 = vld [vmem:[%s14880_s9 + $0x34] ss:$12 sps:$4 sm:$0xff]  }
0x1229   :  { %v14252_v22 = vadd.f32 %v6811_v42, %v6810_v21  ;;  %v14430_v21 = vld [vmem:[%s14880_s9 + $0x30] ss:$12 sps:$4 sm:$0xff]   ;;  %v14436_v42 = vld [vmem:[%s14880_s9 + $0x4c] ss:$12 sps:$4 sm:$0xff]  }
0x122b   :  { %v6813_v60 = vpack.c.bf16 %v14252_v22, %v14252_v22 }
0x122d   :  { %10103 = vmatmul.mubr.bf16.vlgmr.msra.gmra.mrb[132].mxu0 %v6813_v60  ;;  %6959 = vmatmul.mubr.bf16.vlgmr.msra.gmra.mrb[116].mxu1 %v6813_v60 }
0x122e   :  { %10107 = vmatpush3.bf16.msra.mxu0 %v13729_v16  ;;  %10122 = vmatprep.mubr.msk.bf16.mxu0 %vm11450_vm1, %v14933_v17  ;;  %v11129_v16 = vld [vmem:[%s14885_s11 + $0x340] sm:$0xff]  }
0x122f   :  { %10108 = vmatprep.subr.bf16.mxu0 %v14933_v17  ;;  %7143 = vmatpush1.bf16.msra.mxu1 %v13794_v37  ;;  %v14952_v37 = vld [vmem:[#allocation16_spill] sm:$0xff] }
0x1230   :  { %7144 = vmatprep.subr.bf16.mxu1 %v13801_v38  ;;  %7174 = vmatprep.mubr.bf16.mxu1 %v14934_v24  ;;  %v3747_v38 = vadd.f32 %v14952_v37, %v12983_v43  ;;  %v11138_v37 = vld [vmem:[%s14885_s11 + $0x388] sm:$0xff]  }
0x1232   :  { %10109 = vmatpush3.bf16.msra.mxu0 %v13740_v58  ;;  %v11130_v58 = vld [vmem:[%s14885_s11 + $0x348] sm:$0xff]  }
0x1233   :  { %10110 = vmatprep.subr.bf16.mxu0 %v14933_v17  ;;  %7145 = vmatpush1.bf16.msra.mxu1 %v13807_v26  ;;  %v14953_v26 = vld [vmem:[#allocation17_spill] sm:$0xff] }
0x1234   :  { %7146 = vmatprep.subr.bf16.mxu1 %v13813_v8  ;;  %v3749_v8 = vadd.f32 %v14953_v26, %v12986_v32  ;;  %v11140_v26 = vld [vmem:[%s14885_s11 + $0x398] sm:$0xff]  }
0x1236   :  { %10111 = vmatpush3.bf16.msra.mxu0 %v13747_v62  ;;  %v11131_v62 = vld [vmem:[%s14885_s11 + $0x350] sm:$0xff]  }
0x1237   :  { %10112 = vmatprep.subr.bf16.mxu0 %v14933_v17  ;;  %7147 = vmatpush1.bf16.msra.mxu1 %v13819_v40 }
0x1238   :  { %7148 = vmatprep.subr.bf16.mxu1 %v13825_v7 }
0x123a   :  { %10113 = vmatpush3.bf16.msra.mxu0 %v13754_v46  ;;  %v11132_v46 = vld [vmem:[%s14885_s11 + $0x358] sm:$0xff]  }
0x123b   :  { %10114 = vmatprep.subr.bf16.mxu0 %v14933_v17  ;;  %7149 = vmatpush1.bf16.msra.mxu1 %v13831_v13 }
0x123c   :  { %7150 = vmatprep.subr.bf16.mxu1 %v13837_v1 }
0x123e   :  { %10115 = vmatpush3.bf16.msra.mxu0 %v13761_v29  ;;  %v11133_v29 = vld [vmem:[%s14885_s11 + $0x360] sm:$0xff]  }
0x123f   :  { %10116 = vmatprep.subr.bf16.mxu0 %v14933_v17  ;;  %7151 = vmatpush1.bf16.msra.mxu1 %v13843_v33 }
0x1240   :  { %7152 = vmatprep.subr.bf16.mxu1 %v13849_v2 }
0x1242   :  { %10117 = vmatpush3.bf16.msra.mxu0 %v13768_v47  ;;  %v11134_v47 = vld [vmem:[%s14885_s11 + $0x368] sm:$0xff]  }
0x1243   :  { %10118 = vmatprep.subr.bf16.mxu0 %v14933_v17  ;;  %7153 = vmatpush1.bf16.msra.mxu1 %v13855_v27 }
0x1244   :  { %7154 = vmatprep.subr.bf16.mxu1 %v13861_v54 }
0x1246   :  { %10119 = vmatpush3.bf16.msra.mxu0 %v13775_v0  ;;  %v11135_v0 = vld [vmem:[%s14885_s11 + $0x370] sm:$0xff]  }
0x1247   :  { %10120 = vmatprep.subr.bf16.mxu0 %v14933_v17  ;;  %7155 = vmatpush1.bf16.msra.mxu1 %v13867_v4 }
0x1248   :  { %7156 = vmatprep.subr.bf16.mxu1 %v13873_v34 }
0x124a   :  { %10121 = vmatpush3.bf16.msra.mxu0 %v13782_v12  ;;  %v11136_v12 = vld [vmem:[%s14885_s11 + $0x378] sm:$0xff]  }
0x124b   :  { %10126 = vmatprep.subr.bf16.mxu0 %v14933_v17  ;;  %7157 = vmatpush1.bf16.msra.mxu1 %v13879_v36 }
0x124c   :  { %10146 = vmatprep.subr.bf16.mxu1 %v14933_v17 }
0x124d   :  { %10123 = vmatmul.mubr.bf16.vlgmr.msra.gmra.mrb[164].mxu0 %v6813_v60  ;;  %v14448_v60 = vld [vmem:[%s14880_s9 + $0x64] ss:$12 sps:$4 sm:$0xff]  }
0x124e   :  { %10142 = vmatprep.mubr.msk.bf16.mxu0 %vm11450_vm1, %v14933_v17  ;;  %10127 = vmatpush3.bf16.msra.mxu0 %v11129_v16  ;;  %v14454_v16 = vld [vmem:[%s14880_s9 + $0x60] ss:$12 sps:$4 sm:$0xff]  }
0x124f   :  { %10128 = vmatprep.subr.bf16.mxu0 %v14933_v17 }
0x1252   :  { %10129 = vmatpush3.bf16.msra.mxu0 %v11130_v58  ;;  %v14460_v58 = vld [vmem:[%s14880_s9 + $0x7c] ss:$12 sps:$4 sm:$0xff]  }
0x1253   :  { %10130 = vmatprep.subr.bf16.mxu0 %v14933_v17 }
0x1256   :  { %10131 = vmatpush3.bf16.msra.mxu0 %v11131_v62  ;;  %v14466_v62 = vld [vmem:[%s14880_s9 + $0x78] ss:$12 sps:$4 sm:$0xff]  }
0x1257   :  { %10132 = vmatprep.subr.bf16.mxu0 %v14933_v17 }
0x125a   :  { %10133 = vmatpush3.bf16.msra.mxu0 %v11132_v46  ;;  %v14472_v46 = vld [vmem:[%s14880_s9 + $0x94] ss:$12 sps:$4 sm:$0xff]  }
0x125b   :  { %10134 = vmatprep.subr.bf16.mxu0 %v14933_v17 }
0x125e   :  { %10135 = vmatpush3.bf16.msra.mxu0 %v11133_v29  ;;  %v14478_v29 = vld [vmem:[%s14880_s9 + $0x90] ss:$12 sps:$4 sm:$0xff]  }
0x125f   :  { %10136 = vmatprep.subr.bf16.mxu0 %v14933_v17 }
0x1262   :  { %10137 = vmatpush3.bf16.msra.mxu0 %v11134_v47  ;;  %v14484_v47 = vld [vmem:[%s14880_s9 + $0xac] ss:$12 sps:$4 sm:$0xff]  }
0x1263   :  { %10138 = vmatprep.subr.bf16.mxu0 %v14933_v17 }
0x1266   :  { %10139 = vmatpush3.bf16.msra.mxu0 %v11135_v0  ;;  %v14490_v0 = vld [vmem:[%s14880_s9 + $0xa8] ss:$12 sps:$4 sm:$0xff]  }
0x1267   :  { %10140 = vmatprep.subr.bf16.mxu0 %v14933_v17 }
0x126a   :  { %10141 = vmatpush3.bf16.msra.mxu0 %v11136_v12  ;;  %v11137_v12 = vld [vmem:[%s14885_s11 + $0x380] sm:$0xff]  }
0x126b   :  { %10166 = vmatprep.subr.bf16.mxu0 %v14933_v17 }
0x1300   :  { %v6960_v40 = vpop.f32.mrb[116].mxu1 }
0x1301   :  { %v7007_v7 = vadd.f32 %v6960_v40, %v3747_v38  ;;  %v6962_v13 = vpop.f32.mrb[117].mxu1  ;;  %v11139_v38 = vld [vmem:[%s14885_s11 + $0x390] sm:$0xff]   ;;  %v11142_v40 = vld [vmem:[%s14885_s11 + $0x3a8] sm:$0xff]  }
0x1302   :  { %v7014_v1 = vadd.f32 %v6962_v13, %v3749_v8  ;;  %v6964_v33 = vpop.f32.mrb[118].mxu1  ;;  %v11141_v8 = vld [vmem:[%s14885_s11 + $0x3a0] sm:$0xff]   ;;  %v11144_v13 = vld [vmem:[%s14885_s11 + $0x3b8] sm:$0xff]  }
0x1303   :  { %v8999_v2 = vmul.f32 -1.442695, %v7007_v7  ;;  %v6965_v27 = vpop.f32.mrb[119].mxu1  ;;  %v11143_v7 = vld [vmem:[%s14885_s11 + $0x3b0] sm:$0xff]  }
0x1304   :  { %v9000_v54 = vmul.f32 -1.442695, %v7014_v1  ;;  %v14955_v1 = vld [vmem:[#allocation18_spill] sm:$0xff] }
0x1305   :  { %11311 = vpow2.f32 %v8999_v2  ;;  %v3753_v33 = vadd.f32 %v14955_v1, %v12983_v43  ;;  %v14956_v2 = vld [vmem:[#allocation19_spill] sm:$0xff] }
0x1306   :  { %11313 = vpow2.f32 %v9000_v54  ;;  %v3755_v27 = vadd.f32 %v14956_v2, %v12986_v32  ;;  %v11147_v1 = vld [vmem:[%s14885_s11 + $0x3d0] sm:$0xff]   ;;  %v11149_v2 = vld [vmem:[%s14885_s11 + $0x3e0] sm:$0xff]  }
0x130f   :  { %v11312_v4 = vpop.eup %11311 }
0x1310   :  { %v7011_v34 = vadd.f32 1.0, %v11312_v4  ;;  %v11314_v36 = vpop.eup %11313 }
0x1311   :  { %v7018_v25 = vadd.f32 1.0, %v11314_v36 }
0x1312   :  { %11315 = vrcp.f32 %v7011_v34 }
0x1313   :  { %11317 = vrcp.f32 %v7018_v25 }
0x131c   :  { %v11316_v19 = vpop.eup %11315 }
0x131d   :  { %v11318_v10 = vpop.eup %11317 }
0x131e   :  { %v7025_v44 = vsub.f32 1.0, %v11318_v10  ;;  %v7027_v50 = vmul.f32 %v11318_v10, %v14252_v22  ;;  %v14442_v22 = vld [vmem:[%s14880_s9 + $0x48] ss:$12 sps:$4 sm:$0xff]  }
0x1320   :  { %v7001_v41 = vpop.f32.mrb[164].mxu0 }
0x1321   :  { %v7021_v14 = vadd.f32 %v14003_v39, %v7001_v41  ;;  %v10124_v35 = vpop.f32.mrb[165].mxu0 }
0x1322   :  { %v7004_v20 = vpop.f32.mrb[166].mxu0 }
0x1323   :  { %v7022_v56 = vmul.f32 %v11316_v19, %v7021_v14  ;;  %v10125_v11 = vpop.f32.mrb[167].mxu0 }
0x1325   :  { %v7023_v61 = vadd.f32 %v7022_v56, %v3865_v45 }
0x1327   :  { %11319 = vtanh.f32 %v7023_v61 }
0x1331   :  { %v11320_v31 = vpop.eup %11319 }
0x1332   :  { %v7026_v18 = vmul.f32 %v11320_v31, %v7025_v44  ;;  %v14957_v31 = vld [vmem:[#allocation35_spill] sm:$0xff] }
0x1334   :  { %v14333_v52 = vadd.f32 %v7027_v50, %v7026_v18  ;;  %v3870_v18 = vadd.f32 %v14957_v31, %v12998_v49 }
0x1336   :  { %v7029_v23 = vpack.c.bf16 %v14333_v52, %v14333_v52 }
0x1338   :  { %10143 = vmatmul.mubr.bf16.vlgmr.msra.gmra.mrb[132].mxu0 %v7029_v23  ;;  %7175 = vmatmul.mubr.bf16.vlgmr.msra.gmra.mrb[120].mxu1 %v7029_v23 }
0x1339   :  { %10147 = vmatpush3.bf16.msra.mxu1 %v14340_v6  ;;  %10162 = vmatprep.mubr.msk.bf16.mxu1 %vm11450_vm1, %v14933_v17 }
0x133a   :  { %10148 = vmatprep.subr.bf16.mxu1 %v14933_v17  ;;  %10182 = vmatprep.mubr.msk.bf16.mxu0 %vm11450_vm1, %v14933_v17 }
0x133b   :  { %10167 = vmatpush3.bf16.msra.mxu0 %v11137_v12 }
0x133c   :  { %10168 = vmatprep.subr.bf16.mxu0 %v14933_v17 }
0x133d   :  { %10149 = vmatpush3.bf16.msra.mxu1 %v14351_v48 }
0x133e   :  { %10150 = vmatprep.subr.bf16.mxu1 %v14933_v17 }
0x133f   :  { %10169 = vmatpush3.bf16.msra.mxu0 %v11138_v37 }
0x1340   :  { %10170 = vmatprep.subr.bf16.mxu0 %v14933_v17 }
0x1341   :  { %10151 = vmatpush3.bf16.msra.mxu1 %v14358_v30 }
0x1342   :  { %10152 = vmatprep.subr.bf16.mxu1 %v14933_v17 }
0x1343   :  { %10171 = vmatpush3.bf16.msra.mxu0 %v11139_v38 }
0x1344   :  { %10172 = vmatprep.subr.bf16.mxu0 %v14933_v17 }
0x1345   :  { %10153 = vmatpush3.bf16.msra.mxu1 %v14365_v28 }
0x1346   :  { %10154 = vmatprep.subr.bf16.mxu1 %v14933_v17 }
0x1347   :  { %10173 = vmatpush3.bf16.msra.mxu0 %v11140_v26 }
0x1348   :  { %10174 = vmatprep.subr.bf16.mxu0 %v14933_v17 }
0x1349   :  { %10155 = vmatpush3.bf16.msra.mxu1 %v14372_v55 }
0x134a   :  { %10156 = vmatprep.subr.bf16.mxu1 %v14933_v17 }
0x134b   :  { %10175 = vmatpush3.bf16.msra.mxu0 %v11141_v8 }
0x134c   :  { %10176 = vmatprep.subr.bf16.mxu0 %v14933_v17 }
0x134d   :  { %10157 = vmatpush3.bf16.msra.mxu1 %v14379_v5 }
0x134e   :  { %10158 = vmatprep.subr.bf16.mxu1 %v14933_v17 }
0x134f   :  { %10177 = vmatpush3.bf16.msra.mxu0 %v11142_v40 }
0x1350   :  { %10178 = vmatprep.subr.bf16.mxu0 %v14933_v17 }
0x1351   :  { %10159 = vmatpush3.bf16.msra.mxu1 %v14386_v15 }
0x1352   :  { %10160 = vmatprep.subr.bf16.mxu1 %v14933_v17 }
0x1353   :  { %10179 = vmatpush3.bf16.msra.mxu0 %v11143_v7 }
0x1354   :  { %10180 = vmatprep.subr.bf16.mxu0 %v14933_v17 }
0x1355   :  { %10161 = vmatpush3.bf16.msra.mxu1 %v14393_v59 }
0x1356   :  { %7358 = vmatprep.subr.bf16.mxu1 %v14399_v9 }
0x1357   :  { %10181 = vmatpush3.bf16.msra.mxu0 %v11144_v13  ;;  %v11146_v13 = vld [vmem:[%s14885_s11 + $0x3c8] sm:$0xff]  }
0x1358   :  { %10163 = vmatmul.mubr.bf16.vlgmr.msra.gmra.mrb[124].mxu1 %v7029_v23  ;;  %10186 = vmatprep.subr.bf16.mxu0 %v14933_v17 }
0x1359   :  { %7359 = vmatpush1.bf16.msra.mxu1 %v14405_v63  ;;  %7390 = vmatprep.mubr.bf16.mxu1 %v14934_v24 }
0x135a   :  { %7360 = vmatprep.subr.bf16.mxu1 %v14412_v3 }
0x135d   :  { %7361 = vmatpush1.bf16.msra.mxu1 %v14418_v51 }
0x135e   :  { %7362 = vmatprep.subr.bf16.mxu1 %v14424_v57 }
0x1361   :  { %7363 = vmatpush1.bf16.msra.mxu1 %v14430_v21 }
0x1362   :  { %7364 = vmatprep.subr.bf16.mxu1 %v14436_v42 }
0x1365   :  { %7365 = vmatpush1.bf16.msra.mxu1 %v14442_v22 }
0x1366   :  { %7366 = vmatprep.subr.bf16.mxu1 %v14448_v60 }
0x1369   :  { %7367 = vmatpush1.bf16.msra.mxu1 %v14454_v16 }
0x136a   :  { %7368 = vmatprep.subr.bf16.mxu1 %v14460_v58 }
0x136d   :  { %7369 = vmatpush1.bf16.msra.mxu1 %v14466_v62 }
0x136e   :  { %7370 = vmatprep.subr.bf16.mxu1 %v14472_v46 }
0x1371   :  { %7371 = vmatpush1.bf16.msra.mxu1 %v14478_v29 }
0x1372   :  { %7372 = vmatprep.subr.bf16.mxu1 %v14484_v47 }
0x1375   :  { %7373 = vmatpush1.bf16.msra.mxu1 %v14490_v0 }
0x1376   :  { %7574 = vmatprep.subr.bf16.mxu1 %v14399_v9 }
0x140b   :  { %v7176_v54 = vpop.f32.mrb[120].mxu1 }
0x140c   :  { %v7223_v4 = vadd.f32 %v7176_v54, %v3753_v33  ;;  %v7178_v34 = vpop.f32.mrb[121].mxu1  ;;  %v11148_v33 = vld [vmem:[%s14885_s11 + $0x3d8] sm:$0xff]   ;;  %v11151_v54 = vld [vmem:[%s14885_s11 + $0x3f0] sm:$0xff]  }
0x140d   :  { %v7230_v36 = vadd.f32 %v7178_v34, %v3755_v27  ;;  %v7180_v25 = vpop.f32.mrb[122].mxu1  ;;  %v11150_v27 = vld [vmem:[%s14885_s11 + $0x3e8] sm:$0xff]   ;;  %v14958_v34 = vld [vmem:[#allocation20_spill] sm:$0xff] }
0x140e   :  { %v9025_v41 = vmul.f32 -1.442695, %v7223_v4  ;;  %v7181_v14 = vpop.f32.mrb[123].mxu1  ;;  %v11152_v4 = vld [vmem:[%s14885_s11 + $0x3f8] sm:$0xff]   ;;  %v14959_v25 = vld [vmem:[#allocation21_spill] sm:$0xff] }
0x140f   :  { %v9026_v35 = vmul.f32 -1.442695, %v7230_v36  ;;  %v3757_v36 = vadd.f32 %v14958_v34, %v12983_v43  ;;  %v11154_v34 = vld [vmem:[%s14885_s11 + $0x408] sm:$0xff]  }
0x1410   :  { %11321 = vpow2.f32 %v9025_v41  ;;  %v3759_v41 = vadd.f32 %v14959_v25, %v12986_v32  ;;  %v11156_v25 = vld [vmem:[%s14885_s11 + $0x418] sm:$0xff]  }
0x1411   :  { %11323 = vpow2.f32 %v9026_v35 }
0x141a   :  { %v11322_v19 = vpop.eup %11321 }
0x141b   :  { %v7227_v20 = vadd.f32 1.0, %v11322_v19  ;;  %v11324_v53 = vpop.eup %11323 }
0x141c   :  { %v7234_v45 = vadd.f32 1.0, %v11324_v53 }
0x141d   :  { %11325 = vrcp.f32 %v7227_v20 }
0x141e   :  { %11327 = vrcp.f32 %v7234_v45 }
0x1427   :  { %v11326_v10 = vpop.eup %11325 }
0x1428   :  { %v11328_v37 = vpop.eup %11327 }
0x1429   :  { %v7241_v38 = vsub.f32 1.0, %v11328_v37  ;;  %v7243_v40 = vmul.f32 %v11328_v37, %v14333_v52  ;;  %v11145_v52 = vld [vmem:[%s14885_s11 + $0x3c0] sm:$0xff]  }
0x142b   :  { %v7217_v56 = vpop.f32.mrb[124].mxu1 }
0x142c   :  { %v7237_v11 = vadd.f32 %v14003_v39, %v7217_v56  ;;  %v10164_v61 = vpop.f32.mrb[125].mxu1 }
0x142d   :  { %v7220_v44 = vpop.f32.mrb[126].mxu1 }
0x142e   :  { %v7238_v50 = vmul.f32 %v11326_v10, %v7237_v11  ;;  %v10165_v23 = vpop.f32.mrb[127].mxu1 }
0x1430   :  { %v7239_v12 = vadd.f32 %v7238_v50, %v3870_v18  ;;  %v14614_v50 = vld [vmem:[%s14884_s10] ss:$0 sm:$0xff] }
0x1432   :  { %11329 = vtanh.f32 %v7239_v12 }
0x143c   :  { %v11330_v26 = vpop.eup %11329 }
0x143d   :  { %v7242_v8 = vmul.f32 %v11330_v26, %v7241_v38  ;;  %v14960_v26 = vld [vmem:[#allocation36_spill] sm:$0xff] }
0x143f   :  { %v14534_v7 = vadd.f32 %v7243_v40, %v7242_v8  ;;  %v3873_v8 = vadd.f32 %v14960_v26, %v12998_v49 }
0x1441   :  { %v7245_v39 = vpack.c.bf16 %v14534_v7, %v14534_v7 }
0x1443   :  { %10183 = vmatmul.mubr.bf16.vlgmr.msra.gmra.mrb[132].mxu0 %v7245_v39  ;;  %7391 = vmatmul.mubr.bf16.vlgmr.msra.gmra.mrb[128].mxu1 %v7245_v39 }
0x1444   :  { %10187 = vmatpush3.bf16.msra.mxu0 %v14340_v6  ;;  %10202 = vmatprep.mubr.msk.bf16.mxu0 %vm11450_vm1, %v14933_v17 }
0x1445   :  { %10188 = vmatprep.subr.bf16.mxu0 %v14933_v17  ;;  %7575 = vmatpush1.bf16.msra.mxu1 %v14405_v63 }
0x1446   :  { %7576 = vmatprep.subr.bf16.mxu1 %v14412_v3  ;;  %7606 = vmatprep.mubr.bf16.mxu1 %v14934_v24 }
0x1448   :  { %10189 = vmatpush3.bf16.msra.mxu0 %v14351_v48 }
0x1449   :  { %10190 = vmatprep.subr.bf16.mxu0 %v14933_v17  ;;  %7577 = vmatpush1.bf16.msra.mxu1 %v14418_v51 }
0x144a   :  { %7578 = vmatprep.subr.bf16.mxu1 %v14424_v57 }
0x144c   :  { %10191 = vmatpush3.bf16.msra.mxu0 %v14358_v30 }
0x144d   :  { %10192 = vmatprep.subr.bf16.mxu0 %v14933_v17  ;;  %7579 = vmatpush1.bf16.msra.mxu1 %v14430_v21 }
0x144e   :  { %7580 = vmatprep.subr.bf16.mxu1 %v14436_v42 }
0x1450   :  { %10193 = vmatpush3.bf16.msra.mxu0 %v14365_v28 }
0x1451   :  { %10194 = vmatprep.subr.bf16.mxu0 %v14933_v17  ;;  %7581 = vmatpush1.bf16.msra.mxu1 %v14442_v22 }
0x1452   :  { %7582 = vmatprep.subr.bf16.mxu1 %v14448_v60 }
0x1454   :  { %10195 = vmatpush3.bf16.msra.mxu0 %v14372_v55 }
0x1455   :  { %10196 = vmatprep.subr.bf16.mxu0 %v14933_v17  ;;  %7583 = vmatpush1.bf16.msra.mxu1 %v14454_v16 }
0x1456   :  { %7584 = vmatprep.subr.bf16.mxu1 %v14460_v58 }
0x1458   :  { %10197 = vmatpush3.bf16.msra.mxu0 %v14379_v5 }
0x1459   :  { %10198 = vmatprep.subr.bf16.mxu0 %v14933_v17  ;;  %7585 = vmatpush1.bf16.msra.mxu1 %v14466_v62 }
0x145a   :  { %7586 = vmatprep.subr.bf16.mxu1 %v14472_v46 }
0x145c   :  { %10199 = vmatpush3.bf16.msra.mxu0 %v14386_v15 }
0x145d   :  { %10200 = vmatprep.subr.bf16.mxu0 %v14933_v17  ;;  %7587 = vmatpush1.bf16.msra.mxu1 %v14478_v29 }
0x145e   :  { %7588 = vmatprep.subr.bf16.mxu1 %v14484_v47 }
0x1460   :  { %10201 = vmatpush3.bf16.msra.mxu0 %v14393_v59 }
0x1461   :  { %10206 = vmatprep.subr.bf16.mxu0 %v14933_v17  ;;  %7589 = vmatpush1.bf16.msra.mxu1 %v14490_v0 }
0x1462   :  { %10226 = vmatprep.subr.bf16.mxu1 %v14933_v17 }
0x1463   :  { %10203 = vmatmul.mubr.bf16.vlgmr.msra.gmra.mrb[168].mxu0 %v7245_v39 }
0x1464   :  { %10222 = vmatprep.mubr.msk.bf16.mxu0 %vm11450_vm1, %v14933_v17  ;;  %10207 = vmatpush3.bf16.msra.mxu0 %v11145_v52 }
0x1465   :  { %10208 = vmatprep.subr.bf16.mxu0 %v14933_v17 }
0x1468   :  { %10209 = vmatpush3.bf16.msra.mxu0 %v11146_v13 }
0x1469   :  { %10210 = vmatprep.subr.bf16.mxu0 %v14933_v17 }
0x146c   :  { %10211 = vmatpush3.bf16.msra.mxu0 %v11147_v1 }
0x146d   :  { %10212 = vmatprep.subr.bf16.mxu0 %v14933_v17 }
0x1470   :  { %10213 = vmatpush3.bf16.msra.mxu0 %v11148_v33 }
0x1471   :  { %10214 = vmatprep.subr.bf16.mxu0 %v14933_v17 }
0x1474   :  { %10215 = vmatpush3.bf16.msra.mxu0 %v11149_v2 }
0x1475   :  { %10216 = vmatprep.subr.bf16.mxu0 %v14933_v17 }
0x1478   :  { %10217 = vmatpush3.bf16.msra.mxu0 %v11150_v27 }
0x1479   :  { %10218 = vmatprep.subr.bf16.mxu0 %v14933_v17 }
0x147c   :  { %10219 = vmatpush3.bf16.msra.mxu0 %v11151_v54 }
0x147d   :  { %10220 = vmatprep.subr.bf16.mxu0 %v14933_v17 }
0x1480   :  { %10221 = vmatpush3.bf16.msra.mxu0 %v11152_v4 }
0x1481   :  { %10246 = vmatprep.subr.bf16.mxu0 %v14933_v17 }
0x1516   :  { %v7392_v14 = vpop.f32.mrb[128].mxu1 }
0x1517   :  { %v7439_v35 = vadd.f32 %v7392_v14, %v3757_v36  ;;  %v7394_v19 = vpop.f32.mrb[129].mxu1  ;;  %v11155_v36 = vld [vmem:[%s14885_s11 + $0x410] sm:$0xff]   ;;  %v11158_v14 = vld [vmem:[%s14885_s11 + $0x428] sm:$0xff]  }
0x1518   :  { %v7446_v20 = vadd.f32 %v7394_v19, %v3759_v41  ;;  %v7396_v53 = vpop.f32.mrb[130].mxu1  ;;  %v11157_v41 = vld [vmem:[%s14885_s11 + $0x420] sm:$0xff]   ;;  %v11160_v19 = vld [vmem:[%s14885_s11 + $0x438] sm:$0xff]  }
0x1519   :  { %v9051_v45 = vmul.f32 -1.442695, %v7439_v35  ;;  %v7397_v56 = vpop.f32.mrb[131].mxu1  ;;  %v11159_v35 = vld [vmem:[%s14885_s11 + $0x430] sm:$0xff]  }
0x151a   :  { %v9052_v11 = vmul.f32 -1.442695, %v7446_v20  ;;  %v14961_v20 = vld [vmem:[#allocation22_spill] sm:$0xff] }
0x151b   :  { %11331 = vpow2.f32 %v9051_v45  ;;  %v3763_v53 = vadd.f32 %v14961_v20, %v12983_v43  ;;  %v14962_v45 = vld [vmem:[#allocation23_spill] sm:$0xff] }
0x151c   :  { %11333 = vpow2.f32 %v9052_v11  ;;  %v3765_v56 = vadd.f32 %v14962_v45, %v12986_v32 }
0x1525   :  { %v11332_v61 = vpop.eup %11331 }
0x1526   :  { %v7443_v10 = vadd.f32 1.0, %v11332_v61  ;;  %v11334_v44 = vpop.eup %11333 }
0x1527   :  { %v7450_v31 = vadd.f32 1.0, %v11334_v44 }
0x1528   :  { %11335 = vrcp.f32 %v7443_v10 }
0x1529   :  { %11337 = vrcp.f32 %v7450_v31 }
0x1532   :  { %v11336_v37 = vpop.eup %11335 }
0x1533   :  { %v11338_v13 = vpop.eup %11337 }
0x1534   :  { %v7457_v1 = vsub.f32 1.0, %v11338_v13  ;;  %v7459_v27 = vmul.f32 %v11338_v13, %v14534_v7  ;;  %v11153_v7 = vld [vmem:[%s14885_s11 + $0x400] sm:$0xff]  }
0x1536   :  { %v7433_v18 = vpop.f32.mrb[168].mxu0 }
0x1537   :  { %v7453_v23 = vadd.f32 %v14614_v50, %v7433_v18  ;;  %v10204_v12 = vpop.f32.mrb[169].mxu0 }
0x1538   :  { %v7436_v38 = vpop.f32.mrb[170].mxu0 }
0x1539   :  { %v7454_v40 = vmul.f32 %v11336_v37, %v7453_v23  ;;  %v10205_v39 = vpop.f32.mrb[171].mxu0 }
0x153b   :  { %v7455_v52 = vadd.f32 %v7454_v40, %v3873_v8 }
0x153d   :  { %11339 = vtanh.f32 %v7455_v52 }
0x1547   :  { %v11340_v33 = vpop.eup %11339 }
0x1548   :  { %v7458_v2 = vmul.f32 %v11340_v33, %v7457_v1  ;;  %v14963_v33 = vld [vmem:[#allocation37_spill] sm:$0xff] }
0x154a   :  { %v14620_v54 = vadd.f32 %v7459_v27, %v7458_v2  ;;  %v3878_v2 = vadd.f32 %v14963_v33, %v12998_v49 }
0x154c   :  { %v7461_v4 = vpack.c.bf16 %v14620_v54, %v14620_v54 }
0x154e   :  { %10223 = vmatmul.mubr.bf16.vlgmr.msra.gmra.mrb[132].mxu0 %v7461_v4  ;;  %7607 = vmatmul.mubr.bf16.vlgmr.msra.gmra.mrb[132].mxu1 %v7461_v4 }
0x154f   :  { %10227 = vmatpush3.bf16.msra.mxu1 %v14340_v6  ;;  %10242 = vmatprep.mubr.msk.bf16.mxu1 %vm11450_vm1, %v14933_v17 }
0x1550   :  { %10228 = vmatprep.subr.bf16.mxu1 %v14933_v17  ;;  %10262 = vmatprep.mubr.msk.bf16.mxu0 %vm11450_vm1, %v14933_v17 }
0x1551   :  { %10247 = vmatpush3.bf16.msra.mxu0 %v11153_v7 }
0x1552   :  { %10248 = vmatprep.subr.bf16.mxu0 %v14933_v17 }
0x1553   :  { %10229 = vmatpush3.bf16.msra.mxu1 %v14351_v48 }
0x1554   :  { %10230 = vmatprep.subr.bf16.mxu1 %v14933_v17 }
0x1555   :  { %10249 = vmatpush3.bf16.msra.mxu0 %v11154_v34 }
0x1556   :  { %10250 = vmatprep.subr.bf16.mxu0 %v14933_v17 }
0x1557   :  { %10231 = vmatpush3.bf16.msra.mxu1 %v14358_v30 }
0x1558   :  { %10232 = vmatprep.subr.bf16.mxu1 %v14933_v17 }
0x1559   :  { %10251 = vmatpush3.bf16.msra.mxu0 %v11155_v36 }
0x155a   :  { %10252 = vmatprep.subr.bf16.mxu0 %v14933_v17 }
0x155b   :  { %10233 = vmatpush3.bf16.msra.mxu1 %v14365_v28 }
0x155c   :  { %10234 = vmatprep.subr.bf16.mxu1 %v14933_v17 }
0x155d   :  { %10253 = vmatpush3.bf16.msra.mxu0 %v11156_v25 }
0x155e   :  { %10254 = vmatprep.subr.bf16.mxu0 %v14933_v17 }
0x155f   :  { %10235 = vmatpush3.bf16.msra.mxu1 %v14372_v55 }
0x1560   :  { %10236 = vmatprep.subr.bf16.mxu1 %v14933_v17 }
0x1561   :  { %10255 = vmatpush3.bf16.msra.mxu0 %v11157_v41 }
0x1562   :  { %10256 = vmatprep.subr.bf16.mxu0 %v14933_v17 }
0x1563   :  { %10237 = vmatpush3.bf16.msra.mxu1 %v14379_v5 }
0x1564   :  { %10238 = vmatprep.subr.bf16.mxu1 %v14933_v17 }
0x1565   :  { %10257 = vmatpush3.bf16.msra.mxu0 %v11158_v14 }
0x1566   :  { %10258 = vmatprep.subr.bf16.mxu0 %v14933_v17 }
0x1567   :  { %10239 = vmatpush3.bf16.msra.mxu1 %v14386_v15 }
0x1568   :  { %10240 = vmatprep.subr.bf16.mxu1 %v14933_v17 }
0x1569   :  { %10259 = vmatpush3.bf16.msra.mxu0 %v11159_v35 }
0x156a   :  { %10260 = vmatprep.subr.bf16.mxu0 %v14933_v17 }
0x156b   :  { %10241 = vmatpush3.bf16.msra.mxu1 %v14393_v59 }
0x156c   :  { %7790 = vmatprep.subr.bf16.mxu1 %v14399_v9 }
0x156d   :  { %10261 = vmatpush3.bf16.msra.mxu0 %v11160_v19 }
0x156e   :  { %10243 = vmatmul.mubr.bf16.vlgmr.msra.gmra.mrb[136].mxu1 %v7461_v4  ;;  %10266 = vmatprep.subr.bf16.mxu0 %v14933_v17 }
0x156f   :  { %7791 = vmatpush1.bf16.msra.mxu1 %v14405_v63  ;;  %7822 = vmatprep.mubr.bf16.mxu1 %v14934_v24 }
0x1570   :  { %7792 = vmatprep.subr.bf16.mxu1 %v14412_v3 }
0x1573   :  { %7793 = vmatpush1.bf16.msra.mxu1 %v14418_v51 }
0x1574   :  { %7794 = vmatprep.subr.bf16.mxu1 %v14424_v57 }
0x1577   :  { %7795 = vmatpush1.bf16.msra.mxu1 %v14430_v21 }
0x1578   :  { %7796 = vmatprep.subr.bf16.mxu1 %v14436_v42 }
0x157b   :  { %7797 = vmatpush1.bf16.msra.mxu1 %v14442_v22 }
0x157c   :  { %7798 = vmatprep.subr.bf16.mxu1 %v14448_v60 }
0x157f   :  { %7799 = vmatpush1.bf16.msra.mxu1 %v14454_v16 }
0x1580   :  { %7800 = vmatprep.subr.bf16.mxu1 %v14460_v58 }
0x1583   :  { %7801 = vmatpush1.bf16.msra.mxu1 %v14466_v62 }
0x1584   :  { %7802 = vmatprep.subr.bf16.mxu1 %v14472_v46 }
0x1587   :  { %7803 = vmatpush1.bf16.msra.mxu1 %v14478_v29 }
0x1588   :  { %7804 = vmatprep.subr.bf16.mxu1 %v14484_v47 }
0x158b   :  { %7805 = vmatpush1.bf16.msra.mxu1 %v14490_v0 }
0x158c   :  { %10306 = vmatprep.subr.bf16.mxu1 %v14933_v17 }
0x1621   :  { %v7608_v11 = vpop.f32.mrb[132].mxu1 }
0x1622   :  { %v7655_v61 = vadd.f32 %v7608_v11, %v3763_v53  ;;  %v7610_v10 = vpop.f32.mrb[133].mxu1  ;;  %v14965_v53 = vld [vmem:[#allocation25_spill] sm:$0xff] }
0x1623   :  { %v7662_v44 = vadd.f32 %v7610_v10, %v3765_v56  ;;  %v7612_v31 = vpop.f32.mrb[134].mxu1  ;;  %v3769_v45 = vadd.f32 %v14965_v53, %v12986_v32 }
0x1624   :  { %v9077_v18 = vmul.f32 -1.442695, %v7655_v61  ;;  %v7613_v23 = vpop.f32.mrb[135].mxu1 }
0x1625   :  { %v9078_v12 = vmul.f32 -1.442695, %v7662_v44 }
0x1626   :  { %11341 = vpow2.f32 %v9077_v18 }
0x1627   :  { %11343 = vpow2.f32 %v9078_v12 }
0x1630   :  { %v11342_v37 = vpop.eup %11341 }
0x1631   :  { %v7659_v38 = vadd.f32 1.0, %v11342_v37  ;;  %v11344_v26 = vpop.eup %11343 }
0x1632   :  { %v7666_v8 = vadd.f32 1.0, %v11344_v26 }
0x1633   :  { %11345 = vrcp.f32 %v7659_v38 }
0x1634   :  { %11347 = vrcp.f32 %v7666_v8 }
0x163d   :  { %v11346_v13 = vpop.eup %11345 }
0x163e   :  { %v11348_v34 = vpop.eup %11347 }
0x163f   :  { %v7673_v36 = vsub.f32 1.0, %v11348_v34  ;;  %v7675_v14 = vmul.f32 %v11348_v34, %v14620_v54  ;;  %v14964_v54 = vld [vmem:[#allocation24_spill] sm:$0xff] }
0x1640   :  { %v3767_v20 = vadd.f32 %v14964_v54, %v12983_v43 }
0x1641   :  { %v7649_v40 = vpop.f32.mrb[136].mxu1 }
0x1642   :  { %v7669_v39 = vadd.f32 %v14614_v50, %v7649_v40  ;;  %v10244_v52 = vpop.f32.mrb[137].mxu1 }
0x1643   :  { %v7652_v1 = vpop.f32.mrb[138].mxu1 }
0x1644   :  { %v7670_v27 = vmul.f32 %v11346_v13, %v7669_v39  ;;  %v10245_v4 = vpop.f32.mrb[139].mxu1  ;;  %v14966_v13 = vld [vmem:[#allocation38_spill] sm:$0xff] }
0x1645   :  { %v3881_v1 = vadd.f32 %v14966_v13, %v12998_v49 }
0x1646   :  { %v7671_v7 = vadd.f32 %v7670_v27, %v3878_v2 }
0x1648   :  { %11349 = vtanh.f32 %v7671_v7 }
0x1652   :  { %v11350_v25 = vpop.eup %11349 }
0x1653   :  { %v7674_v41 = vmul.f32 %v11350_v25, %v7673_v36 }
0x1655   :  { %v14701_v35 = vadd.f32 %v7675_v14, %v7674_v41 }
0x1657   :  { %v7677_v19 = vpack.c.bf16 %v14701_v35, %v14701_v35 }
0x1659   :  { %10263 = vmatmul.mubr.bf16.vlgmr.msra.gmra.mrb[132].mxu0 %v7677_v19  ;;  %7823 = vmatmul.mubr.bf16.vlgmr.msra.gmra.mrb[140].mxu1 %v7677_v19 }
0x165a   :  { %10267 = vmatpush3.bf16.msra.mxu0 %v14340_v6  ;;  %10282 = vmatprep.mubr.msk.bf16.mxu0 %vm11450_vm1, %v14933_v17 }
0x165b   :  { %10268 = vmatprep.subr.bf16.mxu0 %v14933_v17  ;;  %10307 = vmatpush3.bf16.msra.mxu1 %v14340_v6  ;;  %v11161_v6 = vld [vmem:[%s14885_s11 + $0x440] sm:$0xff]  }
0x165c   :  { %10308 = vmatprep.subr.bf16.mxu1 %v14933_v17  ;;  %10322 = vmatprep.mubr.msk.bf16.mxu1 %vm11450_vm1, %v14933_v17 }
0x165e   :  { %10269 = vmatpush3.bf16.msra.mxu0 %v14351_v48 }
0x165f   :  { %10270 = vmatprep.subr.bf16.mxu0 %v14933_v17  ;;  %10309 = vmatpush3.bf16.msra.mxu1 %v14351_v48  ;;  %v11162_v48 = vld [vmem:[%s14885_s11 + $0x448] sm:$0xff]  }
0x1660   :  { %10310 = vmatprep.subr.bf16.mxu1 %v14933_v17 }
0x1662   :  { %10271 = vmatpush3.bf16.msra.mxu0 %v14358_v30 }
0x1663   :  { %10272 = vmatprep.subr.bf16.mxu0 %v14933_v17  ;;  %10311 = vmatpush3.bf16.msra.mxu1 %v14358_v30  ;;  %v11163_v30 = vld [vmem:[%s14885_s11 + $0x450] sm:$0xff]  }
0x1664   :  { %10312 = vmatprep.subr.bf16.mxu1 %v14933_v17 }
0x1666   :  { %10273 = vmatpush3.bf16.msra.mxu0 %v14365_v28 }
0x1667   :  { %10274 = vmatprep.subr.bf16.mxu0 %v14933_v17  ;;  %10313 = vmatpush3.bf16.msra.mxu1 %v14365_v28  ;;  %v11164_v28 = vld [vmem:[%s14885_s11 + $0x458] sm:$0xff]  }
0x1668   :  { %10314 = vmatprep.subr.bf16.mxu1 %v14933_v17 }
0x166a   :  { %10275 = vmatpush3.bf16.msra.mxu0 %v14372_v55 }
0x166b   :  { %10276 = vmatprep.subr.bf16.mxu0 %v14933_v17  ;;  %10315 = vmatpush3.bf16.msra.mxu1 %v14372_v55  ;;  %v11165_v55 = vld [vmem:[%s14885_s11 + $0x460] sm:$0xff]  }
0x166c   :  { %10316 = vmatprep.subr.bf16.mxu1 %v14933_v17 }
0x166e   :  { %10277 = vmatpush3.bf16.msra.mxu0 %v14379_v5 }
0x166f   :  { %10278 = vmatprep.subr.bf16.mxu0 %v14933_v17  ;;  %10317 = vmatpush3.bf16.msra.mxu1 %v14379_v5  ;;  %v11166_v5 = vld [vmem:[%s14885_s11 + $0x468] sm:$0xff]  }
0x1670   :  { %10318 = vmatprep.subr.bf16.mxu1 %v14933_v17 }
0x1672   :  { %10279 = vmatpush3.bf16.msra.mxu0 %v14386_v15 }
0x1673   :  { %10280 = vmatprep.subr.bf16.mxu0 %v14933_v17  ;;  %10319 = vmatpush3.bf16.msra.mxu1 %v14386_v15  ;;  %v11167_v15 = vld [vmem:[%s14885_s11 + $0x470] sm:$0xff]  }
0x1674   :  { %10320 = vmatprep.subr.bf16.mxu1 %v14933_v17 }
0x1676   :  { %10281 = vmatpush3.bf16.msra.mxu0 %v14393_v59 }
0x1677   :  { %10286 = vmatprep.subr.bf16.mxu0 %v14933_v17  ;;  %10321 = vmatpush3.bf16.msra.mxu1 %v14393_v59  ;;  %v11168_v59 = vld [vmem:[%s14885_s11 + $0x478] sm:$0xff]  }
0x1678   :  { %10346 = vmatprep.subr.bf16.mxu1 %v14933_v17 }
0x1679   :  { %10283 = vmatmul.mubr.bf16.vlgmr.msra.gmra.mrb[172].mxu0 %v7677_v19 }
0x167a   :  { %10302 = vmatprep.mubr.msk.bf16.mxu0 %vm11450_vm1, %v14933_v17  ;;  %10287 = vmatpush3.bf16.msra.mxu0 %v11161_v6 }
0x167b   :  { %10288 = vmatprep.subr.bf16.mxu0 %v14933_v17 }
0x167e   :  { %10289 = vmatpush3.bf16.msra.mxu0 %v11162_v48 }
0x167f   :  { %10290 = vmatprep.subr.bf16.mxu0 %v14933_v17 }
0x1682   :  { %10291 = vmatpush3.bf16.msra.mxu0 %v11163_v30 }
0x1683   :  { %10292 = vmatprep.subr.bf16.mxu0 %v14933_v17 }
0x1686   :  { %10293 = vmatpush3.bf16.msra.mxu0 %v11164_v28 }
0x1687   :  { %10294 = vmatprep.subr.bf16.mxu0 %v14933_v17 }
0x168a   :  { %10295 = vmatpush3.bf16.msra.mxu0 %v11165_v55 }
0x168b   :  { %10296 = vmatprep.subr.bf16.mxu0 %v14933_v17 }
0x168e   :  { %10297 = vmatpush3.bf16.msra.mxu0 %v11166_v5 }
0x168f   :  { %10298 = vmatprep.subr.bf16.mxu0 %v14933_v17 }
0x1692   :  { %10299 = vmatpush3.bf16.msra.mxu0 %v11167_v15 }
0x1693   :  { %10300 = vmatprep.subr.bf16.mxu0 %v14933_v17 }
0x1696   :  { %10301 = vmatpush3.bf16.msra.mxu0 %v11168_v59 }
0x1697   :  { %8006 = vmatprep.subr.bf16.mxu0 %v14399_v9 }
0x172c   :  { %v7824_v56 = vpop.f32.mrb[140].mxu1 }
0x172d   :  { %v7871_v11 = vadd.f32 %v7824_v56, %v3767_v20  ;;  %v7826_v61 = vpop.f32.mrb[141].mxu1 }
0x172e   :  { %v7878_v10 = vadd.f32 %v7826_v61, %v3769_v45  ;;  %v7828_v44 = vpop.f32.mrb[142].mxu1 }
0x172f   :  { %v9103_v31 = vmul.f32 -1.442695, %v7871_v11  ;;  %v7829_v18 = vpop.f32.mrb[143].mxu1 }
0x1730   :  { %v9104_v23 = vmul.f32 -1.442695, %v7878_v10 }
0x1731   :  { %11351 = vpow2.f32 %v9103_v31 }
0x1732   :  { %11353 = vpow2.f32 %v9104_v23 }
0x173b   :  { %v11352_v12 = vpop.eup %11351 }
0x173c   :  { %v7875_v37 = vadd.f32 1.0, %v11352_v12  ;;  %v11354_v9 = vpop.eup %11353 }
0x173d   :  { %v7882_v38 = vadd.f32 1.0, %v11354_v9 }
0x173e   :  { %11355 = vrcp.f32 %v7875_v37 }
0x173f   :  { %11357 = vrcp.f32 %v7882_v38  ;;  %v9155_v38 = vld [vmem:[%s14887_s12] ss:$0 sm:$0xff] }
0x1748   :  { %v11356_v39 = vpop.eup %11355 }
0x1749   :  { %v11358_v4 = vpop.eup %11357 }
0x174a   :  { %v7889_v7 = vsub.f32 1.0, %v11358_v4  ;;  %v7891_v25 = vmul.f32 %v11358_v4, %v14701_v35  ;;  %v14968_v35 = vld [vmem:[#allocation27_spill] sm:$0xff] }
0x174b   :  { %v3775_v19 = vadd.f32 %v14968_v35, %v12986_v32  ;;  %v14969_v32 = vld [vmem:[#allocation39_spill] sm:$0xff] }
0x174c   :  { %v7865_v26 = vpop.f32.mrb[172].mxu0  ;;  %v3886_v11 = vadd.f32 %v14969_v32, %v12998_v49  ;;  %v11180_v49 = vld [vmem:[%s14886_s14 + $0x18] sm:$0xff]  }
0x174d   :  { %v7885_v8 = vadd.f32 %v14614_v50, %v7865_v26  ;;  %v10284_v40 = vpop.f32.mrb[173].mxu0 }
0x174e   :  { %v7868_v52 = vpop.f32.mrb[174].mxu0 }
0x174f   :  { %v7886_v33 = vmul.f32 %v11356_v39, %v7885_v8  ;;  %v10285_v2 = vpop.f32.mrb[175].mxu0  ;;  %v9156_v8 = vld [vmem:[%s14888_s13] ss:$0 sm:$0xff] }
0x1750   :  { %v9157_v2 = vld [vmem:[%s14889_s15] ss:$0 sm:$0xff] }
0x1751   :  { %v7887_v27 = vadd.f32 %v7886_v33, %v3881_v1 }
0x1753   :  { %11359 = vtanh.f32 %v7887_v27 }
0x175d   :  { %v11360_v34 = vpop.eup %11359 }
0x175e   :  { %v7890_v36 = vmul.f32 %v11360_v34, %v7889_v7 }
0x1760   :  { %v14783_v41 = vadd.f32 %v7891_v25, %v7890_v36 }
0x1762   :  { %v7893_v14 = vpack.c.bf16 %v14783_v41, %v14783_v41 }
0x1764   :  { %10303 = vmatmul.mubr.bf16.vlgmr.msra.gmra.mrb[132].mxu0 %v7893_v14  ;;  %10323 = vmatmul.mubr.bf16.vlgmr.msra.gmra.mrb[144].mxu1 %v7893_v14 }
0x1765   :  { %8007 = vmatpush1.bf16.msra.mxu0 %v14405_v63  ;;  %8038 = vmatprep.mubr.bf16.mxu0 %v14934_v24  ;;  %v11169_v24 = vld [vmem:[%s14885_s11 + $0x480] sm:$0xff]   ;;  %v11170_v63 = vld [vmem:[%s14885_s11 + $0x488] sm:$0xff]  }
0x1766   :  { %8008 = vmatprep.subr.bf16.mxu0 %v14412_v3  ;;  %10354 = vmatprep.mubr.msk.bf16.mxu1 %vm11450_vm1, %v14933_v17  ;;  %v11171_v3 = vld [vmem:[%s14885_s11 + $0x490] sm:$0xff]  }
0x1769   :  { %8009 = vmatpush1.bf16.msra.mxu0 %v14418_v51  ;;  %v11172_v51 = vld [vmem:[%s14885_s11 + $0x498] sm:$0xff]  }
0x176a   :  { %8010 = vmatprep.subr.bf16.mxu0 %v14424_v57  ;;  %v11173_v57 = vld [vmem:[%s14885_s11 + $0x4a0] sm:$0xff]  }
0x176d   :  { %8011 = vmatpush1.bf16.msra.mxu0 %v14430_v21  ;;  %v11174_v21 = vld [vmem:[%s14885_s11 + $0x4a8] sm:$0xff]  }
0x176e   :  { %8012 = vmatprep.subr.bf16.mxu0 %v14436_v42  ;;  %v11175_v42 = vld [vmem:[%s14885_s11 + $0x4b0] sm:$0xff]  }
0x1771   :  { %8013 = vmatpush1.bf16.msra.mxu0 %v14442_v22  ;;  %v11176_v22 = vld [vmem:[%s14885_s11 + $0x4b8] sm:$0xff]  }
0x1772   :  { %8014 = vmatprep.subr.bf16.mxu0 %v14448_v60  ;;  %v11177_v60 = vld [vmem:[%s14886_s14] sm:$0xff]  }
0x1773   :  { %10347 = vmatpush3.bf16.msra.mxu1 %v11177_v60 }
0x1774   :  { %10348 = vmatprep.subr.bf16.mxu1 %v14933_v17 }
0x1775   :  { %8015 = vmatpush1.bf16.msra.mxu0 %v14454_v16  ;;  %v11178_v16 = vld [vmem:[%s14886_s14 + $0x8] sm:$0xff]  }
0x1776   :  { %8016 = vmatprep.subr.bf16.mxu0 %v14460_v58 }
0x1777   :  { %10349 = vmatpush3.bf16.msra.mxu1 %v11178_v16 }
0x1778   :  { %10350 = vmatprep.subr.bf16.mxu1 %v14933_v17 }
0x1779   :  { %8017 = vmatpush1.bf16.msra.mxu0 %v14466_v62 }
0x177a   :  { %8018 = vmatprep.subr.bf16.mxu0 %v14472_v46 }
0x177d   :  { %8019 = vmatpush1.bf16.msra.mxu0 %v14478_v29 }
0x177e   :  { %8020 = vmatprep.subr.bf16.mxu0 %v14484_v47  ;;  %v14967_v47 = vld [vmem:[#allocation26_spill] sm:$0xff] }
0x1781   :  { %8021 = vmatpush1.bf16.msra.mxu0 %v14490_v0  ;;  %v3773_v0 = vadd.f32 %v14967_v47, %v12983_v43 }
0x1782   :  { %10326 = vmatprep.subr.bf16.mxu0 %v14933_v17 }
0x1784   :  { %8039 = vmatmul.mubr.bf16.vlgmr.msra.gmra.mrb[176].mxu0 %v7893_v14 }
0x1785   :  { %10342 = vmatprep.mubr.msk.bf16.mxu0 %vm11450_vm1, %v14933_v17  ;;  %10327 = vmatpush3.bf16.msra.mxu0 %v11169_v24 }
0x1786   :  { %10328 = vmatprep.subr.bf16.mxu0 %v14933_v17 }
0x1789   :  { %10329 = vmatpush3.bf16.msra.mxu0 %v11170_v63 }
0x178a   :  { %10330 = vmatprep.subr.bf16.mxu0 %v14933_v17 }
0x178d   :  { %10331 = vmatpush3.bf16.msra.mxu0 %v11171_v3 }
0x178e   :  { %10332 = vmatprep.subr.bf16.mxu0 %v14933_v17 }
0x1791   :  { %10333 = vmatpush3.bf16.msra.mxu0 %v11172_v51 }
0x1792   :  { %10334 = vmatprep.subr.bf16.mxu0 %v14933_v17 }
0x1795   :  { %10335 = vmatpush3.bf16.msra.mxu0 %v11173_v57 }
0x1796   :  { %10336 = vmatprep.subr.bf16.mxu0 %v14933_v17 }
0x1799   :  { %10337 = vmatpush3.bf16.msra.mxu0 %v11174_v21 }
0x179a   :  { %10338 = vmatprep.subr.bf16.mxu0 %v14933_v17 }
0x179d   :  { %10339 = vmatpush3.bf16.msra.mxu0 %v11175_v42 }
0x179e   :  { %10340 = vmatprep.subr.bf16.mxu0 %v14933_v17 }
0x17a1   :  { %10341 = vmatpush3.bf16.msra.mxu0 %v11176_v22 }
0x1837   :  { %v8081_v58 = vpop.f32.mrb[144].mxu1 }
0x1838   :  { %v10324_v62 = vpop.f32.mrb[145].mxu1  ;;  %v8101_v43 = vadd.f32 %v14614_v50, %v8081_v58  ;;  %v11179_v50 = vld [vmem:[%s14886_s14 + $0x10] sm:$0xff]  }
0x1839   :  { %v8084_v46 = vpop.f32.mrb[146].mxu1  ;;  %10351 = vmatpush3.bf16.msra.mxu1 %v11179_v50 }
0x183a   :  { %v10325_v29 = vpop.f32.mrb[147].mxu1  ;;  %10352 = vmatprep.subr.bf16.mxu1 %v14933_v17 }
0x183d   :  { %10353 = vmatpush3.bf16.msra.mxu1 %v11180_v49 }
0x1857   :  { %v8040_v6 = vpop.f32.mrb[176].mxu0 }
0x1858   :  { %v8087_v48 = vadd.f32 %v8040_v6, %v3773_v0  ;;  %v8042_v30 = vpop.f32.mrb[177].mxu0 }
0x1859   :  { %v8094_v28 = vadd.f32 %v8042_v30, %v3775_v19  ;;  %v8044_v55 = vpop.f32.mrb[178].mxu0 }
0x185a   :  { %v9129_v5 = vmul.f32 -1.442695, %v8087_v48  ;;  %v8045_v15 = vpop.f32.mrb[179].mxu0 }
0x185b   :  { %v9130_v59 = vmul.f32 -1.442695, %v8094_v28 }
0x185c   :  { %11361 = vpow2.f32 %v9129_v5 }
0x185d   :  { %11363 = vpow2.f32 %v9130_v59 }
0x1866   :  { %v11362_v54 = vpop.eup %11361 }
0x1867   :  { %v8091_v20 = vadd.f32 1.0, %v11362_v54  ;;  %v11364_v53 = vpop.eup %11363 }
0x1868   :  { %v8098_v45 = vadd.f32 1.0, %v11364_v53 }
0x1869   :  { %11365 = vrcp.f32 %v8091_v20 }
0x186a   :  { %11367 = vrcp.f32 %v8098_v45 }
0x1873   :  { %v11366_v56 = vpop.eup %11365 }
0x1874   :  { %v8102_v61 = vmul.f32 %v11366_v56, %v8101_v43  ;;  %v11368_v44 = vpop.eup %11367 }
0x1875   :  { %v8105_v31 = vsub.f32 1.0, %v11368_v44  ;;  %v8107_v12 = vmul.f32 %v11368_v44, %v14783_v41 }
0x1876   :  { %v8103_v10 = vadd.f32 %v8102_v61, %v3886_v11 }
0x1878   :  { %11369 = vtanh.f32 %v8103_v10 }
0x1882   :  { %v11370_v18 = vpop.eup %11369 }
0x1883   :  { %v8106_v23 = vmul.f32 %v11370_v18, %v8105_v31 }
0x1885   :  { %v8108_v37 = vadd.f32 %v8107_v12, %v8106_v23 }
0x1887   :  { %v8109_v9 = vpack.c.bf16 %v8108_v37, %v8108_v37 }
0x1889   :  { %10343 = vmatmul.mubr.bf16.vlgmr.msra.gmra.mrb[132].mxu0 %v8109_v9 }
0x195c   :  { %v8209_v26 = vpop.f32.mrb[132].mxu0 }
0x195d   :  { %v8223_v40 = vmul.f32 %v9155_v38, %v8209_v26  ;;  %v10344_v39 = vpop.f32.mrb[133].mxu0 }
0x195e   :  { %v8212_v52 = vpop.f32.mrb[134].mxu0 }
0x195f   :  { %v8231_v13 = vadd.f32 %v9156_v8, %v8223_v40  ;;  %v10345_v1 = vpop.f32.mrb[135].mxu0 }
0x1961   :  { %v8232_v17 = vmax.f32 %v8231_v13, 0.0 }
0x1963   :  { %v8233_v33 = vpack.c.bf16 %v8232_v17, %v8232_v17 }
0x1965   :  { %10355 = vmatmul.mubr.msk.bf16.vlgmr.msra.gmra.mrb[148].mxu1 %vm8273_vm2, %v8233_v33 }
0x1a38   :  { %v8311_v27 = vpop.f32.mrb[148].mxu1 }
0x1a39   :  { %v8312_v4 = vadd.f32 %v9157_v2, %v8311_v27  ;;  %v10356_v7 = vpop.f32.mrb[149].mxu1 }
0x1a3a   :  { %v8314_v34 = vpop.f32.mrb[150].mxu1 }
0x1a3b   :  { %8318 = vst.msk [vmem:[%s14890_s16] sm:$0xff] %vm8317_vm3, %v8312_v4  ;;  %v10357_v36 = vpop.f32.mrb[151].mxu1 }

</bundles_post_ra>
